<compile_context>
chip_gen: v7x
topology: tpu7x:2x2x1
jax: 0.10.0
libtpu: 0.0.40
codegen_flags: <defaults>
</compile_context>

<pallas_src>
import functools

import jax
import jax.numpy as jnp
from jax.experimental import pallas as pl
from jax.experimental.pallas import tpu as pltpu


# --------------------------------------------------------------------------
# Pallas kernel: grouped fused  act(scale * (X[g] @ W[g]) + shift)
# --------------------------------------------------------------------------
def _fused_matmul_kernel(x_ref, w_ref, scale_ref, shift_ref, o_ref, acc_ref,
                         *, act, slope=0.01):
    @pl.when(pl.program_id(3) == 0)
    def _():
        acc_ref[...] = jnp.zeros_like(acc_ref)

    acc_ref[...] += jnp.dot(x_ref[0], w_ref[0],
                            preferred_element_type=jnp.float32)

    @pl.when(pl.program_id(3) == pl.num_programs(3) - 1)
    def _():
        y = acc_ref[...] * scale_ref[...] + shift_ref[...]
        if act == "leaky_relu":
            y = jnp.where(y >= 0, y, slope * y)
        elif act == "tanh":
            y = jnp.tanh(y)
        # act == "none": identity
        o_ref[0] = y.astype(o_ref.dtype)


def _pick_tile(dim, candidates):
    for c in candidates:
        if dim >= c and dim % c == 0:
            return c
    return dim  # fall back to the full dimension (always legal)


def fused_matmul_grouped(x, w, scale, shift, act, slope=0.01):
    """out[g] = act(scale * (x[g] @ w[g]) + shift)  with per-column scale/shift.

    x: (G, M, K), w: (G, K, N), scale/shift: (N,).  Returns (G, M, N) f32.
    Small N is lane-padded to a multiple of 128 and sliced back (padded
    columns get zero weights, scale=1, shift=0)."""
    G, M, K = x.shape
    G2, K2, N = w.shape
    assert G == G2 and K == K2

    Np = N if N % 128 == 0 else ((N + 127) // 128) * 128
    if Np != N:
        w = jnp.pad(w, ((0, 0), (0, 0), (0, Np - N)))
        scale = jnp.pad(scale, (0, Np - N), constant_values=1.0)
        shift = jnp.pad(shift, (0, Np - N))

    tm = _pick_tile(M, (1024, 512, 256, 128, 64, 32, 16, 8))
    tn = _pick_tile(Np, (512, 256, 128))
    tk = _pick_tile(K, (2048, 1024, 512, 256, 128))

    scale2 = scale.reshape(1, Np).astype(jnp.float32)
    shift2 = shift.reshape(1, Np).astype(jnp.float32)

    kernel = functools.partial(_fused_matmul_kernel, act=act, slope=slope)
    out = pl.pallas_call(
        kernel,
        out_shape=jax.ShapeDtypeStruct((G, M, Np), jnp.float32),
        grid_spec=pltpu.PrefetchScalarGridSpec(
            num_scalar_prefetch=0,
            grid=(G, M // tm, Np // tn, K // tk),
            in_specs=[
                pl.BlockSpec((1, tm, tk), lambda g, i, j, k: (g, i, k)),
                pl.BlockSpec((1, tk, tn), lambda g, i, j, k: (g, k, j)),
                pl.BlockSpec((1, tn), lambda g, i, j, k: (0, j)),
                pl.BlockSpec((1, tn), lambda g, i, j, k: (0, j)),
            ],
            out_specs=pl.BlockSpec((1, tm, tn), lambda g, i, j, k: (g, i, j)),
            scratch_shapes=[pltpu.VMEM((tm, tn), jnp.float32)],
        ),
        compiler_params=pltpu.CompilerParams(
            dimension_semantics=("parallel", "parallel", "parallel",
                                 "arbitrary"),
            vmem_limit_bytes=32 * 1024 * 1024),
    )(x.astype(jnp.bfloat16), w.astype(jnp.bfloat16), scale2, shift2)

    if Np != N:
        out = out[:, :, :N]
    return out


def fused_matmul(x, w, scale, shift, act, slope=0.01):
    """Ungrouped convenience wrapper: out = act(scale * (x @ w) + shift)."""
    return fused_matmul_grouped(x[None], w[None], scale, shift, act, slope)[0]


# --------------------------------------------------------------------------
# Conv / transposed-conv glue (patch build in plain JAX, matmul in Pallas)
# --------------------------------------------------------------------------
def _conv2d_fused(x_nhwc, w_mat, K, pad, scale, shift, act):
    """Regular stride-1 conv via im2col + fused Pallas matmul (bf16 patches)."""
    B, H, W, C = x_nhwc.shape
    x_bf = x_nhwc.astype(jnp.bfloat16)
    xp = jnp.pad(x_bf, ((0, 0), (pad, pad), (pad, pad), (0, 0)))
    OH = H + 2 * pad - K + 1
    OW = W + 2 * pad - K + 1
    taps = [xp[:, ky:ky + OH, kx:kx + OW, :]
            for ky in range(K) for kx in range(K)]
    patches = jnp.stack(taps, axis=3).reshape(B * OH * OW, K * K * C)
    out = fused_matmul(patches, w_mat, scale, shift, act)
    return out.reshape(B, OH, OW, -1)


def _deconv_s2_phase_fused(x_nhwc, wt, scale, shift, act):
    """ConvTranspose2d(K=4, stride=2, pad=1) as 4 sub-pixel phase convolutions.

    Each output phase (py, px) in {0,1}^2 is a 2x2-tap conv on the ORIGINAL
    (non-dilated) input with the weight sub-grid w_eq[py::2, px::2]; the four
    phase matmuls run as one grouped pallas_call (G = 4 grid axis)."""
    B, H, W, C = x_nhwc.shape
    Cin, Cout, K, _ = wt.shape
    assert K == 4 and Cin == C
    # equivalent forward-conv weight: spatial flip + channel transpose
    w_eq = jnp.transpose(wt[:, :, ::-1, ::-1], (2, 3, 0, 1))   # (K,K,Cin,Cout)
    x_bf = x_nhwc.astype(jnp.bfloat16)

    patch_list, weight_list = [], []
    for py in (0, 1):
        for px in (0, 1):
            xp = jnp.pad(x_bf, ((0, 0), (1 - py, py), (1 - px, px), (0, 0)))
            taps = [xp[:, dy:dy + H, dx:dx + W, :]
                    for dy in range(2) for dx in range(2)]
            patch_list.append(
                jnp.stack(taps, axis=3).reshape(B * H * W, 4 * C))
            weight_list.append(
                w_eq[py::2, px::2, :, :].reshape(4 * Cin, Cout))

    xg = jnp.stack(patch_list, axis=0)        # (4, B*H*W, 4*Cin) bf16
    wg = jnp.stack(weight_list, axis=0)       # (4, 4*Cin, Cout)
    out = fused_matmul_grouped(xg, wg, scale, shift, act)   # (4, B*H*W, Cout)

    # interleave the phases: out[py*2+px] -> rows 2m+py, cols 2n+px
    out = out.reshape(2, 2, B, H, W, Cout)
    out = out.transpose(2, 3, 0, 4, 1, 5).reshape(B, 2 * H, 2 * W, Cout)
    return out


def _conv_transpose2d_s1_fused(x_nhwc, wt, pad, scale, shift, act):
    """ConvTranspose2d with stride=1 == conv with flipped / transposed kernel."""
    Cin, Cout, K, _ = wt.shape
    w_eq = jnp.transpose(wt[:, :, ::-1, ::-1], (2, 3, 0, 1))
    w_mat = w_eq.reshape(K * K * Cin, Cout)
    return _conv2d_fused(x_nhwc, w_mat, K, K - 1 - pad, scale, shift, act)


def _bn_fold(gamma, beta, mean, var, bias, eps=1e-5):
    s = gamma * jax.lax.rsqrt(var + eps)
    return s, (bias - mean) * s + beta


# --------------------------------------------------------------------------
# Parameter init (deterministic, matches module __init__ shapes)
# --------------------------------------------------------------------------
def init_params(key, latent_dim, class_num, output_channel):
    ks = iter(jax.random.split(key, 32))

    def nrm(shape, std=0.05):
        return std * jax.random.normal(next(ks), shape, jnp.float32)

    def bn(n):
        return dict(
            g=1.0 + 0.02 * jax.random.normal(next(ks), (n,), jnp.float32),
            b=0.02 * jax.random.normal(next(ks), (n,), jnp.float32),
            m=0.02 * jax.random.normal(next(ks), (n,), jnp.float32),
            v=1.0 + 0.05 * jnp.abs(jax.random.normal(next(ks), (n,), jnp.float32)),
        )

    d_in = latent_dim + class_num
    p = {
        "emb":  nrm((class_num, class_num), 1.0),            # nn.Embedding
        "fc_w": nrm((256 * 4 * 4, d_in)),                    # nn.Linear (out, in)
        "fc_b": nrm((256 * 4 * 4,), 0.01),
        "bn0":  bn(256 * 4 * 4),
        "dc1_w": nrm((256, 128, 4, 4)), "dc1_b": nrm((128,), 0.01), "bn1": bn(128),
        "dc2_w": nrm((128, 128, 4, 4)), "dc2_b": nrm((128,), 0.01), "bn2": bn(128),
        "dc3_w": nrm((128, 128, 4, 4)), "dc3_b": nrm((128,), 0.01), "bn3": bn(128),
        "dc4_w": nrm((128, output_channel, 3, 3)),
        "dc4_b": nrm((output_channel,), 0.01),
    }
    return p


# --------------------------------------------------------------------------
# Forward pass
# --------------------------------------------------------------------------
def generator_forward(p, noise, labels):
    # label embedding (tiny gather -> plain JAX glue) + concat
    emb = jnp.take(p["emb"], labels, axis=0)
    x = jnp.concatenate([noise, emb], axis=1)                  # (B, latent+class)

    # fc: Linear + BatchNorm1d + LeakyReLU (fused Pallas matmul).
    # Fold the NCHW->NHWC transpose into the fc weight column order so the
    # matmul directly emits (B,4,4,256)-ordered features.
    s, sh = _bn_fold(p["bn0"]["g"], p["bn0"]["b"], p["bn0"]["m"],
                     p["bn0"]["v"], p["fc_b"])
    perm = jnp.arange(256 * 4 * 4).reshape(256, 4, 4).transpose(1, 2, 0).reshape(-1)
    w_fc = p["fc_w"].T[:, perm]                                # (d_in, 4096)
    x = fused_matmul(x, w_fc, s[perm], sh[perm], act="leaky_relu")
    B = x.shape[0]
    x = x.reshape(B, 4, 4, 256)                                # NHWC

    # three ConvTranspose2d(.,.,4,2,1) + BN2d + LeakyReLU (phase-decomposed)
    for i in (1, 2, 3):
        bn = p[f"bn{i}"]
        s, sh = _bn_fold(bn["g"], bn["b"], bn["m"], bn["v"], p[f"dc{i}_b"])
        x = _deconv_s2_phase_fused(x, p[f"dc{i}_w"], s, sh, act="leaky_relu")

    # final ConvTranspose2d(128, out_ch, 3, 1, 1) + Tanh (no BN);
    # Cout is lane-padded to 128 inside fused_matmul_grouped and sliced back.
    cout = p["dc4_w"].shape[1]
    x = _conv_transpose2d_s1_fused(x, p["dc4_w"], pad=1,
                                   scale=jnp.ones((cout,), jnp.float32),
                                   shift=p["dc4_b"], act="tanh")

    return x.transpose(0, 3, 1, 2)                             # NCHW


# --------------------------------------------------------------------------
if __name__ == "__main__":
    # small, module-consistent shapes
    batch = 2
    latent_dim = 32
    class_num = 8
    inputsize = (3, 32)           # (output_channel, input_size)
    output_channel = inputsize[0]

    key = jax.random.PRNGKey(0)
    kp, kn, kl = jax.random.split(key, 3)

    params = init_params(kp, latent_dim, class_num, output_channel)
    noise = jax.random.normal(kn, (batch, latent_dim), jnp.float32)
    labels = jax.random.randint(kl, (batch,), 0, class_num, jnp.int32)

    fwd = jax.jit(generator_forward)
    out = fwd(params, noise, labels)
    out = jax.block_until_ready(out)

    assert out.shape == (batch, output_channel, 32, 32), out.shape
    assert bool(jnp.all(jnp.isfinite(out)))
    assert bool(jnp.all(jnp.abs(out) <= 1.0))   # tanh range
    print("KERNEL_OK")
</pallas_src>

<mosaic_0001>
module attributes {stable_mosaic.version = 11 : i64} {
  func.func private @main(%arg0: i32) attributes {dimension_semantics = [#tpu.dimension_semantics<core_parallel>], iteration_bounds = array<i64: 2>, tpu.core_type = #tpu.core_type<sc_scalar_subcore>, window_params = []} {
    return
  }
}

module attributes {stable_mosaic.version = 11 : i64} {
  func.func private @main(%arg0: i32) attributes {dimension_semantics = [#tpu.dimension_semantics<core_parallel>], iteration_bounds = array<i64: 2>, tpu.core_type = #tpu.core_type<sc_scalar_subcore>, window_params = []} {
    return
  }
}

module attributes {stable_mosaic.version = 11 : i64} {
  func.func @_fused_matmul_kernel(%arg0: i32, %arg1: i32, %arg2: i32, %arg3: i32, %arg4: memref<1x2x40xbf16, #tpu.memory_space<vmem>>, %arg5: memref<1x40x512xbf16, #tpu.memory_space<vmem>>, %arg6: memref<1x512xf32, #tpu.memory_space<vmem>>, %arg7: memref<1x512xf32, #tpu.memory_space<vmem>>, %arg8: memref<1x2x512xf32, #tpu.memory_space<vmem>>, %arg9: memref<2x512xf32, #tpu.memory_space<vmem>>) attributes {dimension_semantics = [#tpu.dimension_semantics<parallel>, #tpu.dimension_semantics<parallel>, #tpu.dimension_semantics<parallel>, #tpu.dimension_semantics<arbitrary>], iteration_bounds = array<i64: 1, 1, 8, 1>, scalar_prefetch = 0 : i64, scratch_operands = 1 : i64, tpu.core_type = #tpu.core_type<tc>, window_params = [{transform_indices = @transform_0, window_bounds = array<i64: 1, 2, 40>}, {transform_indices = @transform_1, window_bounds = array<i64: 1, 40, 512>}, {transform_indices = @transform_2, window_bounds = array<i64: 1, 512>}, {transform_indices = @transform_3, window_bounds = array<i64: 1, 512>}, {transform_indices = @transform_4, window_bounds = array<i64: 1, 2, 512>}]} {
    %c0_i32 = arith.constant 0 : i32
    %0 = arith.cmpi eq, %arg3, %c0_i32 : i32
    %1 = arith.extui %0 : i1 to i32
    %c0_i32_0 = arith.constant 0 : i32
    %2 = arith.cmpi ne, %1, %c0_i32_0 : i32
    scf.if %2 {
      %cst_12 = arith.constant 0.000000e+00 : f32
      %14 = vector.broadcast %cst_12 : f32 to vector<2x512xf32>
      %c0_13 = arith.constant 0 : index
      %c0_14 = arith.constant 0 : index
      %15 = vector.load %arg9[%c0_13, %c0_14] : memref<2x512xf32, #tpu.memory_space<vmem>>, vector<2x512xf32>
      tpu.vector_store %arg9[%c0_13, %c0_14], %14 {strides = array<i32>} : memref<2x512xf32, #tpu.memory_space<vmem>>, vector<2x512xf32>,
    } else {
    }
    %c0 = arith.constant 0 : index
    %c0_1 = arith.constant 0 : index
    %3 = vector.load %arg9[%c0, %c0_1] : memref<2x512xf32, #tpu.memory_space<vmem>>, vector<2x512xf32>
    %c0_2 = arith.constant 0 : index
    %c0_3 = arith.constant 0 : index
    %c0_4 = arith.constant 0 : index
    %4 = vector.load %arg4[%c0_2, %c0_3, %c0_4] : memref<1x2x40xbf16, #tpu.memory_space<vmem>>, vector<1x2x40xbf16>
    %5 = vector.shape_cast %4 : vector<1x2x40xbf16> to vector<2x40xbf16>
    %c0_5 = arith.constant 0 : index
    %c0_6 = arith.constant 0 : index
    %c0_7 = arith.constant 0 : index
    %6 = vector.load %arg5[%c0_5, %c0_6, %c0_7] : memref<1x40x512xbf16, #tpu.memory_space<vmem>>, vector<1x40x512xbf16>
    %7 = vector.shape_cast %6 : vector<1x40x512xbf16> to vector<40x512xbf16>
    %cst = arith.constant dense<0.000000e+00> : vector<2x512xf32>
    %8 = tpu.matmul %5, %7, %cst {dimension_numbers = #tpu.dot_dimension_numbers<[1], [0], [0], [1], [0, 0, 1, 1], [], []>} : vector<2x40xbf16>, vector<40x512xbf16>, vector<2x512xf32> -> vector<2x512xf32>
    %9 = arith.addf %3, %8 : vector<2x512xf32>
    %c0_8 = arith.constant 0 : index
    %c0_9 = arith.constant 0 : index
    %10 = vector.load %arg9[%c0_8, %c0_9] : memref<2x512xf32, #tpu.memory_space<vmem>>, vector<2x512xf32>
    tpu.vector_store %arg9[%c0_8, %c0_9], %9 {strides = array<i32>} : memref<2x512xf32, #tpu.memory_space<vmem>>, vector<2x512xf32>,
    %c0_i32_10 = arith.constant 0 : i32
    %11 = arith.cmpi eq, %arg3, %c0_i32_10 : i32
    %12 = arith.extui %11 : i1 to i32
    %c0_i32_11 = arith.constant 0 : i32
    %13 = arith.cmpi ne, %12, %c0_i32_11 : i32
    scf.if %13 {
      %c0_12 = arith.constant 0 : index
      %c0_13 = arith.constant 0 : index
      %14 = vector.load %arg9[%c0_12, %c0_13] : memref<2x512xf32, #tpu.memory_space<vmem>>, vector<2x512xf32>
      %c0_14 = arith.constant 0 : index
      %c0_15 = arith.constant 0 : index
      %15 = vector.load %arg6[%c0_14, %c0_15] : memref<1x512xf32, #tpu.memory_space<vmem>>, vector<1x512xf32>
      %16 = vector.broadcast %15 : vector<1x512xf32> to vector<2x512xf32>
      %17 = arith.mulf %14, %16 : vector<2x512xf32>
      %c0_16 = arith.constant 0 : index
      %c0_17 = arith.constant 0 : index
      %18 = vector.load %arg7[%c0_16, %c0_17] : memref<1x512xf32, #tpu.memory_space<vmem>>, vector<1x512xf32>
      %19 = vector.broadcast %18 : vector<1x512xf32> to vector<2x512xf32>
      %20 = arith.addf %17, %19 : vector<2x512xf32>
      %cst_18 = arith.constant 0.000000e+00 : f32
      %21 = vector.broadcast %cst_18 : f32 to vector<2x512xf32>
      %22 = arith.cmpf oge, %20, %21 : vector<2x512xf32>
      %cst_19 = arith.constant 0.00999999977 : f32
      %23 = vector.broadcast %cst_19 : f32 to vector<2x512xf32>
      %24 = arith.mulf %23, %20 : vector<2x512xf32>
      %25 = arith.select %22, %20, %24 : vector<2x512xi1>, vector<2x512xf32>
      %c0_20 = arith.constant 0 : index
      %c0_21 = arith.constant 0 : index
      %c0_22 = arith.constant 0 : index
      %26 = vector.load %arg8[%c0_20, %c0_21, %c0_22] : memref<1x2x512xf32, #tpu.memory_space<vmem>>, vector<1x2x512xf32>
      %27 = vector.shape_cast %26 : vector<1x2x512xf32> to vector<2x512xf32>
      %28 = vector.shape_cast %25 : vector<2x512xf32> to vector<1x2x512xf32>
      tpu.vector_store %arg8[%c0_20, %c0_21, %c0_22], %28 {strides = array<i32>} : memref<1x2x512xf32, #tpu.memory_space<vmem>>, vector<1x2x512xf32>,
    } else {
    }
    return
  }
  func.func @transform_0(%arg0: i32, %arg1: i32, %arg2: i32, %arg3: i32) -> (i32, i32, i32) {
    %c0_i32 = arith.constant 0 : i32
    return %arg0, %arg1, %arg3 : i32, i32, i32
  }
  func.func @transform_1(%arg0: i32, %arg1: i32, %arg2: i32, %arg3: i32) -> (i32, i32, i32) {
    %c0_i32 = arith.constant 0 : i32
    return %arg0, %arg3, %arg2 : i32, i32, i32
  }
  func.func @transform_2(%arg0: i32, %arg1: i32, %arg2: i32, %arg3: i32) -> (i32, i32) {
    %c0_i32 = arith.constant 0 : i32
    %c0_i32_0 = arith.constant 0 : i32
    return %c0_i32, %arg2 : i32, i32
  }
  func.func @transform_3(%arg0: i32, %arg1: i32, %arg2: i32, %arg3: i32) -> (i32, i32) {
    %c0_i32 = arith.constant 0 : i32
    %c0_i32_0 = arith.constant 0 : i32
    return %c0_i32, %arg2 : i32, i32
  }
  func.func @transform_4(%arg0: i32, %arg1: i32, %arg2: i32, %arg3: i32) -> (i32, i32, i32) {
    %c0_i32 = arith.constant 0 : i32
    return %arg0, %arg1, %arg2 : i32, i32, i32
  }
}

module attributes {stable_mosaic.version = 11 : i64} {
  func.func @_fused_matmul_kernel(%arg0: i32, %arg1: i32, %arg2: i32, %arg3: i32, %arg4: memref<1x32x1024xbf16, #tpu.memory_space<vmem>>, %arg5: memref<1x1024x128xbf16, #tpu.memory_space<vmem>>, %arg6: memref<1x128xf32, #tpu.memory_space<vmem>>, %arg7: memref<1x128xf32, #tpu.memory_space<vmem>>, %arg8: memref<1x32x128xf32, #tpu.memory_space<vmem>>, %arg9: memref<32x128xf32, #tpu.memory_space<vmem>>) attributes {dimension_semantics = [#tpu.dimension_semantics<parallel>, #tpu.dimension_semantics<parallel>, #tpu.dimension_semantics<parallel>, #tpu.dimension_semantics<arbitrary>], iteration_bounds = array<i64: 4, 1, 1, 1>, scalar_prefetch = 0 : i64, scratch_operands = 1 : i64, tpu.core_type = #tpu.core_type<tc>, window_params = [{transform_indices = @transform_0, window_bounds = array<i64: 1, 32, 1024>}, {transform_indices = @transform_1, window_bounds = array<i64: 1, 1024, 128>}, {transform_indices = @transform_2, window_bounds = array<i64: 1, 128>}, {transform_indices = @transform_3, window_bounds = array<i64: 1, 128>}, {transform_indices = @transform_4, window_bounds = array<i64: 1, 32, 128>}]} {
    %c0_i32 = arith.constant 0 : i32
    %0 = arith.cmpi eq, %arg3, %c0_i32 : i32
    %1 = arith.extui %0 : i1 to i32
    %c0_i32_0 = arith.constant 0 : i32
    %2 = arith.cmpi ne, %1, %c0_i32_0 : i32
    scf.if %2 {
      %cst_12 = arith.constant 0.000000e+00 : f32
      %14 = vector.broadcast %cst_12 : f32 to vector<32x128xf32>
      %c0_13 = arith.constant 0 : index
      %c0_14 = arith.constant 0 : index
      %15 = vector.load %arg9[%c0_13, %c0_14] : memref<32x128xf32, #tpu.memory_space<vmem>>, vector<32x128xf32>
      tpu.vector_store %arg9[%c0_13, %c0_14], %14 {strides = array<i32>} : memref<32x128xf32, #tpu.memory_space<vmem>>, vector<32x128xf32>,
    } else {
    }
    %c0 = arith.constant 0 : index
    %c0_1 = arith.constant 0 : index
    %3 = vector.load %arg9[%c0, %c0_1] : memref<32x128xf32, #tpu.memory_space<vmem>>, vector<32x128xf32>
    %c0_2 = arith.constant 0 : index
    %c0_3 = arith.constant 0 : index
    %c0_4 = arith.constant 0 : index
    %4 = vector.load %arg4[%c0_2, %c0_3, %c0_4] : memref<1x32x1024xbf16, #tpu.memory_space<vmem>>, vector<1x32x1024xbf16>
    %5 = vector.shape_cast %4 : vector<1x32x1024xbf16> to vector<32x1024xbf16>
    %c0_5 = arith.constant 0 : index
    %c0_6 = arith.constant 0 : index
    %c0_7 = arith.constant 0 : index
    %6 = vector.load %arg5[%c0_5, %c0_6, %c0_7] : memref<1x1024x128xbf16, #tpu.memory_space<vmem>>, vector<1x1024x128xbf16>
    %7 = vector.shape_cast %6 : vector<1x1024x128xbf16> to vector<1024x128xbf16>
    %cst = arith.constant dense<0.000000e+00> : vector<32x128xf32>
    %8 = tpu.matmul %5, %7, %cst {dimension_numbers = #tpu.dot_dimension_numbers<[1], [0], [0], [1], [0, 0, 1, 1], [], []>} : vector<32x1024xbf16>, vector<1024x128xbf16>, vector<32x128xf32> -> vector<32x128xf32>
    %9 = arith.addf %3, %8 : vector<32x128xf32>
    %c0_8 = arith.constant 0 : index
    %c0_9 = arith.constant 0 : index
    %10 = vector.load %arg9[%c0_8, %c0_9] : memref<32x128xf32, #tpu.memory_space<vmem>>, vector<32x128xf32>
    tpu.vector_store %arg9[%c0_8, %c0_9], %9 {strides = array<i32>} : memref<32x128xf32, #tpu.memory_space<vmem>>, vector<32x128xf32>,
    %c0_i32_10 = arith.constant 0 : i32
    %11 = arith.cmpi eq, %arg3, %c0_i32_10 : i32
    %12 = arith.extui %11 : i1 to i32
    %c0_i32_11 = arith.constant 0 : i32
    %13 = arith.cmpi ne, %12, %c0_i32_11 : i32
    scf.if %13 {
      %c0_12 = arith.constant 0 : index
      %c0_13 = arith.constant 0 : index
      %14 = vector.load %arg9[%c0_12, %c0_13] : memref<32x128xf32, #tpu.memory_space<vmem>>, vector<32x128xf32>
      %c0_14 = arith.constant 0 : index
      %c0_15 = arith.constant 0 : index
      %15 = vector.load %arg6[%c0_14, %c0_15] : memref<1x128xf32, #tpu.memory_space<vmem>>, vector<1x128xf32>
      %16 = vector.broadcast %15 : vector<1x128xf32> to vector<32x128xf32>
      %17 = arith.mulf %14, %16 : vector<32x128xf32>
      %c0_16 = arith.constant 0 : index
      %c0_17 = arith.constant 0 : index
      %18 = vector.load %arg7[%c0_16, %c0_17] : memref<1x128xf32, #tpu.memory_space<vmem>>, vector<1x128xf32>
      %19 = vector.broadcast %18 : vector<1x128xf32> to vector<32x128xf32>
      %20 = arith.addf %17, %19 : vector<32x128xf32>
      %cst_18 = arith.constant 0.000000e+00 : f32
      %21 = vector.broadcast %cst_18 : f32 to vector<32x128xf32>
      %22 = arith.cmpf oge, %20, %21 : vector<32x128xf32>
      %cst_19 = arith.constant 0.00999999977 : f32
      %23 = vector.broadcast %cst_19 : f32 to vector<32x128xf32>
      %24 = arith.mulf %23, %20 : vector<32x128xf32>
      %25 = arith.select %22, %20, %24 : vector<32x128xi1>, vector<32x128xf32>
      %c0_20 = arith.constant 0 : index
      %c0_21 = arith.constant 0 : index
      %c0_22 = arith.constant 0 : index
      %26 = vector.load %arg8[%c0_20, %c0_21, %c0_22] : memref<1x32x128xf32, #tpu.memory_space<vmem>>, vector<1x32x128xf32>
      %27 = vector.shape_cast %26 : vector<1x32x128xf32> to vector<32x128xf32>
      %28 = vector.shape_cast %25 : vector<32x128xf32> to vector<1x32x128xf32>
      tpu.vector_store %arg8[%c0_20, %c0_21, %c0_22], %28 {strides = array<i32>} : memref<1x32x128xf32, #tpu.memory_space<vmem>>, vector<1x32x128xf32>,
    } else {
    }
    return
  }
  func.func @transform_0(%arg0: i32, %arg1: i32, %arg2: i32, %arg3: i32) -> (i32, i32, i32) {
    %c0_i32 = arith.constant 0 : i32
    return %arg0, %arg1, %arg3 : i32, i32, i32
  }
  func.func @transform_1(%arg0: i32, %arg1: i32, %arg2: i32, %arg3: i32) -> (i32, i32, i32) {
    %c0_i32 = arith.constant 0 : i32
    return %arg0, %arg3, %arg2 : i32, i32, i32
  }
  func.func @transform_2(%arg0: i32, %arg1: i32, %arg2: i32, %arg3: i32) -> (i32, i32) {
    %c0_i32 = arith.constant 0 : i32
    %c0_i32_0 = arith.constant 0 : i32
    return %c0_i32, %arg2 : i32, i32
  }
  func.func @transform_3(%arg0: i32, %arg1: i32, %arg2: i32, %arg3: i32) -> (i32, i32) {
    %c0_i32 = arith.constant 0 : i32
    %c0_i32_0 = arith.constant 0 : i32
    return %c0_i32, %arg2 : i32, i32
  }
  func.func @transform_4(%arg0: i32, %arg1: i32, %arg2: i32, %arg3: i32) -> (i32, i32, i32) {
    %c0_i32 = arith.constant 0 : i32
    return %arg0, %arg1, %arg2 : i32, i32, i32
  }
}

module attributes {stable_mosaic.version = 11 : i64} {
  func.func @_fused_matmul_kernel(%arg0: i32, %arg1: i32, %arg2: i32, %arg3: i32, %arg4: memref<1x128x512xbf16, #tpu.memory_space<vmem>>, %arg5: memref<1x512x128xbf16, #tpu.memory_space<vmem>>, %arg6: memref<1x128xf32, #tpu.memory_space<vmem>>, %arg7: memref<1x128xf32, #tpu.memory_space<vmem>>, %arg8: memref<1x128x128xf32, #tpu.memory_space<vmem>>, %arg9: memref<128x128xf32, #tpu.memory_space<vmem>>) attributes {dimension_semantics = [#tpu.dimension_semantics<parallel>, #tpu.dimension_semantics<parallel>, #tpu.dimension_semantics<parallel>, #tpu.dimension_semantics<arbitrary>], iteration_bounds = array<i64: 4, 1, 1, 1>, scalar_prefetch = 0 : i64, scratch_operands = 1 : i64, tpu.core_type = #tpu.core_type<tc>, window_params = [{transform_indices = @transform_0, window_bounds = array<i64: 1, 128, 512>}, {transform_indices = @transform_1, window_bounds = array<i64: 1, 512, 128>}, {transform_indices = @transform_2, window_bounds = array<i64: 1, 128>}, {transform_indices = @transform_3, window_bounds = array<i64: 1, 128>}, {transform_indices = @transform_4, window_bounds = array<i64: 1, 128, 128>}]} {
    %c0_i32 = arith.constant 0 : i32
    %0 = arith.cmpi eq, %arg3, %c0_i32 : i32
    %1 = arith.extui %0 : i1 to i32
    %c0_i32_0 = arith.constant 0 : i32
    %2 = arith.cmpi ne, %1, %c0_i32_0 : i32
    scf.if %2 {
      %cst_12 = arith.constant 0.000000e+00 : f32
      %14 = vector.broadcast %cst_12 : f32 to vector<128x128xf32>
      %c0_13 = arith.constant 0 : index
      %c0_14 = arith.constant 0 : index
      %15 = vector.load %arg9[%c0_13, %c0_14] : memref<128x128xf32, #tpu.memory_space<vmem>>, vector<128x128xf32>
      tpu.vector_store %arg9[%c0_13, %c0_14], %14 {strides = array<i32>} : memref<128x128xf32, #tpu.memory_space<vmem>>, vector<128x128xf32>,
    } else {
    }
    %c0 = arith.constant 0 : index
    %c0_1 = arith.constant 0 : index
    %3 = vector.load %arg9[%c0, %c0_1] : memref<128x128xf32, #tpu.memory_space<vmem>>, vector<128x128xf32>
    %c0_2 = arith.constant 0 : index
    %c0_3 = arith.constant 0 : index
    %c0_4 = arith.constant 0 : index
    %4 = vector.load %arg4[%c0_2, %c0_3, %c0_4] : memref<1x128x512xbf16, #tpu.memory_space<vmem>>, vector<1x128x512xbf16>
    %5 = vector.shape_cast %4 : vector<1x128x512xbf16> to vector<128x512xbf16>
    %c0_5 = arith.constant 0 : index
    %c0_6 = arith.constant 0 : index
    %c0_7 = arith.constant 0 : index
    %6 = vector.load %arg5[%c0_5, %c0_6, %c0_7] : memref<1x512x128xbf16, #tpu.memory_space<vmem>>, vector<1x512x128xbf16>
    %7 = vector.shape_cast %6 : vector<1x512x128xbf16> to vector<512x128xbf16>
    %cst = arith.constant dense<0.000000e+00> : vector<128x128xf32>
    %8 = tpu.matmul %5, %7, %cst {dimension_numbers = #tpu.dot_dimension_numbers<[1], [0], [0], [1], [0, 0, 1, 1], [], []>} : vector<128x512xbf16>, vector<512x128xbf16>, vector<128x128xf32> -> vector<128x128xf32>
    %9 = arith.addf %3, %8 : vector<128x128xf32>
    %c0_8 = arith.constant 0 : index
    %c0_9 = arith.constant 0 : index
    %10 = vector.load %arg9[%c0_8, %c0_9] : memref<128x128xf32, #tpu.memory_space<vmem>>, vector<128x128xf32>
    tpu.vector_store %arg9[%c0_8, %c0_9], %9 {strides = array<i32>} : memref<128x128xf32, #tpu.memory_space<vmem>>, vector<128x128xf32>,
    %c0_i32_10 = arith.constant 0 : i32
    %11 = arith.cmpi eq, %arg3, %c0_i32_10 : i32
    %12 = arith.extui %11 : i1 to i32
    %c0_i32_11 = arith.constant 0 : i32
    %13 = arith.cmpi ne, %12, %c0_i32_11 : i32
    scf.if %13 {
      %c0_12 = arith.constant 0 : index
      %c0_13 = arith.constant 0 : index
      %14 = vector.load %arg9[%c0_12, %c0_13] : memref<128x128xf32, #tpu.memory_space<vmem>>, vector<128x128xf32>
      %c0_14 = arith.constant 0 : index
      %c0_15 = arith.constant 0 : index
      %15 = vector.load %arg6[%c0_14, %c0_15] : memref<1x128xf32, #tpu.memory_space<vmem>>, vector<1x128xf32>
      %16 = vector.broadcast %15 : vector<1x128xf32> to vector<128x128xf32>
      %17 = arith.mulf %14, %16 : vector<128x128xf32>
      %c0_16 = arith.constant 0 : index
      %c0_17 = arith.constant 0 : index
      %18 = vector.load %arg7[%c0_16, %c0_17] : memref<1x128xf32, #tpu.memory_space<vmem>>, vector<1x128xf32>
      %19 = vector.broadcast %18 : vector<1x128xf32> to vector<128x128xf32>
      %20 = arith.addf %17, %19 : vector<128x128xf32>
      %cst_18 = arith.constant 0.000000e+00 : f32
      %21 = vector.broadcast %cst_18 : f32 to vector<128x128xf32>
      %22 = arith.cmpf oge, %20, %21 : vector<128x128xf32>
      %cst_19 = arith.constant 0.00999999977 : f32
      %23 = vector.broadcast %cst_19 : f32 to vector<128x128xf32>
      %24 = arith.mulf %23, %20 : vector<128x128xf32>
      %25 = arith.select %22, %20, %24 : vector<128x128xi1>, vector<128x128xf32>
      %c0_20 = arith.constant 0 : index
      %c0_21 = arith.constant 0 : index
      %c0_22 = arith.constant 0 : index
      %26 = vector.load %arg8[%c0_20, %c0_21, %c0_22] : memref<1x128x128xf32, #tpu.memory_space<vmem>>, vector<1x128x128xf32>
      %27 = vector.shape_cast %26 : vector<1x128x128xf32> to vector<128x128xf32>
      %28 = vector.shape_cast %25 : vector<128x128xf32> to vector<1x128x128xf32>
      tpu.vector_store %arg8[%c0_20, %c0_21, %c0_22], %28 {strides = array<i32>} : memref<1x128x128xf32, #tpu.memory_space<vmem>>, vector<1x128x128xf32>,
    } else {
    }
    return
  }
  func.func @transform_0(%arg0: i32, %arg1: i32, %arg2: i32, %arg3: i32) -> (i32, i32, i32) {
    %c0_i32 = arith.constant 0 : i32
    return %arg0, %arg1, %arg3 : i32, i32, i32
  }
  func.func @transform_1(%arg0: i32, %arg1: i32, %arg2: i32, %arg3: i32) -> (i32, i32, i32) {
    %c0_i32 = arith.constant 0 : i32
    return %arg0, %arg3, %arg2 : i32, i32, i32
  }
  func.func @transform_2(%arg0: i32, %arg1: i32, %arg2: i32, %arg3: i32) -> (i32, i32) {
    %c0_i32 = arith.constant 0 : i32
    %c0_i32_0 = arith.constant 0 : i32
    return %c0_i32, %arg2 : i32, i32
  }
  func.func @transform_3(%arg0: i32, %arg1: i32, %arg2: i32, %arg3: i32) -> (i32, i32) {
    %c0_i32 = arith.constant 0 : i32
    %c0_i32_0 = arith.constant 0 : i32
    return %c0_i32, %arg2 : i32, i32
  }
  func.func @transform_4(%arg0: i32, %arg1: i32, %arg2: i32, %arg3: i32) -> (i32, i32, i32) {
    %c0_i32 = arith.constant 0 : i32
    return %arg0, %arg1, %arg2 : i32, i32, i32
  }
}

module attributes {stable_mosaic.version = 11 : i64} {
  func.func @_fused_matmul_kernel(%arg0: i32, %arg1: i32, %arg2: i32, %arg3: i32, %arg4: memref<1x512x512xbf16, #tpu.memory_space<vmem>>, %arg5: memref<1x512x128xbf16, #tpu.memory_space<vmem>>, %arg6: memref<1x128xf32, #tpu.memory_space<vmem>>, %arg7: memref<1x128xf32, #tpu.memory_space<vmem>>, %arg8: memref<1x512x128xf32, #tpu.memory_space<vmem>>, %arg9: memref<512x128xf32, #tpu.memory_space<vmem>>) attributes {dimension_semantics = [#tpu.dimension_semantics<parallel>, #tpu.dimension_semantics<parallel>, #tpu.dimension_semantics<parallel>, #tpu.dimension_semantics<arbitrary>], iteration_bounds = array<i64: 4, 1, 1, 1>, scalar_prefetch = 0 : i64, scratch_operands = 1 : i64, tpu.core_type = #tpu.core_type<tc>, window_params = [{transform_indices = @transform_0, window_bounds = array<i64: 1, 512, 512>}, {transform_indices = @transform_1, window_bounds = array<i64: 1, 512, 128>}, {transform_indices = @transform_2, window_bounds = array<i64: 1, 128>}, {transform_indices = @transform_3, window_bounds = array<i64: 1, 128>}, {transform_indices = @transform_4, window_bounds = array<i64: 1, 512, 128>}]} {
    %c0_i32 = arith.constant 0 : i32
    %0 = arith.cmpi eq, %arg3, %c0_i32 : i32
    %1 = arith.extui %0 : i1 to i32
    %c0_i32_0 = arith.constant 0 : i32
    %2 = arith.cmpi ne, %1, %c0_i32_0 : i32
    scf.if %2 {
      %cst_12 = arith.constant 0.000000e+00 : f32
      %14 = vector.broadcast %cst_12 : f32 to vector<512x128xf32>
      %c0_13 = arith.constant 0 : index
      %c0_14 = arith.constant 0 : index
      %15 = vector.load %arg9[%c0_13, %c0_14] : memref<512x128xf32, #tpu.memory_space<vmem>>, vector<512x128xf32>
      tpu.vector_store %arg9[%c0_13, %c0_14], %14 {strides = array<i32>} : memref<512x128xf32, #tpu.memory_space<vmem>>, vector<512x128xf32>,
    } else {
    }
    %c0 = arith.constant 0 : index
    %c0_1 = arith.constant 0 : index
    %3 = vector.load %arg9[%c0, %c0_1] : memref<512x128xf32, #tpu.memory_space<vmem>>, vector<512x128xf32>
    %c0_2 = arith.constant 0 : index
    %c0_3 = arith.constant 0 : index
    %c0_4 = arith.constant 0 : index
    %4 = vector.load %arg4[%c0_2, %c0_3, %c0_4] : memref<1x512x512xbf16, #tpu.memory_space<vmem>>, vector<1x512x512xbf16>
    %5 = vector.shape_cast %4 : vector<1x512x512xbf16> to vector<512x512xbf16>
    %c0_5 = arith.constant 0 : index
    %c0_6 = arith.constant 0 : index
    %c0_7 = arith.constant 0 : index
    %6 = vector.load %arg5[%c0_5, %c0_6, %c0_7] : memref<1x512x128xbf16, #tpu.memory_space<vmem>>, vector<1x512x128xbf16>
    %7 = vector.shape_cast %6 : vector<1x512x128xbf16> to vector<512x128xbf16>
    %cst = arith.constant dense<0.000000e+00> : vector<512x128xf32>
    %8 = tpu.matmul %5, %7, %cst {dimension_numbers = #tpu.dot_dimension_numbers<[1], [0], [0], [1], [0, 0, 1, 1], [], []>} : vector<512x512xbf16>, vector<512x128xbf16>, vector<512x128xf32> -> vector<512x128xf32>
    %9 = arith.addf %3, %8 : vector<512x128xf32>
    %c0_8 = arith.constant 0 : index
    %c0_9 = arith.constant 0 : index
    %10 = vector.load %arg9[%c0_8, %c0_9] : memref<512x128xf32, #tpu.memory_space<vmem>>, vector<512x128xf32>
    tpu.vector_store %arg9[%c0_8, %c0_9], %9 {strides = array<i32>} : memref<512x128xf32, #tpu.memory_space<vmem>>, vector<512x128xf32>,
    %c0_i32_10 = arith.constant 0 : i32
    %11 = arith.cmpi eq, %arg3, %c0_i32_10 : i32
    %12 = arith.extui %11 : i1 to i32
    %c0_i32_11 = arith.constant 0 : i32
    %13 = arith.cmpi ne, %12, %c0_i32_11 : i32
    scf.if %13 {
      %c0_12 = arith.constant 0 : index
      %c0_13 = arith.constant 0 : index
      %14 = vector.load %arg9[%c0_12, %c0_13] : memref<512x128xf32, #tpu.memory_space<vmem>>, vector<512x128xf32>
      %c0_14 = arith.constant 0 : index
      %c0_15 = arith.constant 0 : index
      %15 = vector.load %arg6[%c0_14, %c0_15] : memref<1x128xf32, #tpu.memory_space<vmem>>, vector<1x128xf32>
      %16 = vector.broadcast %15 : vector<1x128xf32> to vector<512x128xf32>
      %17 = arith.mulf %14, %16 : vector<512x128xf32>
      %c0_16 = arith.constant 0 : index
      %c0_17 = arith.constant 0 : index
      %18 = vector.load %arg7[%c0_16, %c0_17] : memref<1x128xf32, #tpu.memory_space<vmem>>, vector<1x128xf32>
      %19 = vector.broadcast %18 : vector<1x128xf32> to vector<512x128xf32>
      %20 = arith.addf %17, %19 : vector<512x128xf32>
      %cst_18 = arith.constant 0.000000e+00 : f32
      %21 = vector.broadcast %cst_18 : f32 to vector<512x128xf32>
      %22 = arith.cmpf oge, %20, %21 : vector<512x128xf32>
      %cst_19 = arith.constant 0.00999999977 : f32
      %23 = vector.broadcast %cst_19 : f32 to vector<512x128xf32>
      %24 = arith.mulf %23, %20 : vector<512x128xf32>
      %25 = arith.select %22, %20, %24 : vector<512x128xi1>, vector<512x128xf32>
      %c0_20 = arith.constant 0 : index
      %c0_21 = arith.constant 0 : index
      %c0_22 = arith.constant 0 : index
      %26 = vector.load %arg8[%c0_20, %c0_21, %c0_22] : memref<1x512x128xf32, #tpu.memory_space<vmem>>, vector<1x512x128xf32>
      %27 = vector.shape_cast %26 : vector<1x512x128xf32> to vector<512x128xf32>
      %28 = vector.shape_cast %25 : vector<512x128xf32> to vector<1x512x128xf32>
      tpu.vector_store %arg8[%c0_20, %c0_21, %c0_22], %28 {strides = array<i32>} : memref<1x512x128xf32, #tpu.memory_space<vmem>>, vector<1x512x128xf32>,
    } else {
    }
    return
  }
  func.func @transform_0(%arg0: i32, %arg1: i32, %arg2: i32, %arg3: i32) -> (i32, i32, i32) {
    %c0_i32 = arith.constant 0 : i32
    return %arg0, %arg1, %arg3 : i32, i32, i32
  }
  func.func @transform_1(%arg0: i32, %arg1: i32, %arg2: i32, %arg3: i32) -> (i32, i32, i32) {
    %c0_i32 = arith.constant 0 : i32
    return %arg0, %arg3, %arg2 : i32, i32, i32
  }
  func.func @transform_2(%arg0: i32, %arg1: i32, %arg2: i32, %arg3: i32) -> (i32, i32) {
    %c0_i32 = arith.constant 0 : i32
    %c0_i32_0 = arith.constant 0 : i32
    return %c0_i32, %arg2 : i32, i32
  }
  func.func @transform_3(%arg0: i32, %arg1: i32, %arg2: i32, %arg3: i32) -> (i32, i32) {
    %c0_i32 = arith.constant 0 : i32
    %c0_i32_0 = arith.constant 0 : i32
    return %c0_i32, %arg2 : i32, i32
  }
  func.func @transform_4(%arg0: i32, %arg1: i32, %arg2: i32, %arg3: i32) -> (i32, i32, i32) {
    %c0_i32 = arith.constant 0 : i32
    return %arg0, %arg1, %arg2 : i32, i32, i32
  }
}

module attributes {stable_mosaic.version = 11 : i64} {
  func.func @_fused_matmul_kernel(%arg0: i32, %arg1: i32, %arg2: i32, %arg3: i32, %arg4: memref<1x1024x128xbf16, #tpu.memory_space<vmem>>, %arg5: memref<1x128x128xbf16, #tpu.memory_space<vmem>>, %arg6: memref<1x128xf32, #tpu.memory_space<vmem>>, %arg7: memref<1x128xf32, #tpu.memory_space<vmem>>, %arg8: memref<1x1024x128xf32, #tpu.memory_space<vmem>>, %arg9: memref<1024x128xf32, #tpu.memory_space<vmem>>) attributes {dimension_semantics = [#tpu.dimension_semantics<parallel>, #tpu.dimension_semantics<parallel>, #tpu.dimension_semantics<parallel>, #tpu.dimension_semantics<arbitrary>], iteration_bounds = array<i64: 1, 2, 1, 9>, scalar_prefetch = 0 : i64, scratch_operands = 1 : i64, tpu.core_type = #tpu.core_type<tc>, window_params = [{transform_indices = @transform_0, window_bounds = array<i64: 1, 1024, 128>}, {transform_indices = @transform_1, window_bounds = array<i64: 1, 128, 128>}, {transform_indices = @transform_2, window_bounds = array<i64: 1, 128>}, {transform_indices = @transform_3, window_bounds = array<i64: 1, 128>}, {transform_indices = @transform_4, window_bounds = array<i64: 1, 1024, 128>}]} {
    %c0_i32 = arith.constant 0 : i32
    %0 = arith.cmpi eq, %arg3, %c0_i32 : i32
    %1 = arith.extui %0 : i1 to i32
    %c0_i32_0 = arith.constant 0 : i32
    %2 = arith.cmpi ne, %1, %c0_i32_0 : i32
    scf.if %2 {
      %cst_11 = arith.constant 0.000000e+00 : f32
      %14 = vector.broadcast %cst_11 : f32 to vector<1024x128xf32>
      %c0_12 = arith.constant 0 : index
      %c0_13 = arith.constant 0 : index
      %15 = vector.load %arg9[%c0_12, %c0_13] : memref<1024x128xf32, #tpu.memory_space<vmem>>, vector<1024x128xf32>
      tpu.vector_store %arg9[%c0_12, %c0_13], %14 {strides = array<i32>} : memref<1024x128xf32, #tpu.memory_space<vmem>>, vector<1024x128xf32>,
    } else {
    }
    %c0 = arith.constant 0 : index
    %c0_1 = arith.constant 0 : index
    %3 = vector.load %arg9[%c0, %c0_1] : memref<1024x128xf32, #tpu.memory_space<vmem>>, vector<1024x128xf32>
    %c0_2 = arith.constant 0 : index
    %c0_3 = arith.constant 0 : index
    %c0_4 = arith.constant 0 : index
    %4 = vector.load %arg4[%c0_2, %c0_3, %c0_4] : memref<1x1024x128xbf16, #tpu.memory_space<vmem>>, vector<1x1024x128xbf16>
    %5 = vector.shape_cast %4 : vector<1x1024x128xbf16> to vector<1024x128xbf16>
    %c0_5 = arith.constant 0 : index
    %c0_6 = arith.constant 0 : index
    %c0_7 = arith.constant 0 : index
    %6 = vector.load %arg5[%c0_5, %c0_6, %c0_7] : memref<1x128x128xbf16, #tpu.memory_space<vmem>>, vector<1x128x128xbf16>
    %7 = vector.shape_cast %6 : vector<1x128x128xbf16> to vector<128x128xbf16>
    %cst = arith.constant dense<0.000000e+00> : vector<1024x128xf32>
    %8 = tpu.matmul %5, %7, %cst {dimension_numbers = #tpu.dot_dimension_numbers<[1], [0], [0], [1], [0, 0, 1, 1], [], []>} : vector<1024x128xbf16>, vector<128x128xbf16>, vector<1024x128xf32> -> vector<1024x128xf32>
    %9 = arith.addf %3, %8 : vector<1024x128xf32>
    %c0_8 = arith.constant 0 : index
    %c0_9 = arith.constant 0 : index
    %10 = vector.load %arg9[%c0_8, %c0_9] : memref<1024x128xf32, #tpu.memory_space<vmem>>, vector<1024x128xf32>
    tpu.vector_store %arg9[%c0_8, %c0_9], %9 {strides = array<i32>} : memref<1024x128xf32, #tpu.memory_space<vmem>>, vector<1024x128xf32>,
    %c8_i32 = arith.constant 8 : i32
    %11 = arith.cmpi eq, %arg3, %c8_i32 : i32
    %12 = arith.extui %11 : i1 to i32
    %c0_i32_10 = arith.constant 0 : i32
    %13 = arith.cmpi ne, %12, %c0_i32_10 : i32
    scf.if %13 {
      %c0_11 = arith.constant 0 : index
      %c0_12 = arith.constant 0 : index
      %14 = vector.load %arg9[%c0_11, %c0_12] : memref<1024x128xf32, #tpu.memory_space<vmem>>, vector<1024x128xf32>
      %c0_13 = arith.constant 0 : index
      %c0_14 = arith.constant 0 : index
      %15 = vector.load %arg6[%c0_13, %c0_14] : memref<1x128xf32, #tpu.memory_space<vmem>>, vector<1x128xf32>
      %16 = vector.broadcast %15 : vector<1x128xf32> to vector<1024x128xf32>
      %17 = arith.mulf %14, %16 : vector<1024x128xf32>
      %c0_15 = arith.constant 0 : index
      %c0_16 = arith.constant 0 : index
      %18 = vector.load %arg7[%c0_15, %c0_16] : memref<1x128xf32, #tpu.memory_space<vmem>>, vector<1x128xf32>
      %19 = vector.broadcast %18 : vector<1x128xf32> to vector<1024x128xf32>
      %20 = arith.addf %17, %19 : vector<1024x128xf32>
      %21 = math.tanh %20 : vector<1024x128xf32>
      %c0_17 = arith.constant 0 : index
      %c0_18 = arith.constant 0 : index
      %c0_19 = arith.constant 0 : index
      %22 = vector.load %arg8[%c0_17, %c0_18, %c0_19] : memref<1x1024x128xf32, #tpu.memory_space<vmem>>, vector<1x1024x128xf32>
      %23 = vector.shape_cast %22 : vector<1x1024x128xf32> to vector<1024x128xf32>
      %24 = vector.shape_cast %21 : vector<1024x128xf32> to vector<1x1024x128xf32>
      tpu.vector_store %arg8[%c0_17, %c0_18, %c0_19], %24 {strides = array<i32>} : memref<1x1024x128xf32, #tpu.memory_space<vmem>>, vector<1x1024x128xf32>,
    } else {
    }
    return
  }
  func.func @transform_0(%arg0: i32, %arg1: i32, %arg2: i32, %arg3: i32) -> (i32, i32, i32) {
    %c0_i32 = arith.constant 0 : i32
    return %arg0, %arg1, %arg3 : i32, i32, i32
  }
  func.func @transform_1(%arg0: i32, %arg1: i32, %arg2: i32, %arg3: i32) -> (i32, i32, i32) {
    %c0_i32 = arith.constant 0 : i32
    return %arg0, %arg3, %arg2 : i32, i32, i32
  }
  func.func @transform_2(%arg0: i32, %arg1: i32, %arg2: i32, %arg3: i32) -> (i32, i32) {
    %c0_i32 = arith.constant 0 : i32
    %c0_i32_0 = arith.constant 0 : i32
    return %c0_i32, %arg2 : i32, i32
  }
  func.func @transform_3(%arg0: i32, %arg1: i32, %arg2: i32, %arg3: i32) -> (i32, i32) {
    %c0_i32 = arith.constant 0 : i32
    %c0_i32_0 = arith.constant 0 : i32
    return %c0_i32, %arg2 : i32, i32
  }
  func.func @transform_4(%arg0: i32, %arg1: i32, %arg2: i32, %arg3: i32) -> (i32, i32, i32) {
    %c0_i32 = arith.constant 0 : i32
    return %arg0, %arg1, %arg2 : i32, i32, i32
  }
}

</mosaic_0001>

<bundles_post_ra>
// kernel: generator_forward.5
= control target key start
LH: loop header
LB: loop body
LE: loop exit
PB: predicated region body
PF: predicated region fallthrough
CT: control target
= control target key end

     0   :  { %9 = vsyncpa [#allocation5], 0  ;;  %s1270_s0 = inlined_call_operand.vmem [shape: bf16[1,2,40], index: 0, kind: input, shape index: {}]   ;;  %s1271_s1 = inlined_call_operand.vmem [shape: bf16[1,40,4096], index: 1, kind: input, shape index: {}]   ;;  %s1272_s2 = inlined_call_operand.hbm [shape: f32[1,4096], index: 2, kind: input, shape index: {}]   ;;  %s1273_s3 = inlined_call_operand.hbm [shape: f32[1,4096], index: 3, kind: input, shape index: {}]   ;;  %s1274_s4 = inlined_call_operand.vmem [shape: f32[1,2,4096], index: 4, kind: output, shape index: {}]  }
   0x1   :  { %11 = vsyncpa [#allocation5 + $0x1], 0 }
   0x2   :  { %12 = vsyncpa [#allocation7], 0 }
   0x3   :  { %14 = vsyncpa [#allocation7 + $0x1], 0  ;;  %s1111_s15 = smov 0   ;;  %s1113_s16 = smov 0  }
   0x4   :  { %s1115_s17 = smov 0   ;;  %s1117_s18 = smov 0  }
   0x5   :  { %s1119_s19 = smov 0   ;;  %s1121_s20 = smov 0  }
   0x6 LB: > { %s859_s21 = sadd.s32 4294967295, %s1080_s20   ;;  %s38_s22 = sadd.s32 1, %s1076_s19  ;;  %s1080_s20 = sphi %s1121_s20, %s20_s20   ;;  %s1076_s19 = sphi %s1119_s19, %s1283_s19   ;;  %s1072_s18 = sphi %s1117_s18, %s1282_s18   ;;  %s1068_s17 = sphi %s1115_s17, %s1281_s17   ;;  %s1064_s16 = sphi %s1113_s16, %s1280_s16   ;;  %s1060_s15 = sphi %s1111_s15, %s1279_s15  }
   0x7   : > { %p40_p0 = scmp.ge.s32.totalorder %s38_s22, 8  ;;  %s87_s23 = sadd.s32 1, %s1068_s17 }
   0x8   : > { %p94_p1 = scmp.ne.s32.totalorder %s1068_s17, %s1064_s16  ;;  %p95_p2 = scmp.eq.s32.totalorder %s1080_s20, 0 }
   0x9   : > { %s1285_s22 = smov (%p40_p0, %s38_s22), 0  ;;  %p126_p4 = scmp.ne.s32.totalorder %s1064_s16, %s1060_s15 }
   0xa   : > { %p1147_p3 = por %p95_p2, %p94_p1  ;;  %s83_s25 = ssub.s32 %s1076_s19, %s1285_s22 }
   0xb   : > { %p127_p5 = scmp.eq.s32.totalorder %s859_s21, 0  ;;  %p85_p6 = scmp.eq.s32.totalorder %s83_s25, 0 }
   0xc   : > { %p863_p8 = scmp.ge.s32.totalorder %s1080_s20, 8 }
   0xd   : > { %p1154_p7 = por %p127_p5, %p126_p4 }
   0xe   : > { %s1159_s27 = scalar_select %p85_p6, %s1068_s17, %s87_s23  }
   0xf   : > { %s1277_s26 = scalar_select %p1154_p7, 1, 0 }
  0x10   : > { %214 = sbr.rel (%p863_p8) target bundleno = 81 (0x51), region = 20 }
  0x17   : > { %217 = sbr.rel (!%p1147_p3) target bundleno = 32 (0x20), region = 24  ;;  %s219_s28 = sand.u32 (%p1147_p3), 1, %s1068_s17  }
  0x18   : > { %s895_s29 = sshll.u32 (%p1147_p3), %s1076_s19, 4  ;;  %s898_s30 = smul.u32 (%p1147_p3), 80, %s219_s28 }
  0x19   : > { %s229_s7 = scalar_lea.vmem (%p1147_p3), %s1271_s1, %s895_s29 }
  0x1a   : > { %v242_v0 = vld [vmem:[%s229_s7] sm:$0xff] (%p1147_p3)  ;;  %v244_v1 = vld [vmem:[%s229_s7 + $0x8] sm:$0xff] (%p1147_p3)  ;;  %s221_s8 = scalar_lea.vmem (%p1147_p3), [#allocation3], %s898_s30 }
  0x1b   : > { %v246_v2 = vld [vmem:[%s229_s7 + $0x80] sm:$0xff] (%p1147_p3)  ;;  %v248_v3 = vld [vmem:[%s229_s7 + $0x88] sm:$0xff] (%p1147_p3)  ;;  %243 = vst [vmem:[%s221_s8] sm:$0xff] (%p1147_p3), %v242_v0  ;;  %245 = vst [vmem:[%s221_s8 + $0x8] sm:$0xff] (%p1147_p3), %v244_v1 }
  0x1c   : > { %v250_v4 = vld [vmem:[%s229_s7 + $0x100] sm:$0xff] (%p1147_p3)  ;;  %v252_v5 = vld [vmem:[%s229_s7 + $0x108] sm:$0xff] (%p1147_p3)  ;;  %247 = vst [vmem:[%s221_s8 + $0x10] sm:$0xff] (%p1147_p3), %v246_v2  ;;  %249 = vst [vmem:[%s221_s8 + $0x18] sm:$0xff] (%p1147_p3), %v248_v3 }
  0x1d   : > { %251 = vst [vmem:[%s221_s8 + $0x20] sm:$0xff] (%p1147_p3), %v250_v4  ;;  %253 = vst [vmem:[%s221_s8 + $0x28] sm:$0xff] (%p1147_p3), %v252_v5  ;;  %v254_v6 = vld [vmem:[%s229_s7 + $0x180] sm:$0xff] (%p1147_p3)  ;;  %v256_v7 = vld [vmem:[%s229_s7 + $0x188] sm:$0xff] (%p1147_p3) }
  0x1e   : > { %v258_v8 = vld [vmem:[%s229_s7 + $0x200] sm:$0xff]  ;;  %255 = vst [vmem:[%s221_s8 + $0x30] sm:$0xff] %v254_v6  ;;  %257 = vst [vmem:[%s221_s8 + $0x38] sm:$0xff] %v256_v7  ;;  %v260_v9 = vld [vmem:[%s229_s7 + $0x208] sm:$0xff] }
  0x1f   : > { %259 = vst [vmem:[%s221_s8 + $0x40] sm:$0xff] %v258_v8  ;;  %261 = vst [vmem:[%s221_s8 + $0x48] sm:$0xff] %v260_v9 }
  0x20 PF: > { %s1170_s9 = sand.u32 1, %s1068_s17   ;;  %s896_s10 = sshll.u32 %s1076_s19, 6 }
  0x21   : > { %s866_s11 = sshll.u32 %s1170_s9, 2  ;;  %s1179_s14 = scalar_lea.hbm %s1272_s2, %s896_s10 }
  0x22   : > { %s272_s15 = scalar_lea.vmem [#allocation4], %s866_s11  ;;  %s269_s23 = scalar_lea.sflag [#allocation5], %s1170_s9 }
  0x23   : > { %s280_s21 = sshll.u32 %s272_s15, 4  ;;  %s970_s25 = scalar_lea.hbm %s1179_s14, 64  ;;  %s281_s21 = int_to_ptr.vmem [resolvable:$true] %s280_s21 }
  0x24   : > { %p971_p9 = scmp.ne.s32.totalorder %s1179_s14, %s970_s25  ;;  %s974_s30 = scalar_lea.hbm %s1272_s2, 512 }
  0x25   : > { %p975_p12 = scmp.lt.u32.totalorder %s1179_s14, %s1272_s2  ;;  %p976_p13 = scmp.lt.u32.totalorder %s974_s30, %s970_s25 }
  0x26   : > { %p972_p10 = pnand %p971_p9, %p1147_p3  ;;  %p978_p1 = scmp.lt.u32.totalorder %s970_s25, %s1179_s14 }
  0x27   : > { %p977_p0 = por %p976_p13, %p975_p12 }
  0x28   : > { %p973_p11 = pneg %p972_p10 }
  0x29   : > { %p979_p2 = por %p978_p1, %p977_p0 }
  0x2b   : > { %p980_p4 = pnand %p979_p2, %p973_p11 }
  0x2d   : > { %983 = shalt.err (!%p980_p4)
}
  0x2e   : > { %s984_s7 = scalar_lea.vmem %s281_s21, 64  ;;  %s1082_s8 = smov [#allocation4]  }
  0x2f   : > { %p985_p5 = scmp.ne.s32.totalorder %s281_s21, %s984_s7  ;;  %s988_s12 = sshll.u32 %s1082_s8, 4  ;;  %s989_s12 = int_to_ptr.vmem [resolvable:$false] %s988_s12 }
  0x30   : > { %s990_s13 = scalar_lea.vmem %s989_s12, 128  ;;  %p991_p9 = scmp.lt.s32.totalorder %s281_s21, %s989_s12 }
  0x31   : > { %p986_p6 = pnand %p985_p5, %p1147_p3  ;;  %p992_p10 = scmp.lt.s32.totalorder %s990_s13, %s984_s7 }
  0x33   : > { %p987_p8 = pneg %p986_p6  ;;  %p993_p7 = por %p992_p10, %p991_p9 }
  0x35   : > { %p994_p12 = pnand %p993_p7, %p987_p8 }
  0x37   : > { %997 = shalt.err (!%p994_p12)
}
  0x38   : > { %900 = dma.hbm_to_vmem [thread:$0]  (%p1147_p3), %s1179_s14, 64, %s281_s21, %s269_s23  }
  0x39   : > { %s1206_s28 = scalar_lea.hbm %s1273_s3, %s896_s10  ;;  %s291_s29 = scalar_lea.vmem [#allocation6], %s866_s11 }
  0x3a   : > { %s299_s30 = sshll.u32 %s291_s29, 4  ;;  %s288_s5 = scalar_lea.sflag [#allocation7], %s1170_s9  ;;  %s300_s30 = int_to_ptr.vmem [resolvable:$true] %s299_s30 }
  0x3b   : > { %s998_s6 = scalar_lea.hbm %s1206_s28, 64  ;;  %s1002_s23 = scalar_lea.hbm %s1273_s3, 512 }
  0x3c   : > { %p999_p7 = scmp.ne.s32.totalorder %s1206_s28, %s998_s6  ;;  %p1003_p0 = scmp.lt.u32.totalorder %s1206_s28, %s1273_s3 }
  0x3d   : > { %p1004_p1 = scmp.lt.u32.totalorder %s1002_s23, %s998_s6  ;;  %p1006_p4 = scmp.lt.u32.totalorder %s998_s6, %s1206_s28 }
  0x3e   : > { %p1000_p11 = pnand %p999_p7, %p1147_p3 }
  0x3f   : > { %p1005_p2 = por %p1004_p1, %p1003_p0 }
  0x40   : > { %p1001_p13 = pneg %p1000_p11 }
  0x41   : > { %p1007_p5 = por %p1006_p4, %p1005_p2 }
  0x43   : > { %p1008_p6 = pnand %p1007_p5, %p1001_p13 }
  0x45   : > { %1011 = shalt.err (!%p1008_p6)
}
  0x46   : > { %s1012_s9 = scalar_lea.vmem %s300_s30, 64  ;;  %s1083_s11 = smov [#allocation6]  }
  0x47   : > { %p1013_p8 = scmp.ne.s32.totalorder %s300_s30, %s1012_s9  ;;  %s1016_s8 = sshll.u32 %s1083_s11, 4  ;;  %s1017_s8 = int_to_ptr.vmem [resolvable:$false] %s1016_s8 }
  0x48   : > { %s1018_s12 = scalar_lea.vmem %s1017_s8, 128  ;;  %p1019_p12 = scmp.lt.s32.totalorder %s300_s30, %s1017_s8 }
  0x49   : > { %p1014_p9 = pnand %p1013_p8, %p1147_p3  ;;  %p1020_p7 = scmp.lt.s32.totalorder %s1018_s12, %s1012_s9 }
  0x4b   : > { %p1015_p10 = pneg %p1014_p9  ;;  %p1021_p11 = por %p1020_p7, %p1019_p12 }
  0x4d   : > { %p1022_p0 = pnand %p1021_p11, %p1015_p10 }
  0x4f   : > { %1025 = shalt.err (!%p1022_p0)
}
  0x50   : > { %901 = dma.hbm_to_vmem [thread:$0]  (%p1147_p3), %s1206_s28, 64, %s300_s30, %s288_s5  }
  0x51 PF: > { %p872_p13 = scmp.ge.s32.totalorder %s1080_s20, 1  ;;  %p304_p1 = scmp.lt.s32.totalorder %s1080_s20, 9 }
  0x53   : > { %p305_p2 = pnand %p872_p13, %p304_p1 }
  0x54   : > { %s311_s13 = sand.u32 (!%p305_p2), 1, %s1064_s16   ;;  %p1278_p4 = scmp.ne.s32.totalorder (!%p305_p2), %s1277_s26, 0 }
  0x55   : > { %308 = sbr.rel (%p305_p2) target bundleno = 336 (0x150), region = 55  ;;  %s873_s25 = sshll.u32 (!%p305_p2), %s311_s13, 2 }
  0x56   : > { %s899_s15 = smul.u32 (!%p305_p2), 80, %s311_s13  ;;  %s318_s6 = scalar_lea.sflag (!%p305_p2), [#allocation5], %s311_s13 }
  0x57   : > { %s1231_s14 = scalar_lea.vmem (!%p305_p2), [#allocation4], %s873_s25 }
  0x58   : > { %s313_s29 = scalar_lea.vmem (!%p305_p2), [#allocation3], %s899_s15 }
  0x5c   : > { %1051 = dma.done.wait (%p1278_p4), %s318_s6, 64  }
  0x5d   : > { %1053 = vsyncadd (%p1278_p4), %s318_s6, 4294967232  ;;  %s327_s24 = scalar_lea.sflag [#allocation7], %s311_s13  ;;  %s1237_s28 = scalar_lea.vmem [#allocation6], %s873_s25 }
  0x5e   : > { %1055 = dma.done.wait (%p1278_p4), %s327_s24, 64  }
  0x5f   : > { %1057 = vsyncadd (%p1278_p4), %s327_s24, 4294967232  ;;  %v1084_v10 = vmov 0   ;;  %v954_v11 = vld [vmem:[%s313_s29 + $0x4] ss:$16 sps:$4 sm:$0xff]   ;;  %v956_v12 = vld [vmem:[%s313_s29 + $0xc] ss:$16 sps:$4 sm:$0xff]   ;;  %v584_v28 = vlaneseq }
  0x60   : > { %525 = vmatprep.mubr.bf16.mxu0 %v1084_v10  ;;  %566 = vmatprep.mubr.bf16.mxu1 %v1084_v10  ;;  %v958_v13 = vld [vmem:[%s313_s29] ss:$16 sps:$4 sm:$0xff]   ;;  %v959_v14 = vld [vmem:[%s313_s29 + $0x8] ss:$16 sps:$4 sm:$0xff]   ;;  %v960_v15 = vld [vmem:[%s313_s29 + $0x24] ss:$16 sps:$4 sm:$0xff]  }
  0x61   : > { %493 = vmatprep.subr.bf16.mxu0 %v954_v11  ;;  %534 = vmatprep.subr.bf16.mxu1 %v956_v12  ;;  %v962_v16 = vld [vmem:[%s313_s29 + $0x2c] ss:$16 sps:$4 sm:$0xff]   ;;  %v964_v17 = vld [vmem:[%s313_s29 + $0x20] ss:$16 sps:$4 sm:$0xff]   ;;  %v965_v18 = vld [vmem:[%s313_s29 + $0x28] ss:$16 sps:$4 sm:$0xff]  }
  0x62   : > { %494 = vmatpush1.bf16.msra.mxu0 %v958_v13  ;;  %535 = vmatpush1.bf16.msra.mxu1 %v959_v14  ;;  %v424_v19 = vld [vmem:[%s313_s29 + $0x40] sm:$0xff]  ;;  %vm480_vm0 = vcmask 1043456   ;;  %v425_v20 = vld [vmem:[%s313_s29 + $0x48] sm:$0xff]  ;;  %vm476_vm1 = vcmask 326656   ;;  %v585_v29 = vshrl.u32 %v584_v28, 7  ;;  %s875_s5 = sshll.u32 %s1072_s18, 2 }
  0x63   : > { %495 = vmatprep.subr.bf16.mxu0 %v960_v15  ;;  %536 = vmatprep.subr.bf16.mxu1 %v962_v16  ;;  %v886_v21 = vcombine.high %v424_v19, %v424_v19  ;;  %v888_v22 = vcombine.high %v425_v20, %v425_v20  ;;  %v885_v23 = vcombine.low %v424_v19, %v424_v19  ;;  %v415_v27 = vld [vmem:[%s1270_s0] sm:$0x1]  ;;  %v1085_v30 = vmov 1983009808   ;;  %v640_v38 = vld [vmem:[%s1237_s28] sm:$0xf] }
  0x64   : > { %v887_v24 = vcombine.low %v425_v20, %v425_v20  ;;  %v582_v31 = vunpack.c.l.s4 %v1085_v30  ;;  %v607_v32 = vsub.s32 0, %v585_v29  ;;  %v611_v33 = vsub.s32 1, %v585_v29  ;;  %v603_v36 = vld [vmem:[%s1231_s14] sm:$0xf]  ;;  %p399_p3 = scmp.lt.s32.totalorder %s875_s5, 31 }
  0x65   : > { %v482_v25 = vsel %vm480_vm0, %v885_v23, 0  ;;  %v615_v34 = vsub.s32 2, %v585_v29  ;;  %v619_v35 = vsub.s32 3, %v585_v29 }
  0x66   : > { %496 = vmatpush1.bf16.msra.mxu0 %v964_v17  ;;  %537 = vmatpush1.bf16.msra.mxu1 %v965_v18  ;;  %v488_v26 = vsel %vm480_vm0, %v887_v24, 0  ;;  %v583_v37 = vunpack.c.0.s8 %v582_v31  ;;  %v608_v39 = vrot.slane %v603_v36, %v607_v32  ;;  %v612_v40 = vrot.slane %v603_v36, %v611_v33  ;;  %s1287_s5 = smov (!%p399_p3, %s875_s5), 31 }
  0x67   : > { %889 = vmatprep.subr.msk.bf16.mxu0 %vm480_vm0, %v886_v21  ;;  %891 = vmatprep.subr.msk.bf16.mxu1 %vm480_vm0, %v888_v22  ;;  %v616_v41 = vrot.slane %v603_v36, %v615_v34  ;;  %v620_v42 = vrot.slane %v603_v36, %v619_v35  ;;  %v645_v43 = vrot.slane %v640_v38, %v607_v32  ;;  %s876_s18 = sshll.u32 %s1287_s5, 1 }
  0x68   : > { %v649_v44 = vrot.slane %v640_v38, %v611_v33  ;;  %v653_v45 = vrot.slane %v640_v38, %v615_v34  ;;  %v657_v46 = vrot.slane %v640_v38, %v619_v35  ;;  %v586_v47 = vsub.s32 %v583_v37, %v585_v29  ;;  %s406_s10 = scalar_lea.vmem %s1274_s4, %s876_s18 }
  0x69   : > { %v621_v48 = vcombine.low %v608_v39, %v612_v40  ;;  %v622_v49 = vcombine.low %v616_v41, %v620_v42 }
  0x6a   : > { %498 = vmatpush1.bf16.msra.mxu0 %v482_v25  ;;  %539 = vmatpush1.bf16.msra.mxu1 %v488_v26  ;;  %v658_v50 = vcombine.low %v645_v43, %v649_v44  ;;  %v659_v51 = vcombine.low %v653_v45, %v657_v46 }
  0x6b   : > { %v629_v54 = vrot.slane %v621_v48, %v586_v47  ;;  %v636_v55 = vrot.slane %v622_v49, %v586_v47 }
  0x6c   : > { %v666_v60 = vrot.slane %v658_v50, %v586_v47  ;;  %v673_v61 = vrot.slane %v659_v51, %v586_v47 }
  0x6d   : > { %890 = vmatmul.mubr.msk.bf16.vlgmr.msra.gmra.mrb[0].mxu0 %vm476_vm1, %v415_v27  ;;  %892 = vmatmul.mubr.msk.bf16.vlgmr.msra.gmra.mrb[0].mxu1 %vm476_vm1, %v415_v27  ;;  %v637_v4 = vcombine.low %v629_v54, %v636_v55 }
  0x6e   : > { %v674_v6 = vcombine.low %v666_v60, %v673_v61 }
 0x140   : > { %v527_v52 = vpop.f32.mrb[0].mxu0  ;;  %v568_v53 = vpop.f32.mrb[0].mxu1 }
 0x141   : > { %v529_v56 = vpop.f32.mrb[1].mxu0  ;;  %v570_v57 = vpop.f32.mrb[1].mxu1 }
 0x142   : > { %v579_v58 = vcombine.low %v527_v52, %v529_v56  ;;  %v580_v59 = vcombine.low %v568_v53, %v570_v57  ;;  %v531_v62 = vpop.f32.mrb[2].mxu0  ;;  %v572_v63 = vpop.f32.mrb[2].mxu1 }
 0x143   : > { %v532_v0 = vpop.f32.mrb[3].mxu0  ;;  %v573_v1 = vpop.f32.mrb[3].mxu1 }
 0x144   : > { %v587_v2 = vrot.slane %v579_v58, %v586_v47  ;;  %v594_v3 = vrot.slane %v580_v59, %v586_v47 }
 0x146   : > { %v595_v5 = vcombine.low %v587_v2, %v594_v3 }
 0x148   : > { %v639_v7 = vmul.f32 %v637_v4, %v595_v5 }
 0x14a   : > { %v676_v8 = vadd.f32 %v674_v6, %v639_v7 }
 0x14c   : > { %vm677_vm2 = vcmp.ge.f32.partialorder %v676_v8, 0.0  ;;  %v678_v9 = vmul.f32 0.01, %v676_v8 }
 0x14e   : > { %v679_v10 = vsel %vm677_vm2, %v676_v8, %v678_v9 }
 0x14f   : > { %680 = vst [vmem:[%s406_s10] sm:$0xff] %v679_v10 }
 0x150 PF: > { %s20_s20 = sadd.s32 1, %s1080_s20   ;;  %s1279_s15 = smov %s1064_s16 }
 0x151   : > { %p17_p5 = scmp.ge.s32.totalorder %s20_s20, 10   ;;  %s1280_s16 = smov %s1068_s17 }
 0x152   : > { %s1281_s17 = smov %s1159_s27  ;;  %s1282_s18 = smov %s1076_s19 }
 0x153   : > { %s1283_s19 = smov %s1285_s22  ;;  %19 = sbr.rel (!%p17_p5) target bundleno = 6 (0x6), region = 131 }
 0x15a   :  { %719 = vsyncpa [#allocation5], 1 }
 0x15b   :  { %721 = vsyncpa [#allocation5 + $0x1], 1 }
 0x15c   :  { %722 = vsyncpa [#allocation7], 1 }
 0x15d   :  { %724 = vsyncpa [#allocation7 + $0x1], 1 }

// kernel: generator_forward.6
= control target key start
LH: loop header
LB: loop body
LE: loop exit
PB: predicated region body
PF: predicated region fallthrough
CT: control target
= control target key end

     0   :  { %s1726_s15 = smov 0   ;;  %s1728_s16 = smov 0   ;;  %s1857_s0 = inlined_call_operand.vmem [shape: bf16[4,32,1024], index: 0, kind: input, shape index: {}]   ;;  %s1858_s1 = inlined_call_operand.vmem [shape: bf16[4,1024,128], index: 1, kind: input, shape index: {}]   ;;  %s1859_s2 = inlined_call_operand.vmem [shape: f32[1,128], index: 2, kind: input, shape index: {}]   ;;  %s1860_s3 = inlined_call_operand.vmem [shape: f32[1,128], index: 3, kind: input, shape index: {}]   ;;  %s1861_s4 = inlined_call_operand.vmem [shape: f32[4,32,128], index: 4, kind: output, shape index: {}]  }
   0x1   :  { %s1730_s17 = smov 0  }
   0x2 LB: > { %s40_s18 = sadd.s32 1, %s1695_s16  ;;  %p1383_p0 = scmp.ge.s32.totalorder %s1699_s17, 1  ;;  %s1699_s17 = sphi %s1730_s17, %s14_s17   ;;  %s1695_s16 = sphi %s1728_s16, %s1863_s16   ;;  %s1691_s15 = sphi %s1726_s15, %s1862_s15  }
   0x3   : > { %p42_p1 = scmp.ge.s32.totalorder %s40_s18, 4  ;;  %p245_p2 = scmp.lt.s32.totalorder %s1699_s17, 5 }
   0x5   : > { %s1865_s18 = smov (%p42_p1, %s40_s18), 0  ;;  %p246_p3 = pnand %p1383_p0, %p245_p2 }
   0x6   : > { %p307_p4 = scmp.lt.s32.totalorder (!%p246_p3), %s1691_s15, 3 }
   0x7   : > { %249 = sbr.rel (%p246_p3) target bundleno = 321 (0x141), region = 36 }
   0xe   : > { %s1867_s15 = smov (!%p307_p4, %s1691_s15), 3 }
   0xf   : > { %s1475_s19 = sshll.u32 %s1867_s15, 9  ;;  %s1474_s23 = sshll.u32 %s1867_s15, 7 }
  0x10   : > { %s1750_s22 = scalar_lea.vmem %s1858_s1, %s1475_s19  ;;  %s1786_s26 = scalar_lea.vmem %s1857_s0, %s1474_s23 }
  0x11   : > { %v1613_v0 = vld [vmem:[%s1750_s22 + $0x40] sm:$0xff]   ;;  %v1617_v4 = vld [vmem:[%s1750_s22 + $0x48] sm:$0xff]   ;;  %v1621_v8 = vld [vmem:[%s1750_s22 + $0x50] sm:$0xff]   ;;  %s1476_s5 = sshll.u32 %s1867_s15, 5 }
  0x12   : > { %v1614_v1 = vld [vmem:[%s1750_s22 + $0xc0] sm:$0xff]   ;;  %1477 = vmatprep.subr.bf16.mxu0 %v1613_v0  ;;  %v1618_v5 = vld [vmem:[%s1750_s22 + $0xc8] sm:$0xff]   ;;  %v1622_v9 = vld [vmem:[%s1750_s22 + $0xd0] sm:$0xff]   ;;  %s351_s8 = scalar_lea.vmem %s1861_s4, %s1476_s5 }
  0x13   : > { %v1615_v2 = vld [vmem:[%s1750_s22] sm:$0xff]   ;;  %1505 = vmatprep.subr.bf16.mxu1 %v1614_v1  ;;  %v1619_v6 = vld [vmem:[%s1750_s22 + $0x8] sm:$0xff]   ;;  %v1623_v10 = vld [vmem:[%s1750_s22 + $0x10] sm:$0xff]  }
  0x14   : > { %v1616_v3 = vld [vmem:[%s1750_s22 + $0x80] sm:$0xff]   ;;  %1478 = vmatpush3.bf16.msra.mxu0 %v1615_v2  ;;  %v1620_v7 = vld [vmem:[%s1750_s22 + $0x88] sm:$0xff]   ;;  %v1624_v11 = vld [vmem:[%s1750_s22 + $0x90] sm:$0xff]  }
  0x15   : > { %1506 = vmatpush3.bf16.msra.mxu1 %v1616_v3  ;;  %1479 = vmatprep.subr.bf16.mxu0 %v1617_v4  ;;  %v1625_v12 = vld [vmem:[%s1750_s22 + $0x58] sm:$0xff]   ;;  %v1629_v16 = vld [vmem:[%s1750_s22 + $0x60] sm:$0xff]   ;;  %v1633_v20 = vld [vmem:[%s1750_s22 + $0x68] sm:$0xff]  }
  0x16   : > { %1507 = vmatprep.subr.bf16.mxu1 %v1618_v5  ;;  %v1626_v13 = vld [vmem:[%s1750_s22 + $0xd8] sm:$0xff]   ;;  %v1630_v17 = vld [vmem:[%s1750_s22 + $0xe0] sm:$0xff]   ;;  %v1634_v21 = vld [vmem:[%s1750_s22 + $0xe8] sm:$0xff]  }
  0x17   : > { %v1627_v14 = vld [vmem:[%s1750_s22 + $0x18] sm:$0xff]   ;;  %v1631_v18 = vld [vmem:[%s1750_s22 + $0x20] sm:$0xff]   ;;  %v1635_v22 = vld [vmem:[%s1750_s22 + $0x28] sm:$0xff]  }
  0x18   : > { %1480 = vmatpush3.bf16.msra.mxu0 %v1619_v6  ;;  %v1628_v15 = vld [vmem:[%s1750_s22 + $0x98] sm:$0xff]   ;;  %v1632_v19 = vld [vmem:[%s1750_s22 + $0xa0] sm:$0xff]   ;;  %v1636_v23 = vld [vmem:[%s1750_s22 + $0xa8] sm:$0xff]  }
  0x19   : > { %1508 = vmatpush3.bf16.msra.mxu1 %v1620_v7  ;;  %1481 = vmatprep.subr.bf16.mxu0 %v1621_v8  ;;  %v1637_v24 = vld [vmem:[%s1750_s22 + $0x70] sm:$0xff]   ;;  %v1641_v28 = vld [vmem:[%s1750_s22 + $0x78] sm:$0xff]   ;;  %v366_v32 = vld [vmem:[%s1786_s26] sm:$0xff] }
  0x1a   : > { %1509 = vmatprep.subr.bf16.mxu1 %v1622_v9  ;;  %v1638_v25 = vld [vmem:[%s1750_s22 + $0xf0] sm:$0xff]   ;;  %v1642_v29 = vld [vmem:[%s1750_s22 + $0xf8] sm:$0xff]   ;;  %v370_v33 = vld [vmem:[%s1786_s26 + $0x20] sm:$0xff] }
  0x1b   : > { %v1639_v26 = vld [vmem:[%s1750_s22 + $0x30] sm:$0xff]   ;;  %v1643_v30 = vld [vmem:[%s1750_s22 + $0x38] sm:$0xff]   ;;  %v367_v34 = vld [vmem:[%s1786_s26 + $0x8] sm:$0xff]  ;;  %v1390_v35 = vcombine.low %v366_v32, %v370_v33  ;;  %v1391_v36 = vcombine.high %v366_v32, %v370_v33 }
  0x1c   : > { %1482 = vmatpush3.bf16.msra.mxu0 %v1623_v10  ;;  %v1640_v27 = vld [vmem:[%s1750_s22 + $0xb0] sm:$0xff]   ;;  %v1644_v31 = vld [vmem:[%s1750_s22 + $0xb8] sm:$0xff]   ;;  %v371_v37 = vld [vmem:[%s1786_s26 + $0x28] sm:$0xff] }
  0x1d   : > { %1510 = vmatpush3.bf16.msra.mxu1 %v1624_v11  ;;  %1483 = vmatprep.subr.bf16.mxu0 %v1625_v12  ;;  %v1392_v38 = vcombine.low %v367_v34, %v371_v37  ;;  %v1393_v39 = vcombine.high %v367_v34, %v371_v37  ;;  %v1645_v40 = vld [vmem:[%s1750_s22 + $0x140] sm:$0xff]   ;;  %v1649_v44 = vld [vmem:[%s1750_s22 + $0x148] sm:$0xff]   ;;  %v1653_v48 = vld [vmem:[%s1750_s22 + $0x150] sm:$0xff]  }
  0x1e   : > { %1511 = vmatprep.subr.bf16.mxu1 %v1626_v13  ;;  %1006 = vmatprep.mubr.bf16.mxu0 %v1391_v36  ;;  %v1646_v41 = vld [vmem:[%s1750_s22 + $0x1c0] sm:$0xff]   ;;  %v1650_v45 = vld [vmem:[%s1750_s22 + $0x1c8] sm:$0xff]   ;;  %v1654_v49 = vld [vmem:[%s1750_s22 + $0x1d0] sm:$0xff]  }
  0x1f   : > { %1055 = vmatprep.mubr.bf16.mxu1 %v1393_v39  ;;  %v1647_v42 = vld [vmem:[%s1750_s22 + $0x100] sm:$0xff]   ;;  %v1651_v46 = vld [vmem:[%s1750_s22 + $0x108] sm:$0xff]   ;;  %v1655_v50 = vld [vmem:[%s1750_s22 + $0x110] sm:$0xff]  }
  0x20   : > { %1484 = vmatpush3.bf16.msra.mxu0 %v1627_v14  ;;  %v1648_v43 = vld [vmem:[%s1750_s22 + $0x180] sm:$0xff]   ;;  %v1652_v47 = vld [vmem:[%s1750_s22 + $0x188] sm:$0xff]   ;;  %v1656_v51 = vld [vmem:[%s1750_s22 + $0x190] sm:$0xff]  }
  0x21   : > { %1512 = vmatpush3.bf16.msra.mxu1 %v1628_v15  ;;  %1485 = vmatprep.subr.bf16.mxu0 %v1629_v16  ;;  %v1657_v52 = vld [vmem:[%s1750_s22 + $0x158] sm:$0xff]   ;;  %v1661_v56 = vld [vmem:[%s1750_s22 + $0x160] sm:$0xff]   ;;  %v375_v63 = vld [vmem:[%s1786_s26 + $0x48] sm:$0xff] }
  0x22   : > { %1513 = vmatprep.subr.bf16.mxu1 %v1630_v17  ;;  %v1658_v53 = vld [vmem:[%s1750_s22 + $0x1d8] sm:$0xff]   ;;  %v1662_v57 = vld [vmem:[%s1750_s22 + $0x1e0] sm:$0xff]   ;;  %v379_v0 = vld [vmem:[%s1786_s26 + $0x68] sm:$0xff] }
  0x23   : > { %v1659_v54 = vld [vmem:[%s1750_s22 + $0x118] sm:$0xff]   ;;  %v1663_v58 = vld [vmem:[%s1750_s22 + $0x120] sm:$0xff]   ;;  %v1401_v2 = vcombine.high %v375_v63, %v379_v0  ;;  %v1665_v3 = vld [vmem:[%s1750_s22 + $0x168] sm:$0xff]   ;;  %v1400_v4 = vcombine.low %v375_v63, %v379_v0 }
  0x24   : > { %1486 = vmatpush3.bf16.msra.mxu0 %v1631_v18  ;;  %v1660_v55 = vld [vmem:[%s1750_s22 + $0x198] sm:$0xff]   ;;  %v1664_v59 = vld [vmem:[%s1750_s22 + $0x1a0] sm:$0xff]   ;;  %v1666_v5 = vld [vmem:[%s1750_s22 + $0x1e8] sm:$0xff]  }
  0x25   : > { %1514 = vmatpush3.bf16.msra.mxu1 %v1632_v19  ;;  %1487 = vmatprep.subr.bf16.mxu0 %v1633_v20  ;;  %v374_v60 = vld [vmem:[%s1786_s26 + $0x40] sm:$0xff]  ;;  %v1667_v6 = vld [vmem:[%s1750_s22 + $0x128] sm:$0xff]   ;;  %v1669_v8 = vld [vmem:[%s1750_s22 + $0x170] sm:$0xff]  }
  0x26   : > { %1515 = vmatprep.subr.bf16.mxu1 %v1634_v21  ;;  %v378_v61 = vld [vmem:[%s1786_s26 + $0x60] sm:$0xff]  ;;  %v1668_v7 = vld [vmem:[%s1750_s22 + $0x1a8] sm:$0xff]   ;;  %v1670_v9 = vld [vmem:[%s1750_s22 + $0x1f0] sm:$0xff]  }
  0x27   : > { %v1399_v62 = vcombine.high %v374_v60, %v378_v61  ;;  %v1398_v1 = vcombine.low %v374_v60, %v378_v61  ;;  %v1671_v10 = vld [vmem:[%s1750_s22 + $0x130] sm:$0xff]   ;;  %v1673_v12 = vld [vmem:[%s1750_s22 + $0x178] sm:$0xff]  }
  0x28   : > { %1488 = vmatpush3.bf16.msra.mxu0 %v1635_v22  ;;  %v1672_v11 = vld [vmem:[%s1750_s22 + $0x1b0] sm:$0xff]   ;;  %v1674_v13 = vld [vmem:[%s1750_s22 + $0x1f8] sm:$0xff]  }
  0x29   : > { %1516 = vmatpush3.bf16.msra.mxu1 %v1636_v23  ;;  %1489 = vmatprep.subr.bf16.mxu0 %v1637_v24  ;;  %v1675_v14 = vld [vmem:[%s1750_s22 + $0x138] sm:$0xff]   ;;  %v368_v16 = vld [vmem:[%s1786_s26 + $0x10] sm:$0xff] }
  0x2a   : > { %1517 = vmatprep.subr.bf16.mxu1 %v1638_v25  ;;  %v1676_v15 = vld [vmem:[%s1750_s22 + $0x1b8] sm:$0xff]   ;;  %v372_v17 = vld [vmem:[%s1786_s26 + $0x30] sm:$0xff] }
  0x2b   : > { %v369_v18 = vld [vmem:[%s1786_s26 + $0x18] sm:$0xff]  ;;  %v1394_v20 = vcombine.low %v368_v16, %v372_v17  ;;  %v1395_v21 = vcombine.high %v368_v16, %v372_v17  ;;  %v376_v24 = vld [vmem:[%s1786_s26 + $0x50] sm:$0xff] }
  0x2c   : > { %1490 = vmatpush3.bf16.msra.mxu0 %v1639_v26  ;;  %v373_v19 = vld [vmem:[%s1786_s26 + $0x38] sm:$0xff]  ;;  %v380_v25 = vld [vmem:[%s1786_s26 + $0x70] sm:$0xff] }
  0x2d   : > { %1518 = vmatpush3.bf16.msra.mxu1 %v1640_v27  ;;  %1491 = vmatprep.subr.bf16.mxu0 %v1641_v28  ;;  %v1396_v22 = vcombine.low %v369_v18, %v373_v19  ;;  %v1397_v23 = vcombine.high %v369_v18, %v373_v19  ;;  %v377_v26 = vld [vmem:[%s1786_s26 + $0x58] sm:$0xff]  ;;  %v1403_v27 = vcombine.high %v376_v24, %v380_v25 }
  0x2e   : > { %1519 = vmatprep.subr.bf16.mxu1 %v1642_v29  ;;  %v381_v28 = vld [vmem:[%s1786_s26 + $0x78] sm:$0xff] }
  0x2f   : > { %v1405_v29 = vcombine.high %v377_v26, %v381_v28 }
  0x30   : > { %1492 = vmatpush3.bf16.msra.mxu0 %v1643_v30  ;;  %v1402_v30 = vcombine.low %v376_v24, %v380_v25 }
  0x31   : > { %1520 = vmatpush3.bf16.msra.mxu1 %v1644_v31  ;;  %1533 = vmatprep.subr.bf16.mxu0 %v1645_v40  ;;  %v1404_v31 = vcombine.low %v377_v26, %v381_v28 }
  0x32   : > { %1561 = vmatprep.subr.bf16.mxu1 %v1646_v41 }
  0x33   : > { %1007 = vmatmul.mubr.bf16.vlgmr.msra.gmra.mrb[0].mxu0 %v1390_v35 }
  0x34   : > { %1056 = vmatmul.mubr.bf16.vlgmr.msra.gmra.mrb[0].mxu1 %v1392_v38  ;;  %1534 = vmatpush3.bf16.msra.mxu0 %v1647_v42 }
  0x35   : > { %1562 = vmatpush3.bf16.msra.mxu1 %v1648_v43  ;;  %1535 = vmatprep.subr.bf16.mxu0 %v1649_v44 }
  0x36   : > { %1563 = vmatprep.subr.bf16.mxu1 %v1650_v45  ;;  %1014 = vmatprep.mubr.bf16.mxu0 %v1399_v62 }
  0x37   : > { %1063 = vmatprep.mubr.bf16.mxu1 %v1401_v2 }
  0x38   : > { %1536 = vmatpush3.bf16.msra.mxu0 %v1651_v46 }
  0x39   : > { %1564 = vmatpush3.bf16.msra.mxu1 %v1652_v47  ;;  %1537 = vmatprep.subr.bf16.mxu0 %v1653_v48 }
  0x3a   : > { %1565 = vmatprep.subr.bf16.mxu1 %v1654_v49 }
  0x3b   : > { %1015 = vmatmul.mubr.bf16.gmra.mrb[4].mxu0 %v1398_v1 }
  0x3c   : > { %1538 = vmatpush3.bf16.msra.mxu0 %v1655_v50  ;;  %1064 = vmatmul.mubr.bf16.gmra.mrb[4].mxu1 %v1400_v4 }
  0x3d   : > { %1566 = vmatpush3.bf16.msra.mxu1 %v1656_v51  ;;  %1539 = vmatprep.subr.bf16.mxu0 %v1657_v52 }
  0x3e   : > { %1567 = vmatprep.subr.bf16.mxu1 %v1658_v53  ;;  %1104 = vmatprep.mubr.bf16.mxu0 %v1395_v21 }
  0x3f   : > { %1153 = vmatprep.mubr.bf16.mxu1 %v1397_v23 }
  0x40   : > { %1540 = vmatpush3.bf16.msra.mxu0 %v1659_v54 }
  0x41   : > { %1568 = vmatpush3.bf16.msra.mxu1 %v1660_v55  ;;  %1541 = vmatprep.subr.bf16.mxu0 %v1661_v56 }
  0x42   : > { %1569 = vmatprep.subr.bf16.mxu1 %v1662_v57 }
  0x44   : > { %1542 = vmatpush3.bf16.msra.mxu0 %v1663_v58 }
  0x45   : > { %1570 = vmatpush3.bf16.msra.mxu1 %v1664_v59  ;;  %1543 = vmatprep.subr.bf16.mxu0 %v1665_v3 }
  0x46   : > { %1571 = vmatprep.subr.bf16.mxu1 %v1666_v5 }
  0x48   : > { %1544 = vmatpush3.bf16.msra.mxu0 %v1667_v6 }
  0x49   : > { %1572 = vmatpush3.bf16.msra.mxu1 %v1668_v7  ;;  %1545 = vmatprep.subr.bf16.mxu0 %v1669_v8 }
  0x4a   : > { %1573 = vmatprep.subr.bf16.mxu1 %v1670_v9  ;;  %v1470_v9 = vld [vmem:[%s1859_s2] ss:$0 sm:$0xff] }
  0x4c   : > { %1546 = vmatpush3.bf16.msra.mxu0 %v1671_v10 }
  0x4d   : > { %1574 = vmatpush3.bf16.msra.mxu1 %v1672_v11  ;;  %1547 = vmatprep.subr.bf16.mxu0 %v1673_v12  ;;  %v1471_v12 = vld [vmem:[%s1860_s3] ss:$0 sm:$0xff] }
  0x4e   : > { %1575 = vmatprep.subr.bf16.mxu1 %v1674_v13 }
  0x50   : > { %1548 = vmatpush3.bf16.msra.mxu0 %v1675_v14 }
  0x51   : > { %1576 = vmatpush3.bf16.msra.mxu1 %v1676_v15 }
  0x53   : > { %1105 = vmatmul.mubr.bf16.vlgmr.msra.gmra.mrb[8].mxu0 %v1394_v20 }
  0x54   : > { %1154 = vmatmul.mubr.bf16.vlgmr.msra.gmra.mrb[8].mxu1 %v1396_v22  ;;  %1112 = vmatprep.mubr.bf16.mxu0 %v1403_v27 }
  0x55   : > { %1161 = vmatprep.mubr.bf16.mxu1 %v1405_v29 }
  0x5b   : > { %1113 = vmatmul.mubr.bf16.gmra.mrb[12].mxu0 %v1402_v30 }
  0x5c   : > { %1162 = vmatmul.mubr.bf16.gmra.mrb[12].mxu1 %v1404_v31 }
 0x106   : > { %v1493_v32 = vpop.f32.mrb[0].mxu0 }
 0x107   : > { %v1521_v33 = vpop.f32.mrb[0].mxu1  ;;  %v1494_v34 = vpop.f32.mrb[1].mxu0 }
 0x108   : > { %v1495_v35 = vadd.f32 %v1494_v34, %v1493_v32  ;;  %v1522_v36 = vpop.f32.mrb[1].mxu1  ;;  %v1496_v37 = vpop.f32.mrb[2].mxu0 }
 0x109   : > { %v1523_v38 = vadd.f32 %v1522_v36, %v1521_v33  ;;  %v1524_v39 = vpop.f32.mrb[2].mxu1  ;;  %v1497_v40 = vpop.f32.mrb[3].mxu0 }
 0x10a   : > { %v1498_v41 = vadd.f32 %v1497_v40, %v1496_v37  ;;  %v1525_v42 = vpop.f32.mrb[3].mxu1 }
 0x10b   : > { %v1058_v43 = vadd.f32 %v1523_v38, %v1495_v35  ;;  %v1526_v44 = vadd.f32 %v1525_v42, %v1524_v39 }
 0x10d   : > { %v1061_v45 = vadd.f32 %v1526_v44, %v1498_v41 }
 0x10e   : > { %v1499_v46 = vpop.f32.mrb[4].mxu0 }
 0x10f   : > { %v1527_v47 = vpop.f32.mrb[4].mxu1  ;;  %v1500_v48 = vpop.f32.mrb[5].mxu0 }
 0x110   : > { %v1501_v49 = vadd.f32 %v1500_v48, %v1499_v46  ;;  %v1528_v50 = vpop.f32.mrb[5].mxu1  ;;  %v1502_v51 = vpop.f32.mrb[6].mxu0 }
 0x111   : > { %v1529_v52 = vadd.f32 %v1528_v50, %v1527_v47  ;;  %v1530_v53 = vpop.f32.mrb[6].mxu1  ;;  %v1503_v54 = vpop.f32.mrb[7].mxu0 }
 0x112   : > { %v1504_v55 = vadd.f32 %v1503_v54, %v1502_v51  ;;  %v1531_v56 = vpop.f32.mrb[7].mxu1 }
 0x113   : > { %v1066_v57 = vadd.f32 %v1529_v52, %v1501_v49  ;;  %v1532_v58 = vadd.f32 %v1531_v56, %v1530_v53 }
 0x115   : > { %v1069_v59 = vadd.f32 %v1532_v58, %v1504_v55 }
 0x126   : > { %v1549_v60 = vpop.f32.mrb[8].mxu0 }
 0x127   : > { %v1577_v61 = vpop.f32.mrb[8].mxu1  ;;  %v1550_v62 = vpop.f32.mrb[9].mxu0 }
 0x128   : > { %v1578_v63 = vpop.f32.mrb[9].mxu1  ;;  %v1551_v0 = vadd.f32 %v1550_v62, %v1549_v60  ;;  %v1552_v2 = vpop.f32.mrb[10].mxu0 }
 0x129   : > { %v1579_v1 = vadd.f32 %v1578_v63, %v1577_v61  ;;  %v1580_v3 = vpop.f32.mrb[10].mxu1  ;;  %v1553_v4 = vpop.f32.mrb[11].mxu0 }
 0x12a   : > { %v1581_v5 = vpop.f32.mrb[11].mxu1  ;;  %v1107_v6 = vadd.f32 %v1551_v0, %v1058_v43  ;;  %v1554_v7 = vadd.f32 %v1553_v4, %v1552_v2 }
 0x12b   : > { %v1582_v8 = vadd.f32 %v1581_v5, %v1580_v3 }
 0x12c   : > { %v1156_v10 = vadd.f32 %v1579_v1, %v1107_v6  ;;  %v1110_v11 = vadd.f32 %v1554_v7, %v1061_v45 }
 0x12e   : > { %v1192_v13 = vmul.f32 %v1470_v9, %v1156_v10  ;;  %v1159_v14 = vadd.f32 %v1582_v8, %v1110_v11  ;;  %v1555_v15 = vpop.f32.mrb[12].mxu0 }
 0x12f   : > { %v1583_v16 = vpop.f32.mrb[12].mxu1  ;;  %v1556_v17 = vpop.f32.mrb[13].mxu0 }
 0x130   : > { %v1584_v18 = vpop.f32.mrb[13].mxu1  ;;  %v1203_v19 = vadd.f32 %v1471_v12, %v1192_v13  ;;  %v1193_v20 = vmul.f32 %v1470_v9, %v1159_v14  ;;  %v1557_v21 = vadd.f32 %v1556_v17, %v1555_v15  ;;  %v1558_v23 = vpop.f32.mrb[14].mxu0 }
 0x131   : > { %v1585_v22 = vadd.f32 %v1584_v18, %v1583_v16  ;;  %v1586_v24 = vpop.f32.mrb[14].mxu1  ;;  %v1559_v25 = vpop.f32.mrb[15].mxu0 }
 0x132   : > { %v1587_v26 = vpop.f32.mrb[15].mxu1  ;;  %vm1207_vm0 = vcmp.ge.f32.partialorder %v1203_v19, 0.0  ;;  %v1211_v27 = vmul.f32 0.01, %v1203_v19  ;;  %v1204_v28 = vadd.f32 %v1471_v12, %v1193_v20  ;;  %v1115_v29 = vadd.f32 %v1557_v21, %v1066_v57 }
 0x133   : > { %v1560_v30 = vadd.f32 %v1559_v25, %v1558_v23  ;;  %v1588_v31 = vadd.f32 %v1587_v26, %v1586_v24 }
 0x134   : > { %v1215_v32 = vsel %vm1207_vm0, %v1203_v19, %v1211_v27  ;;  %vm1208_vm1 = vcmp.ge.f32.partialorder %v1204_v28, 0.0  ;;  %v1212_v33 = vmul.f32 0.01, %v1204_v28  ;;  %v1164_v34 = vadd.f32 %v1585_v22, %v1115_v29 }
 0x135   : > { %1219 = vst [vmem:[%s351_s8] sm:$0xff] %v1215_v32  ;;  %v1118_v35 = vadd.f32 %v1560_v30, %v1069_v59 }
 0x136   : > { %v1216_v36 = vsel %vm1208_vm1, %v1204_v28, %v1212_v33  ;;  %v1194_v37 = vmul.f32 %v1470_v9, %v1164_v34 }
 0x137   : > { %1220 = vst [vmem:[%s351_s8 + $0x8] sm:$0xff] %v1216_v36  ;;  %v1167_v38 = vadd.f32 %v1588_v31, %v1118_v35 }
 0x138   : > { %v1205_v39 = vadd.f32 %v1471_v12, %v1194_v37 }
 0x139   : > { %v1195_v40 = vmul.f32 %v1470_v9, %v1167_v38 }
 0x13a   : > { %vm1209_vm2 = vcmp.ge.f32.partialorder %v1205_v39, 0.0  ;;  %v1213_v41 = vmul.f32 0.01, %v1205_v39 }
 0x13b   : > { %v1206_v42 = vadd.f32 %v1471_v12, %v1195_v40 }
 0x13c   : > { %v1217_v43 = vsel %vm1209_vm2, %v1205_v39, %v1213_v41 }
 0x13d   : > { %1221 = vst [vmem:[%s351_s8 + $0x10] sm:$0xff] %v1217_v43  ;;  %vm1210_vm3 = vcmp.ge.f32.partialorder %v1206_v42, 0.0  ;;  %v1214_v44 = vmul.f32 0.01, %v1206_v42 }
 0x13f   : > { %v1218_v45 = vsel %vm1210_vm3, %v1206_v42, %v1214_v44 }
 0x140   : > { %1222 = vst [vmem:[%s351_s8 + $0x18] sm:$0xff] %v1218_v45 }
 0x141 PF: > { %s14_s17 = sadd.s32 1, %s1699_s17   ;;  %s1862_s15 = smov %s1695_s16 }
 0x142   : > { %p11_p5 = scmp.ge.s32.totalorder %s14_s17, 6   ;;  %s1863_s16 = smov %s1865_s18 }
 0x144   :  { %13 = sbr.rel (!%p11_p5) target bundleno = 2 (0x2), region = 83 }

// kernel: generator_forward.7
= control target key start
LH: loop header
LB: loop body
LE: loop exit
PB: predicated region body
PF: predicated region fallthrough
CT: control target
= control target key end

     0   :  { %s1712_s15 = smov 0   ;;  %s1714_s16 = smov 0   ;;  %s1884_s0 = inlined_call_operand.vmem [shape: bf16[4,128,512], index: 0, kind: input, shape index: {}]   ;;  %s1885_s1 = inlined_call_operand.vmem [shape: bf16[4,512,128], index: 1, kind: input, shape index: {}]   ;;  %s1886_s2 = inlined_call_operand.vmem [shape: f32[1,128], index: 2, kind: input, shape index: {}]   ;;  %s1887_s3 = inlined_call_operand.vmem [shape: f32[1,128], index: 3, kind: input, shape index: {}]   ;;  %s1888_s4 = inlined_call_operand.vmem [shape: f32[4,128,128], index: 4, kind: output, shape index: {}]  }
   0x1   :  { %s1716_s17 = smov 0  }
   0x2 LB: > { %s40_s18 = sadd.s32 1, %s1681_s16  ;;  %p1353_p0 = scmp.ge.s32.totalorder %s1685_s17, 1  ;;  %s1685_s17 = sphi %s1716_s17, %s14_s17   ;;  %s1681_s16 = sphi %s1714_s16, %s1890_s16   ;;  %s1677_s15 = sphi %s1712_s15, %s1889_s15  }
   0x3   : > { %p42_p1 = scmp.ge.s32.totalorder %s40_s18, 4  ;;  %p245_p2 = scmp.lt.s32.totalorder %s1685_s17, 5 }
   0x5   : > { %s1892_s18 = smov (%p42_p1, %s40_s18), 0  ;;  %p246_p3 = pnand %p1353_p0, %p245_p2 }
   0x6   : > { %p307_p4 = scmp.lt.s32.totalorder (!%p246_p3), %s1677_s15, 3 }
   0x7   : > { %249 = sbr.rel (%p246_p3) target bundleno = 336 (0x150), region = 36 }
   0xe   : > { %s1894_s15 = smov (!%p307_p4, %s1677_s15), 3 }
   0xf   : > { %s1428_s19 = sshll.u32 %s1894_s15, 8  ;;  %s1430_s30 = sshll.u32 %s1894_s15, 7 }
  0x10   : > { %s1738_s22 = scalar_lea.vmem %s1885_s1, %s1428_s19  ;;  %s1775_s25 = scalar_lea.vmem %s1884_s0, %s1428_s19 }
  0x11   : > { %v1583_v0 = vld [vmem:[%s1738_s22 + $0x40] sm:$0xff]   ;;  %v1587_v4 = vld [vmem:[%s1738_s22 + $0x48] sm:$0xff]   ;;  %v1591_v8 = vld [vmem:[%s1738_s22 + $0x50] sm:$0xff]   ;;  %s1828_s7 = scalar_lea.vmem %s1888_s4, %s1430_s30 }
  0x12   : > { %v1584_v1 = vld [vmem:[%s1738_s22 + $0xc0] sm:$0xff]   ;;  %1431 = vmatprep.subr.bf16.mxu0 %v1583_v0  ;;  %v1588_v5 = vld [vmem:[%s1738_s22 + $0xc8] sm:$0xff]   ;;  %v1592_v9 = vld [vmem:[%s1738_s22 + $0xd0] sm:$0xff]  }
  0x13   : > { %v1585_v2 = vld [vmem:[%s1738_s22] sm:$0xff]   ;;  %1495 = vmatprep.subr.bf16.mxu1 %v1584_v1  ;;  %v1589_v6 = vld [vmem:[%s1738_s22 + $0x8] sm:$0xff]   ;;  %v1593_v10 = vld [vmem:[%s1738_s22 + $0x10] sm:$0xff]  }
  0x14   : > { %v1586_v3 = vld [vmem:[%s1738_s22 + $0x80] sm:$0xff]   ;;  %1432 = vmatpush3.bf16.msra.mxu0 %v1585_v2  ;;  %v1590_v7 = vld [vmem:[%s1738_s22 + $0x88] sm:$0xff]   ;;  %v1594_v11 = vld [vmem:[%s1738_s22 + $0x90] sm:$0xff]  }
  0x15   : > { %1496 = vmatpush3.bf16.msra.mxu1 %v1586_v3  ;;  %1433 = vmatprep.subr.bf16.mxu0 %v1587_v4  ;;  %v1595_v12 = vld [vmem:[%s1738_s22 + $0x58] sm:$0xff]   ;;  %v1599_v16 = vld [vmem:[%s1738_s22 + $0x60] sm:$0xff]   ;;  %v1603_v20 = vld [vmem:[%s1738_s22 + $0x68] sm:$0xff]  }
  0x16   : > { %1497 = vmatprep.subr.bf16.mxu1 %v1588_v5  ;;  %v1596_v13 = vld [vmem:[%s1738_s22 + $0xd8] sm:$0xff]   ;;  %v1600_v17 = vld [vmem:[%s1738_s22 + $0xe0] sm:$0xff]   ;;  %v1604_v21 = vld [vmem:[%s1738_s22 + $0xe8] sm:$0xff]  }
  0x17   : > { %v1597_v14 = vld [vmem:[%s1738_s22 + $0x18] sm:$0xff]   ;;  %v1601_v18 = vld [vmem:[%s1738_s22 + $0x20] sm:$0xff]   ;;  %v1605_v22 = vld [vmem:[%s1738_s22 + $0x28] sm:$0xff]  }
  0x18   : > { %1434 = vmatpush3.bf16.msra.mxu0 %v1589_v6  ;;  %v1598_v15 = vld [vmem:[%s1738_s22 + $0x98] sm:$0xff]   ;;  %v1602_v19 = vld [vmem:[%s1738_s22 + $0xa0] sm:$0xff]   ;;  %v1606_v23 = vld [vmem:[%s1738_s22 + $0xa8] sm:$0xff]  }
  0x19   : > { %1498 = vmatpush3.bf16.msra.mxu1 %v1590_v7  ;;  %1435 = vmatprep.subr.bf16.mxu0 %v1591_v8  ;;  %v1607_v24 = vld [vmem:[%s1738_s22 + $0x70] sm:$0xff]   ;;  %v1611_v28 = vld [vmem:[%s1738_s22 + $0x78] sm:$0xff]  }
  0x1a   : > { %1499 = vmatprep.subr.bf16.mxu1 %v1592_v9  ;;  %v1608_v25 = vld [vmem:[%s1738_s22 + $0xf0] sm:$0xff]   ;;  %v1612_v29 = vld [vmem:[%s1738_s22 + $0xf8] sm:$0xff]   ;;  %v1814_v9 = vld [vmem:[%s1886_s2] ss:$0 sm:$0xff] }
  0x1b   : > { %v1609_v26 = vld [vmem:[%s1738_s22 + $0x30] sm:$0xff]   ;;  %v1613_v30 = vld [vmem:[%s1738_s22 + $0x38] sm:$0xff]  }
  0x1c   : > { %1436 = vmatpush3.bf16.msra.mxu0 %v1593_v10  ;;  %v1610_v27 = vld [vmem:[%s1738_s22 + $0xb0] sm:$0xff]   ;;  %v1614_v31 = vld [vmem:[%s1738_s22 + $0xb8] sm:$0xff]  }
  0x1d   : > { %1500 = vmatpush3.bf16.msra.mxu1 %v1594_v11  ;;  %1437 = vmatprep.subr.bf16.mxu0 %v1595_v12  ;;  %v1615_v32 = vld [vmem:[%s1775_s25] ss:$16 sps:$4 sm:$0xff]   ;;  %v1617_v33 = vld [vmem:[%s1775_s25 + $0x4] ss:$16 sps:$4 sm:$0xff]   ;;  %v1618_v34 = vld [vmem:[%s1775_s25 + $0x8] ss:$16 sps:$4 sm:$0xff]  }
  0x1e   : > { %1501 = vmatprep.subr.bf16.mxu1 %v1596_v13  ;;  %v1620_v35 = vld [vmem:[%s1775_s25 + $0xc] ss:$16 sps:$4 sm:$0xff]   ;;  %870 = vmatprep.mubr.bf16.mxu0 %v1617_v33  ;;  %v1621_v36 = vld [vmem:[%s1775_s25 + $0x24] ss:$16 sps:$4 sm:$0xff]   ;;  %v1625_v38 = vld [vmem:[%s1775_s25 + $0x20] ss:$16 sps:$4 sm:$0xff]  }
  0x1f   : > { %967 = vmatprep.mubr.bf16.mxu1 %v1620_v35  ;;  %v1623_v37 = vld [vmem:[%s1775_s25 + $0x2c] ss:$16 sps:$4 sm:$0xff]   ;;  %v1626_v39 = vld [vmem:[%s1775_s25 + $0x28] ss:$16 sps:$4 sm:$0xff]   ;;  %v1627_v40 = vld [vmem:[%s1775_s25 + $0x44] ss:$16 sps:$4 sm:$0xff]  }
  0x20   : > { %1438 = vmatpush3.bf16.msra.mxu0 %v1597_v14  ;;  %v1629_v41 = vld [vmem:[%s1775_s25 + $0x4c] ss:$16 sps:$4 sm:$0xff]   ;;  %v1631_v42 = vld [vmem:[%s1775_s25 + $0x40] ss:$16 sps:$4 sm:$0xff]   ;;  %v1632_v43 = vld [vmem:[%s1775_s25 + $0x48] ss:$16 sps:$4 sm:$0xff]  }
  0x21   : > { %1502 = vmatpush3.bf16.msra.mxu1 %v1598_v15  ;;  %1439 = vmatprep.subr.bf16.mxu0 %v1599_v16  ;;  %v1633_v44 = vld [vmem:[%s1775_s25 + $0x64] ss:$16 sps:$4 sm:$0xff]   ;;  %v1635_v45 = vld [vmem:[%s1775_s25 + $0x6c] ss:$16 sps:$4 sm:$0xff]   ;;  %v1637_v46 = vld [vmem:[%s1775_s25 + $0x60] ss:$16 sps:$4 sm:$0xff]  }
  0x22   : > { %1503 = vmatprep.subr.bf16.mxu1 %v1600_v17  ;;  %v1638_v47 = vld [vmem:[%s1775_s25 + $0x68] ss:$16 sps:$4 sm:$0xff]   ;;  %v1639_v48 = vld [vmem:[%s1775_s25 + $0x84] ss:$16 sps:$4 sm:$0xff]   ;;  %v1641_v49 = vld [vmem:[%s1775_s25 + $0x8c] ss:$16 sps:$4 sm:$0xff]  }
  0x23   : > { %v1643_v50 = vld [vmem:[%s1775_s25 + $0x80] ss:$16 sps:$4 sm:$0xff]   ;;  %v1644_v51 = vld [vmem:[%s1775_s25 + $0x88] ss:$16 sps:$4 sm:$0xff]   ;;  %v1645_v52 = vld [vmem:[%s1775_s25 + $0xa4] ss:$16 sps:$4 sm:$0xff]  }
  0x24   : > { %1440 = vmatpush3.bf16.msra.mxu0 %v1601_v18  ;;  %v1647_v53 = vld [vmem:[%s1775_s25 + $0xac] ss:$16 sps:$4 sm:$0xff]   ;;  %v1649_v54 = vld [vmem:[%s1775_s25 + $0xa0] ss:$16 sps:$4 sm:$0xff]   ;;  %v1650_v55 = vld [vmem:[%s1775_s25 + $0xa8] ss:$16 sps:$4 sm:$0xff]  }
  0x25   : > { %1504 = vmatpush3.bf16.msra.mxu1 %v1602_v19  ;;  %1441 = vmatprep.subr.bf16.mxu0 %v1603_v20  ;;  %v1651_v56 = vld [vmem:[%s1775_s25 + $0xc4] ss:$16 sps:$4 sm:$0xff]   ;;  %v1653_v57 = vld [vmem:[%s1775_s25 + $0xcc] ss:$16 sps:$4 sm:$0xff]   ;;  %v1655_v58 = vld [vmem:[%s1775_s25 + $0xc0] ss:$16 sps:$4 sm:$0xff]  }
  0x26   : > { %1505 = vmatprep.subr.bf16.mxu1 %v1604_v21  ;;  %v1656_v59 = vld [vmem:[%s1775_s25 + $0xc8] ss:$16 sps:$4 sm:$0xff]   ;;  %v1657_v60 = vld [vmem:[%s1775_s25 + $0xe4] ss:$16 sps:$4 sm:$0xff]   ;;  %v1659_v61 = vld [vmem:[%s1775_s25 + $0xec] ss:$16 sps:$4 sm:$0xff]  }
  0x27   : > { %v1661_v62 = vld [vmem:[%s1775_s25 + $0xe0] ss:$16 sps:$4 sm:$0xff]   ;;  %v1662_v63 = vld [vmem:[%s1775_s25 + $0xe8] ss:$16 sps:$4 sm:$0xff]  }
  0x28   : > { %1442 = vmatpush3.bf16.msra.mxu0 %v1605_v22  ;;  %v1819_v14 = vld [vmem:[%s1887_s3] ss:$0 sm:$0xff] }
  0x29   : > { %1506 = vmatpush3.bf16.msra.mxu1 %v1606_v23  ;;  %1443 = vmatprep.subr.bf16.mxu0 %v1607_v24 }
  0x2a   : > { %1507 = vmatprep.subr.bf16.mxu1 %v1608_v25 }
  0x2c   : > { %1444 = vmatpush3.bf16.msra.mxu0 %v1609_v26 }
  0x2d   : > { %1508 = vmatpush3.bf16.msra.mxu1 %v1610_v27  ;;  %1445 = vmatprep.subr.bf16.mxu0 %v1611_v28 }
  0x2e   : > { %1509 = vmatprep.subr.bf16.mxu1 %v1612_v29 }
  0x30   : > { %1446 = vmatpush3.bf16.msra.mxu0 %v1613_v30 }
  0x31   : > { %1510 = vmatpush3.bf16.msra.mxu1 %v1614_v31 }
  0x33   : > { %871 = vmatmul.mubr.bf16.vlgmr.msra.gmra.mrb[0].mxu0 %v1615_v32 }
  0x34   : > { %968 = vmatmul.mubr.bf16.vlgmr.msra.gmra.mrb[0].mxu1 %v1618_v34  ;;  %878 = vmatprep.mubr.bf16.mxu0 %v1621_v36 }
  0x35   : > { %975 = vmatprep.mubr.bf16.mxu1 %v1623_v37 }
  0x3b   : > { %879 = vmatmul.mubr.bf16.gmra.mrb[4].mxu0 %v1625_v38 }
  0x3c   : > { %976 = vmatmul.mubr.bf16.gmra.mrb[4].mxu1 %v1626_v39  ;;  %886 = vmatprep.mubr.bf16.mxu0 %v1627_v40 }
  0x3d   : > { %983 = vmatprep.mubr.bf16.mxu1 %v1629_v41 }
  0x43   : > { %887 = vmatmul.mubr.bf16.gmra.mrb[8].mxu0 %v1631_v42 }
  0x44   : > { %984 = vmatmul.mubr.bf16.gmra.mrb[8].mxu1 %v1632_v43  ;;  %894 = vmatprep.mubr.bf16.mxu0 %v1633_v44 }
  0x45   : > { %991 = vmatprep.mubr.bf16.mxu1 %v1635_v45 }
  0x4b   : > { %895 = vmatmul.mubr.bf16.gmra.mrb[12].mxu0 %v1637_v46 }
  0x4c   : > { %992 = vmatmul.mubr.bf16.gmra.mrb[12].mxu1 %v1638_v47  ;;  %902 = vmatprep.mubr.bf16.mxu0 %v1639_v48 }
  0x4d   : > { %999 = vmatprep.mubr.bf16.mxu1 %v1641_v49 }
  0x53   : > { %903 = vmatmul.mubr.bf16.gmra.mrb[16].mxu0 %v1643_v50 }
  0x54   : > { %1000 = vmatmul.mubr.bf16.gmra.mrb[16].mxu1 %v1644_v51  ;;  %910 = vmatprep.mubr.bf16.mxu0 %v1645_v52 }
  0x55   : > { %1007 = vmatprep.mubr.bf16.mxu1 %v1647_v53 }
  0x5b   : > { %911 = vmatmul.mubr.bf16.gmra.mrb[20].mxu0 %v1649_v54 }
  0x5c   : > { %1008 = vmatmul.mubr.bf16.gmra.mrb[20].mxu1 %v1650_v55  ;;  %918 = vmatprep.mubr.bf16.mxu0 %v1651_v56 }
  0x5d   : > { %1015 = vmatprep.mubr.bf16.mxu1 %v1653_v57 }
  0x63   : > { %919 = vmatmul.mubr.bf16.gmra.mrb[24].mxu0 %v1655_v58 }
  0x64   : > { %1016 = vmatmul.mubr.bf16.gmra.mrb[24].mxu1 %v1656_v59  ;;  %926 = vmatprep.mubr.bf16.mxu0 %v1657_v60 }
  0x65   : > { %1023 = vmatprep.mubr.bf16.mxu1 %v1659_v61 }
  0x6b   : > { %927 = vmatmul.mubr.bf16.gmra.mrb[28].mxu0 %v1661_v62 }
  0x6c   : > { %1024 = vmatmul.mubr.bf16.gmra.mrb[28].mxu1 %v1662_v63 }
 0x106   : > { %v1447_v0 = vpop.f32.mrb[0].mxu0 }
 0x107   : > { %v1511_v1 = vpop.f32.mrb[0].mxu1  ;;  %v1448_v2 = vpop.f32.mrb[1].mxu0 }
 0x108   : > { %v1449_v3 = vadd.f32 %v1448_v2, %v1447_v0  ;;  %v1512_v4 = vpop.f32.mrb[1].mxu1  ;;  %v1450_v5 = vpop.f32.mrb[2].mxu0 }
 0x109   : > { %v1513_v6 = vadd.f32 %v1512_v4, %v1511_v1  ;;  %v1514_v7 = vpop.f32.mrb[2].mxu1  ;;  %v1451_v8 = vpop.f32.mrb[3].mxu0 }
 0x10a   : > { %v1452_v10 = vadd.f32 %v1451_v8, %v1450_v5  ;;  %v1515_v11 = vpop.f32.mrb[3].mxu1 }
 0x10b   : > { %v970_v12 = vadd.f32 %v1513_v6, %v1449_v3  ;;  %v1516_v13 = vadd.f32 %v1515_v11, %v1514_v7 }
 0x10d   : > { %v1090_v15 = vmul.f32 %v1814_v9, %v970_v12  ;;  %v973_v16 = vadd.f32 %v1516_v13, %v1452_v10 }
 0x10e   : > { %v1453_v17 = vpop.f32.mrb[4].mxu0 }
 0x10f   : > { %v1113_v18 = vadd.f32 %v1819_v14, %v1090_v15  ;;  %v1091_v19 = vmul.f32 %v1814_v9, %v973_v16  ;;  %v1517_v20 = vpop.f32.mrb[4].mxu1  ;;  %v1454_v21 = vpop.f32.mrb[5].mxu0 }
 0x110   : > { %v1455_v22 = vadd.f32 %v1454_v21, %v1453_v17  ;;  %v1518_v23 = vpop.f32.mrb[5].mxu1  ;;  %v1456_v24 = vpop.f32.mrb[6].mxu0 }
 0x111   : > { %vm1129_vm0 = vcmp.ge.f32.partialorder %v1113_v18, 0.0  ;;  %v1145_v25 = vmul.f32 0.01, %v1113_v18  ;;  %v1114_v26 = vadd.f32 %v1819_v14, %v1091_v19  ;;  %v1519_v27 = vadd.f32 %v1518_v23, %v1517_v20  ;;  %v1520_v28 = vpop.f32.mrb[6].mxu1  ;;  %v1457_v29 = vpop.f32.mrb[7].mxu0 }
 0x112   : > { %v1458_v30 = vadd.f32 %v1457_v29, %v1456_v24  ;;  %v1521_v31 = vpop.f32.mrb[7].mxu1 }
 0x113   : > { %v1161_v32 = vsel %vm1129_vm0, %v1113_v18, %v1145_v25  ;;  %vm1130_vm1 = vcmp.ge.f32.partialorder %v1114_v26, 0.0  ;;  %v1146_v33 = vmul.f32 0.01, %v1114_v26  ;;  %v978_v34 = vadd.f32 %v1519_v27, %v1455_v22 }
 0x114   : > { %1177 = vst [vmem:[%s1828_s7] sm:$0xff] %v1161_v32  ;;  %v1522_v35 = vadd.f32 %v1521_v31, %v1520_v28 }
 0x115   : > { %v1162_v36 = vsel %vm1130_vm1, %v1114_v26, %v1146_v33  ;;  %v1092_v37 = vmul.f32 %v1814_v9, %v978_v34 }
 0x116   : > { %1178 = vst [vmem:[%s1828_s7 + $0x8] sm:$0xff] %v1162_v36  ;;  %v981_v38 = vadd.f32 %v1522_v35, %v1458_v30  ;;  %v1459_v39 = vpop.f32.mrb[8].mxu0 }
 0x117   : > { %v1115_v40 = vadd.f32 %v1819_v14, %v1092_v37  ;;  %v1523_v41 = vpop.f32.mrb[8].mxu1  ;;  %v1460_v42 = vpop.f32.mrb[9].mxu0 }
 0x118   : > { %v1093_v43 = vmul.f32 %v1814_v9, %v981_v38  ;;  %v1461_v44 = vadd.f32 %v1460_v42, %v1459_v39  ;;  %v1524_v45 = vpop.f32.mrb[9].mxu1  ;;  %v1462_v46 = vpop.f32.mrb[10].mxu0 }
 0x119   : > { %vm1131_vm2 = vcmp.ge.f32.partialorder %v1115_v40, 0.0  ;;  %v1147_v47 = vmul.f32 0.01, %v1115_v40  ;;  %v1525_v48 = vadd.f32 %v1524_v45, %v1523_v41  ;;  %v1526_v49 = vpop.f32.mrb[10].mxu1  ;;  %v1463_v50 = vpop.f32.mrb[11].mxu0 }
 0x11a   : > { %v1116_v51 = vadd.f32 %v1819_v14, %v1093_v43  ;;  %v1464_v52 = vadd.f32 %v1463_v50, %v1462_v46  ;;  %v1527_v53 = vpop.f32.mrb[11].mxu1 }
 0x11b   : > { %v1163_v54 = vsel %vm1131_vm2, %v1115_v40, %v1147_v47  ;;  %v986_v55 = vadd.f32 %v1525_v48, %v1461_v44  ;;  %v1528_v56 = vadd.f32 %v1527_v53, %v1526_v49 }
 0x11c   : > { %1179 = vst [vmem:[%s1828_s7 + $0x10] sm:$0xff] %v1163_v54  ;;  %vm1132_vm3 = vcmp.ge.f32.partialorder %v1116_v51, 0.0  ;;  %v1148_v57 = vmul.f32 0.01, %v1116_v51 }
 0x11d   : > { %v1094_v58 = vmul.f32 %v1814_v9, %v986_v55  ;;  %v989_v59 = vadd.f32 %v1528_v56, %v1464_v52 }
 0x11e   : > { %v1164_v60 = vsel %vm1132_vm3, %v1116_v51, %v1148_v57  ;;  %v1465_v61 = vpop.f32.mrb[12].mxu0 }
 0x11f   : > { %1180 = vst [vmem:[%s1828_s7 + $0x18] sm:$0xff] %v1164_v60  ;;  %v1117_v62 = vadd.f32 %v1819_v14, %v1094_v58  ;;  %v1095_v63 = vmul.f32 %v1814_v9, %v989_v59  ;;  %v1529_v0 = vpop.f32.mrb[12].mxu1  ;;  %v1466_v1 = vpop.f32.mrb[13].mxu0 }
 0x120   : > { %v1467_v2 = vadd.f32 %v1466_v1, %v1465_v61  ;;  %v1530_v3 = vpop.f32.mrb[13].mxu1  ;;  %v1468_v4 = vpop.f32.mrb[14].mxu0 }
 0x121   : > { %vm1133_vm4 = vcmp.ge.f32.partialorder %v1117_v62, 0.0  ;;  %v1149_v5 = vmul.f32 0.01, %v1117_v62  ;;  %v1118_v6 = vadd.f32 %v1819_v14, %v1095_v63  ;;  %v1531_v7 = vadd.f32 %v1530_v3, %v1529_v0  ;;  %v1532_v8 = vpop.f32.mrb[14].mxu1  ;;  %v1469_v10 = vpop.f32.mrb[15].mxu0 }
 0x122   : > { %v1470_v11 = vadd.f32 %v1469_v10, %v1468_v4  ;;  %v1533_v12 = vpop.f32.mrb[15].mxu1 }
 0x123   : > { %v1165_v13 = vsel %vm1133_vm4, %v1117_v62, %v1149_v5  ;;  %vm1134_vm5 = vcmp.ge.f32.partialorder %v1118_v6, 0.0  ;;  %v1150_v15 = vmul.f32 0.01, %v1118_v6  ;;  %v994_v16 = vadd.f32 %v1531_v7, %v1467_v2 }
 0x124   : > { %1181 = vst [vmem:[%s1828_s7 + $0x20] sm:$0xff] %v1165_v13  ;;  %v1534_v17 = vadd.f32 %v1533_v12, %v1532_v8 }
 0x125   : > { %v1166_v18 = vsel %vm1134_vm5, %v1118_v6, %v1150_v15  ;;  %v1096_v19 = vmul.f32 %v1814_v9, %v994_v16 }
 0x126   : > { %1182 = vst [vmem:[%s1828_s7 + $0x28] sm:$0xff] %v1166_v18  ;;  %v997_v20 = vadd.f32 %v1534_v17, %v1470_v11  ;;  %v1471_v21 = vpop.f32.mrb[16].mxu0 }
 0x127   : > { %v1119_v22 = vadd.f32 %v1819_v14, %v1096_v19  ;;  %v1535_v23 = vpop.f32.mrb[16].mxu1  ;;  %v1472_v24 = vpop.f32.mrb[17].mxu0 }
 0x128   : > { %v1097_v25 = vmul.f32 %v1814_v9, %v997_v20  ;;  %v1473_v26 = vadd.f32 %v1472_v24, %v1471_v21  ;;  %v1536_v27 = vpop.f32.mrb[17].mxu1  ;;  %v1474_v28 = vpop.f32.mrb[18].mxu0 }
 0x129   : > { %vm1135_vm6 = vcmp.ge.f32.partialorder %v1119_v22, 0.0  ;;  %v1151_v29 = vmul.f32 0.01, %v1119_v22  ;;  %v1537_v30 = vadd.f32 %v1536_v27, %v1535_v23  ;;  %v1538_v31 = vpop.f32.mrb[18].mxu1  ;;  %v1475_v32 = vpop.f32.mrb[19].mxu0 }
 0x12a   : > { %v1120_v33 = vadd.f32 %v1819_v14, %v1097_v25  ;;  %v1476_v34 = vadd.f32 %v1475_v32, %v1474_v28  ;;  %v1539_v35 = vpop.f32.mrb[19].mxu1 }
 0x12b   : > { %v1167_v36 = vsel %vm1135_vm6, %v1119_v22, %v1151_v29  ;;  %v1002_v37 = vadd.f32 %v1537_v30, %v1473_v26  ;;  %v1540_v38 = vadd.f32 %v1539_v35, %v1538_v31 }
 0x12c   : > { %1183 = vst [vmem:[%s1828_s7 + $0x30] sm:$0xff] %v1167_v36  ;;  %vm1136_vm7 = vcmp.ge.f32.partialorder %v1120_v33, 0.0  ;;  %v1152_v39 = vmul.f32 0.01, %v1120_v33 }
 0x12d   : > { %v1098_v40 = vmul.f32 %v1814_v9, %v1002_v37  ;;  %v1005_v41 = vadd.f32 %v1540_v38, %v1476_v34 }
 0x12e   : > { %v1168_v42 = vsel %vm1136_vm7, %v1120_v33, %v1152_v39  ;;  %v1477_v43 = vpop.f32.mrb[20].mxu0 }
 0x12f   : > { %1184 = vst [vmem:[%s1828_s7 + $0x38] sm:$0xff] %v1168_v42  ;;  %v1121_v44 = vadd.f32 %v1819_v14, %v1098_v40  ;;  %v1099_v45 = vmul.f32 %v1814_v9, %v1005_v41  ;;  %v1541_v46 = vpop.f32.mrb[20].mxu1  ;;  %v1478_v47 = vpop.f32.mrb[21].mxu0 }
 0x130   : > { %v1479_v48 = vadd.f32 %v1478_v47, %v1477_v43  ;;  %v1542_v49 = vpop.f32.mrb[21].mxu1  ;;  %v1480_v50 = vpop.f32.mrb[22].mxu0 }
 0x131   : > { %vm1137_vm8 = vcmp.ge.f32.partialorder %v1121_v44, 0.0  ;;  %v1153_v51 = vmul.f32 0.01, %v1121_v44  ;;  %v1122_v52 = vadd.f32 %v1819_v14, %v1099_v45  ;;  %v1543_v53 = vadd.f32 %v1542_v49, %v1541_v46  ;;  %v1544_v54 = vpop.f32.mrb[22].mxu1  ;;  %v1481_v55 = vpop.f32.mrb[23].mxu0 }
 0x132   : > { %v1482_v56 = vadd.f32 %v1481_v55, %v1480_v50  ;;  %v1545_v57 = vpop.f32.mrb[23].mxu1 }
 0x133   : > { %v1169_v58 = vsel %vm1137_vm8, %v1121_v44, %v1153_v51  ;;  %vm1138_vm9 = vcmp.ge.f32.partialorder %v1122_v52, 0.0  ;;  %v1154_v59 = vmul.f32 0.01, %v1122_v52  ;;  %v1010_v60 = vadd.f32 %v1543_v53, %v1479_v48 }
 0x134   : > { %1185 = vst [vmem:[%s1828_s7 + $0x40] sm:$0xff] %v1169_v58  ;;  %v1546_v61 = vadd.f32 %v1545_v57, %v1544_v54 }
 0x135   : > { %v1170_v62 = vsel %vm1138_vm9, %v1122_v52, %v1154_v59  ;;  %v1100_v63 = vmul.f32 %v1814_v9, %v1010_v60 }
 0x136   : > { %1186 = vst [vmem:[%s1828_s7 + $0x48] sm:$0xff] %v1170_v62  ;;  %v1013_v0 = vadd.f32 %v1546_v61, %v1482_v56  ;;  %v1483_v1 = vpop.f32.mrb[24].mxu0 }
 0x137   : > { %v1123_v2 = vadd.f32 %v1819_v14, %v1100_v63  ;;  %v1547_v3 = vpop.f32.mrb[24].mxu1  ;;  %v1484_v4 = vpop.f32.mrb[25].mxu0 }
 0x138   : > { %v1101_v5 = vmul.f32 %v1814_v9, %v1013_v0  ;;  %v1485_v6 = vadd.f32 %v1484_v4, %v1483_v1  ;;  %v1548_v7 = vpop.f32.mrb[25].mxu1  ;;  %v1486_v8 = vpop.f32.mrb[26].mxu0 }
 0x139   : > { %vm1139_vm10 = vcmp.ge.f32.partialorder %v1123_v2, 0.0  ;;  %v1155_v10 = vmul.f32 0.01, %v1123_v2  ;;  %v1549_v11 = vadd.f32 %v1548_v7, %v1547_v3  ;;  %v1550_v12 = vpop.f32.mrb[26].mxu1  ;;  %v1487_v13 = vpop.f32.mrb[27].mxu0 }
 0x13a   : > { %v1124_v15 = vadd.f32 %v1819_v14, %v1101_v5  ;;  %v1488_v16 = vadd.f32 %v1487_v13, %v1486_v8  ;;  %v1551_v17 = vpop.f32.mrb[27].mxu1 }
 0x13b   : > { %v1171_v18 = vsel %vm1139_vm10, %v1123_v2, %v1155_v10  ;;  %v1018_v19 = vadd.f32 %v1549_v11, %v1485_v6  ;;  %v1552_v20 = vadd.f32 %v1551_v17, %v1550_v12 }
 0x13c   : > { %1187 = vst [vmem:[%s1828_s7 + $0x50] sm:$0xff] %v1171_v18  ;;  %vm1140_vm11 = vcmp.ge.f32.partialorder %v1124_v15, 0.0  ;;  %v1156_v21 = vmul.f32 0.01, %v1124_v15 }
 0x13d   : > { %v1102_v22 = vmul.f32 %v1814_v9, %v1018_v19  ;;  %v1021_v23 = vadd.f32 %v1552_v20, %v1488_v16 }
 0x13e   : > { %v1172_v24 = vsel %vm1140_vm11, %v1124_v15, %v1156_v21  ;;  %v1489_v25 = vpop.f32.mrb[28].mxu0 }
 0x13f   : > { %1188 = vst [vmem:[%s1828_s7 + $0x58] sm:$0xff] %v1172_v24  ;;  %v1125_v26 = vadd.f32 %v1819_v14, %v1102_v22  ;;  %v1103_v27 = vmul.f32 %v1814_v9, %v1021_v23  ;;  %v1553_v28 = vpop.f32.mrb[28].mxu1  ;;  %v1490_v29 = vpop.f32.mrb[29].mxu0 }
 0x140   : > { %v1491_v30 = vadd.f32 %v1490_v29, %v1489_v25  ;;  %v1554_v31 = vpop.f32.mrb[29].mxu1  ;;  %v1492_v32 = vpop.f32.mrb[30].mxu0 }
 0x141   : > { %vm1141_vm12 = vcmp.ge.f32.partialorder %v1125_v26, 0.0  ;;  %v1157_v33 = vmul.f32 0.01, %v1125_v26  ;;  %v1126_v34 = vadd.f32 %v1819_v14, %v1103_v27  ;;  %v1555_v35 = vadd.f32 %v1554_v31, %v1553_v28  ;;  %v1556_v36 = vpop.f32.mrb[30].mxu1  ;;  %v1493_v37 = vpop.f32.mrb[31].mxu0 }
 0x142   : > { %v1494_v38 = vadd.f32 %v1493_v37, %v1492_v32  ;;  %v1557_v39 = vpop.f32.mrb[31].mxu1 }
 0x143   : > { %v1173_v40 = vsel %vm1141_vm12, %v1125_v26, %v1157_v33  ;;  %vm1142_vm13 = vcmp.ge.f32.partialorder %v1126_v34, 0.0  ;;  %v1158_v41 = vmul.f32 0.01, %v1126_v34  ;;  %v1026_v42 = vadd.f32 %v1555_v35, %v1491_v30 }
 0x144   : > { %1189 = vst [vmem:[%s1828_s7 + $0x60] sm:$0xff] %v1173_v40  ;;  %v1558_v43 = vadd.f32 %v1557_v39, %v1556_v36 }
 0x145   : > { %v1174_v44 = vsel %vm1142_vm13, %v1126_v34, %v1158_v41  ;;  %v1104_v45 = vmul.f32 %v1814_v9, %v1026_v42 }
 0x146   : > { %1190 = vst [vmem:[%s1828_s7 + $0x68] sm:$0xff] %v1174_v44  ;;  %v1029_v46 = vadd.f32 %v1558_v43, %v1494_v38 }
 0x147   : > { %v1127_v47 = vadd.f32 %v1819_v14, %v1104_v45 }
 0x148   : > { %v1105_v48 = vmul.f32 %v1814_v9, %v1029_v46 }
 0x149   : > { %vm1143_vm14 = vcmp.ge.f32.partialorder %v1127_v47, 0.0  ;;  %v1159_v49 = vmul.f32 0.01, %v1127_v47 }
 0x14a   : > { %v1128_v50 = vadd.f32 %v1819_v14, %v1105_v48 }
 0x14b   : > { %v1175_v51 = vsel %vm1143_vm14, %v1127_v47, %v1159_v49 }
 0x14c   : > { %1191 = vst [vmem:[%s1828_s7 + $0x70] sm:$0xff] %v1175_v51  ;;  %vm1144_vm15 = vcmp.ge.f32.partialorder %v1128_v50, 0.0  ;;  %v1160_v52 = vmul.f32 0.01, %v1128_v50 }
 0x14e   : > { %v1176_v53 = vsel %vm1144_vm15, %v1128_v50, %v1160_v52 }
 0x14f   : > { %1192 = vst [vmem:[%s1828_s7 + $0x78] sm:$0xff] %v1176_v53 }
 0x150 PF: > { %s14_s17 = sadd.s32 1, %s1685_s17   ;;  %s1889_s15 = smov %s1681_s16 }
 0x151   : > { %p11_p5 = scmp.ge.s32.totalorder %s14_s17, 6   ;;  %s1890_s16 = smov %s1892_s18 }
 0x153   :  { %13 = sbr.rel (!%p11_p5) target bundleno = 2 (0x2), region = 83 }

// kernel: generator_forward.8
= control target key start
LH: loop header
LB: loop body
LE: loop exit
PB: predicated region body
PF: predicated region fallthrough
CT: control target
= control target key end

     0   :  { %s3380_s15 = smov 0   ;;  %s3382_s16 = smov 0   ;;  %s3831_s0 = inlined_call_operand.vmem [shape: bf16[4,512,512], index: 0, kind: input, shape index: {}]   ;;  %s3832_s1 = inlined_call_operand.vmem [shape: bf16[4,512,128], index: 1, kind: input, shape index: {}]   ;;  %s3833_s2 = inlined_call_operand.vmem [shape: f32[1,128], index: 2, kind: input, shape index: {}]   ;;  %s3834_s3 = inlined_call_operand.vmem [shape: f32[1,128], index: 3, kind: input, shape index: {}]   ;;  %s3835_s4 = inlined_call_operand.vmem [shape: f32[4,512,128], index: 4, kind: output, shape index: {}]  }
   0x1   :  { %s3384_s17 = smov 0  }
   0x2 LB: > { %s40_s18 = sadd.s32 1, %s3348_s16  ;;  %p2841_p0 = scmp.ge.s32.totalorder %s3352_s17, 1  ;;  %s3352_s17 = sphi %s3384_s17, %s14_s17   ;;  %s3348_s16 = sphi %s3382_s16, %s3837_s16   ;;  %s3344_s15 = sphi %s3380_s15, %s3836_s15  }
   0x3   : > { %p42_p1 = scmp.ge.s32.totalorder %s40_s18, 4  ;;  %p245_p2 = scmp.lt.s32.totalorder %s3352_s17, 5 }
   0x5   : > { %s3839_s18 = smov (%p42_p1, %s40_s18), 0  ;;  %p246_p3 = pnand %p2841_p0, %p245_p2 }
   0x6   : > { %p307_p4 = scmp.lt.s32.totalorder (!%p246_p3), %s3344_s15, 3  ;;  %v3354_v0 = vmov (!%p246_p3), 0  }
   0x7   : > { %249 = sbr.rel (%p246_p3) target bundleno = 554 (0x22a), region = 36  ;;  %1510 = vmatprep.subr.bf16.mxu1 (!%p246_p3), %v3354_v0  ;;  %1799 = vmatprep.subr.bf16.mxu0 (!%p246_p3), %v3354_v0 }
   0xe   : > { %s3841_s15 = smov (!%p307_p4, %s3344_s15), 3 }
   0xf   : > { %s3013_s19 = sshll.u32 %s3841_s15, 8  ;;  %s3012_s23 = sshll.u32 %s3841_s15, 10 }
  0x10   : > { %s3406_s22 = scalar_lea.vmem %s3832_s1, %s3013_s19  ;;  %s3443_s26 = scalar_lea.vmem %s3831_s0, %s3012_s23 }
  0x11   : > { %v3104_v1 = vld [vmem:[%s3406_s22] sm:$0xff]   ;;  %v3106_v3 = vld [vmem:[%s3406_s22 + $0x8] sm:$0xff]   ;;  %v3108_v5 = vld [vmem:[%s3406_s22 + $0x10] sm:$0xff]   ;;  %s3014_s5 = sshll.u32 %s3841_s15, 9 }
  0x12   : > { %v3105_v2 = vld [vmem:[%s3406_s22 + $0x80] sm:$0xff]   ;;  %1511 = vmatpush1.bf16.msra.mxu1 %v3104_v1  ;;  %v3107_v4 = vld [vmem:[%s3406_s22 + $0x88] sm:$0xff]   ;;  %v3109_v6 = vld [vmem:[%s3406_s22 + $0x90] sm:$0xff]   ;;  %s3607_s8 = scalar_lea.vmem %s3835_s4, %s3014_s5 }
  0x13   : > { %1800 = vmatpush1.bf16.msra.mxu0 %v3105_v2  ;;  %1512 = vmatprep.subr.bf16.mxu1 %v3354_v0  ;;  %v3110_v7 = vld [vmem:[%s3406_s22 + $0x18] sm:$0xff]   ;;  %v3112_v9 = vld [vmem:[%s3406_s22 + $0x20] sm:$0xff]   ;;  %v3114_v11 = vld [vmem:[%s3406_s22 + $0x28] sm:$0xff]  }
  0x14   : > { %1801 = vmatprep.subr.bf16.mxu0 %v3354_v0  ;;  %v3111_v8 = vld [vmem:[%s3406_s22 + $0x98] sm:$0xff]   ;;  %v3113_v10 = vld [vmem:[%s3406_s22 + $0xa0] sm:$0xff]   ;;  %v3115_v12 = vld [vmem:[%s3406_s22 + $0xa8] sm:$0xff]  }
  0x15   : > { %v3116_v13 = vld [vmem:[%s3406_s22 + $0x30] sm:$0xff]   ;;  %v3118_v15 = vld [vmem:[%s3406_s22 + $0x38] sm:$0xff]   ;;  %v3120_v17 = vld [vmem:[%s3406_s22 + $0x40] sm:$0xff]  }
  0x16   : > { %1513 = vmatpush1.bf16.msra.mxu1 %v3106_v3  ;;  %v3117_v14 = vld [vmem:[%s3406_s22 + $0xb0] sm:$0xff]   ;;  %v3119_v16 = vld [vmem:[%s3406_s22 + $0xb8] sm:$0xff]   ;;  %v3121_v18 = vld [vmem:[%s3406_s22 + $0xc0] sm:$0xff]  }
  0x17   : > { %1802 = vmatpush1.bf16.msra.mxu0 %v3107_v4  ;;  %1514 = vmatprep.subr.bf16.mxu1 %v3354_v0  ;;  %v3138_v19 = vld [vmem:[%s3443_s26 + $0x4] ss:$16 sps:$4 sm:$0xff]   ;;  %v3122_v20 = vld [vmem:[%s3406_s22 + $0x48] sm:$0xff]   ;;  %v3126_v25 = vld [vmem:[%s3406_s22 + $0x58] sm:$0xff]  }
  0x18   : > { %1803 = vmatprep.subr.bf16.mxu0 %v3354_v0  ;;  %v3141_v21 = vld [vmem:[%s3443_s26 + $0xc] ss:$16 sps:$4 sm:$0xff]   ;;  %1542 = vmatprep.mubr.bf16.mxu1 %v3138_v19  ;;  %v3124_v23 = vld [vmem:[%s3406_s22 + $0x50] sm:$0xff]   ;;  %v3128_v27 = vld [vmem:[%s3406_s22 + $0x60] sm:$0xff]  }
  0x19   : > { %v3123_v22 = vld [vmem:[%s3406_s22 + $0xc8] sm:$0xff]   ;;  %1831 = vmatprep.mubr.bf16.mxu0 %v3141_v21  ;;  %v3125_v24 = vld [vmem:[%s3406_s22 + $0xd0] sm:$0xff]   ;;  %v3127_v26 = vld [vmem:[%s3406_s22 + $0xd8] sm:$0xff]  }
  0x1a   : > { %1515 = vmatpush1.bf16.msra.mxu1 %v3108_v5  ;;  %v3129_v28 = vld [vmem:[%s3406_s22 + $0xe0] sm:$0xff]   ;;  %v3130_v29 = vld [vmem:[%s3406_s22 + $0x68] sm:$0xff]   ;;  %v3132_v31 = vld [vmem:[%s3406_s22 + $0x70] sm:$0xff]  }
  0x1b   : > { %1804 = vmatpush1.bf16.msra.mxu0 %v3109_v6  ;;  %1516 = vmatprep.subr.bf16.mxu1 %v3354_v0  ;;  %v3131_v30 = vld [vmem:[%s3406_s22 + $0xe8] sm:$0xff]   ;;  %v3133_v32 = vld [vmem:[%s3406_s22 + $0xf0] sm:$0xff]   ;;  %v3134_v33 = vld [vmem:[%s3406_s22 + $0x78] sm:$0xff]  }
  0x1c   : > { %1805 = vmatprep.subr.bf16.mxu0 %v3354_v0  ;;  %v3135_v34 = vld [vmem:[%s3406_s22 + $0xf8] sm:$0xff]   ;;  %v3136_v35 = vld [vmem:[%s3443_s26] ss:$16 sps:$4 sm:$0xff]   ;;  %v3142_v37 = vld [vmem:[%s3443_s26 + $0x24] ss:$16 sps:$4 sm:$0xff]  }
  0x1d   : > { %v3139_v36 = vld [vmem:[%s3443_s26 + $0x8] ss:$16 sps:$4 sm:$0xff]   ;;  %v3144_v38 = vld [vmem:[%s3443_s26 + $0x2c] ss:$16 sps:$4 sm:$0xff]   ;;  %v3146_v39 = vld [vmem:[%s3443_s26 + $0x20] ss:$16 sps:$4 sm:$0xff]  }
  0x1e   : > { %1517 = vmatpush1.bf16.msra.mxu1 %v3110_v7  ;;  %v3147_v40 = vld [vmem:[%s3443_s26 + $0x28] ss:$16 sps:$4 sm:$0xff]   ;;  %v3148_v41 = vld [vmem:[%s3443_s26 + $0x44] ss:$16 sps:$4 sm:$0xff]   ;;  %v3150_v42 = vld [vmem:[%s3443_s26 + $0x4c] ss:$16 sps:$4 sm:$0xff]  }
  0x1f   : > { %1806 = vmatpush1.bf16.msra.mxu0 %v3111_v8  ;;  %1518 = vmatprep.subr.bf16.mxu1 %v3354_v0  ;;  %v3152_v43 = vld [vmem:[%s3443_s26 + $0x40] ss:$16 sps:$4 sm:$0xff]   ;;  %v3153_v44 = vld [vmem:[%s3443_s26 + $0x48] ss:$16 sps:$4 sm:$0xff]   ;;  %v3154_v45 = vld [vmem:[%s3443_s26 + $0x64] ss:$16 sps:$4 sm:$0xff]  }
  0x20   : > { %1807 = vmatprep.subr.bf16.mxu0 %v3354_v0  ;;  %v3156_v46 = vld [vmem:[%s3443_s26 + $0x6c] ss:$16 sps:$4 sm:$0xff]   ;;  %v3158_v47 = vld [vmem:[%s3443_s26 + $0x60] ss:$16 sps:$4 sm:$0xff]   ;;  %v3159_v48 = vld [vmem:[%s3443_s26 + $0x68] ss:$16 sps:$4 sm:$0xff]  }
  0x21   : > { %v3160_v49 = vld [vmem:[%s3443_s26 + $0x84] ss:$16 sps:$4 sm:$0xff]   ;;  %v3162_v50 = vld [vmem:[%s3443_s26 + $0x8c] ss:$16 sps:$4 sm:$0xff]   ;;  %v3164_v51 = vld [vmem:[%s3443_s26 + $0x80] ss:$16 sps:$4 sm:$0xff]  }
  0x22   : > { %1519 = vmatpush1.bf16.msra.mxu1 %v3112_v9  ;;  %v3165_v52 = vld [vmem:[%s3443_s26 + $0x88] ss:$16 sps:$4 sm:$0xff]   ;;  %v3166_v53 = vld [vmem:[%s3443_s26 + $0xa4] ss:$16 sps:$4 sm:$0xff]   ;;  %v3168_v54 = vld [vmem:[%s3443_s26 + $0xac] ss:$16 sps:$4 sm:$0xff]  }
  0x23   : > { %1808 = vmatpush1.bf16.msra.mxu0 %v3113_v10  ;;  %1520 = vmatprep.subr.bf16.mxu1 %v3354_v0  ;;  %v3170_v55 = vld [vmem:[%s3443_s26 + $0xa0] ss:$16 sps:$4 sm:$0xff]   ;;  %v3171_v56 = vld [vmem:[%s3443_s26 + $0xa8] ss:$16 sps:$4 sm:$0xff]   ;;  %v3172_v57 = vld [vmem:[%s3443_s26 + $0xc4] ss:$16 sps:$4 sm:$0xff]  }
  0x24   : > { %1809 = vmatprep.subr.bf16.mxu0 %v3354_v0  ;;  %v3174_v58 = vld [vmem:[%s3443_s26 + $0xcc] ss:$16 sps:$4 sm:$0xff]   ;;  %v3176_v59 = vld [vmem:[%s3443_s26 + $0xc0] ss:$16 sps:$4 sm:$0xff]   ;;  %v3177_v60 = vld [vmem:[%s3443_s26 + $0xc8] ss:$16 sps:$4 sm:$0xff]  }
  0x25   : > { %v3178_v61 = vld [vmem:[%s3443_s26 + $0xe4] ss:$16 sps:$4 sm:$0xff]   ;;  %v3180_v62 = vld [vmem:[%s3443_s26 + $0xec] ss:$16 sps:$4 sm:$0xff]   ;;  %v3182_v63 = vld [vmem:[%s3443_s26 + $0xe0] ss:$16 sps:$4 sm:$0xff]  }
  0x26   : > { %1521 = vmatpush1.bf16.msra.mxu1 %v3114_v11  ;;  %v3184_v1 = vld [vmem:[%s3443_s26 + $0x104] ss:$16 sps:$4 sm:$0xff]   ;;  %v3186_v2 = vld [vmem:[%s3443_s26 + $0x10c] ss:$16 sps:$4 sm:$0xff]   ;;  %v3188_v3 = vld [vmem:[%s3443_s26 + $0x100] ss:$16 sps:$4 sm:$0xff]  }
  0x27   : > { %1810 = vmatpush1.bf16.msra.mxu0 %v3115_v12  ;;  %1522 = vmatprep.subr.bf16.mxu1 %v3354_v0  ;;  %v3189_v4 = vld [vmem:[%s3443_s26 + $0x108] ss:$16 sps:$4 sm:$0xff]   ;;  %v3190_v5 = vld [vmem:[%s3443_s26 + $0x124] ss:$16 sps:$4 sm:$0xff]   ;;  %v3192_v6 = vld [vmem:[%s3443_s26 + $0x12c] ss:$16 sps:$4 sm:$0xff]  }
  0x28   : > { %1811 = vmatprep.subr.bf16.mxu0 %v3354_v0  ;;  %v3194_v7 = vld [vmem:[%s3443_s26 + $0x120] ss:$16 sps:$4 sm:$0xff]   ;;  %v3195_v8 = vld [vmem:[%s3443_s26 + $0x128] ss:$16 sps:$4 sm:$0xff]   ;;  %v3196_v9 = vld [vmem:[%s3443_s26 + $0x144] ss:$16 sps:$4 sm:$0xff]  }
  0x29   : > { %v3198_v10 = vld [vmem:[%s3443_s26 + $0x14c] ss:$16 sps:$4 sm:$0xff]   ;;  %v3200_v11 = vld [vmem:[%s3443_s26 + $0x140] ss:$16 sps:$4 sm:$0xff]   ;;  %v3201_v12 = vld [vmem:[%s3443_s26 + $0x148] ss:$16 sps:$4 sm:$0xff]  }
  0x2a   : > { %1523 = vmatpush1.bf16.msra.mxu1 %v3116_v13  ;;  %v3202_v13 = vld [vmem:[%s3443_s26 + $0x164] ss:$16 sps:$4 sm:$0xff]   ;;  %v3212_v19 = vld [vmem:[%s3443_s26 + $0x180] ss:$16 sps:$4 sm:$0xff]  }
  0x2b   : > { %1812 = vmatpush1.bf16.msra.mxu0 %v3117_v14  ;;  %1524 = vmatprep.subr.bf16.mxu1 %v3354_v0  ;;  %v3204_v14 = vld [vmem:[%s3443_s26 + $0x16c] ss:$16 sps:$4 sm:$0xff]   ;;  %v3214_v21 = vld [vmem:[%s3443_s26 + $0x1a4] ss:$16 sps:$4 sm:$0xff]  }
  0x2c   : > { %1813 = vmatprep.subr.bf16.mxu0 %v3354_v0 }
  0x2e   : > { %1525 = vmatpush1.bf16.msra.mxu1 %v3118_v15  ;;  %v3206_v15 = vld [vmem:[%s3443_s26 + $0x160] ss:$16 sps:$4 sm:$0xff]  }
  0x2f   : > { %1814 = vmatpush1.bf16.msra.mxu0 %v3119_v16  ;;  %1526 = vmatprep.subr.bf16.mxu1 %v3354_v0  ;;  %v3207_v16 = vld [vmem:[%s3443_s26 + $0x168] ss:$16 sps:$4 sm:$0xff]  }
  0x30   : > { %1815 = vmatprep.subr.bf16.mxu0 %v3354_v0 }
  0x32   : > { %1527 = vmatpush1.bf16.msra.mxu1 %v3120_v17  ;;  %v3208_v17 = vld [vmem:[%s3443_s26 + $0x184] ss:$16 sps:$4 sm:$0xff]  }
  0x33   : > { %1816 = vmatpush1.bf16.msra.mxu0 %v3121_v18  ;;  %1528 = vmatprep.subr.bf16.mxu1 %v3354_v0  ;;  %v3210_v18 = vld [vmem:[%s3443_s26 + $0x18c] ss:$16 sps:$4 sm:$0xff]  }
  0x34   : > { %1817 = vmatprep.subr.bf16.mxu0 %v3354_v0 }
  0x36   : > { %1529 = vmatpush1.bf16.msra.mxu1 %v3122_v20  ;;  %v3213_v20 = vld [vmem:[%s3443_s26 + $0x188] ss:$16 sps:$4 sm:$0xff]  }
  0x37   : > { %1818 = vmatpush1.bf16.msra.mxu0 %v3123_v22  ;;  %1530 = vmatprep.subr.bf16.mxu1 %v3354_v0  ;;  %v3216_v22 = vld [vmem:[%s3443_s26 + $0x1ac] ss:$16 sps:$4 sm:$0xff]  }
  0x38   : > { %1819 = vmatprep.subr.bf16.mxu0 %v3354_v0 }
  0x3a   : > { %1531 = vmatpush1.bf16.msra.mxu1 %v3124_v23  ;;  %v3218_v23 = vld [vmem:[%s3443_s26 + $0x1a0] ss:$16 sps:$4 sm:$0xff]  }
  0x3b   : > { %1820 = vmatpush1.bf16.msra.mxu0 %v3125_v24  ;;  %1532 = vmatprep.subr.bf16.mxu1 %v3354_v0  ;;  %v3219_v24 = vld [vmem:[%s3443_s26 + $0x1a8] ss:$16 sps:$4 sm:$0xff]  }
  0x3c   : > { %1821 = vmatprep.subr.bf16.mxu0 %v3354_v0 }
  0x3e   : > { %1533 = vmatpush1.bf16.msra.mxu1 %v3126_v25  ;;  %v3220_v25 = vld [vmem:[%s3443_s26 + $0x1c4] ss:$16 sps:$4 sm:$0xff]  }
  0x3f   : > { %1822 = vmatpush1.bf16.msra.mxu0 %v3127_v26  ;;  %1534 = vmatprep.subr.bf16.mxu1 %v3354_v0  ;;  %v3222_v26 = vld [vmem:[%s3443_s26 + $0x1cc] ss:$16 sps:$4 sm:$0xff]  }
  0x40   : > { %1823 = vmatprep.subr.bf16.mxu0 %v3354_v0 }
  0x42   : > { %1535 = vmatpush1.bf16.msra.mxu1 %v3128_v27  ;;  %v3224_v27 = vld [vmem:[%s3443_s26 + $0x1c0] ss:$16 sps:$4 sm:$0xff]  }
  0x43   : > { %1824 = vmatpush1.bf16.msra.mxu0 %v3129_v28  ;;  %1536 = vmatprep.subr.bf16.mxu1 %v3354_v0  ;;  %v3225_v28 = vld [vmem:[%s3443_s26 + $0x1c8] ss:$16 sps:$4 sm:$0xff]  }
  0x44   : > { %1825 = vmatprep.subr.bf16.mxu0 %v3354_v0 }
  0x46   : > { %1537 = vmatpush1.bf16.msra.mxu1 %v3130_v29  ;;  %v3226_v29 = vld [vmem:[%s3443_s26 + $0x1e4] ss:$16 sps:$4 sm:$0xff]  }
  0x47   : > { %1826 = vmatpush1.bf16.msra.mxu0 %v3131_v30  ;;  %1538 = vmatprep.subr.bf16.mxu1 %v3354_v0  ;;  %v3228_v30 = vld [vmem:[%s3443_s26 + $0x1ec] ss:$16 sps:$4 sm:$0xff]  }
  0x48   : > { %1827 = vmatprep.subr.bf16.mxu0 %v3354_v0 }
  0x4a   : > { %1539 = vmatpush1.bf16.msra.mxu1 %v3132_v31  ;;  %v3230_v31 = vld [vmem:[%s3443_s26 + $0x1e0] ss:$16 sps:$4 sm:$0xff]  }
  0x4b   : > { %1828 = vmatpush1.bf16.msra.mxu0 %v3133_v32  ;;  %1540 = vmatprep.subr.bf16.mxu1 %v3354_v0  ;;  %v3231_v32 = vld [vmem:[%s3443_s26 + $0x1e8] ss:$16 sps:$4 sm:$0xff]  }
  0x4c   : > { %1829 = vmatprep.subr.bf16.mxu0 %v3354_v0  ;;  %v3183_v0 = vld [vmem:[%s3443_s26 + $0xe8] ss:$16 sps:$4 sm:$0xff]  }
  0x4e   : > { %1541 = vmatpush1.bf16.msra.mxu1 %v3134_v33  ;;  %v3232_v33 = vld [vmem:[%s3443_s26 + $0x204] ss:$16 sps:$4 sm:$0xff]  }
  0x4f   : > { %1830 = vmatpush1.bf16.msra.mxu0 %v3135_v34  ;;  %v3234_v34 = vld [vmem:[%s3443_s26 + $0x20c] ss:$16 sps:$4 sm:$0xff]  }
  0x51   : > { %1543 = vmatmul.mubr.bf16.vlgmr.msra.gmra.mrb[0].mxu1 %v3136_v35  ;;  %v3236_v35 = vld [vmem:[%s3443_s26 + $0x200] ss:$16 sps:$4 sm:$0xff]  }
  0x52   : > { %1832 = vmatmul.mubr.bf16.vlgmr.msra.gmra.mrb[0].mxu0 %v3139_v36  ;;  %1550 = vmatprep.mubr.bf16.mxu1 %v3142_v37  ;;  %v3237_v36 = vld [vmem:[%s3443_s26 + $0x208] ss:$16 sps:$4 sm:$0xff]   ;;  %v3238_v37 = vld [vmem:[%s3443_s26 + $0x224] ss:$16 sps:$4 sm:$0xff]  }
  0x53   : > { %1839 = vmatprep.mubr.bf16.mxu0 %v3144_v38  ;;  %v3240_v38 = vld [vmem:[%s3443_s26 + $0x22c] ss:$16 sps:$4 sm:$0xff]  }
  0x59   : > { %1551 = vmatmul.mubr.bf16.gmra.mrb[4].mxu1 %v3146_v39  ;;  %v3242_v39 = vld [vmem:[%s3443_s26 + $0x220] ss:$16 sps:$4 sm:$0xff]  }
  0x5a   : > { %1840 = vmatmul.mubr.bf16.gmra.mrb[4].mxu0 %v3147_v40  ;;  %1558 = vmatprep.mubr.bf16.mxu1 %v3148_v41  ;;  %v3243_v40 = vld [vmem:[%s3443_s26 + $0x228] ss:$16 sps:$4 sm:$0xff]   ;;  %v3244_v41 = vld [vmem:[%s3443_s26 + $0x244] ss:$16 sps:$4 sm:$0xff]  }
  0x5b   : > { %1847 = vmatprep.mubr.bf16.mxu0 %v3150_v42  ;;  %v3246_v42 = vld [vmem:[%s3443_s26 + $0x24c] ss:$16 sps:$4 sm:$0xff]  }
  0x61   : > { %1559 = vmatmul.mubr.bf16.gmra.mrb[8].mxu1 %v3152_v43  ;;  %v3248_v43 = vld [vmem:[%s3443_s26 + $0x240] ss:$16 sps:$4 sm:$0xff]  }
  0x62   : > { %1848 = vmatmul.mubr.bf16.gmra.mrb[8].mxu0 %v3153_v44  ;;  %1566 = vmatprep.mubr.bf16.mxu1 %v3154_v45  ;;  %v3249_v44 = vld [vmem:[%s3443_s26 + $0x248] ss:$16 sps:$4 sm:$0xff]   ;;  %v3250_v45 = vld [vmem:[%s3443_s26 + $0x264] ss:$16 sps:$4 sm:$0xff]  }
  0x63   : > { %1855 = vmatprep.mubr.bf16.mxu0 %v3156_v46  ;;  %v3252_v46 = vld [vmem:[%s3443_s26 + $0x26c] ss:$16 sps:$4 sm:$0xff]  }
  0x69   : > { %1567 = vmatmul.mubr.bf16.gmra.mrb[12].mxu1 %v3158_v47  ;;  %v3254_v47 = vld [vmem:[%s3443_s26 + $0x260] ss:$16 sps:$4 sm:$0xff]  }
  0x6a   : > { %1856 = vmatmul.mubr.bf16.gmra.mrb[12].mxu0 %v3159_v48  ;;  %1574 = vmatprep.mubr.bf16.mxu1 %v3160_v49  ;;  %v3255_v48 = vld [vmem:[%s3443_s26 + $0x268] ss:$16 sps:$4 sm:$0xff]   ;;  %v3256_v49 = vld [vmem:[%s3443_s26 + $0x284] ss:$16 sps:$4 sm:$0xff]  }
  0x6b   : > { %1863 = vmatprep.mubr.bf16.mxu0 %v3162_v50  ;;  %v3258_v50 = vld [vmem:[%s3443_s26 + $0x28c] ss:$16 sps:$4 sm:$0xff]  }
  0x71   : > { %1575 = vmatmul.mubr.bf16.gmra.mrb[16].mxu1 %v3164_v51  ;;  %v3260_v51 = vld [vmem:[%s3443_s26 + $0x280] ss:$16 sps:$4 sm:$0xff]  }
  0x72   : > { %1864 = vmatmul.mubr.bf16.gmra.mrb[16].mxu0 %v3165_v52  ;;  %1582 = vmatprep.mubr.bf16.mxu1 %v3166_v53  ;;  %v3261_v52 = vld [vmem:[%s3443_s26 + $0x288] ss:$16 sps:$4 sm:$0xff]   ;;  %v3262_v53 = vld [vmem:[%s3443_s26 + $0x2a4] ss:$16 sps:$4 sm:$0xff]  }
  0x73   : > { %1871 = vmatprep.mubr.bf16.mxu0 %v3168_v54  ;;  %v3264_v54 = vld [vmem:[%s3443_s26 + $0x2ac] ss:$16 sps:$4 sm:$0xff]  }
  0x79   : > { %1583 = vmatmul.mubr.bf16.gmra.mrb[20].mxu1 %v3170_v55  ;;  %v3266_v55 = vld [vmem:[%s3443_s26 + $0x2a0] ss:$16 sps:$4 sm:$0xff]  }
  0x7a   : > { %1872 = vmatmul.mubr.bf16.gmra.mrb[20].mxu0 %v3171_v56  ;;  %1590 = vmatprep.mubr.bf16.mxu1 %v3172_v57  ;;  %v3267_v56 = vld [vmem:[%s3443_s26 + $0x2a8] ss:$16 sps:$4 sm:$0xff]   ;;  %v3268_v57 = vld [vmem:[%s3443_s26 + $0x2c4] ss:$16 sps:$4 sm:$0xff]  }
  0x7b   : > { %1879 = vmatprep.mubr.bf16.mxu0 %v3174_v58  ;;  %v3270_v58 = vld [vmem:[%s3443_s26 + $0x2cc] ss:$16 sps:$4 sm:$0xff]  }
  0x81   : > { %1591 = vmatmul.mubr.bf16.gmra.mrb[24].mxu1 %v3176_v59  ;;  %v3272_v59 = vld [vmem:[%s3443_s26 + $0x2c0] ss:$16 sps:$4 sm:$0xff]  }
  0x82   : > { %1880 = vmatmul.mubr.bf16.gmra.mrb[24].mxu0 %v3177_v60  ;;  %1598 = vmatprep.mubr.bf16.mxu1 %v3178_v61  ;;  %v3273_v60 = vld [vmem:[%s3443_s26 + $0x2c8] ss:$16 sps:$4 sm:$0xff]   ;;  %v3274_v61 = vld [vmem:[%s3443_s26 + $0x2e4] ss:$16 sps:$4 sm:$0xff]  }
  0x83   : > { %1887 = vmatprep.mubr.bf16.mxu0 %v3180_v62  ;;  %v3276_v62 = vld [vmem:[%s3443_s26 + $0x2ec] ss:$16 sps:$4 sm:$0xff]  }
  0x89   : > { %1599 = vmatmul.mubr.bf16.gmra.mrb[28].mxu1 %v3182_v63  ;;  %v3278_v63 = vld [vmem:[%s3443_s26 + $0x2e0] ss:$16 sps:$4 sm:$0xff]  }
  0x8a   : > { %1888 = vmatmul.mubr.bf16.gmra.mrb[28].mxu0 %v3183_v0  ;;  %1606 = vmatprep.mubr.bf16.mxu1 %v3184_v1  ;;  %v3279_v0 = vld [vmem:[%s3443_s26 + $0x2e8] ss:$16 sps:$4 sm:$0xff]   ;;  %v3280_v1 = vld [vmem:[%s3443_s26 + $0x304] ss:$16 sps:$4 sm:$0xff]  }
  0x8b   : > { %1895 = vmatprep.mubr.bf16.mxu0 %v3186_v2  ;;  %v3282_v2 = vld [vmem:[%s3443_s26 + $0x30c] ss:$16 sps:$4 sm:$0xff]  }
  0x91   : > { %1607 = vmatmul.mubr.bf16.gmra.mrb[32].mxu1 %v3188_v3  ;;  %v3284_v3 = vld [vmem:[%s3443_s26 + $0x300] ss:$16 sps:$4 sm:$0xff]  }
  0x92   : > { %1896 = vmatmul.mubr.bf16.gmra.mrb[32].mxu0 %v3189_v4  ;;  %1614 = vmatprep.mubr.bf16.mxu1 %v3190_v5  ;;  %v3285_v4 = vld [vmem:[%s3443_s26 + $0x308] ss:$16 sps:$4 sm:$0xff]   ;;  %v3286_v5 = vld [vmem:[%s3443_s26 + $0x324] ss:$16 sps:$4 sm:$0xff]  }
  0x93   : > { %1903 = vmatprep.mubr.bf16.mxu0 %v3192_v6  ;;  %v3288_v6 = vld [vmem:[%s3443_s26 + $0x32c] ss:$16 sps:$4 sm:$0xff]  }
  0x99   : > { %1615 = vmatmul.mubr.bf16.gmra.mrb[36].mxu1 %v3194_v7  ;;  %v3290_v7 = vld [vmem:[%s3443_s26 + $0x320] ss:$16 sps:$4 sm:$0xff]  }
  0x9a   : > { %1904 = vmatmul.mubr.bf16.gmra.mrb[36].mxu0 %v3195_v8  ;;  %1622 = vmatprep.mubr.bf16.mxu1 %v3196_v9  ;;  %v3291_v8 = vld [vmem:[%s3443_s26 + $0x328] ss:$16 sps:$4 sm:$0xff]   ;;  %v3292_v9 = vld [vmem:[%s3443_s26 + $0x344] ss:$16 sps:$4 sm:$0xff]  }
  0x9b   : > { %1911 = vmatprep.mubr.bf16.mxu0 %v3198_v10  ;;  %v3294_v10 = vld [vmem:[%s3443_s26 + $0x34c] ss:$16 sps:$4 sm:$0xff]  }
  0xa1   : > { %1623 = vmatmul.mubr.bf16.gmra.mrb[40].mxu1 %v3200_v11  ;;  %v3296_v11 = vld [vmem:[%s3443_s26 + $0x340] ss:$16 sps:$4 sm:$0xff]  }
  0xa2   : > { %1912 = vmatmul.mubr.bf16.gmra.mrb[40].mxu0 %v3201_v12  ;;  %1630 = vmatprep.mubr.bf16.mxu1 %v3202_v13  ;;  %v3297_v12 = vld [vmem:[%s3443_s26 + $0x348] ss:$16 sps:$4 sm:$0xff]   ;;  %v3298_v13 = vld [vmem:[%s3443_s26 + $0x364] ss:$16 sps:$4 sm:$0xff]  }
  0xa3   : > { %1919 = vmatprep.mubr.bf16.mxu0 %v3204_v14  ;;  %v3300_v14 = vld [vmem:[%s3443_s26 + $0x36c] ss:$16 sps:$4 sm:$0xff]  }
  0xa9   : > { %1631 = vmatmul.mubr.bf16.gmra.mrb[44].mxu1 %v3206_v15 }
  0xaa   : > { %1920 = vmatmul.mubr.bf16.gmra.mrb[44].mxu0 %v3207_v16  ;;  %1638 = vmatprep.mubr.bf16.mxu1 %v3208_v17  ;;  %v3589_v17 = vld [vmem:[%s3833_s2] ss:$0 sm:$0xff] }
  0xab   : > { %1927 = vmatprep.mubr.bf16.mxu0 %v3210_v18 }
  0xb1   : > { %1639 = vmatmul.mubr.bf16.gmra.mrb[48].mxu1 %v3212_v19  ;;  %v3302_v19 = vld [vmem:[%s3443_s26 + $0x360] ss:$16 sps:$4 sm:$0xff]  }
  0xb2   : > { %1928 = vmatmul.mubr.bf16.gmra.mrb[48].mxu0 %v3213_v20  ;;  %1646 = vmatprep.mubr.bf16.mxu1 %v3214_v21 }
  0xb3   : > { %1935 = vmatprep.mubr.bf16.mxu0 %v3216_v22 }
  0xb9   : > { %1647 = vmatmul.mubr.bf16.gmra.mrb[52].mxu1 %v3218_v23  ;;  %v3303_v23 = vld [vmem:[%s3443_s26 + $0x368] ss:$16 sps:$4 sm:$0xff]  }
  0xba   : > { %1936 = vmatmul.mubr.bf16.gmra.mrb[52].mxu0 %v3219_v24  ;;  %1654 = vmatprep.mubr.bf16.mxu1 %v3220_v25  ;;  %v3304_v24 = vld [vmem:[%s3443_s26 + $0x384] ss:$16 sps:$4 sm:$0xff]   ;;  %v3597_v25 = vld [vmem:[%s3834_s3] ss:$0 sm:$0xff] }
  0xbb   : > { %1943 = vmatprep.mubr.bf16.mxu0 %v3222_v26 }
  0xc1   : > { %1655 = vmatmul.mubr.bf16.gmra.mrb[56].mxu1 %v3224_v27 }
  0xc2   : > { %1944 = vmatmul.mubr.bf16.gmra.mrb[56].mxu0 %v3225_v28  ;;  %1662 = vmatprep.mubr.bf16.mxu1 %v3226_v29  ;;  %v3306_v28 = vld [vmem:[%s3443_s26 + $0x38c] ss:$16 sps:$4 sm:$0xff]  }
  0xc3   : > { %1951 = vmatprep.mubr.bf16.mxu0 %v3228_v30 }
  0xc9   : > { %1663 = vmatmul.mubr.bf16.gmra.mrb[60].mxu1 %v3230_v31 }
  0xca   : > { %1952 = vmatmul.mubr.bf16.gmra.mrb[60].mxu0 %v3231_v32  ;;  %1670 = vmatprep.mubr.bf16.mxu1 %v3232_v33 }
  0xcb   : > { %1959 = vmatprep.mubr.bf16.mxu0 %v3234_v34 }
  0xd1   : > { %1671 = vmatmul.mubr.bf16.gmra.mrb[64].mxu1 %v3236_v35 }
  0xd2   : > { %1960 = vmatmul.mubr.bf16.gmra.mrb[64].mxu0 %v3237_v36  ;;  %1678 = vmatprep.mubr.bf16.mxu1 %v3238_v37  ;;  %v3308_v37 = vld [vmem:[%s3443_s26 + $0x380] ss:$16 sps:$4 sm:$0xff]  }
  0xd3   : > { %1967 = vmatprep.mubr.bf16.mxu0 %v3240_v38 }
  0xd9   : > { %1679 = vmatmul.mubr.bf16.gmra.mrb[68].mxu1 %v3242_v39 }
  0xda   : > { %1968 = vmatmul.mubr.bf16.gmra.mrb[68].mxu0 %v3243_v40  ;;  %1686 = vmatprep.mubr.bf16.mxu1 %v3244_v41  ;;  %v3309_v40 = vld [vmem:[%s3443_s26 + $0x388] ss:$16 sps:$4 sm:$0xff]   ;;  %v3310_v41 = vld [vmem:[%s3443_s26 + $0x3a4] ss:$16 sps:$4 sm:$0xff]  }
  0xdb   : > { %1975 = vmatprep.mubr.bf16.mxu0 %v3246_v42 }
  0xe1   : > { %1687 = vmatmul.mubr.bf16.gmra.mrb[72].mxu1 %v3248_v43 }
  0xe2   : > { %1976 = vmatmul.mubr.bf16.gmra.mrb[72].mxu0 %v3249_v44  ;;  %1694 = vmatprep.mubr.bf16.mxu1 %v3250_v45 }
  0xe3   : > { %1983 = vmatprep.mubr.bf16.mxu0 %v3252_v46 }
  0xe9   : > { %1695 = vmatmul.mubr.bf16.gmra.mrb[76].mxu1 %v3254_v47 }
  0xea   : > { %1984 = vmatmul.mubr.bf16.gmra.mrb[76].mxu0 %v3255_v48  ;;  %1702 = vmatprep.mubr.bf16.mxu1 %v3256_v49  ;;  %v3312_v49 = vld [vmem:[%s3443_s26 + $0x3ac] ss:$16 sps:$4 sm:$0xff]  }
  0xeb   : > { %1991 = vmatprep.mubr.bf16.mxu0 %v3258_v50 }
  0xf1   : > { %1703 = vmatmul.mubr.bf16.gmra.mrb[80].mxu1 %v3260_v51 }
  0xf2   : > { %1992 = vmatmul.mubr.bf16.gmra.mrb[80].mxu0 %v3261_v52  ;;  %1710 = vmatprep.mubr.bf16.mxu1 %v3262_v53 }
  0xf3   : > { %1999 = vmatprep.mubr.bf16.mxu0 %v3264_v54 }
  0xf9   : > { %1711 = vmatmul.mubr.bf16.gmra.mrb[84].mxu1 %v3266_v55 }
  0xfa   : > { %2000 = vmatmul.mubr.bf16.gmra.mrb[84].mxu0 %v3267_v56  ;;  %1718 = vmatprep.mubr.bf16.mxu1 %v3268_v57 }
  0xfb   : > { %2007 = vmatprep.mubr.bf16.mxu0 %v3270_v58 }
 0x101   : > { %1719 = vmatmul.mubr.bf16.gmra.mrb[88].mxu1 %v3272_v59  ;;  %v3314_v59 = vld [vmem:[%s3443_s26 + $0x3a0] ss:$16 sps:$4 sm:$0xff]  }
 0x102   : > { %2008 = vmatmul.mubr.bf16.gmra.mrb[88].mxu0 %v3273_v60  ;;  %1726 = vmatprep.mubr.bf16.mxu1 %v3274_v61 }
 0x103   : > { %2015 = vmatprep.mubr.bf16.mxu0 %v3276_v62  ;;  %v3315_v62 = vld [vmem:[%s3443_s26 + $0x3a8] ss:$16 sps:$4 sm:$0xff]  }
 0x109   : > { %1727 = vmatmul.mubr.bf16.gmra.mrb[92].mxu1 %v3278_v63  ;;  %v3316_v63 = vld [vmem:[%s3443_s26 + $0x3c4] ss:$16 sps:$4 sm:$0xff]  }
 0x10a   : > { %2016 = vmatmul.mubr.bf16.gmra.mrb[92].mxu0 %v3279_v0  ;;  %1734 = vmatprep.mubr.bf16.mxu1 %v3280_v1 }
 0x10b   : > { %2023 = vmatprep.mubr.bf16.mxu0 %v3282_v2 }
 0x111   : > { %1735 = vmatmul.mubr.bf16.gmra.mrb[96].mxu1 %v3284_v3 }
 0x112   : > { %2024 = vmatmul.mubr.bf16.gmra.mrb[96].mxu0 %v3285_v4  ;;  %1742 = vmatprep.mubr.bf16.mxu1 %v3286_v5 }
 0x113   : > { %2031 = vmatprep.mubr.bf16.mxu0 %v3288_v6 }
 0x119   : > { %1743 = vmatmul.mubr.bf16.gmra.mrb[100].mxu1 %v3290_v7  ;;  %v3318_v7 = vld [vmem:[%s3443_s26 + $0x3cc] ss:$16 sps:$4 sm:$0xff]  }
 0x11a   : > { %2032 = vmatmul.mubr.bf16.gmra.mrb[100].mxu0 %v3291_v8  ;;  %1750 = vmatprep.mubr.bf16.mxu1 %v3292_v9 }
 0x11b   : > { %2039 = vmatprep.mubr.bf16.mxu0 %v3294_v10 }
 0x121   : > { %1751 = vmatmul.mubr.bf16.gmra.mrb[104].mxu1 %v3296_v11 }
 0x122   : > { %2040 = vmatmul.mubr.bf16.gmra.mrb[104].mxu0 %v3297_v12  ;;  %1758 = vmatprep.mubr.bf16.mxu1 %v3298_v13 }
 0x123   : > { %2047 = vmatprep.mubr.bf16.mxu0 %v3300_v14 }
 0x124   : > { %v1544_v15 = vpop.f32.mrb[0].mxu1 }
 0x125   : > { %v1833_v16 = vpop.f32.mrb[0].mxu0  ;;  %v1546_v18 = vpop.f32.mrb[1].mxu1 }
 0x126   : > { %v1834_v20 = vadd.f32 %v1833_v16, %v1544_v15  ;;  %v1835_v21 = vpop.f32.mrb[1].mxu0  ;;  %v1547_v22 = vpop.f32.mrb[2].mxu1  ;;  %v3320_v18 = vld [vmem:[%s3443_s26 + $0x3c0] ss:$16 sps:$4 sm:$0xff]  }
 0x127   : > { %v1836_v26 = vpop.f32.mrb[2].mxu0  ;;  %v1549_v27 = vpop.f32.mrb[3].mxu1  ;;  %v3321_v21 = vld [vmem:[%s3443_s26 + $0x3c8] ss:$16 sps:$4 sm:$0xff]  }
 0x128   : > { %v2290_v29 = vmul.f32 %v3589_v17, %v1834_v20  ;;  %v1837_v30 = vadd.f32 %v1836_v26, %v1547_v22  ;;  %v1838_v31 = vpop.f32.mrb[3].mxu0  ;;  %v3322_v22 = vld [vmem:[%s3443_s26 + $0x3e4] ss:$16 sps:$4 sm:$0xff]  }
 0x129   : > { %1759 = vmatmul.mubr.bf16.gmra.mrb[108].mxu1 %v3302_v19  ;;  %v3324_v31 = vld [vmem:[%s3443_s26 + $0x3ec] ss:$16 sps:$4 sm:$0xff]  }
 0x12a   : > { %v2361_v32 = vadd.f32 %v3597_v25, %v2290_v29  ;;  %v2291_v33 = vmul.f32 %v3589_v17, %v1837_v30  ;;  %2048 = vmatmul.mubr.bf16.gmra.mrb[108].mxu0 %v3303_v23  ;;  %1766 = vmatprep.mubr.bf16.mxu1 %v3304_v24 }
 0x12b   : > { %2055 = vmatprep.mubr.bf16.mxu0 %v3306_v28 }
 0x12c   : > { %vm2425_vm0 = vcmp.ge.f32.partialorder %v2361_v32, 0.0  ;;  %v2489_v34 = vmul.f32 0.01, %v2361_v32  ;;  %v2362_v35 = vadd.f32 %v3597_v25, %v2291_v33  ;;  %v1552_v36 = vpop.f32.mrb[4].mxu1 }
 0x12d   : > { %v1841_v38 = vpop.f32.mrb[4].mxu0  ;;  %v1554_v39 = vpop.f32.mrb[5].mxu1 }
 0x12e   : > { %v2553_v42 = vsel %vm2425_vm0, %v2361_v32, %v2489_v34  ;;  %vm2426_vm1 = vcmp.ge.f32.partialorder %v2362_v35, 0.0  ;;  %v2490_v43 = vmul.f32 0.01, %v2362_v35  ;;  %v1842_v44 = vadd.f32 %v1841_v38, %v1552_v36  ;;  %v1843_v45 = vpop.f32.mrb[5].mxu0  ;;  %v1555_v46 = vpop.f32.mrb[6].mxu1 }
 0x12f   : > { %2617 = vst [vmem:[%s3607_s8] sm:$0xff] %v2553_v42  ;;  %v1844_v47 = vpop.f32.mrb[6].mxu0  ;;  %v1557_v48 = vpop.f32.mrb[7].mxu1 }
 0x130   : > { %v2554_v50 = vsel %vm2426_vm1, %v2362_v35, %v2490_v43  ;;  %v2292_v51 = vmul.f32 %v3589_v17, %v1842_v44  ;;  %v1845_v52 = vadd.f32 %v1844_v47, %v1555_v46  ;;  %v1846_v53 = vpop.f32.mrb[7].mxu0  ;;  %v3326_v43 = vld [vmem:[%s3443_s26 + $0x3e0] ss:$16 sps:$4 sm:$0xff]   ;;  %v3327_v44 = vld [vmem:[%s3443_s26 + $0x3e8] ss:$16 sps:$4 sm:$0xff]  }
 0x131   : > { %2618 = vst [vmem:[%s3607_s8 + $0x8] sm:$0xff] %v2554_v50  ;;  %1767 = vmatmul.mubr.bf16.gmra.mrb[112].mxu1 %v3308_v37 }
 0x132   : > { %v2363_v54 = vadd.f32 %v3597_v25, %v2292_v51  ;;  %v2293_v55 = vmul.f32 %v3589_v17, %v1845_v52  ;;  %2056 = vmatmul.mubr.bf16.gmra.mrb[112].mxu0 %v3309_v40  ;;  %1774 = vmatprep.mubr.bf16.mxu1 %v3310_v41 }
 0x133   : > { %2063 = vmatprep.mubr.bf16.mxu0 %v3312_v49 }
 0x134   : > { %vm2427_vm2 = vcmp.ge.f32.partialorder %v2363_v54, 0.0  ;;  %v2491_v56 = vmul.f32 0.01, %v2363_v54  ;;  %v2364_v57 = vadd.f32 %v3597_v25, %v2293_v55  ;;  %v1560_v58 = vpop.f32.mrb[8].mxu1 }
 0x135   : > { %v1849_v60 = vpop.f32.mrb[8].mxu0  ;;  %v1562_v61 = vpop.f32.mrb[9].mxu1 }
 0x136   : > { %v2555_v0 = vsel %vm2427_vm2, %v2363_v54, %v2491_v56  ;;  %vm2428_vm3 = vcmp.ge.f32.partialorder %v2364_v57, 0.0  ;;  %v2492_v1 = vmul.f32 0.01, %v2364_v57  ;;  %v1850_v2 = vadd.f32 %v1849_v60, %v1560_v58  ;;  %v1851_v3 = vpop.f32.mrb[9].mxu0  ;;  %v1563_v4 = vpop.f32.mrb[10].mxu1 }
 0x137   : > { %2619 = vst [vmem:[%s3607_s8 + $0x10] sm:$0xff] %v2555_v0  ;;  %v1852_v5 = vpop.f32.mrb[10].mxu0  ;;  %v1565_v6 = vpop.f32.mrb[11].mxu1 }
 0x138   : > { %v2556_v8 = vsel %vm2428_vm3, %v2364_v57, %v2492_v1  ;;  %v2294_v9 = vmul.f32 %v3589_v17, %v1850_v2  ;;  %v1853_v10 = vadd.f32 %v1852_v5, %v1563_v4  ;;  %v1854_v11 = vpop.f32.mrb[11].mxu0 }
 0x139   : > { %2620 = vst [vmem:[%s3607_s8 + $0x18] sm:$0xff] %v2556_v8  ;;  %1775 = vmatmul.mubr.bf16.gmra.mrb[116].mxu1 %v3314_v59 }
 0x13a   : > { %v2365_v12 = vadd.f32 %v3597_v25, %v2294_v9  ;;  %v2295_v13 = vmul.f32 %v3589_v17, %v1853_v10  ;;  %2064 = vmatmul.mubr.bf16.gmra.mrb[116].mxu0 %v3315_v62  ;;  %1782 = vmatprep.mubr.bf16.mxu1 %v3316_v63 }
 0x13b   : > { %2071 = vmatprep.mubr.bf16.mxu0 %v3318_v7 }
 0x13c   : > { %vm2429_vm4 = vcmp.ge.f32.partialorder %v2365_v12, 0.0  ;;  %v2493_v14 = vmul.f32 0.01, %v2365_v12  ;;  %v2366_v15 = vadd.f32 %v3597_v25, %v2295_v13  ;;  %v1568_v16 = vpop.f32.mrb[12].mxu1 }
 0x13d   : > { %v1857_v19 = vpop.f32.mrb[12].mxu0  ;;  %v1570_v20 = vpop.f32.mrb[13].mxu1 }
 0x13e   : > { %v2557_v23 = vsel %vm2429_vm4, %v2365_v12, %v2493_v14  ;;  %vm2430_vm5 = vcmp.ge.f32.partialorder %v2366_v15, 0.0  ;;  %v2494_v24 = vmul.f32 0.01, %v2366_v15  ;;  %v1858_v26 = vadd.f32 %v1857_v19, %v1568_v16  ;;  %v1859_v27 = vpop.f32.mrb[13].mxu0  ;;  %v1571_v28 = vpop.f32.mrb[14].mxu1 }
 0x13f   : > { %2621 = vst [vmem:[%s3607_s8 + $0x20] sm:$0xff] %v2557_v23  ;;  %v1860_v29 = vpop.f32.mrb[14].mxu0  ;;  %v1573_v30 = vpop.f32.mrb[15].mxu1 }
 0x140   : > { %v2558_v32 = vsel %vm2430_vm5, %v2366_v15, %v2494_v24  ;;  %v2296_v33 = vmul.f32 %v3589_v17, %v1858_v26  ;;  %v1861_v34 = vadd.f32 %v1860_v29, %v1571_v28  ;;  %v1862_v35 = vpop.f32.mrb[15].mxu0 }
 0x141   : > { %2622 = vst [vmem:[%s3607_s8 + $0x28] sm:$0xff] %v2558_v32  ;;  %1783 = vmatmul.mubr.bf16.gmra.mrb[120].mxu1 %v3320_v18 }
 0x142   : > { %v2367_v36 = vadd.f32 %v3597_v25, %v2296_v33  ;;  %v2297_v37 = vmul.f32 %v3589_v17, %v1861_v34  ;;  %2072 = vmatmul.mubr.bf16.gmra.mrb[120].mxu0 %v3321_v21  ;;  %1790 = vmatprep.mubr.bf16.mxu1 %v3322_v22 }
 0x143   : > { %2079 = vmatprep.mubr.bf16.mxu0 %v3324_v31 }
 0x144   : > { %vm2431_vm6 = vcmp.ge.f32.partialorder %v2367_v36, 0.0  ;;  %v2495_v38 = vmul.f32 0.01, %v2367_v36  ;;  %v2368_v39 = vadd.f32 %v3597_v25, %v2297_v37  ;;  %v1576_v40 = vpop.f32.mrb[16].mxu1 }
 0x145   : > { %v1865_v41 = vpop.f32.mrb[16].mxu0  ;;  %v1578_v42 = vpop.f32.mrb[17].mxu1 }
 0x146   : > { %v2559_v45 = vsel %vm2431_vm6, %v2367_v36, %v2495_v38  ;;  %vm2432_vm7 = vcmp.ge.f32.partialorder %v2368_v39, 0.0  ;;  %v2496_v46 = vmul.f32 0.01, %v2368_v39  ;;  %v1866_v47 = vadd.f32 %v1865_v41, %v1576_v40  ;;  %v1867_v48 = vpop.f32.mrb[17].mxu0  ;;  %v1579_v49 = vpop.f32.mrb[18].mxu1 }
 0x147   : > { %2623 = vst [vmem:[%s3607_s8 + $0x30] sm:$0xff] %v2559_v45  ;;  %v1868_v50 = vpop.f32.mrb[18].mxu0  ;;  %v1581_v51 = vpop.f32.mrb[19].mxu1 }
 0x148   : > { %v2560_v52 = vsel %vm2432_vm7, %v2368_v39, %v2496_v46  ;;  %v2298_v53 = vmul.f32 %v3589_v17, %v1866_v47  ;;  %v1869_v54 = vadd.f32 %v1868_v50, %v1579_v49  ;;  %v1870_v55 = vpop.f32.mrb[19].mxu0 }
 0x149   : > { %2624 = vst [vmem:[%s3607_s8 + $0x38] sm:$0xff] %v2560_v52  ;;  %1791 = vmatmul.mubr.bf16.gmra.mrb[124].mxu1 %v3326_v43 }
 0x14a   : > { %v2369_v56 = vadd.f32 %v3597_v25, %v2298_v53  ;;  %v2299_v57 = vmul.f32 %v3589_v17, %v1869_v54  ;;  %2080 = vmatmul.mubr.bf16.gmra.mrb[124].mxu0 %v3327_v44 }
 0x14c   : > { %vm2433_vm8 = vcmp.ge.f32.partialorder %v2369_v56, 0.0  ;;  %v2497_v58 = vmul.f32 0.01, %v2369_v56  ;;  %v2370_v59 = vadd.f32 %v3597_v25, %v2299_v57  ;;  %v1584_v60 = vpop.f32.mrb[20].mxu1 }
 0x14d   : > { %v1873_v61 = vpop.f32.mrb[20].mxu0  ;;  %v1586_v62 = vpop.f32.mrb[21].mxu1 }
 0x14e   : > { %v2561_v63 = vsel %vm2433_vm8, %v2369_v56, %v2497_v58  ;;  %vm2434_vm9 = vcmp.ge.f32.partialorder %v2370_v59, 0.0  ;;  %v2498_v0 = vmul.f32 0.01, %v2370_v59  ;;  %v1874_v1 = vadd.f32 %v1873_v61, %v1584_v60  ;;  %v1875_v2 = vpop.f32.mrb[21].mxu0  ;;  %v1587_v3 = vpop.f32.mrb[22].mxu1 }
 0x14f   : > { %2625 = vst [vmem:[%s3607_s8 + $0x40] sm:$0xff] %v2561_v63  ;;  %v1876_v4 = vpop.f32.mrb[22].mxu0  ;;  %v1589_v5 = vpop.f32.mrb[23].mxu1 }
 0x150   : > { %v2562_v6 = vsel %vm2434_vm9, %v2370_v59, %v2498_v0  ;;  %v2300_v7 = vmul.f32 %v3589_v17, %v1874_v1  ;;  %v1877_v8 = vadd.f32 %v1876_v4, %v1587_v3  ;;  %v1878_v9 = vpop.f32.mrb[23].mxu0 }
 0x151   : > { %2626 = vst [vmem:[%s3607_s8 + $0x48] sm:$0xff] %v2562_v6 }
 0x152   : > { %v2371_v10 = vadd.f32 %v3597_v25, %v2300_v7  ;;  %v2301_v11 = vmul.f32 %v3589_v17, %v1877_v8 }
 0x154   : > { %vm2435_vm10 = vcmp.ge.f32.partialorder %v2371_v10, 0.0  ;;  %v2499_v12 = vmul.f32 0.01, %v2371_v10  ;;  %v2372_v13 = vadd.f32 %v3597_v25, %v2301_v11  ;;  %v1592_v14 = vpop.f32.mrb[24].mxu1 }
 0x155   : > { %v1881_v15 = vpop.f32.mrb[24].mxu0  ;;  %v1594_v16 = vpop.f32.mrb[25].mxu1 }
 0x156   : > { %v2563_v18 = vsel %vm2435_vm10, %v2371_v10, %v2499_v12  ;;  %vm2436_vm11 = vcmp.ge.f32.partialorder %v2372_v13, 0.0  ;;  %v2500_v19 = vmul.f32 0.01, %v2372_v13  ;;  %v1882_v20 = vadd.f32 %v1881_v15, %v1592_v14  ;;  %v1883_v21 = vpop.f32.mrb[25].mxu0  ;;  %v1595_v22 = vpop.f32.mrb[26].mxu1 }
 0x157   : > { %2627 = vst [vmem:[%s3607_s8 + $0x50] sm:$0xff] %v2563_v18  ;;  %v1884_v23 = vpop.f32.mrb[26].mxu0  ;;  %v1597_v24 = vpop.f32.mrb[27].mxu1 }
 0x158   : > { %v2564_v26 = vsel %vm2436_vm11, %v2372_v13, %v2500_v19  ;;  %v2302_v27 = vmul.f32 %v3589_v17, %v1882_v20  ;;  %v1885_v28 = vadd.f32 %v1884_v23, %v1595_v22  ;;  %v1886_v29 = vpop.f32.mrb[27].mxu0 }
 0x159   : > { %2628 = vst [vmem:[%s3607_s8 + $0x58] sm:$0xff] %v2564_v26 }
 0x15a   : > { %v2373_v30 = vadd.f32 %v3597_v25, %v2302_v27  ;;  %v2303_v31 = vmul.f32 %v3589_v17, %v1885_v28 }
 0x15c   : > { %vm2437_vm12 = vcmp.ge.f32.partialorder %v2373_v30, 0.0  ;;  %v2501_v32 = vmul.f32 0.01, %v2373_v30  ;;  %v2374_v33 = vadd.f32 %v3597_v25, %v2303_v31  ;;  %v1600_v34 = vpop.f32.mrb[28].mxu1 }
 0x15d   : > { %v1889_v35 = vpop.f32.mrb[28].mxu0  ;;  %v1602_v36 = vpop.f32.mrb[29].mxu1 }
 0x15e   : > { %v2565_v37 = vsel %vm2437_vm12, %v2373_v30, %v2501_v32  ;;  %vm2438_vm13 = vcmp.ge.f32.partialorder %v2374_v33, 0.0  ;;  %v2502_v38 = vmul.f32 0.01, %v2374_v33  ;;  %v1890_v39 = vadd.f32 %v1889_v35, %v1600_v34  ;;  %v1891_v40 = vpop.f32.mrb[29].mxu0  ;;  %v1603_v41 = vpop.f32.mrb[30].mxu1 }
 0x15f   : > { %2629 = vst [vmem:[%s3607_s8 + $0x60] sm:$0xff] %v2565_v37  ;;  %v1892_v42 = vpop.f32.mrb[30].mxu0  ;;  %v1605_v43 = vpop.f32.mrb[31].mxu1 }
 0x160   : > { %v2566_v44 = vsel %vm2438_vm13, %v2374_v33, %v2502_v38  ;;  %v2304_v45 = vmul.f32 %v3589_v17, %v1890_v39  ;;  %v1893_v46 = vadd.f32 %v1892_v42, %v1603_v41  ;;  %v1894_v47 = vpop.f32.mrb[31].mxu0 }
 0x161   : > { %2630 = vst [vmem:[%s3607_s8 + $0x68] sm:$0xff] %v2566_v44 }
 0x162   : > { %v2375_v48 = vadd.f32 %v3597_v25, %v2304_v45  ;;  %v2305_v49 = vmul.f32 %v3589_v17, %v1893_v46 }
 0x164   : > { %vm2439_vm14 = vcmp.ge.f32.partialorder %v2375_v48, 0.0  ;;  %v2503_v50 = vmul.f32 0.01, %v2375_v48  ;;  %v2376_v51 = vadd.f32 %v3597_v25, %v2305_v49  ;;  %v1608_v52 = vpop.f32.mrb[32].mxu1 }
 0x165   : > { %v1897_v53 = vpop.f32.mrb[32].mxu0  ;;  %v1610_v54 = vpop.f32.mrb[33].mxu1 }
 0x166   : > { %v2567_v55 = vsel %vm2439_vm14, %v2375_v48, %v2503_v50  ;;  %vm2440_vm15 = vcmp.ge.f32.partialorder %v2376_v51, 0.0  ;;  %v2504_v56 = vmul.f32 0.01, %v2376_v51  ;;  %v1898_v57 = vadd.f32 %v1897_v53, %v1608_v52  ;;  %v1899_v58 = vpop.f32.mrb[33].mxu0  ;;  %v1611_v59 = vpop.f32.mrb[34].mxu1 }
 0x167   : > { %2631 = vst [vmem:[%s3607_s8 + $0x70] sm:$0xff] %v2567_v55  ;;  %v1900_v60 = vpop.f32.mrb[34].mxu0  ;;  %v1613_v61 = vpop.f32.mrb[35].mxu1 }
 0x168   : > { %v2568_v62 = vsel %vm2440_vm15, %v2376_v51, %v2504_v56  ;;  %v2306_v63 = vmul.f32 %v3589_v17, %v1898_v57  ;;  %v1901_v0 = vadd.f32 %v1900_v60, %v1611_v59  ;;  %v1902_v1 = vpop.f32.mrb[35].mxu0 }
 0x169   : > { %2632 = vst [vmem:[%s3607_s8 + $0x78] sm:$0xff] %v2568_v62 }
 0x16a   : > { %v2377_v2 = vadd.f32 %v3597_v25, %v2306_v63  ;;  %v2307_v3 = vmul.f32 %v3589_v17, %v1901_v0 }
 0x16c   : > { %vm2441_vm0 = vcmp.ge.f32.partialorder %v2377_v2, 0.0  ;;  %v2505_v4 = vmul.f32 0.01, %v2377_v2  ;;  %v2378_v5 = vadd.f32 %v3597_v25, %v2307_v3  ;;  %v1616_v6 = vpop.f32.mrb[36].mxu1 }
 0x16d   : > { %v1905_v7 = vpop.f32.mrb[36].mxu0  ;;  %v1618_v8 = vpop.f32.mrb[37].mxu1 }
 0x16e   : > { %v2569_v9 = vsel %vm2441_vm0, %v2377_v2, %v2505_v4  ;;  %vm2442_vm1 = vcmp.ge.f32.partialorder %v2378_v5, 0.0  ;;  %v2506_v10 = vmul.f32 0.01, %v2378_v5  ;;  %v1906_v11 = vadd.f32 %v1905_v7, %v1616_v6  ;;  %v1907_v12 = vpop.f32.mrb[37].mxu0  ;;  %v1619_v13 = vpop.f32.mrb[38].mxu1 }
 0x16f   : > { %2633 = vst [vmem:[%s3607_s8 + $0x80] sm:$0xff] %v2569_v9  ;;  %v1908_v14 = vpop.f32.mrb[38].mxu0  ;;  %v1621_v15 = vpop.f32.mrb[39].mxu1 }
 0x170   : > { %v2570_v16 = vsel %vm2442_vm1, %v2378_v5, %v2506_v10  ;;  %v2308_v18 = vmul.f32 %v3589_v17, %v1906_v11  ;;  %v1909_v19 = vadd.f32 %v1908_v14, %v1619_v13  ;;  %v1910_v20 = vpop.f32.mrb[39].mxu0 }
 0x171   : > { %2634 = vst [vmem:[%s3607_s8 + $0x88] sm:$0xff] %v2570_v16 }
 0x172   : > { %v2379_v21 = vadd.f32 %v3597_v25, %v2308_v18  ;;  %v2309_v22 = vmul.f32 %v3589_v17, %v1909_v19 }
 0x174   : > { %vm2443_vm2 = vcmp.ge.f32.partialorder %v2379_v21, 0.0  ;;  %v2507_v23 = vmul.f32 0.01, %v2379_v21  ;;  %v2380_v24 = vadd.f32 %v3597_v25, %v2309_v22  ;;  %v1624_v26 = vpop.f32.mrb[40].mxu1 }
 0x175   : > { %v1913_v27 = vpop.f32.mrb[40].mxu0  ;;  %v1626_v28 = vpop.f32.mrb[41].mxu1 }
 0x176   : > { %v2571_v29 = vsel %vm2443_vm2, %v2379_v21, %v2507_v23  ;;  %vm2444_vm3 = vcmp.ge.f32.partialorder %v2380_v24, 0.0  ;;  %v2508_v30 = vmul.f32 0.01, %v2380_v24  ;;  %v1914_v31 = vadd.f32 %v1913_v27, %v1624_v26  ;;  %v1915_v32 = vpop.f32.mrb[41].mxu0  ;;  %v1627_v33 = vpop.f32.mrb[42].mxu1 }
 0x177   : > { %2635 = vst [vmem:[%s3607_s8 + $0x90] sm:$0xff] %v2571_v29  ;;  %v1916_v34 = vpop.f32.mrb[42].mxu0  ;;  %v1629_v35 = vpop.f32.mrb[43].mxu1 }
 0x178   : > { %v2572_v36 = vsel %vm2444_vm3, %v2380_v24, %v2508_v30  ;;  %v2310_v37 = vmul.f32 %v3589_v17, %v1914_v31  ;;  %v1917_v38 = vadd.f32 %v1916_v34, %v1627_v33  ;;  %v1918_v39 = vpop.f32.mrb[43].mxu0 }
 0x179   : > { %2636 = vst [vmem:[%s3607_s8 + $0x98] sm:$0xff] %v2572_v36 }
 0x17a   : > { %v2381_v40 = vadd.f32 %v3597_v25, %v2310_v37  ;;  %v2311_v41 = vmul.f32 %v3589_v17, %v1917_v38 }
 0x17c   : > { %vm2445_vm4 = vcmp.ge.f32.partialorder %v2381_v40, 0.0  ;;  %v2509_v42 = vmul.f32 0.01, %v2381_v40  ;;  %v2382_v43 = vadd.f32 %v3597_v25, %v2311_v41  ;;  %v1632_v44 = vpop.f32.mrb[44].mxu1 }
 0x17d   : > { %v1921_v45 = vpop.f32.mrb[44].mxu0  ;;  %v1634_v46 = vpop.f32.mrb[45].mxu1 }
 0x17e   : > { %v2573_v47 = vsel %vm2445_vm4, %v2381_v40, %v2509_v42  ;;  %vm2446_vm5 = vcmp.ge.f32.partialorder %v2382_v43, 0.0  ;;  %v2510_v48 = vmul.f32 0.01, %v2382_v43  ;;  %v1922_v49 = vadd.f32 %v1921_v45, %v1632_v44  ;;  %v1923_v50 = vpop.f32.mrb[45].mxu0  ;;  %v1635_v51 = vpop.f32.mrb[46].mxu1 }
 0x17f   : > { %2637 = vst [vmem:[%s3607_s8 + $0xa0] sm:$0xff] %v2573_v47  ;;  %v1924_v52 = vpop.f32.mrb[46].mxu0  ;;  %v1637_v53 = vpop.f32.mrb[47].mxu1 }
 0x180   : > { %v2574_v54 = vsel %vm2446_vm5, %v2382_v43, %v2510_v48  ;;  %v2312_v55 = vmul.f32 %v3589_v17, %v1922_v49  ;;  %v1925_v56 = vadd.f32 %v1924_v52, %v1635_v51  ;;  %v1926_v57 = vpop.f32.mrb[47].mxu0 }
 0x181   : > { %2638 = vst [vmem:[%s3607_s8 + $0xa8] sm:$0xff] %v2574_v54 }
 0x182   : > { %v2383_v58 = vadd.f32 %v3597_v25, %v2312_v55  ;;  %v2313_v59 = vmul.f32 %v3589_v17, %v1925_v56 }
 0x184   : > { %vm2447_vm6 = vcmp.ge.f32.partialorder %v2383_v58, 0.0  ;;  %v2511_v60 = vmul.f32 0.01, %v2383_v58  ;;  %v2384_v61 = vadd.f32 %v3597_v25, %v2313_v59  ;;  %v1640_v62 = vpop.f32.mrb[48].mxu1 }
 0x185   : > { %v1929_v63 = vpop.f32.mrb[48].mxu0  ;;  %v1642_v0 = vpop.f32.mrb[49].mxu1 }
 0x186   : > { %v2575_v1 = vsel %vm2447_vm6, %v2383_v58, %v2511_v60  ;;  %vm2448_vm7 = vcmp.ge.f32.partialorder %v2384_v61, 0.0  ;;  %v2512_v2 = vmul.f32 0.01, %v2384_v61  ;;  %v1930_v3 = vadd.f32 %v1929_v63, %v1640_v62  ;;  %v1931_v4 = vpop.f32.mrb[49].mxu0  ;;  %v1643_v5 = vpop.f32.mrb[50].mxu1 }
 0x187   : > { %2639 = vst [vmem:[%s3607_s8 + $0xb0] sm:$0xff] %v2575_v1  ;;  %v1932_v6 = vpop.f32.mrb[50].mxu0  ;;  %v1645_v7 = vpop.f32.mrb[51].mxu1 }
 0x188   : > { %v2576_v8 = vsel %vm2448_vm7, %v2384_v61, %v2512_v2  ;;  %v2314_v9 = vmul.f32 %v3589_v17, %v1930_v3  ;;  %v1933_v10 = vadd.f32 %v1932_v6, %v1643_v5  ;;  %v1934_v11 = vpop.f32.mrb[51].mxu0 }
 0x189   : > { %2640 = vst [vmem:[%s3607_s8 + $0xb8] sm:$0xff] %v2576_v8 }
 0x18a   : > { %v2385_v12 = vadd.f32 %v3597_v25, %v2314_v9  ;;  %v2315_v13 = vmul.f32 %v3589_v17, %v1933_v10 }
 0x18c   : > { %vm2449_vm8 = vcmp.ge.f32.partialorder %v2385_v12, 0.0  ;;  %v2513_v14 = vmul.f32 0.01, %v2385_v12  ;;  %v2386_v15 = vadd.f32 %v3597_v25, %v2315_v13  ;;  %v1648_v16 = vpop.f32.mrb[52].mxu1 }
 0x18d   : > { %v1937_v18 = vpop.f32.mrb[52].mxu0  ;;  %v1650_v19 = vpop.f32.mrb[53].mxu1 }
 0x18e   : > { %v2577_v20 = vsel %vm2449_vm8, %v2385_v12, %v2513_v14  ;;  %vm2450_vm9 = vcmp.ge.f32.partialorder %v2386_v15, 0.0  ;;  %v2514_v21 = vmul.f32 0.01, %v2386_v15  ;;  %v1938_v22 = vadd.f32 %v1937_v18, %v1648_v16  ;;  %v1939_v23 = vpop.f32.mrb[53].mxu0  ;;  %v1651_v24 = vpop.f32.mrb[54].mxu1 }
 0x18f   : > { %2641 = vst [vmem:[%s3607_s8 + $0xc0] sm:$0xff] %v2577_v20  ;;  %v1940_v26 = vpop.f32.mrb[54].mxu0  ;;  %v1653_v27 = vpop.f32.mrb[55].mxu1 }
 0x190   : > { %v2578_v28 = vsel %vm2450_vm9, %v2386_v15, %v2514_v21  ;;  %v2316_v29 = vmul.f32 %v3589_v17, %v1938_v22  ;;  %v1941_v30 = vadd.f32 %v1940_v26, %v1651_v24  ;;  %v1942_v31 = vpop.f32.mrb[55].mxu0 }
 0x191   : > { %2642 = vst [vmem:[%s3607_s8 + $0xc8] sm:$0xff] %v2578_v28 }
 0x192   : > { %v2387_v32 = vadd.f32 %v3597_v25, %v2316_v29  ;;  %v2317_v33 = vmul.f32 %v3589_v17, %v1941_v30 }
 0x194   : > { %vm2451_vm10 = vcmp.ge.f32.partialorder %v2387_v32, 0.0  ;;  %v2515_v34 = vmul.f32 0.01, %v2387_v32  ;;  %v2388_v35 = vadd.f32 %v3597_v25, %v2317_v33  ;;  %v1656_v36 = vpop.f32.mrb[56].mxu1 }
 0x195   : > { %v1945_v37 = vpop.f32.mrb[56].mxu0  ;;  %v1658_v38 = vpop.f32.mrb[57].mxu1 }
 0x196   : > { %v2579_v39 = vsel %vm2451_vm10, %v2387_v32, %v2515_v34  ;;  %vm2452_vm11 = vcmp.ge.f32.partialorder %v2388_v35, 0.0  ;;  %v2516_v40 = vmul.f32 0.01, %v2388_v35  ;;  %v1946_v41 = vadd.f32 %v1945_v37, %v1656_v36  ;;  %v1947_v42 = vpop.f32.mrb[57].mxu0  ;;  %v1659_v43 = vpop.f32.mrb[58].mxu1 }
 0x197   : > { %2643 = vst [vmem:[%s3607_s8 + $0xd0] sm:$0xff] %v2579_v39  ;;  %v1948_v44 = vpop.f32.mrb[58].mxu0  ;;  %v1661_v45 = vpop.f32.mrb[59].mxu1 }
 0x198   : > { %v2580_v46 = vsel %vm2452_vm11, %v2388_v35, %v2516_v40  ;;  %v2318_v47 = vmul.f32 %v3589_v17, %v1946_v41  ;;  %v1949_v48 = vadd.f32 %v1948_v44, %v1659_v43  ;;  %v1950_v49 = vpop.f32.mrb[59].mxu0 }
 0x199   : > { %2644 = vst [vmem:[%s3607_s8 + $0xd8] sm:$0xff] %v2580_v46 }
 0x19a   : > { %v2389_v50 = vadd.f32 %v3597_v25, %v2318_v47  ;;  %v2319_v51 = vmul.f32 %v3589_v17, %v1949_v48 }
 0x19c   : > { %vm2453_vm12 = vcmp.ge.f32.partialorder %v2389_v50, 0.0  ;;  %v2517_v52 = vmul.f32 0.01, %v2389_v50  ;;  %v2390_v53 = vadd.f32 %v3597_v25, %v2319_v51  ;;  %v1664_v54 = vpop.f32.mrb[60].mxu1 }
 0x19d   : > { %v1953_v55 = vpop.f32.mrb[60].mxu0  ;;  %v1666_v56 = vpop.f32.mrb[61].mxu1 }
 0x19e   : > { %v2581_v57 = vsel %vm2453_vm12, %v2389_v50, %v2517_v52  ;;  %vm2454_vm13 = vcmp.ge.f32.partialorder %v2390_v53, 0.0  ;;  %v2518_v58 = vmul.f32 0.01, %v2390_v53  ;;  %v1954_v59 = vadd.f32 %v1953_v55, %v1664_v54  ;;  %v1955_v60 = vpop.f32.mrb[61].mxu0  ;;  %v1667_v61 = vpop.f32.mrb[62].mxu1 }
 0x19f   : > { %2645 = vst [vmem:[%s3607_s8 + $0xe0] sm:$0xff] %v2581_v57  ;;  %v1956_v62 = vpop.f32.mrb[62].mxu0  ;;  %v1669_v63 = vpop.f32.mrb[63].mxu1 }
 0x1a0   : > { %v2582_v0 = vsel %vm2454_vm13, %v2390_v53, %v2518_v58  ;;  %v2320_v1 = vmul.f32 %v3589_v17, %v1954_v59  ;;  %v1957_v2 = vadd.f32 %v1956_v62, %v1667_v61  ;;  %v1958_v3 = vpop.f32.mrb[63].mxu0 }
 0x1a1   : > { %2646 = vst [vmem:[%s3607_s8 + $0xe8] sm:$0xff] %v2582_v0 }
 0x1a2   : > { %v2391_v4 = vadd.f32 %v3597_v25, %v2320_v1  ;;  %v2321_v5 = vmul.f32 %v3589_v17, %v1957_v2 }
 0x1a4   : > { %vm2455_vm14 = vcmp.ge.f32.partialorder %v2391_v4, 0.0  ;;  %v2519_v6 = vmul.f32 0.01, %v2391_v4  ;;  %v2392_v7 = vadd.f32 %v3597_v25, %v2321_v5  ;;  %v1672_v8 = vpop.f32.mrb[64].mxu1 }
 0x1a5   : > { %v1961_v9 = vpop.f32.mrb[64].mxu0  ;;  %v1674_v10 = vpop.f32.mrb[65].mxu1 }
 0x1a6   : > { %v2583_v11 = vsel %vm2455_vm14, %v2391_v4, %v2519_v6  ;;  %vm2456_vm15 = vcmp.ge.f32.partialorder %v2392_v7, 0.0  ;;  %v2520_v12 = vmul.f32 0.01, %v2392_v7  ;;  %v1962_v13 = vadd.f32 %v1961_v9, %v1672_v8  ;;  %v1963_v14 = vpop.f32.mrb[65].mxu0  ;;  %v1675_v15 = vpop.f32.mrb[66].mxu1 }
 0x1a7   : > { %2647 = vst [vmem:[%s3607_s8 + $0xf0] sm:$0xff] %v2583_v11  ;;  %v1964_v16 = vpop.f32.mrb[66].mxu0  ;;  %v1677_v18 = vpop.f32.mrb[67].mxu1 }
 0x1a8   : > { %v2584_v19 = vsel %vm2456_vm15, %v2392_v7, %v2520_v12  ;;  %v2322_v20 = vmul.f32 %v3589_v17, %v1962_v13  ;;  %v1965_v21 = vadd.f32 %v1964_v16, %v1675_v15  ;;  %v1966_v22 = vpop.f32.mrb[67].mxu0 }
 0x1a9   : > { %2648 = vst [vmem:[%s3607_s8 + $0xf8] sm:$0xff] %v2584_v19 }
 0x1aa   : > { %v2393_v23 = vadd.f32 %v3597_v25, %v2322_v20  ;;  %v2323_v24 = vmul.f32 %v3589_v17, %v1965_v21 }
 0x1ac   : > { %vm2457_vm0 = vcmp.ge.f32.partialorder %v2393_v23, 0.0  ;;  %v2521_v26 = vmul.f32 0.01, %v2393_v23  ;;  %v2394_v27 = vadd.f32 %v3597_v25, %v2323_v24  ;;  %v1680_v28 = vpop.f32.mrb[68].mxu1 }
 0x1ad   : > { %v1969_v29 = vpop.f32.mrb[68].mxu0  ;;  %v1682_v30 = vpop.f32.mrb[69].mxu1 }
 0x1ae   : > { %v2585_v31 = vsel %vm2457_vm0, %v2393_v23, %v2521_v26  ;;  %vm2458_vm1 = vcmp.ge.f32.partialorder %v2394_v27, 0.0  ;;  %v2522_v32 = vmul.f32 0.01, %v2394_v27  ;;  %v1970_v33 = vadd.f32 %v1969_v29, %v1680_v28  ;;  %v1971_v34 = vpop.f32.mrb[69].mxu0  ;;  %v1683_v35 = vpop.f32.mrb[70].mxu1 }
 0x1af   : > { %2649 = vst [vmem:[%s3607_s8 + $0x100] sm:$0xff] %v2585_v31  ;;  %v1972_v36 = vpop.f32.mrb[70].mxu0  ;;  %v1685_v37 = vpop.f32.mrb[71].mxu1 }
 0x1b0   : > { %v2586_v38 = vsel %vm2458_vm1, %v2394_v27, %v2522_v32  ;;  %v2324_v39 = vmul.f32 %v3589_v17, %v1970_v33  ;;  %v1973_v40 = vadd.f32 %v1972_v36, %v1683_v35  ;;  %v1974_v41 = vpop.f32.mrb[71].mxu0 }
 0x1b1   : > { %2650 = vst [vmem:[%s3607_s8 + $0x108] sm:$0xff] %v2586_v38 }
 0x1b2   : > { %v2395_v42 = vadd.f32 %v3597_v25, %v2324_v39  ;;  %v2325_v43 = vmul.f32 %v3589_v17, %v1973_v40 }
 0x1b4   : > { %vm2459_vm2 = vcmp.ge.f32.partialorder %v2395_v42, 0.0  ;;  %v2523_v44 = vmul.f32 0.01, %v2395_v42  ;;  %v2396_v45 = vadd.f32 %v3597_v25, %v2325_v43  ;;  %v1688_v46 = vpop.f32.mrb[72].mxu1 }
 0x1b5   : > { %v1977_v47 = vpop.f32.mrb[72].mxu0  ;;  %v1690_v48 = vpop.f32.mrb[73].mxu1 }
 0x1b6   : > { %v2587_v49 = vsel %vm2459_vm2, %v2395_v42, %v2523_v44  ;;  %vm2460_vm3 = vcmp.ge.f32.partialorder %v2396_v45, 0.0  ;;  %v2524_v50 = vmul.f32 0.01, %v2396_v45  ;;  %v1978_v51 = vadd.f32 %v1977_v47, %v1688_v46  ;;  %v1979_v52 = vpop.f32.mrb[73].mxu0  ;;  %v1691_v53 = vpop.f32.mrb[74].mxu1 }
 0x1b7   : > { %2651 = vst [vmem:[%s3607_s8 + $0x110] sm:$0xff] %v2587_v49  ;;  %v1980_v54 = vpop.f32.mrb[74].mxu0  ;;  %v1693_v55 = vpop.f32.mrb[75].mxu1 }
 0x1b8   : > { %v2588_v56 = vsel %vm2460_vm3, %v2396_v45, %v2524_v50  ;;  %v2326_v57 = vmul.f32 %v3589_v17, %v1978_v51  ;;  %v1981_v58 = vadd.f32 %v1980_v54, %v1691_v53  ;;  %v1982_v59 = vpop.f32.mrb[75].mxu0  ;;  %v3751_v53 = vld [vmem:[%s3833_s2] ss:$0 sm:$0xff] }
 0x1b9   : > { %2652 = vst [vmem:[%s3607_s8 + $0x118] sm:$0xff] %v2588_v56 }
 0x1ba   : > { %v2397_v60 = vadd.f32 %v3597_v25, %v2326_v57  ;;  %v2327_v61 = vmul.f32 %v3589_v17, %v1981_v58 }
 0x1bc   : > { %vm2461_vm4 = vcmp.ge.f32.partialorder %v2397_v60, 0.0  ;;  %v2525_v62 = vmul.f32 0.01, %v2397_v60  ;;  %v2398_v63 = vadd.f32 %v3597_v25, %v2327_v61  ;;  %v1696_v0 = vpop.f32.mrb[76].mxu1 }
 0x1bd   : > { %v1985_v1 = vpop.f32.mrb[76].mxu0  ;;  %v1698_v2 = vpop.f32.mrb[77].mxu1 }
 0x1be   : > { %v2589_v3 = vsel %vm2461_vm4, %v2397_v60, %v2525_v62  ;;  %vm2462_vm5 = vcmp.ge.f32.partialorder %v2398_v63, 0.0  ;;  %v2526_v4 = vmul.f32 0.01, %v2398_v63  ;;  %v1986_v5 = vadd.f32 %v1985_v1, %v1696_v0  ;;  %v1987_v6 = vpop.f32.mrb[77].mxu0  ;;  %v1699_v7 = vpop.f32.mrb[78].mxu1 }
 0x1bf   : > { %2653 = vst [vmem:[%s3607_s8 + $0x120] sm:$0xff] %v2589_v3  ;;  %v1988_v8 = vpop.f32.mrb[78].mxu0  ;;  %v1701_v9 = vpop.f32.mrb[79].mxu1 }
 0x1c0   : > { %v2590_v10 = vsel %vm2462_vm5, %v2398_v63, %v2526_v4  ;;  %v2328_v11 = vmul.f32 %v3589_v17, %v1986_v5  ;;  %v1989_v12 = vadd.f32 %v1988_v8, %v1699_v7  ;;  %v1990_v13 = vpop.f32.mrb[79].mxu0 }
 0x1c1   : > { %2654 = vst [vmem:[%s3607_s8 + $0x128] sm:$0xff] %v2590_v10 }
 0x1c2   : > { %v2399_v14 = vadd.f32 %v3597_v25, %v2328_v11  ;;  %v2329_v15 = vmul.f32 %v3589_v17, %v1989_v12 }
 0x1c4   : > { %vm2463_vm6 = vcmp.ge.f32.partialorder %v2399_v14, 0.0  ;;  %v2527_v16 = vmul.f32 0.01, %v2399_v14  ;;  %v2400_v18 = vadd.f32 %v3597_v25, %v2329_v15  ;;  %v1704_v19 = vpop.f32.mrb[80].mxu1 }
 0x1c5   : > { %v1993_v20 = vpop.f32.mrb[80].mxu0  ;;  %v1706_v21 = vpop.f32.mrb[81].mxu1 }
 0x1c6   : > { %v2591_v22 = vsel %vm2463_vm6, %v2399_v14, %v2527_v16  ;;  %vm2464_vm7 = vcmp.ge.f32.partialorder %v2400_v18, 0.0  ;;  %v2528_v23 = vmul.f32 0.01, %v2400_v18  ;;  %v1994_v24 = vadd.f32 %v1993_v20, %v1704_v19  ;;  %v1995_v26 = vpop.f32.mrb[81].mxu0  ;;  %v1707_v27 = vpop.f32.mrb[82].mxu1 }
 0x1c7   : > { %2655 = vst [vmem:[%s3607_s8 + $0x130] sm:$0xff] %v2591_v22  ;;  %v1996_v28 = vpop.f32.mrb[82].mxu0  ;;  %v1709_v29 = vpop.f32.mrb[83].mxu1 }
 0x1c8   : > { %v2592_v30 = vsel %vm2464_vm7, %v2400_v18, %v2528_v23  ;;  %v2330_v31 = vmul.f32 %v3589_v17, %v1994_v24  ;;  %v1997_v32 = vadd.f32 %v1996_v28, %v1707_v27  ;;  %v1998_v33 = vpop.f32.mrb[83].mxu0 }
 0x1c9   : > { %2656 = vst [vmem:[%s3607_s8 + $0x138] sm:$0xff] %v2592_v30 }
 0x1ca   : > { %v2401_v34 = vadd.f32 %v3597_v25, %v2330_v31  ;;  %v2331_v35 = vmul.f32 %v3589_v17, %v1997_v32 }
 0x1cc   : > { %vm2465_vm8 = vcmp.ge.f32.partialorder %v2401_v34, 0.0  ;;  %v2529_v36 = vmul.f32 0.01, %v2401_v34  ;;  %v2402_v37 = vadd.f32 %v3597_v25, %v2331_v35  ;;  %v1712_v38 = vpop.f32.mrb[84].mxu1 }
 0x1cd   : > { %v2001_v39 = vpop.f32.mrb[84].mxu0  ;;  %v1714_v40 = vpop.f32.mrb[85].mxu1 }
 0x1ce   : > { %v2593_v41 = vsel %vm2465_vm8, %v2401_v34, %v2529_v36  ;;  %vm2466_vm9 = vcmp.ge.f32.partialorder %v2402_v37, 0.0  ;;  %v2530_v42 = vmul.f32 0.01, %v2402_v37  ;;  %v2002_v43 = vadd.f32 %v2001_v39, %v1712_v38  ;;  %v2003_v44 = vpop.f32.mrb[85].mxu0  ;;  %v1715_v45 = vpop.f32.mrb[86].mxu1 }
 0x1cf   : > { %2657 = vst [vmem:[%s3607_s8 + $0x140] sm:$0xff] %v2593_v41  ;;  %v2004_v46 = vpop.f32.mrb[86].mxu0  ;;  %v1717_v47 = vpop.f32.mrb[87].mxu1 }
 0x1d0   : > { %v2594_v48 = vsel %vm2466_vm9, %v2402_v37, %v2530_v42  ;;  %v2332_v49 = vmul.f32 %v3589_v17, %v2002_v43  ;;  %v2005_v50 = vadd.f32 %v2004_v46, %v1715_v45  ;;  %v2006_v51 = vpop.f32.mrb[87].mxu0 }
 0x1d1   : > { %2658 = vst [vmem:[%s3607_s8 + $0x148] sm:$0xff] %v2594_v48 }
 0x1d2   : > { %v2403_v52 = vadd.f32 %v3597_v25, %v2332_v49  ;;  %v2333_v54 = vmul.f32 %v3751_v53, %v2005_v50 }
 0x1d4   : > { %vm2467_vm10 = vcmp.ge.f32.partialorder %v2403_v52, 0.0  ;;  %v2531_v55 = vmul.f32 0.01, %v2403_v52  ;;  %v2404_v56 = vadd.f32 %v3597_v25, %v2333_v54  ;;  %v1720_v57 = vpop.f32.mrb[88].mxu1  ;;  %v3761_v25 = vld [vmem:[%s3834_s3] ss:$0 sm:$0xff] }
 0x1d5   : > { %v2009_v17 = vpop.f32.mrb[88].mxu0  ;;  %v1722_v58 = vpop.f32.mrb[89].mxu1 }
 0x1d6   : > { %v2595_v59 = vsel %vm2467_vm10, %v2403_v52, %v2531_v55  ;;  %vm2468_vm11 = vcmp.ge.f32.partialorder %v2404_v56, 0.0  ;;  %v2532_v60 = vmul.f32 0.01, %v2404_v56  ;;  %v2010_v61 = vadd.f32 %v2009_v17, %v1720_v57  ;;  %v2011_v62 = vpop.f32.mrb[89].mxu0  ;;  %v1723_v63 = vpop.f32.mrb[90].mxu1 }
 0x1d7   : > { %2659 = vst [vmem:[%s3607_s8 + $0x150] sm:$0xff] %v2595_v59  ;;  %v2012_v0 = vpop.f32.mrb[90].mxu0  ;;  %v1725_v1 = vpop.f32.mrb[91].mxu1 }
 0x1d8   : > { %v2596_v2 = vsel %vm2468_vm11, %v2404_v56, %v2532_v60  ;;  %v2334_v3 = vmul.f32 %v3751_v53, %v2010_v61  ;;  %v2013_v4 = vadd.f32 %v2012_v0, %v1723_v63  ;;  %v2014_v5 = vpop.f32.mrb[91].mxu0 }
 0x1d9   : > { %2660 = vst [vmem:[%s3607_s8 + $0x158] sm:$0xff] %v2596_v2 }
 0x1da   : > { %v2405_v6 = vadd.f32 %v3761_v25, %v2334_v3  ;;  %v2335_v7 = vmul.f32 %v3751_v53, %v2013_v4 }
 0x1dc   : > { %vm2469_vm12 = vcmp.ge.f32.partialorder %v2405_v6, 0.0  ;;  %v2533_v8 = vmul.f32 0.01, %v2405_v6  ;;  %v2406_v9 = vadd.f32 %v3761_v25, %v2335_v7  ;;  %v1728_v10 = vpop.f32.mrb[92].mxu1 }
 0x1dd   : > { %v2017_v11 = vpop.f32.mrb[92].mxu0  ;;  %v1730_v12 = vpop.f32.mrb[93].mxu1 }
 0x1de   : > { %v2597_v13 = vsel %vm2469_vm12, %v2405_v6, %v2533_v8  ;;  %vm2470_vm13 = vcmp.ge.f32.partialorder %v2406_v9, 0.0  ;;  %v2534_v14 = vmul.f32 0.01, %v2406_v9  ;;  %v2018_v15 = vadd.f32 %v2017_v11, %v1728_v10  ;;  %v2019_v16 = vpop.f32.mrb[93].mxu0  ;;  %v1731_v18 = vpop.f32.mrb[94].mxu1 }
 0x1df   : > { %2661 = vst [vmem:[%s3607_s8 + $0x160] sm:$0xff] %v2597_v13  ;;  %v2020_v19 = vpop.f32.mrb[94].mxu0  ;;  %v1733_v20 = vpop.f32.mrb[95].mxu1 }
 0x1e0   : > { %v2598_v21 = vsel %vm2470_vm13, %v2406_v9, %v2534_v14  ;;  %v2336_v22 = vmul.f32 %v3751_v53, %v2018_v15  ;;  %v2021_v23 = vadd.f32 %v2020_v19, %v1731_v18  ;;  %v2022_v24 = vpop.f32.mrb[95].mxu0 }
 0x1e1   : > { %2662 = vst [vmem:[%s3607_s8 + $0x168] sm:$0xff] %v2598_v21 }
 0x1e2   : > { %v2407_v26 = vadd.f32 %v3761_v25, %v2336_v22  ;;  %v2337_v27 = vmul.f32 %v3751_v53, %v2021_v23 }
 0x1e4   : > { %vm2471_vm14 = vcmp.ge.f32.partialorder %v2407_v26, 0.0  ;;  %v2535_v28 = vmul.f32 0.01, %v2407_v26  ;;  %v2408_v29 = vadd.f32 %v3761_v25, %v2337_v27  ;;  %v1736_v30 = vpop.f32.mrb[96].mxu1 }
 0x1e5   : > { %v2025_v31 = vpop.f32.mrb[96].mxu0  ;;  %v1738_v32 = vpop.f32.mrb[97].mxu1 }
 0x1e6   : > { %v2599_v33 = vsel %vm2471_vm14, %v2407_v26, %v2535_v28  ;;  %vm2472_vm15 = vcmp.ge.f32.partialorder %v2408_v29, 0.0  ;;  %v2536_v34 = vmul.f32 0.01, %v2408_v29  ;;  %v2026_v35 = vadd.f32 %v2025_v31, %v1736_v30  ;;  %v2027_v36 = vpop.f32.mrb[97].mxu0  ;;  %v1739_v37 = vpop.f32.mrb[98].mxu1 }
 0x1e7   : > { %2663 = vst [vmem:[%s3607_s8 + $0x170] sm:$0xff] %v2599_v33  ;;  %v2028_v38 = vpop.f32.mrb[98].mxu0  ;;  %v1741_v39 = vpop.f32.mrb[99].mxu1 }
 0x1e8   : > { %v2600_v40 = vsel %vm2472_vm15, %v2408_v29, %v2536_v34  ;;  %v2338_v41 = vmul.f32 %v3751_v53, %v2026_v35  ;;  %v2029_v42 = vadd.f32 %v2028_v38, %v1739_v37  ;;  %v2030_v43 = vpop.f32.mrb[99].mxu0 }
 0x1e9   : > { %2664 = vst [vmem:[%s3607_s8 + $0x178] sm:$0xff] %v2600_v40 }
 0x1ea   : > { %v2409_v44 = vadd.f32 %v3761_v25, %v2338_v41  ;;  %v2339_v45 = vmul.f32 %v3751_v53, %v2029_v42 }
 0x1ec   : > { %vm2473_vm0 = vcmp.ge.f32.partialorder %v2409_v44, 0.0  ;;  %v2537_v46 = vmul.f32 0.01, %v2409_v44  ;;  %v2410_v47 = vadd.f32 %v3761_v25, %v2339_v45  ;;  %v1744_v48 = vpop.f32.mrb[100].mxu1 }
 0x1ed   : > { %v2033_v49 = vpop.f32.mrb[100].mxu0  ;;  %v1746_v50 = vpop.f32.mrb[101].mxu1 }
 0x1ee   : > { %v2601_v51 = vsel %vm2473_vm0, %v2409_v44, %v2537_v46  ;;  %vm2474_vm1 = vcmp.ge.f32.partialorder %v2410_v47, 0.0  ;;  %v2538_v52 = vmul.f32 0.01, %v2410_v47  ;;  %v2034_v54 = vadd.f32 %v2033_v49, %v1744_v48  ;;  %v2035_v55 = vpop.f32.mrb[101].mxu0  ;;  %v1747_v56 = vpop.f32.mrb[102].mxu1 }
 0x1ef   : > { %2665 = vst [vmem:[%s3607_s8 + $0x180] sm:$0xff] %v2601_v51  ;;  %v2036_v57 = vpop.f32.mrb[102].mxu0  ;;  %v1749_v17 = vpop.f32.mrb[103].mxu1 }
 0x1f0   : > { %v2602_v58 = vsel %vm2474_vm1, %v2410_v47, %v2538_v52  ;;  %v2340_v59 = vmul.f32 %v3751_v53, %v2034_v54  ;;  %v2037_v60 = vadd.f32 %v2036_v57, %v1747_v56  ;;  %v2038_v61 = vpop.f32.mrb[103].mxu0 }
 0x1f1   : > { %2666 = vst [vmem:[%s3607_s8 + $0x188] sm:$0xff] %v2602_v58 }
 0x1f2   : > { %v2411_v62 = vadd.f32 %v3761_v25, %v2340_v59  ;;  %v2341_v63 = vmul.f32 %v3751_v53, %v2037_v60 }
 0x1f4   : > { %vm2475_vm2 = vcmp.ge.f32.partialorder %v2411_v62, 0.0  ;;  %v2539_v0 = vmul.f32 0.01, %v2411_v62  ;;  %v2412_v1 = vadd.f32 %v3761_v25, %v2341_v63  ;;  %v1752_v2 = vpop.f32.mrb[104].mxu1 }
 0x1f5   : > { %v2041_v3 = vpop.f32.mrb[104].mxu0  ;;  %v1754_v4 = vpop.f32.mrb[105].mxu1 }
 0x1f6   : > { %v2603_v5 = vsel %vm2475_vm2, %v2411_v62, %v2539_v0  ;;  %vm2476_vm3 = vcmp.ge.f32.partialorder %v2412_v1, 0.0  ;;  %v2540_v6 = vmul.f32 0.01, %v2412_v1  ;;  %v2042_v7 = vadd.f32 %v2041_v3, %v1752_v2  ;;  %v2043_v8 = vpop.f32.mrb[105].mxu0  ;;  %v1755_v9 = vpop.f32.mrb[106].mxu1 }
 0x1f7   : > { %2667 = vst [vmem:[%s3607_s8 + $0x190] sm:$0xff] %v2603_v5  ;;  %v2044_v10 = vpop.f32.mrb[106].mxu0  ;;  %v1757_v11 = vpop.f32.mrb[107].mxu1 }
 0x1f8   : > { %v2604_v12 = vsel %vm2476_vm3, %v2412_v1, %v2540_v6  ;;  %v2342_v13 = vmul.f32 %v3751_v53, %v2042_v7  ;;  %v2045_v14 = vadd.f32 %v2044_v10, %v1755_v9  ;;  %v2046_v15 = vpop.f32.mrb[107].mxu0 }
 0x1f9   : > { %2668 = vst [vmem:[%s3607_s8 + $0x198] sm:$0xff] %v2604_v12 }
 0x1fa   : > { %v2413_v16 = vadd.f32 %v3761_v25, %v2342_v13  ;;  %v2343_v18 = vmul.f32 %v3751_v53, %v2045_v14 }
 0x1fc   : > { %vm2477_vm4 = vcmp.ge.f32.partialorder %v2413_v16, 0.0  ;;  %v2541_v19 = vmul.f32 0.01, %v2413_v16  ;;  %v2414_v20 = vadd.f32 %v3761_v25, %v2343_v18  ;;  %v1760_v21 = vpop.f32.mrb[108].mxu1 }
 0x1fd   : > { %v2049_v22 = vpop.f32.mrb[108].mxu0  ;;  %v1762_v23 = vpop.f32.mrb[109].mxu1 }
 0x1fe   : > { %v2605_v24 = vsel %vm2477_vm4, %v2413_v16, %v2541_v19  ;;  %vm2478_vm5 = vcmp.ge.f32.partialorder %v2414_v20, 0.0  ;;  %v2542_v26 = vmul.f32 0.01, %v2414_v20  ;;  %v2050_v27 = vadd.f32 %v2049_v22, %v1760_v21  ;;  %v2051_v28 = vpop.f32.mrb[109].mxu0  ;;  %v1763_v29 = vpop.f32.mrb[110].mxu1 }
 0x1ff   : > { %2669 = vst [vmem:[%s3607_s8 + $0x1a0] sm:$0xff] %v2605_v24  ;;  %v2052_v30 = vpop.f32.mrb[110].mxu0  ;;  %v1765_v31 = vpop.f32.mrb[111].mxu1 }
 0x200   : > { %v2606_v32 = vsel %vm2478_vm5, %v2414_v20, %v2542_v26  ;;  %v2344_v33 = vmul.f32 %v3751_v53, %v2050_v27  ;;  %v2053_v34 = vadd.f32 %v2052_v30, %v1763_v29  ;;  %v2054_v35 = vpop.f32.mrb[111].mxu0 }
 0x201   : > { %2670 = vst [vmem:[%s3607_s8 + $0x1a8] sm:$0xff] %v2606_v32 }
 0x202   : > { %v2415_v36 = vadd.f32 %v3761_v25, %v2344_v33  ;;  %v2345_v37 = vmul.f32 %v3751_v53, %v2053_v34 }
 0x204   : > { %vm2479_vm6 = vcmp.ge.f32.partialorder %v2415_v36, 0.0  ;;  %v2543_v38 = vmul.f32 0.01, %v2415_v36  ;;  %v2416_v39 = vadd.f32 %v3761_v25, %v2345_v37  ;;  %v1768_v40 = vpop.f32.mrb[112].mxu1 }
 0x205   : > { %v2057_v41 = vpop.f32.mrb[112].mxu0  ;;  %v1770_v42 = vpop.f32.mrb[113].mxu1 }
 0x206   : > { %v2607_v43 = vsel %vm2479_vm6, %v2415_v36, %v2543_v38  ;;  %vm2480_vm7 = vcmp.ge.f32.partialorder %v2416_v39, 0.0  ;;  %v2544_v44 = vmul.f32 0.01, %v2416_v39  ;;  %v2058_v45 = vadd.f32 %v2057_v41, %v1768_v40  ;;  %v2059_v46 = vpop.f32.mrb[113].mxu0  ;;  %v1771_v47 = vpop.f32.mrb[114].mxu1 }
 0x207   : > { %2671 = vst [vmem:[%s3607_s8 + $0x1b0] sm:$0xff] %v2607_v43  ;;  %v2060_v48 = vpop.f32.mrb[114].mxu0  ;;  %v1773_v49 = vpop.f32.mrb[115].mxu1 }
 0x208   : > { %v2608_v50 = vsel %vm2480_vm7, %v2416_v39, %v2544_v44  ;;  %v2346_v51 = vmul.f32 %v3751_v53, %v2058_v45  ;;  %v2061_v52 = vadd.f32 %v2060_v48, %v1771_v47  ;;  %v2062_v54 = vpop.f32.mrb[115].mxu0 }
 0x209   : > { %2672 = vst [vmem:[%s3607_s8 + $0x1b8] sm:$0xff] %v2608_v50 }
 0x20a   : > { %v2417_v55 = vadd.f32 %v3761_v25, %v2346_v51  ;;  %v2347_v56 = vmul.f32 %v3751_v53, %v2061_v52 }
 0x20c   : > { %vm2481_vm8 = vcmp.ge.f32.partialorder %v2417_v55, 0.0  ;;  %v2545_v57 = vmul.f32 0.01, %v2417_v55  ;;  %v2418_v17 = vadd.f32 %v3761_v25, %v2347_v56  ;;  %v1776_v58 = vpop.f32.mrb[116].mxu1 }
 0x20d   : > { %v2065_v59 = vpop.f32.mrb[116].mxu0  ;;  %v1778_v60 = vpop.f32.mrb[117].mxu1 }
 0x20e   : > { %v2609_v61 = vsel %vm2481_vm8, %v2417_v55, %v2545_v57  ;;  %vm2482_vm9 = vcmp.ge.f32.partialorder %v2418_v17, 0.0  ;;  %v2546_v62 = vmul.f32 0.01, %v2418_v17  ;;  %v2066_v63 = vadd.f32 %v2065_v59, %v1776_v58  ;;  %v2067_v0 = vpop.f32.mrb[117].mxu0  ;;  %v1779_v1 = vpop.f32.mrb[118].mxu1 }
 0x20f   : > { %2673 = vst [vmem:[%s3607_s8 + $0x1c0] sm:$0xff] %v2609_v61  ;;  %v2068_v2 = vpop.f32.mrb[118].mxu0  ;;  %v1781_v3 = vpop.f32.mrb[119].mxu1 }
 0x210   : > { %v2610_v4 = vsel %vm2482_vm9, %v2418_v17, %v2546_v62  ;;  %v2348_v5 = vmul.f32 %v3751_v53, %v2066_v63  ;;  %v2069_v6 = vadd.f32 %v2068_v2, %v1779_v1  ;;  %v2070_v7 = vpop.f32.mrb[119].mxu0 }
 0x211   : > { %2674 = vst [vmem:[%s3607_s8 + $0x1c8] sm:$0xff] %v2610_v4 }
 0x212   : > { %v2419_v8 = vadd.f32 %v3761_v25, %v2348_v5  ;;  %v2349_v9 = vmul.f32 %v3751_v53, %v2069_v6 }
 0x214   : > { %vm2483_vm10 = vcmp.ge.f32.partialorder %v2419_v8, 0.0  ;;  %v2547_v10 = vmul.f32 0.01, %v2419_v8  ;;  %v2420_v11 = vadd.f32 %v3761_v25, %v2349_v9  ;;  %v1784_v12 = vpop.f32.mrb[120].mxu1 }
 0x215   : > { %v2073_v13 = vpop.f32.mrb[120].mxu0  ;;  %v1786_v14 = vpop.f32.mrb[121].mxu1 }
 0x216   : > { %v2611_v15 = vsel %vm2483_vm10, %v2419_v8, %v2547_v10  ;;  %vm2484_vm11 = vcmp.ge.f32.partialorder %v2420_v11, 0.0  ;;  %v2548_v16 = vmul.f32 0.01, %v2420_v11  ;;  %v2074_v18 = vadd.f32 %v2073_v13, %v1784_v12  ;;  %v2075_v19 = vpop.f32.mrb[121].mxu0  ;;  %v1787_v20 = vpop.f32.mrb[122].mxu1 }
 0x217   : > { %2675 = vst [vmem:[%s3607_s8 + $0x1d0] sm:$0xff] %v2611_v15  ;;  %v2076_v21 = vpop.f32.mrb[122].mxu0  ;;  %v1789_v22 = vpop.f32.mrb[123].mxu1 }
 0x218   : > { %v2612_v23 = vsel %vm2484_vm11, %v2420_v11, %v2548_v16  ;;  %v2350_v24 = vmul.f32 %v3751_v53, %v2074_v18  ;;  %v2077_v26 = vadd.f32 %v2076_v21, %v1787_v20  ;;  %v2078_v27 = vpop.f32.mrb[123].mxu0 }
 0x219   : > { %2676 = vst [vmem:[%s3607_s8 + $0x1d8] sm:$0xff] %v2612_v23 }
 0x21a   : > { %v2421_v28 = vadd.f32 %v3761_v25, %v2350_v24  ;;  %v2351_v29 = vmul.f32 %v3751_v53, %v2077_v26 }
 0x21c   : > { %vm2485_vm12 = vcmp.ge.f32.partialorder %v2421_v28, 0.0  ;;  %v2549_v30 = vmul.f32 0.01, %v2421_v28  ;;  %v2422_v31 = vadd.f32 %v3761_v25, %v2351_v29  ;;  %v1792_v32 = vpop.f32.mrb[124].mxu1 }
 0x21d   : > { %v2081_v33 = vpop.f32.mrb[124].mxu0  ;;  %v1794_v34 = vpop.f32.mrb[125].mxu1 }
 0x21e   : > { %v2613_v35 = vsel %vm2485_vm12, %v2421_v28, %v2549_v30  ;;  %vm2486_vm13 = vcmp.ge.f32.partialorder %v2422_v31, 0.0  ;;  %v2550_v36 = vmul.f32 0.01, %v2422_v31  ;;  %v2082_v37 = vadd.f32 %v2081_v33, %v1792_v32  ;;  %v2083_v38 = vpop.f32.mrb[125].mxu0  ;;  %v1795_v39 = vpop.f32.mrb[126].mxu1 }
 0x21f   : > { %2677 = vst [vmem:[%s3607_s8 + $0x1e0] sm:$0xff] %v2613_v35  ;;  %v2084_v40 = vpop.f32.mrb[126].mxu0  ;;  %v1797_v41 = vpop.f32.mrb[127].mxu1 }
 0x220   : > { %v2614_v42 = vsel %vm2486_vm13, %v2422_v31, %v2550_v36  ;;  %v2352_v43 = vmul.f32 %v3751_v53, %v2082_v37  ;;  %v2085_v44 = vadd.f32 %v2084_v40, %v1795_v39  ;;  %v2086_v45 = vpop.f32.mrb[127].mxu0 }
 0x221   : > { %2678 = vst [vmem:[%s3607_s8 + $0x1e8] sm:$0xff] %v2614_v42 }
 0x222   : > { %v2423_v46 = vadd.f32 %v3761_v25, %v2352_v43  ;;  %v2353_v47 = vmul.f32 %v3751_v53, %v2085_v44 }
 0x224   : > { %vm2487_vm14 = vcmp.ge.f32.partialorder %v2423_v46, 0.0  ;;  %v2551_v48 = vmul.f32 0.01, %v2423_v46  ;;  %v2424_v49 = vadd.f32 %v3761_v25, %v2353_v47 }
 0x226   : > { %v2615_v50 = vsel %vm2487_vm14, %v2423_v46, %v2551_v48  ;;  %vm2488_vm15 = vcmp.ge.f32.partialorder %v2424_v49, 0.0  ;;  %v2552_v51 = vmul.f32 0.01, %v2424_v49 }
 0x227   : > { %2679 = vst [vmem:[%s3607_s8 + $0x1f0] sm:$0xff] %v2615_v50 }
 0x228   : > { %v2616_v52 = vsel %vm2488_vm15, %v2424_v49, %v2552_v51 }
 0x229   : > { %2680 = vst [vmem:[%s3607_s8 + $0x1f8] sm:$0xff] %v2616_v52 }
 0x22a PF: > { %s14_s17 = sadd.s32 1, %s3352_s17   ;;  %s3836_s15 = smov %s3348_s16 }
 0x22b   : > { %p11_p5 = scmp.ge.s32.totalorder %s14_s17, 6   ;;  %s3837_s16 = smov %s3839_s18 }
 0x22d   :  { %13 = sbr.rel (!%p11_p5) target bundleno = 2 (0x2), region = 83 }

// kernel: generator_forward.9
= control target key start
LH: loop header
LB: loop body
LE: loop exit
PB: predicated region body
PF: predicated region fallthrough
CT: control target
= control target key end

     0   :  { %s4124_s15 = smov 0   ;;  %s4126_s16 = smov 0   ;;  %s5088_s0 = inlined_call_operand.vmem [shape: bf16[1,2048,1152], index: 0, kind: input, shape index: {}]   ;;  %s5089_s1 = inlined_call_operand.vmem [shape: bf16[1,1152,128], index: 1, kind: input, shape index: {}]   ;;  %s5090_s2 = inlined_call_operand.vmem [shape: f32[1,128], index: 2, kind: input, shape index: {}]   ;;  %s5091_s3 = inlined_call_operand.vmem [shape: f32[1,128], index: 3, kind: input, shape index: {}]   ;;  %s5092_s4 = inlined_call_operand.vmem [shape: f32[1,2048,128], index: 4, kind: output, shape index: {}]  }
   0x1   :  { %s4128_s17 = smov 0   ;;  %s4130_s18 = smov 0  }
   0x2   :  { %s4132_s19 = smov 0   ;;  %s4134_s20 = smov 0  }
   0x3   :  { %s4136_s21 = smov 0  }
   0x4 LB: > { %s29_s22 = sadd.s32 1, %s4088_s19  ;;  %s36_s23 = sadd.s32 1, %s4092_s20  ;;  %s4096_s21 = sphi %s4136_s21, %s14_s21   ;;  %s4092_s20 = sphi %s4134_s20, %s5098_s20   ;;  %s4088_s19 = sphi %s4132_s19, %s5097_s19   ;;  %s4084_s18 = sphi %s4130_s18, %s5096_s18   ;;  %s4080_s17 = sphi %s4128_s17, %s5095_s17   ;;  %s4076_s16 = sphi %s4126_s16, %s5094_s16   ;;  %s4072_s15 = sphi %s4124_s15, %s5093_s15  }
   0x5   : > { %p30_p0 = scmp.ge.s32.totalorder %s29_s22, 9  ;;  %p58_p1 = scmp.ne.s32.totalorder %s4076_s16, %s4072_s15 }
   0x6   : > { %p59_p2 = scmp.eq.s32.totalorder %s4096_s21, 0  ;;  %s51_s27 = sadd.s32 1, %s4076_s16 }
   0x7   : > { %s5100_s22 = smov (%p30_p0, %s29_s22), 0  ;;  %s5102_s23 = smov (!%p30_p0, %s36_s23), %s4092_s20 }
   0x8   : > { %p60_p3 = por %p59_p2, %p58_p1  ;;  %p38_p4 = scmp.ge.s32.totalorder %s5102_s23, 2 }
   0x9   : > { %s47_s24 = ssub.s32 %s4088_s19, %s5100_s22  ;;  %p3333_p6 = scmp.ge.s32.totalorder %s4096_s21, 18 }
   0xa   : > { %s5104_s23 = smov (%p38_p4, %s5102_s23), 0 }
   0xb   : > { %s45_s25 = ssub.s32 %s4092_s20, %s5104_s23  ;;  %208 = sbr.rel (%p3333_p6) target bundleno = 110 (0x6e), region = 24 }
   0xc   : > { %s48_s26 = sor.u32 %s47_s24, %s45_s25 }
   0xd   : > { %p49_p5 = scmp.eq.s32.totalorder %s48_s26, 0 }
   0xf   : > { %s4175_s28 = scalar_select %p49_p5, %s4076_s16, %s51_s27  }
  0x12   : > { %211 = sbr.rel (!%p60_p3) target bundleno = 110 (0x6e), region = 28  ;;  %s213_s29 = sand.u32 (%p60_p3), 1, %s4076_s16  }
  0x13   : > { %s3654_s30 = smul.u32 (%p60_p3), 1152, %s4092_s20  ;;  %s3334_s5 = sshll.u32 (%p60_p3), %s213_s29, 9 }
  0x14   : > { %s4189_s11 = scalar_lea.vmem (%p60_p3), [#allocation3], %s3334_s5 }
  0x15   : > { %s218_s6 = sadd.s32 (%p60_p3), %s4088_s19, %s3654_s30 }
  0x16   : > { %s3337_s7 = sshll.u32 (%p60_p3), %s218_s6, 2 }
  0x17   : > { %s4184_s10 = scalar_lea.vmem (%p60_p3), %s5088_s0, %s3337_s7 }
  0x18   : > { %v238_v0 = vld [vmem:[%s4184_s10] sm:$0xf] (%p60_p3)  ;;  %v240_v1 = vld [vmem:[%s4184_s10 + $0x24] sm:$0xf] (%p60_p3)  ;;  %v242_v2 = vld [vmem:[%s4184_s10 + $0x48] sm:$0xf] (%p60_p3) }
  0x19   : > { %239 = vst [vmem:[%s4189_s11] sm:$0xf] %v238_v0  ;;  %241 = vst [vmem:[%s4189_s11 + $0x4] sm:$0xf] %v240_v1  ;;  %v244_v3 = vld [vmem:[%s4184_s10 + $0x6c] sm:$0xf] }
  0x1a   : > { %243 = vst [vmem:[%s4189_s11 + $0x8] sm:$0xf] %v242_v2  ;;  %v246_v4 = vld [vmem:[%s4184_s10 + $0x90] sm:$0xf]  ;;  %v248_v5 = vld [vmem:[%s4184_s10 + $0xb4] sm:$0xf] }
  0x1b   : > { %245 = vst [vmem:[%s4189_s11 + $0xc] sm:$0xf] %v244_v3  ;;  %247 = vst [vmem:[%s4189_s11 + $0x10] sm:$0xf] %v246_v4  ;;  %v250_v6 = vld [vmem:[%s4184_s10 + $0xd8] sm:$0xf] }
  0x1c   : > { %249 = vst [vmem:[%s4189_s11 + $0x14] sm:$0xf] %v248_v5  ;;  %v252_v7 = vld [vmem:[%s4184_s10 + $0xfc] sm:$0xf]  ;;  %v254_v8 = vld [vmem:[%s4184_s10 + $0x120] sm:$0xf] }
  0x1d   : > { %251 = vst [vmem:[%s4189_s11 + $0x18] sm:$0xf] %v250_v6  ;;  %253 = vst [vmem:[%s4189_s11 + $0x1c] sm:$0xf] %v252_v7  ;;  %v256_v9 = vld [vmem:[%s4184_s10 + $0x144] sm:$0xf] }
  0x1e   : > { %255 = vst [vmem:[%s4189_s11 + $0x20] sm:$0xf] %v254_v8  ;;  %v258_v10 = vld [vmem:[%s4184_s10 + $0x168] sm:$0xf]  ;;  %v260_v11 = vld [vmem:[%s4184_s10 + $0x18c] sm:$0xf] }
  0x1f   : > { %257 = vst [vmem:[%s4189_s11 + $0x24] sm:$0xf] %v256_v9  ;;  %259 = vst [vmem:[%s4189_s11 + $0x28] sm:$0xf] %v258_v10  ;;  %v262_v12 = vld [vmem:[%s4184_s10 + $0x1b0] sm:$0xf] }
  0x20   : > { %261 = vst [vmem:[%s4189_s11 + $0x2c] sm:$0xf] %v260_v11  ;;  %v264_v13 = vld [vmem:[%s4184_s10 + $0x1d4] sm:$0xf]  ;;  %v266_v14 = vld [vmem:[%s4184_s10 + $0x1f8] sm:$0xf] }
  0x21   : > { %263 = vst [vmem:[%s4189_s11 + $0x30] sm:$0xf] %v262_v12  ;;  %265 = vst [vmem:[%s4189_s11 + $0x34] sm:$0xf] %v264_v13  ;;  %v268_v15 = vld [vmem:[%s4184_s10 + $0x21c] sm:$0xf] }
  0x22   : > { %267 = vst [vmem:[%s4189_s11 + $0x38] sm:$0xf] %v266_v14  ;;  %v270_v16 = vld [vmem:[%s4184_s10 + $0x240] sm:$0xf]  ;;  %v272_v17 = vld [vmem:[%s4184_s10 + $0x264] sm:$0xf] }
  0x23   : > { %269 = vst [vmem:[%s4189_s11 + $0x3c] sm:$0xf] %v268_v15  ;;  %271 = vst [vmem:[%s4189_s11 + $0x40] sm:$0xf] %v270_v16  ;;  %v274_v18 = vld [vmem:[%s4184_s10 + $0x288] sm:$0xf] }
  0x24   : > { %273 = vst [vmem:[%s4189_s11 + $0x44] sm:$0xf] %v272_v17  ;;  %v276_v19 = vld [vmem:[%s4184_s10 + $0x2ac] sm:$0xf]  ;;  %v278_v20 = vld [vmem:[%s4184_s10 + $0x2d0] sm:$0xf] }
  0x25   : > { %275 = vst [vmem:[%s4189_s11 + $0x48] sm:$0xf] %v274_v18  ;;  %277 = vst [vmem:[%s4189_s11 + $0x4c] sm:$0xf] %v276_v19  ;;  %v280_v21 = vld [vmem:[%s4184_s10 + $0x2f4] sm:$0xf] }
  0x26   : > { %279 = vst [vmem:[%s4189_s11 + $0x50] sm:$0xf] %v278_v20  ;;  %v282_v22 = vld [vmem:[%s4184_s10 + $0x318] sm:$0xf]  ;;  %v284_v23 = vld [vmem:[%s4184_s10 + $0x33c] sm:$0xf] }
  0x27   : > { %281 = vst [vmem:[%s4189_s11 + $0x54] sm:$0xf] %v280_v21  ;;  %283 = vst [vmem:[%s4189_s11 + $0x58] sm:$0xf] %v282_v22  ;;  %v286_v24 = vld [vmem:[%s4184_s10 + $0x360] sm:$0xf] }
  0x28   : > { %285 = vst [vmem:[%s4189_s11 + $0x5c] sm:$0xf] %v284_v23  ;;  %v288_v25 = vld [vmem:[%s4184_s10 + $0x384] sm:$0xf]  ;;  %v290_v26 = vld [vmem:[%s4184_s10 + $0x3a8] sm:$0xf] }
  0x29   : > { %287 = vst [vmem:[%s4189_s11 + $0x60] sm:$0xf] %v286_v24  ;;  %289 = vst [vmem:[%s4189_s11 + $0x64] sm:$0xf] %v288_v25  ;;  %v292_v27 = vld [vmem:[%s4184_s10 + $0x3cc] sm:$0xf] }
  0x2a   : > { %291 = vst [vmem:[%s4189_s11 + $0x68] sm:$0xf] %v290_v26  ;;  %v294_v28 = vld [vmem:[%s4184_s10 + $0x3f0] sm:$0xf]  ;;  %v296_v29 = vld [vmem:[%s4184_s10 + $0x414] sm:$0xf] }
  0x2b   : > { %293 = vst [vmem:[%s4189_s11 + $0x6c] sm:$0xf] %v292_v27  ;;  %295 = vst [vmem:[%s4189_s11 + $0x70] sm:$0xf] %v294_v28  ;;  %v298_v30 = vld [vmem:[%s4184_s10 + $0x438] sm:$0xf] }
  0x2c   : > { %297 = vst [vmem:[%s4189_s11 + $0x74] sm:$0xf] %v296_v29  ;;  %v300_v31 = vld [vmem:[%s4184_s10 + $0x45c] sm:$0xf]  ;;  %v302_v32 = vld [vmem:[%s4184_s10 + $0x480] sm:$0xf] }
  0x2d   : > { %299 = vst [vmem:[%s4189_s11 + $0x78] sm:$0xf] %v298_v30  ;;  %301 = vst [vmem:[%s4189_s11 + $0x7c] sm:$0xf] %v300_v31  ;;  %v304_v33 = vld [vmem:[%s4184_s10 + $0x4a4] sm:$0xf] }
  0x2e   : > { %303 = vst [vmem:[%s4189_s11 + $0x80] sm:$0xf] %v302_v32  ;;  %v306_v34 = vld [vmem:[%s4184_s10 + $0x4c8] sm:$0xf]  ;;  %v308_v35 = vld [vmem:[%s4184_s10 + $0x4ec] sm:$0xf] }
  0x2f   : > { %305 = vst [vmem:[%s4189_s11 + $0x84] sm:$0xf] %v304_v33  ;;  %307 = vst [vmem:[%s4189_s11 + $0x88] sm:$0xf] %v306_v34  ;;  %v310_v36 = vld [vmem:[%s4184_s10 + $0x510] sm:$0xf] }
  0x30   : > { %309 = vst [vmem:[%s4189_s11 + $0x8c] sm:$0xf] %v308_v35  ;;  %v312_v37 = vld [vmem:[%s4184_s10 + $0x534] sm:$0xf]  ;;  %v314_v38 = vld [vmem:[%s4184_s10 + $0x558] sm:$0xf] }
  0x31   : > { %311 = vst [vmem:[%s4189_s11 + $0x90] sm:$0xf] %v310_v36  ;;  %313 = vst [vmem:[%s4189_s11 + $0x94] sm:$0xf] %v312_v37  ;;  %v316_v39 = vld [vmem:[%s4184_s10 + $0x57c] sm:$0xf] }
  0x32   : > { %315 = vst [vmem:[%s4189_s11 + $0x98] sm:$0xf] %v314_v38  ;;  %v318_v40 = vld [vmem:[%s4184_s10 + $0x5a0] sm:$0xf]  ;;  %v320_v41 = vld [vmem:[%s4184_s10 + $0x5c4] sm:$0xf] }
  0x33   : > { %317 = vst [vmem:[%s4189_s11 + $0x9c] sm:$0xf] %v316_v39  ;;  %319 = vst [vmem:[%s4189_s11 + $0xa0] sm:$0xf] %v318_v40  ;;  %v322_v42 = vld [vmem:[%s4184_s10 + $0x5e8] sm:$0xf] }
  0x34   : > { %321 = vst [vmem:[%s4189_s11 + $0xa4] sm:$0xf] %v320_v41  ;;  %v324_v43 = vld [vmem:[%s4184_s10 + $0x60c] sm:$0xf]  ;;  %v326_v44 = vld [vmem:[%s4184_s10 + $0x630] sm:$0xf] }
  0x35   : > { %323 = vst [vmem:[%s4189_s11 + $0xa8] sm:$0xf] %v322_v42  ;;  %325 = vst [vmem:[%s4189_s11 + $0xac] sm:$0xf] %v324_v43  ;;  %v328_v45 = vld [vmem:[%s4184_s10 + $0x654] sm:$0xf] }
  0x36   : > { %327 = vst [vmem:[%s4189_s11 + $0xb0] sm:$0xf] %v326_v44  ;;  %v330_v46 = vld [vmem:[%s4184_s10 + $0x678] sm:$0xf]  ;;  %v332_v47 = vld [vmem:[%s4184_s10 + $0x69c] sm:$0xf] }
  0x37   : > { %329 = vst [vmem:[%s4189_s11 + $0xb4] sm:$0xf] %v328_v45  ;;  %331 = vst [vmem:[%s4189_s11 + $0xb8] sm:$0xf] %v330_v46  ;;  %v334_v48 = vld [vmem:[%s4184_s10 + $0x6c0] sm:$0xf] }
  0x38   : > { %333 = vst [vmem:[%s4189_s11 + $0xbc] sm:$0xf] %v332_v47  ;;  %v336_v49 = vld [vmem:[%s4184_s10 + $0x6e4] sm:$0xf]  ;;  %v338_v50 = vld [vmem:[%s4184_s10 + $0x708] sm:$0xf] }
  0x39   : > { %335 = vst [vmem:[%s4189_s11 + $0xc0] sm:$0xf] %v334_v48  ;;  %337 = vst [vmem:[%s4189_s11 + $0xc4] sm:$0xf] %v336_v49  ;;  %v340_v51 = vld [vmem:[%s4184_s10 + $0x72c] sm:$0xf] }
  0x3a   : > { %339 = vst [vmem:[%s4189_s11 + $0xc8] sm:$0xf] %v338_v50  ;;  %v342_v52 = vld [vmem:[%s4184_s10 + $0x750] sm:$0xf]  ;;  %v344_v53 = vld [vmem:[%s4184_s10 + $0x774] sm:$0xf] }
  0x3b   : > { %341 = vst [vmem:[%s4189_s11 + $0xcc] sm:$0xf] %v340_v51  ;;  %343 = vst [vmem:[%s4189_s11 + $0xd0] sm:$0xf] %v342_v52  ;;  %v346_v54 = vld [vmem:[%s4184_s10 + $0x798] sm:$0xf] }
  0x3c   : > { %345 = vst [vmem:[%s4189_s11 + $0xd4] sm:$0xf] %v344_v53  ;;  %v348_v55 = vld [vmem:[%s4184_s10 + $0x7bc] sm:$0xf]  ;;  %v350_v56 = vld [vmem:[%s4184_s10 + $0x7e0] sm:$0xf] }
  0x3d   : > { %347 = vst [vmem:[%s4189_s11 + $0xd8] sm:$0xf] %v346_v54  ;;  %349 = vst [vmem:[%s4189_s11 + $0xdc] sm:$0xf] %v348_v55  ;;  %v352_v57 = vld [vmem:[%s4184_s10 + $0x804] sm:$0xf] }
  0x3e   : > { %351 = vst [vmem:[%s4189_s11 + $0xe0] sm:$0xf] %v350_v56  ;;  %v354_v58 = vld [vmem:[%s4184_s10 + $0x828] sm:$0xf]  ;;  %v356_v59 = vld [vmem:[%s4184_s10 + $0x84c] sm:$0xf] }
  0x3f   : > { %353 = vst [vmem:[%s4189_s11 + $0xe4] sm:$0xf] %v352_v57  ;;  %355 = vst [vmem:[%s4189_s11 + $0xe8] sm:$0xf] %v354_v58  ;;  %v358_v60 = vld [vmem:[%s4184_s10 + $0x870] sm:$0xf] }
  0x40   : > { %357 = vst [vmem:[%s4189_s11 + $0xec] sm:$0xf] %v356_v59  ;;  %v360_v61 = vld [vmem:[%s4184_s10 + $0x894] sm:$0xf]  ;;  %v362_v62 = vld [vmem:[%s4184_s10 + $0x8b8] sm:$0xf] }
  0x41   : > { %359 = vst [vmem:[%s4189_s11 + $0xf0] sm:$0xf] %v358_v60  ;;  %361 = vst [vmem:[%s4189_s11 + $0xf4] sm:$0xf] %v360_v61  ;;  %v364_v63 = vld [vmem:[%s4184_s10 + $0x8dc] sm:$0xf] }
  0x42   : > { %363 = vst [vmem:[%s4189_s11 + $0xf8] sm:$0xf] %v362_v62  ;;  %v366_v0 = vld [vmem:[%s4184_s10 + $0x900] sm:$0xf]  ;;  %v368_v1 = vld [vmem:[%s4184_s10 + $0x924] sm:$0xf] }
  0x43   : > { %365 = vst [vmem:[%s4189_s11 + $0xfc] sm:$0xf] %v364_v63  ;;  %367 = vst [vmem:[%s4189_s11 + $0x100] sm:$0xf] %v366_v0  ;;  %v370_v2 = vld [vmem:[%s4184_s10 + $0x948] sm:$0xf] }
  0x44   : > { %369 = vst [vmem:[%s4189_s11 + $0x104] sm:$0xf] %v368_v1  ;;  %v372_v3 = vld [vmem:[%s4184_s10 + $0x96c] sm:$0xf]  ;;  %v374_v4 = vld [vmem:[%s4184_s10 + $0x990] sm:$0xf] }
  0x45   : > { %371 = vst [vmem:[%s4189_s11 + $0x108] sm:$0xf] %v370_v2  ;;  %373 = vst [vmem:[%s4189_s11 + $0x10c] sm:$0xf] %v372_v3  ;;  %v376_v5 = vld [vmem:[%s4184_s10 + $0x9b4] sm:$0xf] }
  0x46   : > { %375 = vst [vmem:[%s4189_s11 + $0x110] sm:$0xf] %v374_v4  ;;  %v378_v6 = vld [vmem:[%s4184_s10 + $0x9d8] sm:$0xf]  ;;  %v380_v7 = vld [vmem:[%s4184_s10 + $0x9fc] sm:$0xf] }
  0x47   : > { %377 = vst [vmem:[%s4189_s11 + $0x114] sm:$0xf] %v376_v5  ;;  %379 = vst [vmem:[%s4189_s11 + $0x118] sm:$0xf] %v378_v6  ;;  %v382_v8 = vld [vmem:[%s4184_s10 + $0xa20] sm:$0xf] }
  0x48   : > { %381 = vst [vmem:[%s4189_s11 + $0x11c] sm:$0xf] %v380_v7  ;;  %v384_v9 = vld [vmem:[%s4184_s10 + $0xa44] sm:$0xf]  ;;  %v386_v10 = vld [vmem:[%s4184_s10 + $0xa68] sm:$0xf] }
  0x49   : > { %383 = vst [vmem:[%s4189_s11 + $0x120] sm:$0xf] %v382_v8  ;;  %385 = vst [vmem:[%s4189_s11 + $0x124] sm:$0xf] %v384_v9  ;;  %v388_v11 = vld [vmem:[%s4184_s10 + $0xa8c] sm:$0xf] }
  0x4a   : > { %387 = vst [vmem:[%s4189_s11 + $0x128] sm:$0xf] %v386_v10  ;;  %v390_v12 = vld [vmem:[%s4184_s10 + $0xab0] sm:$0xf]  ;;  %v392_v13 = vld [vmem:[%s4184_s10 + $0xad4] sm:$0xf] }
  0x4b   : > { %389 = vst [vmem:[%s4189_s11 + $0x12c] sm:$0xf] %v388_v11  ;;  %391 = vst [vmem:[%s4189_s11 + $0x130] sm:$0xf] %v390_v12  ;;  %v394_v14 = vld [vmem:[%s4184_s10 + $0xaf8] sm:$0xf] }
  0x4c   : > { %393 = vst [vmem:[%s4189_s11 + $0x134] sm:$0xf] %v392_v13  ;;  %v396_v15 = vld [vmem:[%s4184_s10 + $0xb1c] sm:$0xf]  ;;  %v398_v16 = vld [vmem:[%s4184_s10 + $0xb40] sm:$0xf] }
  0x4d   : > { %395 = vst [vmem:[%s4189_s11 + $0x138] sm:$0xf] %v394_v14  ;;  %397 = vst [vmem:[%s4189_s11 + $0x13c] sm:$0xf] %v396_v15  ;;  %v400_v17 = vld [vmem:[%s4184_s10 + $0xb64] sm:$0xf] }
  0x4e   : > { %399 = vst [vmem:[%s4189_s11 + $0x140] sm:$0xf] %v398_v16  ;;  %v402_v18 = vld [vmem:[%s4184_s10 + $0xb88] sm:$0xf]  ;;  %v404_v19 = vld [vmem:[%s4184_s10 + $0xbac] sm:$0xf] }
  0x4f   : > { %401 = vst [vmem:[%s4189_s11 + $0x144] sm:$0xf] %v400_v17  ;;  %403 = vst [vmem:[%s4189_s11 + $0x148] sm:$0xf] %v402_v18  ;;  %v406_v20 = vld [vmem:[%s4184_s10 + $0xbd0] sm:$0xf] }
  0x50   : > { %405 = vst [vmem:[%s4189_s11 + $0x14c] sm:$0xf] %v404_v19  ;;  %v408_v21 = vld [vmem:[%s4184_s10 + $0xbf4] sm:$0xf]  ;;  %v410_v22 = vld [vmem:[%s4184_s10 + $0xc18] sm:$0xf] }
  0x51   : > { %407 = vst [vmem:[%s4189_s11 + $0x150] sm:$0xf] %v406_v20  ;;  %409 = vst [vmem:[%s4189_s11 + $0x154] sm:$0xf] %v408_v21  ;;  %v412_v23 = vld [vmem:[%s4184_s10 + $0xc3c] sm:$0xf] }
  0x52   : > { %411 = vst [vmem:[%s4189_s11 + $0x158] sm:$0xf] %v410_v22  ;;  %v414_v24 = vld [vmem:[%s4184_s10 + $0xc60] sm:$0xf]  ;;  %v416_v25 = vld [vmem:[%s4184_s10 + $0xc84] sm:$0xf] }
  0x53   : > { %413 = vst [vmem:[%s4189_s11 + $0x15c] sm:$0xf] %v412_v23  ;;  %415 = vst [vmem:[%s4189_s11 + $0x160] sm:$0xf] %v414_v24  ;;  %v418_v26 = vld [vmem:[%s4184_s10 + $0xca8] sm:$0xf] }
  0x54   : > { %417 = vst [vmem:[%s4189_s11 + $0x164] sm:$0xf] %v416_v25  ;;  %v420_v27 = vld [vmem:[%s4184_s10 + $0xccc] sm:$0xf]  ;;  %v422_v28 = vld [vmem:[%s4184_s10 + $0xcf0] sm:$0xf] }
  0x55   : > { %419 = vst [vmem:[%s4189_s11 + $0x168] sm:$0xf] %v418_v26  ;;  %421 = vst [vmem:[%s4189_s11 + $0x16c] sm:$0xf] %v420_v27  ;;  %v424_v29 = vld [vmem:[%s4184_s10 + $0xd14] sm:$0xf] }
  0x56   : > { %423 = vst [vmem:[%s4189_s11 + $0x170] sm:$0xf] %v422_v28  ;;  %v426_v30 = vld [vmem:[%s4184_s10 + $0xd38] sm:$0xf]  ;;  %v428_v31 = vld [vmem:[%s4184_s10 + $0xd5c] sm:$0xf] }
  0x57   : > { %425 = vst [vmem:[%s4189_s11 + $0x174] sm:$0xf] %v424_v29  ;;  %427 = vst [vmem:[%s4189_s11 + $0x178] sm:$0xf] %v426_v30  ;;  %v430_v32 = vld [vmem:[%s4184_s10 + $0xd80] sm:$0xf] }
  0x58   : > { %429 = vst [vmem:[%s4189_s11 + $0x17c] sm:$0xf] %v428_v31  ;;  %v432_v33 = vld [vmem:[%s4184_s10 + $0xda4] sm:$0xf]  ;;  %v434_v34 = vld [vmem:[%s4184_s10 + $0xdc8] sm:$0xf] }
  0x59   : > { %431 = vst [vmem:[%s4189_s11 + $0x180] sm:$0xf] %v430_v32  ;;  %433 = vst [vmem:[%s4189_s11 + $0x184] sm:$0xf] %v432_v33  ;;  %v436_v35 = vld [vmem:[%s4184_s10 + $0xdec] sm:$0xf] }
  0x5a   : > { %435 = vst [vmem:[%s4189_s11 + $0x188] sm:$0xf] %v434_v34  ;;  %v438_v36 = vld [vmem:[%s4184_s10 + $0xe10] sm:$0xf]  ;;  %v440_v37 = vld [vmem:[%s4184_s10 + $0xe34] sm:$0xf] }
  0x5b   : > { %437 = vst [vmem:[%s4189_s11 + $0x18c] sm:$0xf] %v436_v35  ;;  %439 = vst [vmem:[%s4189_s11 + $0x190] sm:$0xf] %v438_v36  ;;  %v442_v38 = vld [vmem:[%s4184_s10 + $0xe58] sm:$0xf] }
  0x5c   : > { %441 = vst [vmem:[%s4189_s11 + $0x194] sm:$0xf] %v440_v37  ;;  %v444_v39 = vld [vmem:[%s4184_s10 + $0xe7c] sm:$0xf]  ;;  %v446_v40 = vld [vmem:[%s4184_s10 + $0xea0] sm:$0xf] }
  0x5d   : > { %443 = vst [vmem:[%s4189_s11 + $0x198] sm:$0xf] %v442_v38  ;;  %445 = vst [vmem:[%s4189_s11 + $0x19c] sm:$0xf] %v444_v39  ;;  %v448_v41 = vld [vmem:[%s4184_s10 + $0xec4] sm:$0xf] }
  0x5e   : > { %447 = vst [vmem:[%s4189_s11 + $0x1a0] sm:$0xf] %v446_v40  ;;  %v450_v42 = vld [vmem:[%s4184_s10 + $0xee8] sm:$0xf]  ;;  %v452_v43 = vld [vmem:[%s4184_s10 + $0xf0c] sm:$0xf] }
  0x5f   : > { %449 = vst [vmem:[%s4189_s11 + $0x1a4] sm:$0xf] %v448_v41  ;;  %451 = vst [vmem:[%s4189_s11 + $0x1a8] sm:$0xf] %v450_v42  ;;  %v454_v44 = vld [vmem:[%s4184_s10 + $0xf30] sm:$0xf] }
  0x60   : > { %453 = vst [vmem:[%s4189_s11 + $0x1ac] sm:$0xf] %v452_v43  ;;  %v456_v45 = vld [vmem:[%s4184_s10 + $0xf54] sm:$0xf]  ;;  %v458_v46 = vld [vmem:[%s4184_s10 + $0xf78] sm:$0xf] }
  0x61   : > { %455 = vst [vmem:[%s4189_s11 + $0x1b0] sm:$0xf] %v454_v44  ;;  %457 = vst [vmem:[%s4189_s11 + $0x1b4] sm:$0xf] %v456_v45  ;;  %v460_v47 = vld [vmem:[%s4184_s10 + $0xf9c] sm:$0xf] }
  0x62   : > { %459 = vst [vmem:[%s4189_s11 + $0x1b8] sm:$0xf] %v458_v46  ;;  %v462_v48 = vld [vmem:[%s4184_s10 + $0xfc0] sm:$0xf]  ;;  %v464_v49 = vld [vmem:[%s4184_s10 + $0xfe4] sm:$0xf] }
  0x63   : > { %461 = vst [vmem:[%s4189_s11 + $0x1bc] sm:$0xf] %v460_v47  ;;  %463 = vst [vmem:[%s4189_s11 + $0x1c0] sm:$0xf] %v462_v48  ;;  %v466_v50 = vld [vmem:[%s4184_s10 + $0x1008] sm:$0xf] }
  0x64   : > { %465 = vst [vmem:[%s4189_s11 + $0x1c4] sm:$0xf] %v464_v49  ;;  %v468_v51 = vld [vmem:[%s4184_s10 + $0x102c] sm:$0xf]  ;;  %v470_v52 = vld [vmem:[%s4184_s10 + $0x1050] sm:$0xf] }
  0x65   : > { %467 = vst [vmem:[%s4189_s11 + $0x1c8] sm:$0xf] %v466_v50  ;;  %469 = vst [vmem:[%s4189_s11 + $0x1cc] sm:$0xf] %v468_v51  ;;  %v472_v53 = vld [vmem:[%s4184_s10 + $0x1074] sm:$0xf] }
  0x66   : > { %471 = vst [vmem:[%s4189_s11 + $0x1d0] sm:$0xf] %v470_v52  ;;  %v474_v54 = vld [vmem:[%s4184_s10 + $0x1098] sm:$0xf]  ;;  %v476_v55 = vld [vmem:[%s4184_s10 + $0x10bc] sm:$0xf] }
  0x67   : > { %473 = vst [vmem:[%s4189_s11 + $0x1d4] sm:$0xf] %v472_v53  ;;  %475 = vst [vmem:[%s4189_s11 + $0x1d8] sm:$0xf] %v474_v54  ;;  %v478_v56 = vld [vmem:[%s4184_s10 + $0x10e0] sm:$0xf] }
  0x68   : > { %477 = vst [vmem:[%s4189_s11 + $0x1dc] sm:$0xf] %v476_v55  ;;  %v480_v57 = vld [vmem:[%s4184_s10 + $0x1104] sm:$0xf]  ;;  %v482_v58 = vld [vmem:[%s4184_s10 + $0x1128] sm:$0xf] }
  0x69   : > { %479 = vst [vmem:[%s4189_s11 + $0x1e0] sm:$0xf] %v478_v56  ;;  %481 = vst [vmem:[%s4189_s11 + $0x1e4] sm:$0xf] %v480_v57  ;;  %v484_v59 = vld [vmem:[%s4184_s10 + $0x114c] sm:$0xf] }
  0x6a   : > { %483 = vst [vmem:[%s4189_s11 + $0x1e8] sm:$0xf] %v482_v58  ;;  %v486_v60 = vld [vmem:[%s4184_s10 + $0x1170] sm:$0xf]  ;;  %v488_v61 = vld [vmem:[%s4184_s10 + $0x1194] sm:$0xf] }
  0x6b   : > { %485 = vst [vmem:[%s4189_s11 + $0x1ec] sm:$0xf] %v484_v59  ;;  %487 = vst [vmem:[%s4189_s11 + $0x1f0] sm:$0xf] %v486_v60  ;;  %v490_v62 = vld [vmem:[%s4184_s10 + $0x11b8] sm:$0xf] }
  0x6c   : > { %489 = vst [vmem:[%s4189_s11 + $0x1f4] sm:$0xf] %v488_v61  ;;  %v492_v63 = vld [vmem:[%s4184_s10 + $0x11dc] sm:$0xf]  ;;  %491 = vst [vmem:[%s4189_s11 + $0x1f8] sm:$0xf] %v490_v62 }
  0x6d   : > { %493 = vst [vmem:[%s4189_s11 + $0x1fc] sm:$0xf] %v492_v63 }
  0x6e PF: > { %p3338_p7 = scmp.ge.s32.totalorder %s4096_s21, 1  ;;  %p787_p8 = scmp.lt.s32.totalorder %s4096_s21, 19 }
  0x70   : > { %p788_p9 = pnand %p3338_p7, %p787_p8 }
  0x71   : > { %s794_s12 = sand.u32 (!%p788_p9), 1, %s4072_s15   ;;  %s3340_s13 = sshll.u32 (!%p788_p9), %s4080_s17, 4 }
  0x72   : > { %791 = sbr.rel (%p788_p9) target bundleno = 686 (0x2ae), region = 73  ;;  %s3339_s14 = sshll.u32 (!%p788_p9), %s794_s12, 9 }
  0x73   : > { %p848_p10 = scmp.lt.s32.totalorder (!%p788_p9), %s3340_s13, 143  ;;  %s3342_s24 = sshll.u32 (!%p788_p9), %s4084_s18, 7 }
  0x74   : > { %p867_p11 = scmp.lt.s32.totalorder (!%p788_p9), %s3342_s24, 255  ;;  %s4459_s15 = scalar_lea.vmem (!%p788_p9), [#allocation3], %s3339_s14 }
  0x75   : > { %p3344_p12 = scmp.ne.s32.totalorder (!%p788_p9), %s4080_s17, 0 }
  0x79   : > { %s5106_s13 = smov (!%p848_p10, %s3340_s13), 143  ;;  %s5108_s24 = smov (!%p867_p11, %s3342_s24), 255 }
  0x7a   : > { %s3341_s25 = sshll.u32 %s5106_s13, 2  ;;  %s3343_s30 = sshll.u32 %s5108_s24, 3  ;;  %v4098_v0 = vmov (!%p3344_p12), 0.0  }
  0x7b   : > { %s4452_s29 = scalar_lea.vmem %s5089_s1, %s3341_s25  ;;  %s4457_s7 = scalar_lea.vmem %s5092_s4, %s3343_s30  ;;  %882 = vst [vmem:[#allocation2] sm:$0xff] (!%p3344_p12), %v4098_v0  ;;  %883 = vst [vmem:[#allocation2 + $0x8] sm:$0xff] (!%p3344_p12), %v4098_v0 }
  0x7c   : > { %881 = sbr.rel (%p3344_p12) target bundleno = 187 (0xbb), region = 81  ;;  %884 = vst [vmem:[#allocation2 + $0x10] sm:$0xff] (!%p3344_p12), %v4098_v0  ;;  %885 = vst [vmem:[#allocation2 + $0x18] sm:$0xff] (!%p3344_p12), %v4098_v0 }
  0x7d   : > { %886 = vst [vmem:[#allocation2 + $0x20] sm:$0xff] (!%p3344_p12), %v4098_v0  ;;  %887 = vst [vmem:[#allocation2 + $0x28] sm:$0xff] (!%p3344_p12), %v4098_v0 }
  0x7e   : > { %888 = vst [vmem:[#allocation2 + $0x30] sm:$0xff] (!%p3344_p12), %v4098_v0  ;;  %889 = vst [vmem:[#allocation2 + $0x38] sm:$0xff] (!%p3344_p12), %v4098_v0 }
  0x7f   : > { %890 = vst [vmem:[#allocation2 + $0x40] sm:$0xff] (!%p3344_p12), %v4098_v0  ;;  %891 = vst [vmem:[#allocation2 + $0x48] sm:$0xff] (!%p3344_p12), %v4098_v0 }
  0x80   : > { %892 = vst [vmem:[#allocation2 + $0x50] sm:$0xff] (!%p3344_p12), %v4098_v0  ;;  %893 = vst [vmem:[#allocation2 + $0x58] sm:$0xff] (!%p3344_p12), %v4098_v0 }
  0x81   : > { %894 = vst [vmem:[#allocation2 + $0x60] sm:$0xff] (!%p3344_p12), %v4098_v0  ;;  %895 = vst [vmem:[#allocation2 + $0x68] sm:$0xff] (!%p3344_p12), %v4098_v0 }
  0x82   : > { %896 = vst [vmem:[#allocation2 + $0x70] sm:$0xff] (!%p3344_p12), %v4098_v0  ;;  %897 = vst [vmem:[#allocation2 + $0x78] sm:$0xff] (!%p3344_p12), %v4098_v0 }
  0x83   : > { %898 = vst [vmem:[#allocation2 + $0x80] sm:$0xff] %v4098_v0  ;;  %899 = vst [vmem:[#allocation2 + $0x88] sm:$0xff] %v4098_v0 }
  0x84   : > { %900 = vst [vmem:[#allocation2 + $0x90] sm:$0xff] %v4098_v0  ;;  %901 = vst [vmem:[#allocation2 + $0x98] sm:$0xff] %v4098_v0 }
  0x85   : > { %902 = vst [vmem:[#allocation2 + $0xa0] sm:$0xff] %v4098_v0  ;;  %903 = vst [vmem:[#allocation2 + $0xa8] sm:$0xff] %v4098_v0 }
  0x86   : > { %904 = vst [vmem:[#allocation2 + $0xb0] sm:$0xff] %v4098_v0  ;;  %905 = vst [vmem:[#allocation2 + $0xb8] sm:$0xff] %v4098_v0 }
  0x87   : > { %906 = vst [vmem:[#allocation2 + $0xc0] sm:$0xff] %v4098_v0  ;;  %907 = vst [vmem:[#allocation2 + $0xc8] sm:$0xff] %v4098_v0 }
  0x88   : > { %908 = vst [vmem:[#allocation2 + $0xd0] sm:$0xff] %v4098_v0  ;;  %909 = vst [vmem:[#allocation2 + $0xd8] sm:$0xff] %v4098_v0 }
  0x89   : > { %910 = vst [vmem:[#allocation2 + $0xe0] sm:$0xff] %v4098_v0  ;;  %911 = vst [vmem:[#allocation2 + $0xe8] sm:$0xff] %v4098_v0 }
  0x8a   : > { %912 = vst [vmem:[#allocation2 + $0xf0] sm:$0xff] %v4098_v0  ;;  %913 = vst [vmem:[#allocation2 + $0xf8] sm:$0xff] %v4098_v0 }
  0x8b   : > { %914 = vst [vmem:[#allocation2 + $0x100] sm:$0xff] %v4098_v0  ;;  %915 = vst [vmem:[#allocation2 + $0x108] sm:$0xff] %v4098_v0 }
  0x8c   : > { %916 = vst [vmem:[#allocation2 + $0x110] sm:$0xff] %v4098_v0  ;;  %917 = vst [vmem:[#allocation2 + $0x118] sm:$0xff] %v4098_v0 }
  0x8d   : > { %918 = vst [vmem:[#allocation2 + $0x120] sm:$0xff] %v4098_v0  ;;  %919 = vst [vmem:[#allocation2 + $0x128] sm:$0xff] %v4098_v0 }
  0x8e   : > { %920 = vst [vmem:[#allocation2 + $0x130] sm:$0xff] %v4098_v0  ;;  %921 = vst [vmem:[#allocation2 + $0x138] sm:$0xff] %v4098_v0 }
  0x8f   : > { %922 = vst [vmem:[#allocation2 + $0x140] sm:$0xff] %v4098_v0  ;;  %923 = vst [vmem:[#allocation2 + $0x148] sm:$0xff] %v4098_v0 }
  0x90   : > { %924 = vst [vmem:[#allocation2 + $0x150] sm:$0xff] %v4098_v0  ;;  %925 = vst [vmem:[#allocation2 + $0x158] sm:$0xff] %v4098_v0 }
  0x91   : > { %926 = vst [vmem:[#allocation2 + $0x160] sm:$0xff] %v4098_v0  ;;  %927 = vst [vmem:[#allocation2 + $0x168] sm:$0xff] %v4098_v0 }
  0x92   : > { %928 = vst [vmem:[#allocation2 + $0x170] sm:$0xff] %v4098_v0  ;;  %929 = vst [vmem:[#allocation2 + $0x178] sm:$0xff] %v4098_v0 }
  0x93   : > { %930 = vst [vmem:[#allocation2 + $0x180] sm:$0xff] %v4098_v0  ;;  %931 = vst [vmem:[#allocation2 + $0x188] sm:$0xff] %v4098_v0 }
  0x94   : > { %932 = vst [vmem:[#allocation2 + $0x190] sm:$0xff] %v4098_v0  ;;  %933 = vst [vmem:[#allocation2 + $0x198] sm:$0xff] %v4098_v0 }
  0x95   : > { %934 = vst [vmem:[#allocation2 + $0x1a0] sm:$0xff] %v4098_v0  ;;  %935 = vst [vmem:[#allocation2 + $0x1a8] sm:$0xff] %v4098_v0 }
  0x96   : > { %936 = vst [vmem:[#allocation2 + $0x1b0] sm:$0xff] %v4098_v0  ;;  %937 = vst [vmem:[#allocation2 + $0x1b8] sm:$0xff] %v4098_v0 }
  0x97   : > { %938 = vst [vmem:[#allocation2 + $0x1c0] sm:$0xff] %v4098_v0  ;;  %939 = vst [vmem:[#allocation2 + $0x1c8] sm:$0xff] %v4098_v0 }
  0x98   : > { %940 = vst [vmem:[#allocation2 + $0x1d0] sm:$0xff] %v4098_v0  ;;  %941 = vst [vmem:[#allocation2 + $0x1d8] sm:$0xff] %v4098_v0 }
  0x99   : > { %942 = vst [vmem:[#allocation2 + $0x1e0] sm:$0xff] %v4098_v0  ;;  %943 = vst [vmem:[#allocation2 + $0x1e8] sm:$0xff] %v4098_v0 }
  0x9a   : > { %944 = vst [vmem:[#allocation2 + $0x1f0] sm:$0xff] %v4098_v0  ;;  %945 = vst [vmem:[#allocation2 + $0x1f8] sm:$0xff] %v4098_v0 }
  0x9b   : > { %946 = vst [vmem:[#allocation2 + $0x200] sm:$0xff] %v4098_v0  ;;  %947 = vst [vmem:[#allocation2 + $0x208] sm:$0xff] %v4098_v0 }
  0x9c   : > { %948 = vst [vmem:[#allocation2 + $0x210] sm:$0xff] %v4098_v0  ;;  %949 = vst [vmem:[#allocation2 + $0x218] sm:$0xff] %v4098_v0 }
  0x9d   : > { %950 = vst [vmem:[#allocation2 + $0x220] sm:$0xff] %v4098_v0  ;;  %951 = vst [vmem:[#allocation2 + $0x228] sm:$0xff] %v4098_v0 }
  0x9e   : > { %952 = vst [vmem:[#allocation2 + $0x230] sm:$0xff] %v4098_v0  ;;  %953 = vst [vmem:[#allocation2 + $0x238] sm:$0xff] %v4098_v0 }
  0x9f   : > { %954 = vst [vmem:[#allocation2 + $0x240] sm:$0xff] %v4098_v0  ;;  %955 = vst [vmem:[#allocation2 + $0x248] sm:$0xff] %v4098_v0 }
  0xa0   : > { %956 = vst [vmem:[#allocation2 + $0x250] sm:$0xff] %v4098_v0  ;;  %957 = vst [vmem:[#allocation2 + $0x258] sm:$0xff] %v4098_v0 }
  0xa1   : > { %958 = vst [vmem:[#allocation2 + $0x260] sm:$0xff] %v4098_v0  ;;  %959 = vst [vmem:[#allocation2 + $0x268] sm:$0xff] %v4098_v0 }
  0xa2   : > { %960 = vst [vmem:[#allocation2 + $0x270] sm:$0xff] %v4098_v0  ;;  %961 = vst [vmem:[#allocation2 + $0x278] sm:$0xff] %v4098_v0 }
  0xa3   : > { %962 = vst [vmem:[#allocation2 + $0x280] sm:$0xff] %v4098_v0  ;;  %963 = vst [vmem:[#allocation2 + $0x288] sm:$0xff] %v4098_v0 }
  0xa4   : > { %964 = vst [vmem:[#allocation2 + $0x290] sm:$0xff] %v4098_v0  ;;  %965 = vst [vmem:[#allocation2 + $0x298] sm:$0xff] %v4098_v0 }
  0xa5   : > { %966 = vst [vmem:[#allocation2 + $0x2a0] sm:$0xff] %v4098_v0  ;;  %967 = vst [vmem:[#allocation2 + $0x2a8] sm:$0xff] %v4098_v0 }
  0xa6   : > { %968 = vst [vmem:[#allocation2 + $0x2b0] sm:$0xff] %v4098_v0  ;;  %969 = vst [vmem:[#allocation2 + $0x2b8] sm:$0xff] %v4098_v0 }
  0xa7   : > { %970 = vst [vmem:[#allocation2 + $0x2c0] sm:$0xff] %v4098_v0  ;;  %971 = vst [vmem:[#allocation2 + $0x2c8] sm:$0xff] %v4098_v0 }
  0xa8   : > { %972 = vst [vmem:[#allocation2 + $0x2d0] sm:$0xff] %v4098_v0  ;;  %973 = vst [vmem:[#allocation2 + $0x2d8] sm:$0xff] %v4098_v0 }
  0xa9   : > { %974 = vst [vmem:[#allocation2 + $0x2e0] sm:$0xff] %v4098_v0  ;;  %975 = vst [vmem:[#allocation2 + $0x2e8] sm:$0xff] %v4098_v0 }
  0xaa   : > { %976 = vst [vmem:[#allocation2 + $0x2f0] sm:$0xff] %v4098_v0  ;;  %977 = vst [vmem:[#allocation2 + $0x2f8] sm:$0xff] %v4098_v0 }
  0xab   : > { %978 = vst [vmem:[#allocation2 + $0x300] sm:$0xff] %v4098_v0  ;;  %979 = vst [vmem:[#allocation2 + $0x308] sm:$0xff] %v4098_v0 }
  0xac   : > { %980 = vst [vmem:[#allocation2 + $0x310] sm:$0xff] %v4098_v0  ;;  %981 = vst [vmem:[#allocation2 + $0x318] sm:$0xff] %v4098_v0 }
  0xad   : > { %982 = vst [vmem:[#allocation2 + $0x320] sm:$0xff] %v4098_v0  ;;  %983 = vst [vmem:[#allocation2 + $0x328] sm:$0xff] %v4098_v0 }
  0xae   : > { %984 = vst [vmem:[#allocation2 + $0x330] sm:$0xff] %v4098_v0  ;;  %985 = vst [vmem:[#allocation2 + $0x338] sm:$0xff] %v4098_v0 }
  0xaf   : > { %986 = vst [vmem:[#allocation2 + $0x340] sm:$0xff] %v4098_v0  ;;  %987 = vst [vmem:[#allocation2 + $0x348] sm:$0xff] %v4098_v0 }
  0xb0   : > { %988 = vst [vmem:[#allocation2 + $0x350] sm:$0xff] %v4098_v0  ;;  %989 = vst [vmem:[#allocation2 + $0x358] sm:$0xff] %v4098_v0 }
  0xb1   : > { %990 = vst [vmem:[#allocation2 + $0x360] sm:$0xff] %v4098_v0  ;;  %991 = vst [vmem:[#allocation2 + $0x368] sm:$0xff] %v4098_v0 }
  0xb2   : > { %992 = vst [vmem:[#allocation2 + $0x370] sm:$0xff] %v4098_v0  ;;  %993 = vst [vmem:[#allocation2 + $0x378] sm:$0xff] %v4098_v0 }
  0xb3   : > { %994 = vst [vmem:[#allocation2 + $0x380] sm:$0xff] %v4098_v0  ;;  %995 = vst [vmem:[#allocation2 + $0x388] sm:$0xff] %v4098_v0 }
  0xb4   : > { %996 = vst [vmem:[#allocation2 + $0x390] sm:$0xff] %v4098_v0  ;;  %997 = vst [vmem:[#allocation2 + $0x398] sm:$0xff] %v4098_v0 }
  0xb5   : > { %998 = vst [vmem:[#allocation2 + $0x3a0] sm:$0xff] %v4098_v0  ;;  %999 = vst [vmem:[#allocation2 + $0x3a8] sm:$0xff] %v4098_v0 }
  0xb6   : > { %1000 = vst [vmem:[#allocation2 + $0x3b0] sm:$0xff] %v4098_v0  ;;  %1001 = vst [vmem:[#allocation2 + $0x3b8] sm:$0xff] %v4098_v0 }
  0xb7   : > { %1002 = vst [vmem:[#allocation2 + $0x3c0] sm:$0xff] %v4098_v0  ;;  %1003 = vst [vmem:[#allocation2 + $0x3c8] sm:$0xff] %v4098_v0 }
  0xb8   : > { %1004 = vst [vmem:[#allocation2 + $0x3d0] sm:$0xff] %v4098_v0  ;;  %1005 = vst [vmem:[#allocation2 + $0x3d8] sm:$0xff] %v4098_v0 }
  0xb9   : > { %1006 = vst [vmem:[#allocation2 + $0x3e0] sm:$0xff] %v4098_v0  ;;  %1007 = vst [vmem:[#allocation2 + $0x3e8] sm:$0xff] %v4098_v0 }
  0xba   : > { %1008 = vst [vmem:[#allocation2 + $0x3f0] sm:$0xff] %v4098_v0  ;;  %1009 = vst [vmem:[#allocation2 + $0x3f8] sm:$0xff] %v4098_v0 }
  0xbb PF: > { %v3712_v1 = vld [vmem:[%s4452_s29] sm:$0xff]   ;;  %v3713_v2 = vld [vmem:[%s4452_s29 + $0x8] sm:$0xff]   ;;  %v3714_v3 = vld [vmem:[%s4452_s29 + $0x10] sm:$0xff]   ;;  %p3417_p13 = scmp.ne.s32.totalorder %s4080_s17, 8 }
  0xbc   : > { %3494 = vmatprep.subr.bf16.mxu0 %v3712_v1  ;;  %3638 = vmatprep.subr.bf16.mxu1 %v3712_v1  ;;  %v3715_v4 = vld [vmem:[%s4452_s29 + $0x18] sm:$0xff]   ;;  %v3720_v5 = vld [vmem:[%s4459_s15] sm:$0xff]   ;;  %v3717_v8 = vld [vmem:[%s4452_s29 + $0x28] sm:$0xff]  }
  0xbd   : > { %3495 = vmatpush3.bf16.msra.mxu0 %v3712_v1  ;;  %3646 = vmatpush3.bf16.msra.mxu1 %v3712_v1  ;;  %v3721_v6 = vld [vmem:[%s4459_s15 + $0x100] sm:$0xff]   ;;  %v3718_v9 = vld [vmem:[%s4452_s29 + $0x30] sm:$0xff]   ;;  %v3719_v10 = vld [vmem:[%s4452_s29 + $0x38] sm:$0xff]  }
  0xbe   : > { %3496 = vmatprep.subr.bf16.mxu0 %v3713_v2  ;;  %3639 = vmatprep.subr.bf16.mxu1 %v3713_v2  ;;  %v3716_v7 = vld [vmem:[%s4452_s29 + $0x20] sm:$0xff]   ;;  %v3722_v11 = vld [vmem:[%s4459_s15 + $0x8] sm:$0xff]   ;;  %v3724_v13 = vld [vmem:[%s4459_s15 + $0x10] sm:$0xff]  }
  0xbf   : > { %3510 = vmatprep.mubr.bf16.mxu0 %v3720_v5  ;;  %3574 = vmatprep.mubr.bf16.mxu1 %v3721_v6  ;;  %v3723_v12 = vld [vmem:[%s4459_s15 + $0x108] sm:$0xff]   ;;  %v3725_v14 = vld [vmem:[%s4459_s15 + $0x110] sm:$0xff]   ;;  %v3726_v15 = vld [vmem:[%s4459_s15 + $0x18] sm:$0xff]  }
  0xc0   : > { %v3727_v16 = vld [vmem:[%s4459_s15 + $0x118] sm:$0xff]   ;;  %v3728_v17 = vld [vmem:[%s4459_s15 + $0x20] sm:$0xff]   ;;  %v3730_v19 = vld [vmem:[%s4459_s15 + $0x28] sm:$0xff]  }
  0xc1   : > { %3497 = vmatpush3.bf16.msra.mxu0 %v3713_v2  ;;  %3647 = vmatpush3.bf16.msra.mxu1 %v3713_v2  ;;  %v3729_v18 = vld [vmem:[%s4459_s15 + $0x120] sm:$0xff]   ;;  %v3731_v20 = vld [vmem:[%s4459_s15 + $0x128] sm:$0xff]   ;;  %v3732_v21 = vld [vmem:[%s4459_s15 + $0x30] sm:$0xff]  }
  0xc2   : > { %3498 = vmatprep.subr.bf16.mxu0 %v3714_v3  ;;  %3640 = vmatprep.subr.bf16.mxu1 %v3714_v3  ;;  %v3733_v22 = vld [vmem:[%s4459_s15 + $0x130] sm:$0xff]   ;;  %v3734_v23 = vld [vmem:[%s4459_s15 + $0x38] sm:$0xff]   ;;  %v3736_v25 = vld [vmem:[%s4459_s15 + $0x40] sm:$0xff]  }
  0xc3   : > { %v3735_v24 = vld [vmem:[%s4459_s15 + $0x138] sm:$0xff]   ;;  %v3737_v26 = vld [vmem:[%s4459_s15 + $0x140] sm:$0xff]   ;;  %v3738_v27 = vld [vmem:[%s4459_s15 + $0x48] sm:$0xff]  }
  0xc4   : > { %v3739_v28 = vld [vmem:[%s4459_s15 + $0x148] sm:$0xff]   ;;  %v3740_v29 = vld [vmem:[%s4459_s15 + $0x50] sm:$0xff]   ;;  %v3742_v31 = vld [vmem:[%s4459_s15 + $0x58] sm:$0xff]  }
  0xc5   : > { %3499 = vmatpush3.bf16.msra.mxu0 %v3714_v3  ;;  %3648 = vmatpush3.bf16.msra.mxu1 %v3714_v3  ;;  %v3741_v30 = vld [vmem:[%s4459_s15 + $0x150] sm:$0xff]   ;;  %v3743_v32 = vld [vmem:[%s4459_s15 + $0x158] sm:$0xff]   ;;  %v3744_v33 = vld [vmem:[%s4459_s15 + $0x60] sm:$0xff]  }
  0xc6   : > { %3500 = vmatprep.subr.bf16.mxu0 %v3715_v4  ;;  %3641 = vmatprep.subr.bf16.mxu1 %v3715_v4  ;;  %v3745_v34 = vld [vmem:[%s4459_s15 + $0x160] sm:$0xff]   ;;  %v3746_v35 = vld [vmem:[%s4459_s15 + $0x68] sm:$0xff]   ;;  %v3748_v37 = vld [vmem:[%s4459_s15 + $0x70] sm:$0xff]  }
  0xc7   : > { %v3747_v36 = vld [vmem:[%s4459_s15 + $0x168] sm:$0xff]   ;;  %v3749_v38 = vld [vmem:[%s4459_s15 + $0x170] sm:$0xff]   ;;  %v3750_v39 = vld [vmem:[%s4459_s15 + $0x78] sm:$0xff]  }
  0xc8   : > { %v3751_v40 = vld [vmem:[%s4459_s15 + $0x178] sm:$0xff]   ;;  %v3752_v41 = vld [vmem:[%s4459_s15 + $0x80] sm:$0xff]   ;;  %v3754_v43 = vld [vmem:[%s4459_s15 + $0x88] sm:$0xff]  }
  0xc9   : > { %3501 = vmatpush3.bf16.msra.mxu0 %v3715_v4  ;;  %3649 = vmatpush3.bf16.msra.mxu1 %v3715_v4  ;;  %v3753_v42 = vld [vmem:[%s4459_s15 + $0x180] sm:$0xff]   ;;  %v3755_v44 = vld [vmem:[%s4459_s15 + $0x188] sm:$0xff]   ;;  %v3756_v45 = vld [vmem:[%s4459_s15 + $0x90] sm:$0xff]  }
  0xca   : > { %3502 = vmatprep.subr.bf16.mxu0 %v3716_v7  ;;  %3642 = vmatprep.subr.bf16.mxu1 %v3716_v7  ;;  %v3757_v46 = vld [vmem:[%s4459_s15 + $0x190] sm:$0xff]   ;;  %v3758_v47 = vld [vmem:[%s4459_s15 + $0x98] sm:$0xff]   ;;  %v3760_v49 = vld [vmem:[%s4459_s15 + $0xa0] sm:$0xff]  }
  0xcb   : > { %v3759_v48 = vld [vmem:[%s4459_s15 + $0x198] sm:$0xff]   ;;  %v3761_v50 = vld [vmem:[%s4459_s15 + $0x1a0] sm:$0xff]   ;;  %v3762_v51 = vld [vmem:[%s4459_s15 + $0xa8] sm:$0xff]  }
  0xcc   : > { %v3763_v52 = vld [vmem:[%s4459_s15 + $0x1a8] sm:$0xff]   ;;  %v3764_v53 = vld [vmem:[%s4459_s15 + $0xb0] sm:$0xff]   ;;  %v3766_v55 = vld [vmem:[%s4459_s15 + $0xb8] sm:$0xff]  }
  0xcd   : > { %3503 = vmatpush3.bf16.msra.mxu0 %v3716_v7  ;;  %3650 = vmatpush3.bf16.msra.mxu1 %v3716_v7  ;;  %v3765_v54 = vld [vmem:[%s4459_s15 + $0x1b0] sm:$0xff]   ;;  %v3767_v56 = vld [vmem:[%s4459_s15 + $0x1b8] sm:$0xff]   ;;  %v3768_v57 = vld [vmem:[%s4459_s15 + $0xc0] sm:$0xff]  }
  0xce   : > { %3504 = vmatprep.subr.bf16.mxu0 %v3717_v8  ;;  %3643 = vmatprep.subr.bf16.mxu1 %v3717_v8  ;;  %v3769_v58 = vld [vmem:[%s4459_s15 + $0x1c0] sm:$0xff]   ;;  %v3770_v59 = vld [vmem:[%s4459_s15 + $0xc8] sm:$0xff]   ;;  %v3772_v61 = vld [vmem:[%s4459_s15 + $0xd0] sm:$0xff]  }
  0xcf   : > { %v3771_v60 = vld [vmem:[%s4459_s15 + $0x1c8] sm:$0xff]   ;;  %v3773_v62 = vld [vmem:[%s4459_s15 + $0x1d0] sm:$0xff]   ;;  %v3774_v63 = vld [vmem:[%s4459_s15 + $0xd8] sm:$0xff]  }
  0xd0   : > { %v3775_v0 = vld [vmem:[%s4459_s15 + $0x1d8] sm:$0xff]   ;;  %v3776_v1 = vld [vmem:[%s4459_s15 + $0xe0] sm:$0xff]   ;;  %v3778_v3 = vld [vmem:[%s4459_s15 + $0xe8] sm:$0xff]  }
  0xd1   : > { %3505 = vmatpush3.bf16.msra.mxu0 %v3717_v8  ;;  %3651 = vmatpush3.bf16.msra.mxu1 %v3717_v8  ;;  %v3777_v2 = vld [vmem:[%s4459_s15 + $0x1e0] sm:$0xff]   ;;  %v3779_v4 = vld [vmem:[%s4459_s15 + $0x1e8] sm:$0xff]   ;;  %v3780_v5 = vld [vmem:[%s4459_s15 + $0xf0] sm:$0xff]  }
  0xd2   : > { %3506 = vmatprep.subr.bf16.mxu0 %v3718_v9  ;;  %3644 = vmatprep.subr.bf16.mxu1 %v3718_v9  ;;  %v3781_v6 = vld [vmem:[%s4459_s15 + $0x1f0] sm:$0xff]   ;;  %v3782_v7 = vld [vmem:[%s4459_s15 + $0xf8] sm:$0xff]  }
  0xd3   : > { %v3783_v8 = vld [vmem:[%s4459_s15 + $0x1f8] sm:$0xff]  }
  0xd5   : > { %3507 = vmatpush3.bf16.msra.mxu0 %v3718_v9  ;;  %3652 = vmatpush3.bf16.msra.mxu1 %v3718_v9  ;;  %v1012_v9 = vld [vmem:[#allocation2 + $0x10] sm:$0xff] }
  0xd6   : > { %3508 = vmatprep.subr.bf16.mxu0 %v3719_v10  ;;  %3645 = vmatprep.subr.bf16.mxu1 %v3719_v10 }
  0xd9   : > { %3509 = vmatpush3.bf16.msra.mxu0 %v3719_v10  ;;  %3653 = vmatpush3.bf16.msra.mxu1 %v3719_v10  ;;  %v1076_v10 = vld [vmem:[#allocation2 + $0x210] sm:$0xff] }
  0xdc   : > { %3511 = vmatmul.mubr.bf16.vlgmr.msra.gmra.mrb[0].mxu0 %v3722_v11  ;;  %3575 = vmatmul.mubr.bf16.vlgmr.msra.gmra.mrb[0].mxu1 %v3723_v12  ;;  %v1010_v11 = vld [vmem:[#allocation2] sm:$0xff] }
  0xdd   : > { %3514 = vmatprep.mubr.bf16.mxu0 %v3724_v13  ;;  %3578 = vmatprep.mubr.bf16.mxu1 %v3725_v14  ;;  %v1074_v12 = vld [vmem:[#allocation2 + $0x200] sm:$0xff] }
  0xe4   : > { %3515 = vmatmul.mubr.bf16.gmra.mrb[4].mxu0 %v3726_v15  ;;  %3579 = vmatmul.mubr.bf16.gmra.mrb[4].mxu1 %v3727_v16  ;;  %v1013_v15 = vld [vmem:[#allocation2 + $0x18] sm:$0xff] }
  0xe5   : > { %3518 = vmatprep.mubr.bf16.mxu0 %v3728_v17  ;;  %3582 = vmatprep.mubr.bf16.mxu1 %v3729_v18  ;;  %v1077_v16 = vld [vmem:[#allocation2 + $0x218] sm:$0xff] }
  0xec   : > { %3519 = vmatmul.mubr.bf16.gmra.mrb[8].mxu0 %v3730_v19  ;;  %3583 = vmatmul.mubr.bf16.gmra.mrb[8].mxu1 %v3731_v20 }
  0xed   : > { %3522 = vmatprep.mubr.bf16.mxu0 %v3732_v21  ;;  %3586 = vmatprep.mubr.bf16.mxu1 %v3733_v22  ;;  %v1011_v21 = vld [vmem:[#allocation2 + $0x8] sm:$0xff] }
  0xee   : > { %v1075_v22 = vld [vmem:[#allocation2 + $0x208] sm:$0xff] }
  0xf4   : > { %3523 = vmatmul.mubr.bf16.gmra.mrb[12].mxu0 %v3734_v23  ;;  %3587 = vmatmul.mubr.bf16.gmra.mrb[12].mxu1 %v3735_v24 }
  0xf5   : > { %3526 = vmatprep.mubr.bf16.mxu0 %v3736_v25  ;;  %3590 = vmatprep.mubr.bf16.mxu1 %v3737_v26 }
  0xfc   : > { %3527 = vmatmul.mubr.bf16.gmra.mrb[16].mxu0 %v3738_v27  ;;  %3591 = vmatmul.mubr.bf16.gmra.mrb[16].mxu1 %v3739_v28 }
  0xfd   : > { %3530 = vmatprep.mubr.bf16.mxu0 %v3740_v29  ;;  %3594 = vmatprep.mubr.bf16.mxu1 %v3741_v30 }
 0x104   : > { %3531 = vmatmul.mubr.bf16.gmra.mrb[20].mxu0 %v3742_v31  ;;  %3595 = vmatmul.mubr.bf16.gmra.mrb[20].mxu1 %v3743_v32 }
 0x105   : > { %3534 = vmatprep.mubr.bf16.mxu0 %v3744_v33  ;;  %3598 = vmatprep.mubr.bf16.mxu1 %v3745_v34  ;;  %v1016_v33 = vld [vmem:[#allocation2 + $0x30] sm:$0xff] }
 0x106   : > { %v1080_v34 = vld [vmem:[#allocation2 + $0x230] sm:$0xff] }
 0x10c   : > { %3535 = vmatmul.mubr.bf16.gmra.mrb[24].mxu0 %v3746_v35  ;;  %3599 = vmatmul.mubr.bf16.gmra.mrb[24].mxu1 %v3747_v36  ;;  %v1014_v35 = vld [vmem:[#allocation2 + $0x20] sm:$0xff] }
 0x10d   : > { %3538 = vmatprep.mubr.bf16.mxu0 %v3748_v37  ;;  %3602 = vmatprep.mubr.bf16.mxu1 %v3749_v38  ;;  %v1078_v36 = vld [vmem:[#allocation2 + $0x220] sm:$0xff] }
 0x114   : > { %3539 = vmatmul.mubr.bf16.gmra.mrb[28].mxu0 %v3750_v39  ;;  %3603 = vmatmul.mubr.bf16.gmra.mrb[28].mxu1 %v3751_v40  ;;  %v1017_v39 = vld [vmem:[#allocation2 + $0x38] sm:$0xff] }
 0x115   : > { %3542 = vmatprep.mubr.bf16.mxu0 %v3752_v41  ;;  %3606 = vmatprep.mubr.bf16.mxu1 %v3753_v42  ;;  %v1081_v40 = vld [vmem:[#allocation2 + $0x238] sm:$0xff] }
 0x11c   : > { %3543 = vmatmul.mubr.bf16.gmra.mrb[32].mxu0 %v3754_v43  ;;  %3607 = vmatmul.mubr.bf16.gmra.mrb[32].mxu1 %v3755_v44 }
 0x11d   : > { %3546 = vmatprep.mubr.bf16.mxu0 %v3756_v45  ;;  %3610 = vmatprep.mubr.bf16.mxu1 %v3757_v46  ;;  %v1015_v45 = vld [vmem:[#allocation2 + $0x28] sm:$0xff] }
 0x11e   : > { %v1079_v46 = vld [vmem:[#allocation2 + $0x228] sm:$0xff] }
 0x124   : > { %3547 = vmatmul.mubr.bf16.gmra.mrb[36].mxu0 %v3758_v47  ;;  %3611 = vmatmul.mubr.bf16.gmra.mrb[36].mxu1 %v3759_v48 }
 0x125   : > { %3550 = vmatprep.mubr.bf16.mxu0 %v3760_v49  ;;  %3614 = vmatprep.mubr.bf16.mxu1 %v3761_v50 }
 0x12c   : > { %3551 = vmatmul.mubr.bf16.gmra.mrb[40].mxu0 %v3762_v51  ;;  %3615 = vmatmul.mubr.bf16.gmra.mrb[40].mxu1 %v3763_v52 }
 0x12d   : > { %3554 = vmatprep.mubr.bf16.mxu0 %v3764_v53  ;;  %3618 = vmatprep.mubr.bf16.mxu1 %v3765_v54 }
 0x134   : > { %3555 = vmatmul.mubr.bf16.gmra.mrb[44].mxu0 %v3766_v55  ;;  %3619 = vmatmul.mubr.bf16.gmra.mrb[44].mxu1 %v3767_v56 }
 0x135   : > { %3558 = vmatprep.mubr.bf16.mxu0 %v3768_v57  ;;  %3622 = vmatprep.mubr.bf16.mxu1 %v3769_v58  ;;  %v1020_v57 = vld [vmem:[#allocation2 + $0x50] sm:$0xff] }
 0x136   : > { %v1084_v58 = vld [vmem:[#allocation2 + $0x250] sm:$0xff] }
 0x13c   : > { %3559 = vmatmul.mubr.bf16.gmra.mrb[48].mxu0 %v3770_v59  ;;  %3623 = vmatmul.mubr.bf16.gmra.mrb[48].mxu1 %v3771_v60  ;;  %v1018_v59 = vld [vmem:[#allocation2 + $0x40] sm:$0xff] }
 0x13d   : > { %3562 = vmatprep.mubr.bf16.mxu0 %v3772_v61  ;;  %3626 = vmatprep.mubr.bf16.mxu1 %v3773_v62  ;;  %v1082_v60 = vld [vmem:[#allocation2 + $0x240] sm:$0xff] }
 0x144   : > { %3563 = vmatmul.mubr.bf16.gmra.mrb[52].mxu0 %v3774_v63  ;;  %3627 = vmatmul.mubr.bf16.gmra.mrb[52].mxu1 %v3775_v0  ;;  %v1021_v63 = vld [vmem:[#allocation2 + $0x58] sm:$0xff] }
 0x145   : > { %3566 = vmatprep.mubr.bf16.mxu0 %v3776_v1  ;;  %3630 = vmatprep.mubr.bf16.mxu1 %v3777_v2  ;;  %v1085_v0 = vld [vmem:[#allocation2 + $0x258] sm:$0xff] }
 0x14c   : > { %3567 = vmatmul.mubr.bf16.gmra.mrb[56].mxu0 %v3778_v3  ;;  %3631 = vmatmul.mubr.bf16.gmra.mrb[56].mxu1 %v3779_v4 }
 0x14d   : > { %3570 = vmatprep.mubr.bf16.mxu0 %v3780_v5  ;;  %3634 = vmatprep.mubr.bf16.mxu1 %v3781_v6  ;;  %v1019_v5 = vld [vmem:[#allocation2 + $0x48] sm:$0xff] }
 0x14e   : > { %v1083_v6 = vld [vmem:[#allocation2 + $0x248] sm:$0xff] }
 0x154   : > { %3571 = vmatmul.mubr.bf16.gmra.mrb[60].mxu0 %v3782_v7  ;;  %3635 = vmatmul.mubr.bf16.gmra.mrb[60].mxu1 %v3783_v8 }
 0x1af   : > { %v3512_v13 = vpop.f32.mrb[0].mxu0  ;;  %v3576_v14 = vpop.f32.mrb[0].mxu1 }
 0x1b0   : > { %v2261_v17 = vadd.f32 %v3512_v13, %v1012_v9  ;;  %v2325_v18 = vadd.f32 %v3576_v14, %v1076_v10  ;;  %v1748_v19 = vpop.f32.mrb[1].mxu0  ;;  %v2004_v20 = vpop.f32.mrb[1].mxu1 }
 0x1b1   : > { %v2259_v23 = vadd.f32 %v1748_v19, %v1010_v11  ;;  %v2323_v24 = vadd.f32 %v2004_v20, %v1074_v12  ;;  %v3513_v25 = vpop.f32.mrb[2].mxu0  ;;  %v3577_v26 = vpop.f32.mrb[2].mxu1  ;;  %v1022_v19 = vld [vmem:[#allocation2 + $0x60] sm:$0xff] }
 0x1b2   : > { %2389 = vst [vmem:[#allocation2 + $0x10] sm:$0xff] %v2261_v17  ;;  %2453 = vst [vmem:[#allocation2 + $0x210] sm:$0xff] %v2325_v18  ;;  %v2262_v27 = vadd.f32 %v3513_v25, %v1013_v15  ;;  %v2326_v28 = vadd.f32 %v3577_v26, %v1077_v16  ;;  %v1751_v29 = vpop.f32.mrb[3].mxu0  ;;  %v2007_v30 = vpop.f32.mrb[3].mxu1  ;;  %v1024_v17 = vld [vmem:[#allocation2 + $0x70] sm:$0xff]  ;;  %v1086_v20 = vld [vmem:[#allocation2 + $0x260] sm:$0xff] }
 0x1b3   : > { %2387 = vst [vmem:[#allocation2] sm:$0xff] %v2259_v23  ;;  %2451 = vst [vmem:[#allocation2 + $0x200] sm:$0xff] %v2323_v24  ;;  %v2260_v31 = vadd.f32 %v1751_v29, %v1011_v21  ;;  %v2324_v32 = vadd.f32 %v2007_v30, %v1075_v22  ;;  %v1088_v18 = vld [vmem:[#allocation2 + $0x270] sm:$0xff]  ;;  %v1025_v23 = vld [vmem:[#allocation2 + $0x78] sm:$0xff] }
 0x1b4   : > { %2390 = vst [vmem:[#allocation2 + $0x18] sm:$0xff] %v2262_v27  ;;  %2454 = vst [vmem:[#allocation2 + $0x218] sm:$0xff] %v2326_v28  ;;  %v1089_v24 = vld [vmem:[#allocation2 + $0x278] sm:$0xff]  ;;  %v1023_v29 = vld [vmem:[#allocation2 + $0x68] sm:$0xff] }
 0x1b5   : > { %2388 = vst [vmem:[#allocation2 + $0x8] sm:$0xff] %v2260_v31  ;;  %2452 = vst [vmem:[#allocation2 + $0x208] sm:$0xff] %v2324_v32  ;;  %v1087_v30 = vld [vmem:[#allocation2 + $0x268] sm:$0xff] }
 0x1b7   : > { %v3516_v37 = vpop.f32.mrb[4].mxu0  ;;  %v3580_v38 = vpop.f32.mrb[4].mxu1 }
 0x1b8   : > { %v2265_v41 = vadd.f32 %v3516_v37, %v1016_v33  ;;  %v2329_v42 = vadd.f32 %v3580_v38, %v1080_v34  ;;  %v1764_v43 = vpop.f32.mrb[5].mxu0  ;;  %v2020_v44 = vpop.f32.mrb[5].mxu1 }
 0x1b9   : > { %v2263_v47 = vadd.f32 %v1764_v43, %v1014_v35  ;;  %v2327_v48 = vadd.f32 %v2020_v44, %v1078_v36  ;;  %v3517_v49 = vpop.f32.mrb[6].mxu0  ;;  %v3581_v50 = vpop.f32.mrb[6].mxu1  ;;  %v1026_v43 = vld [vmem:[#allocation2 + $0x80] sm:$0xff] }
 0x1ba   : > { %2393 = vst [vmem:[#allocation2 + $0x30] sm:$0xff] %v2265_v41  ;;  %2457 = vst [vmem:[#allocation2 + $0x230] sm:$0xff] %v2329_v42  ;;  %v2266_v51 = vadd.f32 %v3517_v49, %v1017_v39  ;;  %v2330_v52 = vadd.f32 %v3581_v50, %v1081_v40  ;;  %v1767_v53 = vpop.f32.mrb[7].mxu0  ;;  %v2023_v54 = vpop.f32.mrb[7].mxu1  ;;  %v1028_v41 = vld [vmem:[#allocation2 + $0x90] sm:$0xff]  ;;  %v1090_v44 = vld [vmem:[#allocation2 + $0x280] sm:$0xff] }
 0x1bb   : > { %2391 = vst [vmem:[#allocation2 + $0x20] sm:$0xff] %v2263_v47  ;;  %2455 = vst [vmem:[#allocation2 + $0x220] sm:$0xff] %v2327_v48  ;;  %v2264_v55 = vadd.f32 %v1767_v53, %v1015_v45  ;;  %v2328_v56 = vadd.f32 %v2023_v54, %v1079_v46  ;;  %v1092_v42 = vld [vmem:[#allocation2 + $0x290] sm:$0xff]  ;;  %v1029_v47 = vld [vmem:[#allocation2 + $0x98] sm:$0xff] }
 0x1bc   : > { %2394 = vst [vmem:[#allocation2 + $0x38] sm:$0xff] %v2266_v51  ;;  %2458 = vst [vmem:[#allocation2 + $0x238] sm:$0xff] %v2330_v52  ;;  %v1093_v48 = vld [vmem:[#allocation2 + $0x298] sm:$0xff]  ;;  %v1027_v53 = vld [vmem:[#allocation2 + $0x88] sm:$0xff] }
 0x1bd   : > { %2392 = vst [vmem:[#allocation2 + $0x28] sm:$0xff] %v2264_v55  ;;  %2456 = vst [vmem:[#allocation2 + $0x228] sm:$0xff] %v2328_v56  ;;  %v1091_v54 = vld [vmem:[#allocation2 + $0x288] sm:$0xff] }
 0x1bf   : > { %v3520_v61 = vpop.f32.mrb[8].mxu0  ;;  %v3584_v62 = vpop.f32.mrb[8].mxu1 }
 0x1c0   : > { %v2269_v1 = vadd.f32 %v3520_v61, %v1020_v57  ;;  %v2333_v2 = vadd.f32 %v3584_v62, %v1084_v58  ;;  %v1780_v3 = vpop.f32.mrb[9].mxu0  ;;  %v2036_v4 = vpop.f32.mrb[9].mxu1 }
 0x1c1   : > { %v2267_v7 = vadd.f32 %v1780_v3, %v1018_v59  ;;  %v2331_v8 = vadd.f32 %v2036_v4, %v1082_v60  ;;  %v3521_v9 = vpop.f32.mrb[10].mxu0  ;;  %v3585_v10 = vpop.f32.mrb[10].mxu1  ;;  %v1030_v3 = vld [vmem:[#allocation2 + $0xa0] sm:$0xff] }
 0x1c2   : > { %2397 = vst [vmem:[#allocation2 + $0x50] sm:$0xff] %v2269_v1  ;;  %2461 = vst [vmem:[#allocation2 + $0x250] sm:$0xff] %v2333_v2  ;;  %v2270_v11 = vadd.f32 %v3521_v9, %v1021_v63  ;;  %v2334_v12 = vadd.f32 %v3585_v10, %v1085_v0  ;;  %v1783_v13 = vpop.f32.mrb[11].mxu0  ;;  %v2039_v14 = vpop.f32.mrb[11].mxu1  ;;  %v1032_v1 = vld [vmem:[#allocation2 + $0xb0] sm:$0xff]  ;;  %v1094_v4 = vld [vmem:[#allocation2 + $0x2a0] sm:$0xff] }
 0x1c3   : > { %2395 = vst [vmem:[#allocation2 + $0x40] sm:$0xff] %v2267_v7  ;;  %2459 = vst [vmem:[#allocation2 + $0x240] sm:$0xff] %v2331_v8  ;;  %v2268_v15 = vadd.f32 %v1783_v13, %v1019_v5  ;;  %v2332_v16 = vadd.f32 %v2039_v14, %v1083_v6  ;;  %v1096_v2 = vld [vmem:[#allocation2 + $0x2b0] sm:$0xff]  ;;  %v1033_v7 = vld [vmem:[#allocation2 + $0xb8] sm:$0xff] }
 0x1c4   : > { %2398 = vst [vmem:[#allocation2 + $0x58] sm:$0xff] %v2270_v11  ;;  %2462 = vst [vmem:[#allocation2 + $0x258] sm:$0xff] %v2334_v12  ;;  %v1097_v8 = vld [vmem:[#allocation2 + $0x2b8] sm:$0xff]  ;;  %v1031_v13 = vld [vmem:[#allocation2 + $0xa8] sm:$0xff] }
 0x1c5   : > { %2396 = vst [vmem:[#allocation2 + $0x48] sm:$0xff] %v2268_v15  ;;  %2460 = vst [vmem:[#allocation2 + $0x248] sm:$0xff] %v2332_v16  ;;  %v1095_v14 = vld [vmem:[#allocation2 + $0x2a8] sm:$0xff] }
 0x1c7   : > { %v3524_v21 = vpop.f32.mrb[12].mxu0  ;;  %v3588_v22 = vpop.f32.mrb[12].mxu1 }
 0x1c8   : > { %v2273_v25 = vadd.f32 %v3524_v21, %v1024_v17  ;;  %v2337_v26 = vadd.f32 %v3588_v22, %v1088_v18  ;;  %v1796_v27 = vpop.f32.mrb[13].mxu0  ;;  %v2052_v28 = vpop.f32.mrb[13].mxu1 }
 0x1c9   : > { %v2271_v31 = vadd.f32 %v1796_v27, %v1022_v19  ;;  %v2335_v32 = vadd.f32 %v2052_v28, %v1086_v20  ;;  %v3525_v33 = vpop.f32.mrb[14].mxu0  ;;  %v3589_v34 = vpop.f32.mrb[14].mxu1  ;;  %v1034_v27 = vld [vmem:[#allocation2 + $0xc0] sm:$0xff] }
 0x1ca   : > { %2401 = vst [vmem:[#allocation2 + $0x70] sm:$0xff] %v2273_v25  ;;  %2465 = vst [vmem:[#allocation2 + $0x270] sm:$0xff] %v2337_v26  ;;  %v2274_v35 = vadd.f32 %v3525_v33, %v1025_v23  ;;  %v2338_v36 = vadd.f32 %v3589_v34, %v1089_v24  ;;  %v1799_v37 = vpop.f32.mrb[15].mxu0  ;;  %v2055_v38 = vpop.f32.mrb[15].mxu1  ;;  %v1036_v25 = vld [vmem:[#allocation2 + $0xd0] sm:$0xff]  ;;  %v1098_v28 = vld [vmem:[#allocation2 + $0x2c0] sm:$0xff] }
 0x1cb   : > { %2399 = vst [vmem:[#allocation2 + $0x60] sm:$0xff] %v2271_v31  ;;  %2463 = vst [vmem:[#allocation2 + $0x260] sm:$0xff] %v2335_v32  ;;  %v2272_v39 = vadd.f32 %v1799_v37, %v1023_v29  ;;  %v2336_v40 = vadd.f32 %v2055_v38, %v1087_v30  ;;  %v1100_v26 = vld [vmem:[#allocation2 + $0x2d0] sm:$0xff]  ;;  %v1037_v31 = vld [vmem:[#allocation2 + $0xd8] sm:$0xff] }
 0x1cc   : > { %2402 = vst [vmem:[#allocation2 + $0x78] sm:$0xff] %v2274_v35  ;;  %2466 = vst [vmem:[#allocation2 + $0x278] sm:$0xff] %v2338_v36  ;;  %v1101_v32 = vld [vmem:[#allocation2 + $0x2d8] sm:$0xff]  ;;  %v1035_v37 = vld [vmem:[#allocation2 + $0xc8] sm:$0xff] }
 0x1cd   : > { %2400 = vst [vmem:[#allocation2 + $0x68] sm:$0xff] %v2272_v39  ;;  %2464 = vst [vmem:[#allocation2 + $0x268] sm:$0xff] %v2336_v40  ;;  %v1099_v38 = vld [vmem:[#allocation2 + $0x2c8] sm:$0xff] }
 0x1cf   : > { %v3528_v45 = vpop.f32.mrb[16].mxu0  ;;  %v3592_v46 = vpop.f32.mrb[16].mxu1 }
 0x1d0   : > { %v2277_v49 = vadd.f32 %v3528_v45, %v1028_v41  ;;  %v2341_v50 = vadd.f32 %v3592_v46, %v1092_v42  ;;  %v1812_v51 = vpop.f32.mrb[17].mxu0  ;;  %v2068_v52 = vpop.f32.mrb[17].mxu1 }
 0x1d1   : > { %v2275_v55 = vadd.f32 %v1812_v51, %v1026_v43  ;;  %v2339_v56 = vadd.f32 %v2068_v52, %v1090_v44  ;;  %v3529_v57 = vpop.f32.mrb[18].mxu0  ;;  %v3593_v58 = vpop.f32.mrb[18].mxu1  ;;  %v1038_v51 = vld [vmem:[#allocation2 + $0xe0] sm:$0xff] }
 0x1d2   : > { %2405 = vst [vmem:[#allocation2 + $0x90] sm:$0xff] %v2277_v49  ;;  %2469 = vst [vmem:[#allocation2 + $0x290] sm:$0xff] %v2341_v50  ;;  %v2278_v59 = vadd.f32 %v3529_v57, %v1029_v47  ;;  %v2342_v60 = vadd.f32 %v3593_v58, %v1093_v48  ;;  %v1815_v61 = vpop.f32.mrb[19].mxu0  ;;  %v2071_v62 = vpop.f32.mrb[19].mxu1  ;;  %v1040_v49 = vld [vmem:[#allocation2 + $0xf0] sm:$0xff]  ;;  %v1102_v52 = vld [vmem:[#allocation2 + $0x2e0] sm:$0xff] }
 0x1d3   : > { %2403 = vst [vmem:[#allocation2 + $0x80] sm:$0xff] %v2275_v55  ;;  %2467 = vst [vmem:[#allocation2 + $0x280] sm:$0xff] %v2339_v56  ;;  %v2276_v63 = vadd.f32 %v1815_v61, %v1027_v53  ;;  %v2340_v0 = vadd.f32 %v2071_v62, %v1091_v54  ;;  %v1104_v50 = vld [vmem:[#allocation2 + $0x2f0] sm:$0xff]  ;;  %v1041_v55 = vld [vmem:[#allocation2 + $0xf8] sm:$0xff] }
 0x1d4   : > { %2406 = vst [vmem:[#allocation2 + $0x98] sm:$0xff] %v2278_v59  ;;  %2470 = vst [vmem:[#allocation2 + $0x298] sm:$0xff] %v2342_v60  ;;  %v1105_v56 = vld [vmem:[#allocation2 + $0x2f8] sm:$0xff]  ;;  %v1039_v61 = vld [vmem:[#allocation2 + $0xe8] sm:$0xff] }
 0x1d5   : > { %2404 = vst [vmem:[#allocation2 + $0x88] sm:$0xff] %v2276_v63  ;;  %2468 = vst [vmem:[#allocation2 + $0x288] sm:$0xff] %v2340_v0  ;;  %v1103_v62 = vld [vmem:[#allocation2 + $0x2e8] sm:$0xff] }
 0x1d7   : > { %v3532_v5 = vpop.f32.mrb[20].mxu0  ;;  %v3596_v6 = vpop.f32.mrb[20].mxu1 }
 0x1d8   : > { %v2281_v9 = vadd.f32 %v3532_v5, %v1032_v1  ;;  %v2345_v10 = vadd.f32 %v3596_v6, %v1096_v2  ;;  %v1828_v11 = vpop.f32.mrb[21].mxu0  ;;  %v2084_v12 = vpop.f32.mrb[21].mxu1 }
 0x1d9   : > { %v2279_v15 = vadd.f32 %v1828_v11, %v1030_v3  ;;  %v2343_v16 = vadd.f32 %v2084_v12, %v1094_v4  ;;  %v3533_v17 = vpop.f32.mrb[22].mxu0  ;;  %v3597_v18 = vpop.f32.mrb[22].mxu1  ;;  %v1042_v11 = vld [vmem:[#allocation2 + $0x100] sm:$0xff] }
 0x1da   : > { %2409 = vst [vmem:[#allocation2 + $0xb0] sm:$0xff] %v2281_v9  ;;  %2473 = vst [vmem:[#allocation2 + $0x2b0] sm:$0xff] %v2345_v10  ;;  %v2282_v19 = vadd.f32 %v3533_v17, %v1033_v7  ;;  %v2346_v20 = vadd.f32 %v3597_v18, %v1097_v8  ;;  %v1831_v21 = vpop.f32.mrb[23].mxu0  ;;  %v2087_v22 = vpop.f32.mrb[23].mxu1  ;;  %v1044_v9 = vld [vmem:[#allocation2 + $0x110] sm:$0xff]  ;;  %v1106_v12 = vld [vmem:[#allocation2 + $0x300] sm:$0xff] }
 0x1db   : > { %2407 = vst [vmem:[#allocation2 + $0xa0] sm:$0xff] %v2279_v15  ;;  %2471 = vst [vmem:[#allocation2 + $0x2a0] sm:$0xff] %v2343_v16  ;;  %v2280_v23 = vadd.f32 %v1831_v21, %v1031_v13  ;;  %v2344_v24 = vadd.f32 %v2087_v22, %v1095_v14  ;;  %v1108_v10 = vld [vmem:[#allocation2 + $0x310] sm:$0xff]  ;;  %v1045_v15 = vld [vmem:[#allocation2 + $0x118] sm:$0xff] }
 0x1dc   : > { %2410 = vst [vmem:[#allocation2 + $0xb8] sm:$0xff] %v2282_v19  ;;  %2474 = vst [vmem:[#allocation2 + $0x2b8] sm:$0xff] %v2346_v20  ;;  %v1109_v16 = vld [vmem:[#allocation2 + $0x318] sm:$0xff]  ;;  %v1043_v21 = vld [vmem:[#allocation2 + $0x108] sm:$0xff] }
 0x1dd   : > { %2408 = vst [vmem:[#allocation2 + $0xa8] sm:$0xff] %v2280_v23  ;;  %2472 = vst [vmem:[#allocation2 + $0x2a8] sm:$0xff] %v2344_v24  ;;  %v1107_v22 = vld [vmem:[#allocation2 + $0x308] sm:$0xff] }
 0x1df   : > { %v3536_v29 = vpop.f32.mrb[24].mxu0  ;;  %v3600_v30 = vpop.f32.mrb[24].mxu1 }
 0x1e0   : > { %v2285_v33 = vadd.f32 %v3536_v29, %v1036_v25  ;;  %v2349_v34 = vadd.f32 %v3600_v30, %v1100_v26  ;;  %v1844_v35 = vpop.f32.mrb[25].mxu0  ;;  %v2100_v36 = vpop.f32.mrb[25].mxu1 }
 0x1e1   : > { %v2283_v39 = vadd.f32 %v1844_v35, %v1034_v27  ;;  %v2347_v40 = vadd.f32 %v2100_v36, %v1098_v28  ;;  %v3537_v41 = vpop.f32.mrb[26].mxu0  ;;  %v3601_v42 = vpop.f32.mrb[26].mxu1  ;;  %v1046_v35 = vld [vmem:[#allocation2 + $0x120] sm:$0xff] }
 0x1e2   : > { %2413 = vst [vmem:[#allocation2 + $0xd0] sm:$0xff] %v2285_v33  ;;  %2477 = vst [vmem:[#allocation2 + $0x2d0] sm:$0xff] %v2349_v34  ;;  %v2286_v43 = vadd.f32 %v3537_v41, %v1037_v31  ;;  %v2350_v44 = vadd.f32 %v3601_v42, %v1101_v32  ;;  %v1847_v45 = vpop.f32.mrb[27].mxu0  ;;  %v2103_v46 = vpop.f32.mrb[27].mxu1  ;;  %v1048_v33 = vld [vmem:[#allocation2 + $0x130] sm:$0xff]  ;;  %v1110_v36 = vld [vmem:[#allocation2 + $0x320] sm:$0xff] }
 0x1e3   : > { %2411 = vst [vmem:[#allocation2 + $0xc0] sm:$0xff] %v2283_v39  ;;  %2475 = vst [vmem:[#allocation2 + $0x2c0] sm:$0xff] %v2347_v40  ;;  %v2284_v47 = vadd.f32 %v1847_v45, %v1035_v37  ;;  %v2348_v48 = vadd.f32 %v2103_v46, %v1099_v38  ;;  %v1112_v34 = vld [vmem:[#allocation2 + $0x330] sm:$0xff]  ;;  %v1049_v39 = vld [vmem:[#allocation2 + $0x138] sm:$0xff] }
 0x1e4   : > { %2414 = vst [vmem:[#allocation2 + $0xd8] sm:$0xff] %v2286_v43  ;;  %2478 = vst [vmem:[#allocation2 + $0x2d8] sm:$0xff] %v2350_v44  ;;  %v1113_v40 = vld [vmem:[#allocation2 + $0x338] sm:$0xff]  ;;  %v1047_v45 = vld [vmem:[#allocation2 + $0x128] sm:$0xff] }
 0x1e5   : > { %2412 = vst [vmem:[#allocation2 + $0xc8] sm:$0xff] %v2284_v47  ;;  %2476 = vst [vmem:[#allocation2 + $0x2c8] sm:$0xff] %v2348_v48  ;;  %v1111_v46 = vld [vmem:[#allocation2 + $0x328] sm:$0xff] }
 0x1e7   : > { %v3540_v53 = vpop.f32.mrb[28].mxu0  ;;  %v3604_v54 = vpop.f32.mrb[28].mxu1 }
 0x1e8   : > { %v2289_v57 = vadd.f32 %v3540_v53, %v1040_v49  ;;  %v2353_v58 = vadd.f32 %v3604_v54, %v1104_v50  ;;  %v1860_v59 = vpop.f32.mrb[29].mxu0  ;;  %v2116_v60 = vpop.f32.mrb[29].mxu1 }
 0x1e9   : > { %v2287_v63 = vadd.f32 %v1860_v59, %v1038_v51  ;;  %v2351_v0 = vadd.f32 %v2116_v60, %v1102_v52  ;;  %v3541_v1 = vpop.f32.mrb[30].mxu0  ;;  %v3605_v2 = vpop.f32.mrb[30].mxu1  ;;  %v1050_v59 = vld [vmem:[#allocation2 + $0x140] sm:$0xff] }
 0x1ea   : > { %2417 = vst [vmem:[#allocation2 + $0xf0] sm:$0xff] %v2289_v57  ;;  %2481 = vst [vmem:[#allocation2 + $0x2f0] sm:$0xff] %v2353_v58  ;;  %v2290_v3 = vadd.f32 %v3541_v1, %v1041_v55  ;;  %v2354_v4 = vadd.f32 %v3605_v2, %v1105_v56  ;;  %v1863_v5 = vpop.f32.mrb[31].mxu0  ;;  %v2119_v6 = vpop.f32.mrb[31].mxu1  ;;  %v1052_v57 = vld [vmem:[#allocation2 + $0x150] sm:$0xff]  ;;  %v1114_v60 = vld [vmem:[#allocation2 + $0x340] sm:$0xff] }
 0x1eb   : > { %2415 = vst [vmem:[#allocation2 + $0xe0] sm:$0xff] %v2287_v63  ;;  %2479 = vst [vmem:[#allocation2 + $0x2e0] sm:$0xff] %v2351_v0  ;;  %v2288_v7 = vadd.f32 %v1863_v5, %v1039_v61  ;;  %v2352_v8 = vadd.f32 %v2119_v6, %v1103_v62  ;;  %v1116_v58 = vld [vmem:[#allocation2 + $0x350] sm:$0xff]  ;;  %v1053_v63 = vld [vmem:[#allocation2 + $0x158] sm:$0xff] }
 0x1ec   : > { %2418 = vst [vmem:[#allocation2 + $0xf8] sm:$0xff] %v2290_v3  ;;  %2482 = vst [vmem:[#allocation2 + $0x2f8] sm:$0xff] %v2354_v4  ;;  %v1117_v0 = vld [vmem:[#allocation2 + $0x358] sm:$0xff]  ;;  %v1051_v5 = vld [vmem:[#allocation2 + $0x148] sm:$0xff] }
 0x1ed   : > { %2416 = vst [vmem:[#allocation2 + $0xe8] sm:$0xff] %v2288_v7  ;;  %2480 = vst [vmem:[#allocation2 + $0x2e8] sm:$0xff] %v2352_v8  ;;  %v1115_v6 = vld [vmem:[#allocation2 + $0x348] sm:$0xff] }
 0x1ef   : > { %v3544_v13 = vpop.f32.mrb[32].mxu0  ;;  %v3608_v14 = vpop.f32.mrb[32].mxu1 }
 0x1f0   : > { %v2293_v17 = vadd.f32 %v3544_v13, %v1044_v9  ;;  %v2357_v18 = vadd.f32 %v3608_v14, %v1108_v10  ;;  %v1876_v19 = vpop.f32.mrb[33].mxu0  ;;  %v2132_v20 = vpop.f32.mrb[33].mxu1 }
 0x1f1   : > { %v2291_v23 = vadd.f32 %v1876_v19, %v1042_v11  ;;  %v2355_v24 = vadd.f32 %v2132_v20, %v1106_v12  ;;  %v3545_v25 = vpop.f32.mrb[34].mxu0  ;;  %v3609_v26 = vpop.f32.mrb[34].mxu1  ;;  %v1054_v19 = vld [vmem:[#allocation2 + $0x160] sm:$0xff] }
 0x1f2   : > { %2421 = vst [vmem:[#allocation2 + $0x110] sm:$0xff] %v2293_v17  ;;  %2485 = vst [vmem:[#allocation2 + $0x310] sm:$0xff] %v2357_v18  ;;  %v2294_v27 = vadd.f32 %v3545_v25, %v1045_v15  ;;  %v2358_v28 = vadd.f32 %v3609_v26, %v1109_v16  ;;  %v1879_v29 = vpop.f32.mrb[35].mxu0  ;;  %v2135_v30 = vpop.f32.mrb[35].mxu1  ;;  %v1056_v17 = vld [vmem:[#allocation2 + $0x170] sm:$0xff]  ;;  %v1118_v20 = vld [vmem:[#allocation2 + $0x360] sm:$0xff] }
 0x1f3   : > { %2419 = vst [vmem:[#allocation2 + $0x100] sm:$0xff] %v2291_v23  ;;  %2483 = vst [vmem:[#allocation2 + $0x300] sm:$0xff] %v2355_v24  ;;  %v2292_v31 = vadd.f32 %v1879_v29, %v1043_v21  ;;  %v2356_v32 = vadd.f32 %v2135_v30, %v1107_v22  ;;  %v1120_v18 = vld [vmem:[#allocation2 + $0x370] sm:$0xff]  ;;  %v1057_v23 = vld [vmem:[#allocation2 + $0x178] sm:$0xff] }
 0x1f4   : > { %2422 = vst [vmem:[#allocation2 + $0x118] sm:$0xff] %v2294_v27  ;;  %2486 = vst [vmem:[#allocation2 + $0x318] sm:$0xff] %v2358_v28  ;;  %v1121_v24 = vld [vmem:[#allocation2 + $0x378] sm:$0xff]  ;;  %v1055_v29 = vld [vmem:[#allocation2 + $0x168] sm:$0xff] }
 0x1f5   : > { %2420 = vst [vmem:[#allocation2 + $0x108] sm:$0xff] %v2292_v31  ;;  %2484 = vst [vmem:[#allocation2 + $0x308] sm:$0xff] %v2356_v32  ;;  %v1119_v30 = vld [vmem:[#allocation2 + $0x368] sm:$0xff] }
 0x1f7   : > { %v3548_v37 = vpop.f32.mrb[36].mxu0  ;;  %v3612_v38 = vpop.f32.mrb[36].mxu1 }
 0x1f8   : > { %v2297_v41 = vadd.f32 %v3548_v37, %v1048_v33  ;;  %v2361_v42 = vadd.f32 %v3612_v38, %v1112_v34  ;;  %v1892_v43 = vpop.f32.mrb[37].mxu0  ;;  %v2148_v44 = vpop.f32.mrb[37].mxu1 }
 0x1f9   : > { %v2295_v47 = vadd.f32 %v1892_v43, %v1046_v35  ;;  %v2359_v48 = vadd.f32 %v2148_v44, %v1110_v36  ;;  %v3549_v49 = vpop.f32.mrb[38].mxu0  ;;  %v3613_v50 = vpop.f32.mrb[38].mxu1  ;;  %v1058_v43 = vld [vmem:[#allocation2 + $0x180] sm:$0xff] }
 0x1fa   : > { %2425 = vst [vmem:[#allocation2 + $0x130] sm:$0xff] %v2297_v41  ;;  %2489 = vst [vmem:[#allocation2 + $0x330] sm:$0xff] %v2361_v42  ;;  %v2298_v51 = vadd.f32 %v3549_v49, %v1049_v39  ;;  %v2362_v52 = vadd.f32 %v3613_v50, %v1113_v40  ;;  %v1895_v53 = vpop.f32.mrb[39].mxu0  ;;  %v2151_v54 = vpop.f32.mrb[39].mxu1  ;;  %v1060_v41 = vld [vmem:[#allocation2 + $0x190] sm:$0xff]  ;;  %v1122_v44 = vld [vmem:[#allocation2 + $0x380] sm:$0xff] }
 0x1fb   : > { %2423 = vst [vmem:[#allocation2 + $0x120] sm:$0xff] %v2295_v47  ;;  %2487 = vst [vmem:[#allocation2 + $0x320] sm:$0xff] %v2359_v48  ;;  %v2296_v55 = vadd.f32 %v1895_v53, %v1047_v45  ;;  %v2360_v56 = vadd.f32 %v2151_v54, %v1111_v46  ;;  %v1124_v42 = vld [vmem:[#allocation2 + $0x390] sm:$0xff]  ;;  %v1061_v47 = vld [vmem:[#allocation2 + $0x198] sm:$0xff] }
 0x1fc   : > { %2426 = vst [vmem:[#allocation2 + $0x138] sm:$0xff] %v2298_v51  ;;  %2490 = vst [vmem:[#allocation2 + $0x338] sm:$0xff] %v2362_v52  ;;  %v1125_v48 = vld [vmem:[#allocation2 + $0x398] sm:$0xff]  ;;  %v1059_v53 = vld [vmem:[#allocation2 + $0x188] sm:$0xff] }
 0x1fd   : > { %2424 = vst [vmem:[#allocation2 + $0x128] sm:$0xff] %v2296_v55  ;;  %2488 = vst [vmem:[#allocation2 + $0x328] sm:$0xff] %v2360_v56  ;;  %v1123_v54 = vld [vmem:[#allocation2 + $0x388] sm:$0xff] }
 0x1ff   : > { %v3552_v61 = vpop.f32.mrb[40].mxu0  ;;  %v3616_v62 = vpop.f32.mrb[40].mxu1 }
 0x200   : > { %v2301_v1 = vadd.f32 %v3552_v61, %v1052_v57  ;;  %v2365_v2 = vadd.f32 %v3616_v62, %v1116_v58  ;;  %v1908_v3 = vpop.f32.mrb[41].mxu0  ;;  %v2164_v4 = vpop.f32.mrb[41].mxu1 }
 0x201   : > { %v2299_v7 = vadd.f32 %v1908_v3, %v1050_v59  ;;  %v2363_v8 = vadd.f32 %v2164_v4, %v1114_v60  ;;  %v3553_v9 = vpop.f32.mrb[42].mxu0  ;;  %v3617_v10 = vpop.f32.mrb[42].mxu1  ;;  %v1062_v3 = vld [vmem:[#allocation2 + $0x1a0] sm:$0xff] }
 0x202   : > { %2429 = vst [vmem:[#allocation2 + $0x150] sm:$0xff] %v2301_v1  ;;  %2493 = vst [vmem:[#allocation2 + $0x350] sm:$0xff] %v2365_v2  ;;  %v2302_v11 = vadd.f32 %v3553_v9, %v1053_v63  ;;  %v2366_v12 = vadd.f32 %v3617_v10, %v1117_v0  ;;  %v1911_v13 = vpop.f32.mrb[43].mxu0  ;;  %v2167_v14 = vpop.f32.mrb[43].mxu1  ;;  %v1064_v1 = vld [vmem:[#allocation2 + $0x1b0] sm:$0xff]  ;;  %v1126_v4 = vld [vmem:[#allocation2 + $0x3a0] sm:$0xff] }
 0x203   : > { %2427 = vst [vmem:[#allocation2 + $0x140] sm:$0xff] %v2299_v7  ;;  %2491 = vst [vmem:[#allocation2 + $0x340] sm:$0xff] %v2363_v8  ;;  %v2300_v15 = vadd.f32 %v1911_v13, %v1051_v5  ;;  %v2364_v16 = vadd.f32 %v2167_v14, %v1115_v6  ;;  %v1128_v2 = vld [vmem:[#allocation2 + $0x3b0] sm:$0xff]  ;;  %v1065_v7 = vld [vmem:[#allocation2 + $0x1b8] sm:$0xff] }
 0x204   : > { %2430 = vst [vmem:[#allocation2 + $0x158] sm:$0xff] %v2302_v11  ;;  %2494 = vst [vmem:[#allocation2 + $0x358] sm:$0xff] %v2366_v12  ;;  %v1129_v8 = vld [vmem:[#allocation2 + $0x3b8] sm:$0xff]  ;;  %v1063_v13 = vld [vmem:[#allocation2 + $0x1a8] sm:$0xff] }
 0x205   : > { %2428 = vst [vmem:[#allocation2 + $0x148] sm:$0xff] %v2300_v15  ;;  %2492 = vst [vmem:[#allocation2 + $0x348] sm:$0xff] %v2364_v16  ;;  %v1127_v14 = vld [vmem:[#allocation2 + $0x3a8] sm:$0xff] }
 0x207   : > { %v3556_v21 = vpop.f32.mrb[44].mxu0  ;;  %v3620_v22 = vpop.f32.mrb[44].mxu1 }
 0x208   : > { %v2305_v25 = vadd.f32 %v3556_v21, %v1056_v17  ;;  %v2369_v26 = vadd.f32 %v3620_v22, %v1120_v18  ;;  %v1924_v27 = vpop.f32.mrb[45].mxu0  ;;  %v2180_v28 = vpop.f32.mrb[45].mxu1 }
 0x209   : > { %v2303_v31 = vadd.f32 %v1924_v27, %v1054_v19  ;;  %v2367_v32 = vadd.f32 %v2180_v28, %v1118_v20  ;;  %v3557_v33 = vpop.f32.mrb[46].mxu0  ;;  %v3621_v34 = vpop.f32.mrb[46].mxu1  ;;  %v1066_v27 = vld [vmem:[#allocation2 + $0x1c0] sm:$0xff] }
 0x20a   : > { %2433 = vst [vmem:[#allocation2 + $0x170] sm:$0xff] %v2305_v25  ;;  %2497 = vst [vmem:[#allocation2 + $0x370] sm:$0xff] %v2369_v26  ;;  %v2306_v35 = vadd.f32 %v3557_v33, %v1057_v23  ;;  %v2370_v36 = vadd.f32 %v3621_v34, %v1121_v24  ;;  %v1927_v37 = vpop.f32.mrb[47].mxu0  ;;  %v2183_v38 = vpop.f32.mrb[47].mxu1  ;;  %v1068_v25 = vld [vmem:[#allocation2 + $0x1d0] sm:$0xff]  ;;  %v1130_v28 = vld [vmem:[#allocation2 + $0x3c0] sm:$0xff] }
 0x20b   : > { %2431 = vst [vmem:[#allocation2 + $0x160] sm:$0xff] %v2303_v31  ;;  %2495 = vst [vmem:[#allocation2 + $0x360] sm:$0xff] %v2367_v32  ;;  %v2304_v39 = vadd.f32 %v1927_v37, %v1055_v29  ;;  %v2368_v40 = vadd.f32 %v2183_v38, %v1119_v30  ;;  %v1132_v26 = vld [vmem:[#allocation2 + $0x3d0] sm:$0xff]  ;;  %v1069_v31 = vld [vmem:[#allocation2 + $0x1d8] sm:$0xff] }
 0x20c   : > { %2434 = vst [vmem:[#allocation2 + $0x178] sm:$0xff] %v2306_v35  ;;  %2498 = vst [vmem:[#allocation2 + $0x378] sm:$0xff] %v2370_v36  ;;  %v1133_v32 = vld [vmem:[#allocation2 + $0x3d8] sm:$0xff]  ;;  %v1067_v37 = vld [vmem:[#allocation2 + $0x1c8] sm:$0xff] }
 0x20d   : > { %2432 = vst [vmem:[#allocation2 + $0x168] sm:$0xff] %v2304_v39  ;;  %2496 = vst [vmem:[#allocation2 + $0x368] sm:$0xff] %v2368_v40  ;;  %v1131_v38 = vld [vmem:[#allocation2 + $0x3c8] sm:$0xff] }
 0x20f   : > { %v3560_v45 = vpop.f32.mrb[48].mxu0  ;;  %v3624_v46 = vpop.f32.mrb[48].mxu1 }
 0x210   : > { %v2309_v49 = vadd.f32 %v3560_v45, %v1060_v41  ;;  %v2373_v50 = vadd.f32 %v3624_v46, %v1124_v42  ;;  %v1940_v51 = vpop.f32.mrb[49].mxu0  ;;  %v2196_v52 = vpop.f32.mrb[49].mxu1 }
 0x211   : > { %v2307_v55 = vadd.f32 %v1940_v51, %v1058_v43  ;;  %v2371_v56 = vadd.f32 %v2196_v52, %v1122_v44  ;;  %v3561_v57 = vpop.f32.mrb[50].mxu0  ;;  %v3625_v58 = vpop.f32.mrb[50].mxu1  ;;  %v1070_v51 = vld [vmem:[#allocation2 + $0x1e0] sm:$0xff] }
 0x212   : > { %2437 = vst [vmem:[#allocation2 + $0x190] sm:$0xff] %v2309_v49  ;;  %2501 = vst [vmem:[#allocation2 + $0x390] sm:$0xff] %v2373_v50  ;;  %v2310_v59 = vadd.f32 %v3561_v57, %v1061_v47  ;;  %v2374_v60 = vadd.f32 %v3625_v58, %v1125_v48  ;;  %v1943_v61 = vpop.f32.mrb[51].mxu0  ;;  %v2199_v62 = vpop.f32.mrb[51].mxu1  ;;  %v1072_v49 = vld [vmem:[#allocation2 + $0x1f0] sm:$0xff]  ;;  %v1134_v52 = vld [vmem:[#allocation2 + $0x3e0] sm:$0xff] }
 0x213   : > { %2435 = vst [vmem:[#allocation2 + $0x180] sm:$0xff] %v2307_v55  ;;  %2499 = vst [vmem:[#allocation2 + $0x380] sm:$0xff] %v2371_v56  ;;  %v2308_v63 = vadd.f32 %v1943_v61, %v1059_v53  ;;  %v2372_v0 = vadd.f32 %v2199_v62, %v1123_v54  ;;  %v1136_v50 = vld [vmem:[#allocation2 + $0x3f0] sm:$0xff]  ;;  %v1073_v55 = vld [vmem:[#allocation2 + $0x1f8] sm:$0xff] }
 0x214   : > { %2438 = vst [vmem:[#allocation2 + $0x198] sm:$0xff] %v2310_v59  ;;  %2502 = vst [vmem:[#allocation2 + $0x398] sm:$0xff] %v2374_v60  ;;  %v1137_v56 = vld [vmem:[#allocation2 + $0x3f8] sm:$0xff]  ;;  %v1071_v61 = vld [vmem:[#allocation2 + $0x1e8] sm:$0xff] }
 0x215   : > { %2436 = vst [vmem:[#allocation2 + $0x188] sm:$0xff] %v2308_v63  ;;  %2500 = vst [vmem:[#allocation2 + $0x388] sm:$0xff] %v2372_v0  ;;  %v1135_v62 = vld [vmem:[#allocation2 + $0x3e8] sm:$0xff] }
 0x217   : > { %v3564_v5 = vpop.f32.mrb[52].mxu0  ;;  %v3628_v6 = vpop.f32.mrb[52].mxu1 }
 0x218   : > { %v2313_v9 = vadd.f32 %v3564_v5, %v1064_v1  ;;  %v2377_v10 = vadd.f32 %v3628_v6, %v1128_v2  ;;  %v1956_v11 = vpop.f32.mrb[53].mxu0  ;;  %v2212_v12 = vpop.f32.mrb[53].mxu1 }
 0x219   : > { %v2311_v15 = vadd.f32 %v1956_v11, %v1062_v3  ;;  %v2375_v16 = vadd.f32 %v2212_v12, %v1126_v4  ;;  %v3565_v17 = vpop.f32.mrb[54].mxu0  ;;  %v3629_v18 = vpop.f32.mrb[54].mxu1  ;;  %v4671_v11 = vld [vmem:[%s5091_s3] ss:$0 sm:$0xff] (!%p3417_p13) }
 0x21a   : > { %2441 = vst [vmem:[#allocation2 + $0x1b0] sm:$0xff] %v2313_v9  ;;  %2505 = vst [vmem:[#allocation2 + $0x3b0] sm:$0xff] %v2377_v10  ;;  %v2314_v19 = vadd.f32 %v3565_v17, %v1065_v7  ;;  %v2378_v20 = vadd.f32 %v3629_v18, %v1129_v8  ;;  %v1959_v21 = vpop.f32.mrb[55].mxu0  ;;  %v2215_v22 = vpop.f32.mrb[55].mxu1  ;;  %v2519_v9 = vld [vmem:[#allocation2] sm:$0xff] (!%p3417_p13) }
 0x21b   : > { %2439 = vst [vmem:[#allocation2 + $0x1a0] sm:$0xff] %v2311_v15  ;;  %2503 = vst [vmem:[#allocation2 + $0x3a0] sm:$0xff] %v2375_v16  ;;  %v2312_v23 = vadd.f32 %v1959_v21, %v1063_v13  ;;  %v2376_v24 = vadd.f32 %v2215_v22, %v1127_v14  ;;  %v4666_v10 = vld [vmem:[%s5090_s2] ss:$0 sm:$0xff] (!%p3417_p13)  ;;  %v2520_v13 = vld [vmem:[#allocation2 + $0x8] sm:$0xff] (!%p3417_p13) }
 0x21c   : > { %2442 = vst [vmem:[#allocation2 + $0x1b8] sm:$0xff] %v2314_v19  ;;  %2506 = vst [vmem:[#allocation2 + $0x3b8] sm:$0xff] %v2378_v20  ;;  %v2654_v12 = vmul.f32 (!%p3417_p13), %v4666_v10, %v2519_v9  ;;  %v2521_v14 = vld [vmem:[#allocation2 + $0x10] sm:$0xff] (!%p3417_p13)  ;;  %v2522_v15 = vld [vmem:[#allocation2 + $0x18] sm:$0xff] (!%p3417_p13)  ;;  %v2655_v16 = vmul.f32 (!%p3417_p13), %v4666_v10, %v2520_v13 }
 0x21d   : > { %2440 = vst [vmem:[#allocation2 + $0x1a8] sm:$0xff] %v2312_v23  ;;  %2504 = vst [vmem:[#allocation2 + $0x3a8] sm:$0xff] %v2376_v24  ;;  %v2656_v17 = vmul.f32 (!%p3417_p13), %v4666_v10, %v2521_v14  ;;  %v2657_v18 = vmul.f32 (!%p3417_p13), %v4666_v10, %v2522_v15  ;;  %v2523_v19 = vld [vmem:[#allocation2 + $0x20] sm:$0xff] (!%p3417_p13)  ;;  %v2524_v20 = vld [vmem:[#allocation2 + $0x28] sm:$0xff] (!%p3417_p13) }
 0x21e   : > { %v2525_v21 = vld [vmem:[#allocation2 + $0x30] sm:$0xff] (!%p3417_p13)  ;;  %v2789_v22 = vadd.f32 (!%p3417_p13), %v4671_v11, %v2654_v12  ;;  %v2658_v23 = vmul.f32 (!%p3417_p13), %v4666_v10, %v2523_v19  ;;  %v2659_v24 = vmul.f32 (!%p3417_p13), %v4666_v10, %v2524_v20  ;;  %v2542_v13 = vld [vmem:[#allocation2 + $0xb8] sm:$0xff] (!%p3417_p13) }
 0x21f   : > { %v3568_v29 = vpop.f32.mrb[56].mxu0  ;;  %v3632_v30 = vpop.f32.mrb[56].mxu1 }
 0x220   : > { %v2317_v33 = vadd.f32 %v3568_v29, %v1068_v25  ;;  %v2381_v34 = vadd.f32 %v3632_v30, %v1132_v26  ;;  %v1972_v35 = vpop.f32.mrb[57].mxu0  ;;  %v2228_v36 = vpop.f32.mrb[57].mxu1  ;;  %v2660_v25 = vmul.f32 (!%p3417_p13), %v4666_v10, %v2525_v21  ;;  %v2526_v26 = vld [vmem:[#allocation2 + $0x38] sm:$0xff] (!%p3417_p13)  ;;  %v2790_v29 = vadd.f32 (!%p3417_p13), %v4671_v11, %v2655_v16  ;;  %v2544_v21 = vld [vmem:[#allocation2 + $0xc8] sm:$0xff] (!%p3417_p13) }
 0x221   : > { %v2315_v39 = vadd.f32 %v1972_v35, %v1066_v27  ;;  %v2379_v40 = vadd.f32 %v2228_v36, %v1130_v28  ;;  %v3569_v41 = vpop.f32.mrb[58].mxu0  ;;  %v3633_v42 = vpop.f32.mrb[58].mxu1  ;;  %v2527_v27 = vld [vmem:[#allocation2 + $0x40] sm:$0xff] (!%p3417_p13)  ;;  %v2528_v28 = vld [vmem:[#allocation2 + $0x48] sm:$0xff] (!%p3417_p13)  ;;  %v2791_v30 = vadd.f32 (!%p3417_p13), %v4671_v11, %v2656_v17  ;;  %3784 = vtanh.f32 (!%p3417_p13), %v2789_v22  ;;  %v2530_v35 = vld [vmem:[#allocation2 + $0x58] sm:$0xff] (!%p3417_p13) }
 0x222   : > { %2445 = vst [vmem:[#allocation2 + $0x1d0] sm:$0xff] %v2317_v33  ;;  %2509 = vst [vmem:[#allocation2 + $0x3d0] sm:$0xff] %v2381_v34  ;;  %v2318_v43 = vadd.f32 %v3569_v41, %v1069_v31  ;;  %v2382_v44 = vadd.f32 %v3633_v42, %v1133_v32  ;;  %v1975_v45 = vpop.f32.mrb[59].mxu0  ;;  %v2231_v46 = vpop.f32.mrb[59].mxu1  ;;  %v2792_v31 = vadd.f32 (!%p3417_p13), %v4671_v11, %v2657_v18  ;;  %v2529_v33 = vld [vmem:[#allocation2 + $0x50] sm:$0xff] (!%p3417_p13)  ;;  %3786 = vtanh.f32 (!%p3417_p13), %v2790_v29  ;;  %v2532_v42 = vld [vmem:[#allocation2 + $0x68] sm:$0xff] (!%p3417_p13) }
 0x223   : > { %2443 = vst [vmem:[#allocation2 + $0x1c0] sm:$0xff] %v2315_v39  ;;  %2507 = vst [vmem:[#allocation2 + $0x3c0] sm:$0xff] %v2379_v40  ;;  %v2316_v47 = vadd.f32 %v1975_v45, %v1067_v37  ;;  %v2380_v48 = vadd.f32 %v2231_v46, %v1131_v38  ;;  %v2661_v32 = vmul.f32 (!%p3417_p13), %v4666_v10, %v2526_v26  ;;  %v2531_v39 = vld [vmem:[#allocation2 + $0x60] sm:$0xff] (!%p3417_p13)  ;;  %3788 = vtanh.f32 (!%p3417_p13), %v2791_v30  ;;  %v2533_v45 = vld [vmem:[#allocation2 + $0x70] sm:$0xff] (!%p3417_p13) }
 0x224   : > { %2446 = vst [vmem:[#allocation2 + $0x1d8] sm:$0xff] %v2318_v43  ;;  %2510 = vst [vmem:[#allocation2 + $0x3d8] sm:$0xff] %v2382_v44  ;;  %v2793_v34 = vadd.f32 (!%p3417_p13), %v4671_v11, %v2658_v23  ;;  %v2794_v36 = vadd.f32 (!%p3417_p13), %v4671_v11, %v2659_v24  ;;  %v2662_v37 = vmul.f32 (!%p3417_p13), %v4666_v10, %v2527_v27  ;;  %3790 = vtanh.f32 (!%p3417_p13), %v2792_v31  ;;  %v2543_v17 = vld [vmem:[#allocation2 + $0xc0] sm:$0xff] (!%p3417_p13)  ;;  %v2546_v29 = vld [vmem:[#allocation2 + $0xd8] sm:$0xff] (!%p3417_p13) }
 0x225   : > { %2444 = vst [vmem:[#allocation2 + $0x1c8] sm:$0xff] %v2316_v47  ;;  %2508 = vst [vmem:[#allocation2 + $0x3c8] sm:$0xff] %v2380_v48  ;;  %v2663_v38 = vmul.f32 (!%p3417_p13), %v4666_v10, %v2528_v28  ;;  %v2795_v40 = vadd.f32 (!%p3417_p13), %v4671_v11, %v2660_v25  ;;  %v2664_v41 = vmul.f32 (!%p3417_p13), %v4666_v10, %v2529_v33  ;;  %v2534_v48 = vld [vmem:[#allocation2 + $0x78] sm:$0xff] (!%p3417_p13)  ;;  %v2545_v25 = vld [vmem:[#allocation2 + $0xd0] sm:$0xff] (!%p3417_p13) }
 0x226   : > { %v2796_v43 = vadd.f32 (!%p3417_p13), %v4671_v11, %v2661_v32  ;;  %v2665_v44 = vmul.f32 (!%p3417_p13), %v4666_v10, %v2530_v35  ;;  %3792 = vtanh.f32 (!%p3417_p13), %v2793_v34  ;;  %v2797_v46 = vadd.f32 (!%p3417_p13), %v4671_v11, %v2662_v37  ;;  %v2547_v33 = vld [vmem:[#allocation2 + $0xe0] sm:$0xff] (!%p3417_p13)  ;;  %v2548_v37 = vld [vmem:[#allocation2 + $0xe8] sm:$0xff] (!%p3417_p13) }
 0x227   : > { %v3572_v53 = vpop.f32.mrb[60].mxu0  ;;  %v3636_v54 = vpop.f32.mrb[60].mxu1  ;;  %2518 = sbr.rel (%p3417_p13) target bundleno = 686 (0x2ae), region = 85  ;;  %v2666_v47 = vmul.f32 (!%p3417_p13), %v4666_v10, %v2531_v39  ;;  %3794 = vtanh.f32 (!%p3417_p13), %v2794_v36  ;;  %v2677_v24 = vmul.f32 (!%p3417_p13), %v4666_v10, %v2542_v13  ;;  %v2678_v28 = vmul.f32 (!%p3417_p13), %v4666_v10, %v2543_v17 }
 0x228   : > { %v2321_v57 = vadd.f32 %v3572_v53, %v1072_v49  ;;  %v2385_v58 = vadd.f32 %v3636_v54, %v1136_v50  ;;  %v1988_v59 = vpop.f32.mrb[61].mxu0  ;;  %v2244_v60 = vpop.f32.mrb[61].mxu1  ;;  %v2798_v49 = vadd.f32 (!%p3417_p13), %v4671_v11, %v2663_v38  ;;  %v2667_v50 = vmul.f32 (!%p3417_p13), %v4666_v10, %v2532_v42  ;;  %v2536_v54 = vld [vmem:[#allocation2 + $0x88] sm:$0xff] (!%p3417_p13) }
 0x229   : > { %v2319_v63 = vadd.f32 %v1988_v59, %v1070_v51  ;;  %v2383_v0 = vadd.f32 %v2244_v60, %v1134_v52  ;;  %v3573_v1 = vpop.f32.mrb[62].mxu0  ;;  %v3637_v2 = vpop.f32.mrb[62].mxu1  ;;  %v2535_v51 = vld [vmem:[#allocation2 + $0x80] sm:$0xff] (!%p3417_p13)  ;;  %3796 = vtanh.f32 (!%p3417_p13), %v2795_v40  ;;  %v2799_v52 = vadd.f32 (!%p3417_p13), %v4671_v11, %v2664_v41  ;;  %v2538_v60 = vld [vmem:[#allocation2 + $0x98] sm:$0xff] (!%p3417_p13)  ;;  %v2549_v41 = vld [vmem:[#allocation2 + $0xf0] sm:$0xff] (!%p3417_p13) }
 0x22a   : > { %2449 = vst [vmem:[#allocation2 + $0x1f0] sm:$0xff] %v2321_v57  ;;  %2513 = vst [vmem:[#allocation2 + $0x3f0] sm:$0xff] %v2385_v58  ;;  %v2322_v3 = vadd.f32 %v3573_v1, %v1073_v55  ;;  %v2386_v4 = vadd.f32 %v3637_v2, %v1137_v56  ;;  %v1991_v5 = vpop.f32.mrb[63].mxu0  ;;  %v2247_v6 = vpop.f32.mrb[63].mxu1  ;;  %v2668_v53 = vmul.f32 (!%p3417_p13), %v4666_v10, %v2533_v45  ;;  %3798 = vtanh.f32 (!%p3417_p13), %v2796_v43  ;;  %v2537_v57 = vld [vmem:[#allocation2 + $0x90] sm:$0xff] (!%p3417_p13)  ;;  %v2550_v45 = vld [vmem:[#allocation2 + $0xf8] sm:$0xff] (!%p3417_p13) }
 0x22b   : > { %2447 = vst [vmem:[#allocation2 + $0x1e0] sm:$0xff] %v2319_v63  ;;  %2511 = vst [vmem:[#allocation2 + $0x3e0] sm:$0xff] %v2383_v0  ;;  %v2320_v7 = vadd.f32 %v1991_v5, %v1071_v61  ;;  %v2384_v8 = vadd.f32 %v2247_v6, %v1135_v62  ;;  %v2800_v55 = vadd.f32 (!%p3417_p13), %v4671_v11, %v2665_v44  ;;  %3800 = vtanh.f32 (!%p3417_p13), %v2797_v46  ;;  %v2539_v63 = vld [vmem:[#allocation2 + $0xa0] sm:$0xff] (!%p3417_p13)  ;;  %v3785_v0 = vpop.eup (!%p3417_p13), %3784 }
 0x22c   : > { %2450 = vst [vmem:[#allocation2 + $0x1f8] sm:$0xff] %v2322_v3  ;;  %2514 = vst [vmem:[#allocation2 + $0x3f8] sm:$0xff] %v2386_v4  ;;  %v2669_v56 = vmul.f32 (!%p3417_p13), %v4666_v10, %v2534_v48  ;;  %v2801_v58 = vadd.f32 (!%p3417_p13), %v4671_v11, %v2666_v47  ;;  %v2670_v59 = vmul.f32 (!%p3417_p13), %v4666_v10, %v2535_v51  ;;  %3802 = vtanh.f32 (!%p3417_p13), %v2798_v49  ;;  %v2540_v3 = vld [vmem:[#allocation2 + $0xa8] sm:$0xff] (!%p3417_p13)  ;;  %v3787_v4 = vpop.eup (!%p3417_p13), %3786  ;;  %v2551_v49 = vld [vmem:[#allocation2 + $0x100] sm:$0xff] (!%p3417_p13) }
 0x22d   : > { %2448 = vst [vmem:[#allocation2 + $0x1e8] sm:$0xff] %v2320_v7  ;;  %2512 = vst [vmem:[#allocation2 + $0x3e8] sm:$0xff] %v2384_v8  ;;  %v2802_v61 = vadd.f32 (!%p3417_p13), %v4671_v11, %v2667_v50  ;;  %v2671_v62 = vmul.f32 (!%p3417_p13), %v4666_v10, %v2536_v54  ;;  %3804 = vtanh.f32 (!%p3417_p13), %v2799_v52  ;;  %v2803_v1 = vadd.f32 (!%p3417_p13), %v4671_v11, %v2668_v53  ;;  %v2541_v7 = vld [vmem:[#allocation2 + $0xb0] sm:$0xff] (!%p3417_p13)  ;;  %v3789_v8 = vpop.eup (!%p3417_p13), %3788  ;;  %v2552_v53 = vld [vmem:[#allocation2 + $0x108] sm:$0xff] (!%p3417_p13) }
 0x22e   : > { %v2672_v2 = vmul.f32 %v4666_v10, %v2537_v57  ;;  %3045 = vst [vmem:[%s4457_s7] sm:$0xff] %v3785_v0  ;;  %3806 = vtanh.f32 %v2800_v55  ;;  %v2804_v5 = vadd.f32 %v4671_v11, %v2669_v56  ;;  %v2673_v6 = vmul.f32 %v4666_v10, %v2538_v60  ;;  %3046 = vst [vmem:[%s4457_s7 + $0x8] sm:$0xff] %v3787_v4  ;;  %v3791_v14 = vpop.eup %3790  ;;  %v2553_v57 = vld [vmem:[#allocation2 + $0x110] sm:$0xff] }
 0x22f   : > { %3808 = vtanh.f32 %v2801_v58  ;;  %v2805_v9 = vadd.f32 %v4671_v11, %v2670_v59  ;;  %v2674_v12 = vmul.f32 %v4666_v10, %v2539_v63  ;;  %3047 = vst [vmem:[%s4457_s7 + $0x10] sm:$0xff] %v3789_v8  ;;  %v2806_v15 = vadd.f32 %v4671_v11, %v2671_v62  ;;  %3048 = vst [vmem:[%s4457_s7 + $0x18] sm:$0xff] %v3791_v14 }
 0x230   : > { %3810 = vtanh.f32 %v2802_v61  ;;  %v2675_v16 = vmul.f32 %v4666_v10, %v2540_v3  ;;  %v3793_v18 = vpop.eup %3792  ;;  %v2807_v19 = vadd.f32 %v4671_v11, %v2672_v2  ;;  %v2676_v20 = vmul.f32 %v4666_v10, %v2541_v7  ;;  %v2554_v61 = vld [vmem:[#allocation2 + $0x118] sm:$0xff] }
 0x231   : > { %3812 = vtanh.f32 %v2803_v1  ;;  %v3795_v22 = vpop.eup %3794  ;;  %3049 = vst [vmem:[%s4457_s7 + $0x20] sm:$0xff] %v3793_v18  ;;  %v2808_v23 = vadd.f32 %v4671_v11, %v2673_v6  ;;  %v2809_v27 = vadd.f32 %v4671_v11, %v2674_v12  ;;  %v2679_v32 = vmul.f32 %v4666_v10, %v2544_v21  ;;  %v2555_v1 = vld [vmem:[#allocation2 + $0x120] sm:$0xff] }
 0x232   : > { %3814 = vtanh.f32 %v2804_v5  ;;  %3050 = vst [vmem:[%s4457_s7 + $0x28] sm:$0xff] %v3795_v22  ;;  %v2810_v31 = vadd.f32 %v4671_v11, %v2675_v16  ;;  %v2811_v35 = vadd.f32 %v4671_v11, %v2676_v20  ;;  %v2680_v36 = vmul.f32 %v4666_v10, %v2545_v25  ;;  %v2556_v5 = vld [vmem:[#allocation2 + $0x128] sm:$0xff] }
 0x233   : > { %v3797_v26 = vpop.eup %3796  ;;  %3816 = vtanh.f32 %v2805_v9  ;;  %v2812_v39 = vadd.f32 %v4671_v11, %v2677_v24  ;;  %v2681_v40 = vmul.f32 %v4666_v10, %v2546_v29  ;;  %v2813_v43 = vadd.f32 %v4671_v11, %v2678_v28  ;;  %v2557_v9 = vld [vmem:[#allocation2 + $0x130] sm:$0xff] }
 0x234   : > { %v3799_v30 = vpop.eup %3798  ;;  %3051 = vst [vmem:[%s4457_s7 + $0x30] sm:$0xff] %v3797_v26  ;;  %3818 = vtanh.f32 %v2806_v15  ;;  %v2682_v44 = vmul.f32 %v4666_v10, %v2547_v33  ;;  %v2814_v47 = vadd.f32 %v4671_v11, %v2679_v32  ;;  %v2683_v48 = vmul.f32 %v4666_v10, %v2548_v37  ;;  %v2558_v15 = vld [vmem:[#allocation2 + $0x138] sm:$0xff] }
 0x235   : > { %v3801_v34 = vpop.eup %3800  ;;  %3052 = vst [vmem:[%s4457_s7 + $0x38] sm:$0xff] %v3799_v30  ;;  %3820 = vtanh.f32 %v2807_v19  ;;  %v2815_v51 = vadd.f32 %v4671_v11, %v2680_v36  ;;  %v2684_v52 = vmul.f32 %v4666_v10, %v2549_v41  ;;  %v2816_v55 = vadd.f32 %v4671_v11, %v2681_v40  ;;  %v2559_v19 = vld [vmem:[#allocation2 + $0x140] sm:$0xff] }
 0x236   : > { %v3803_v38 = vpop.eup %3802  ;;  %3053 = vst [vmem:[%s4457_s7 + $0x40] sm:$0xff] %v3801_v34  ;;  %3822 = vtanh.f32 %v2808_v23  ;;  %v2685_v56 = vmul.f32 %v4666_v10, %v2550_v45  ;;  %v2817_v59 = vadd.f32 %v4671_v11, %v2682_v44  ;;  %v2686_v60 = vmul.f32 %v4666_v10, %v2551_v49  ;;  %v2560_v23 = vld [vmem:[#allocation2 + $0x148] sm:$0xff] }
 0x237   : > { %v3805_v42 = vpop.eup %3804  ;;  %3054 = vst [vmem:[%s4457_s7 + $0x48] sm:$0xff] %v3803_v38  ;;  %3824 = vtanh.f32 %v2809_v27  ;;  %v2818_v63 = vadd.f32 %v4671_v11, %v2683_v48  ;;  %v2687_v0 = vmul.f32 %v4666_v10, %v2552_v53  ;;  %v2819_v3 = vadd.f32 %v4671_v11, %v2684_v52  ;;  %v2561_v27 = vld [vmem:[#allocation2 + $0x150] sm:$0xff] }
 0x238   : > { %v3807_v46 = vpop.eup %3806  ;;  %3055 = vst [vmem:[%s4457_s7 + $0x50] sm:$0xff] %v3805_v42  ;;  %3826 = vtanh.f32 %v2810_v31  ;;  %v2688_v4 = vmul.f32 %v4666_v10, %v2553_v57  ;;  %v2820_v7 = vadd.f32 %v4671_v11, %v2685_v56  ;;  %v2689_v8 = vmul.f32 %v4666_v10, %v2554_v61  ;;  %v2562_v31 = vld [vmem:[#allocation2 + $0x158] sm:$0xff] }
 0x239   : > { %v3809_v50 = vpop.eup %3808  ;;  %3056 = vst [vmem:[%s4457_s7 + $0x58] sm:$0xff] %v3807_v46  ;;  %3828 = vtanh.f32 %v2811_v35  ;;  %v2821_v13 = vadd.f32 %v4671_v11, %v2686_v60  ;;  %v2690_v14 = vmul.f32 %v4666_v10, %v2555_v1  ;;  %v2822_v17 = vadd.f32 %v4671_v11, %v2687_v0  ;;  %v2563_v35 = vld [vmem:[#allocation2 + $0x160] sm:$0xff] }
 0x23a   : > { %v3811_v54 = vpop.eup %3810  ;;  %3057 = vst [vmem:[%s4457_s7 + $0x60] sm:$0xff] %v3809_v50  ;;  %3830 = vtanh.f32 %v2812_v39  ;;  %v2691_v18 = vmul.f32 %v4666_v10, %v2556_v5  ;;  %v2823_v21 = vadd.f32 %v4671_v11, %v2688_v4  ;;  %v2692_v22 = vmul.f32 %v4666_v10, %v2557_v9  ;;  %v2564_v39 = vld [vmem:[#allocation2 + $0x168] sm:$0xff] }
 0x23b   : > { %v3813_v58 = vpop.eup %3812  ;;  %3058 = vst [vmem:[%s4457_s7 + $0x68] sm:$0xff] %v3811_v54  ;;  %3832 = vtanh.f32 %v2813_v43  ;;  %v2824_v25 = vadd.f32 %v4671_v11, %v2689_v8  ;;  %v2693_v26 = vmul.f32 %v4666_v10, %v2558_v15  ;;  %v2825_v29 = vadd.f32 %v4671_v11, %v2690_v14  ;;  %v2565_v43 = vld [vmem:[#allocation2 + $0x170] sm:$0xff] }
 0x23c   : > { %v3815_v62 = vpop.eup %3814  ;;  %3059 = vst [vmem:[%s4457_s7 + $0x70] sm:$0xff] %v3813_v58  ;;  %3834 = vtanh.f32 %v2814_v47  ;;  %v2694_v30 = vmul.f32 %v4666_v10, %v2559_v19  ;;  %v2826_v33 = vadd.f32 %v4671_v11, %v2691_v18  ;;  %v2695_v34 = vmul.f32 %v4666_v10, %v2560_v23  ;;  %v2566_v47 = vld [vmem:[#allocation2 + $0x178] sm:$0xff] }
 0x23d   : > { %v3817_v2 = vpop.eup %3816  ;;  %3060 = vst [vmem:[%s4457_s7 + $0x78] sm:$0xff] %v3815_v62  ;;  %3836 = vtanh.f32 %v2815_v51  ;;  %v2827_v37 = vadd.f32 %v4671_v11, %v2692_v22  ;;  %v2696_v38 = vmul.f32 %v4666_v10, %v2561_v27  ;;  %v2828_v41 = vadd.f32 %v4671_v11, %v2693_v26  ;;  %v2567_v51 = vld [vmem:[#allocation2 + $0x180] sm:$0xff] }
 0x23e   : > { %v3819_v6 = vpop.eup %3818  ;;  %3061 = vst [vmem:[%s4457_s7 + $0x80] sm:$0xff] %v3817_v2  ;;  %3838 = vtanh.f32 %v2816_v55  ;;  %v2697_v42 = vmul.f32 %v4666_v10, %v2562_v31  ;;  %v2829_v45 = vadd.f32 %v4671_v11, %v2694_v30  ;;  %v2698_v46 = vmul.f32 %v4666_v10, %v2563_v35  ;;  %v2568_v55 = vld [vmem:[#allocation2 + $0x188] sm:$0xff] }
 0x23f   : > { %v3821_v12 = vpop.eup %3820  ;;  %3062 = vst [vmem:[%s4457_s7 + $0x88] sm:$0xff] %v3819_v6  ;;  %3840 = vtanh.f32 %v2817_v59  ;;  %v2830_v49 = vadd.f32 %v4671_v11, %v2695_v34  ;;  %v2699_v50 = vmul.f32 %v4666_v10, %v2564_v39  ;;  %v2831_v53 = vadd.f32 %v4671_v11, %v2696_v38  ;;  %v2569_v59 = vld [vmem:[#allocation2 + $0x190] sm:$0xff] }
 0x240   : > { %v3823_v16 = vpop.eup %3822  ;;  %3063 = vst [vmem:[%s4457_s7 + $0x90] sm:$0xff] %v3821_v12  ;;  %3842 = vtanh.f32 %v2818_v63  ;;  %v2700_v54 = vmul.f32 %v4666_v10, %v2565_v43  ;;  %v2832_v57 = vadd.f32 %v4671_v11, %v2697_v42  ;;  %v2701_v58 = vmul.f32 %v4666_v10, %v2566_v47  ;;  %v2570_v63 = vld [vmem:[#allocation2 + $0x198] sm:$0xff] }
 0x241   : > { %v3825_v20 = vpop.eup %3824  ;;  %3064 = vst [vmem:[%s4457_s7 + $0x98] sm:$0xff] %v3823_v16  ;;  %3844 = vtanh.f32 %v2819_v3  ;;  %v2833_v61 = vadd.f32 %v4671_v11, %v2698_v46  ;;  %v2702_v62 = vmul.f32 %v4666_v10, %v2567_v51  ;;  %v2834_v1 = vadd.f32 %v4671_v11, %v2699_v50  ;;  %v2571_v3 = vld [vmem:[#allocation2 + $0x1a0] sm:$0xff] }
 0x242   : > { %v3827_v24 = vpop.eup %3826  ;;  %3065 = vst [vmem:[%s4457_s7 + $0xa0] sm:$0xff] %v3825_v20  ;;  %3846 = vtanh.f32 %v2820_v7  ;;  %v2703_v2 = vmul.f32 %v4666_v10, %v2568_v55  ;;  %v2835_v5 = vadd.f32 %v4671_v11, %v2700_v54  ;;  %v2704_v6 = vmul.f32 %v4666_v10, %v2569_v59  ;;  %v2572_v7 = vld [vmem:[#allocation2 + $0x1a8] sm:$0xff] }
 0x243   : > { %v3829_v28 = vpop.eup %3828  ;;  %3066 = vst [vmem:[%s4457_s7 + $0xa8] sm:$0xff] %v3827_v24  ;;  %3848 = vtanh.f32 %v2821_v13  ;;  %v2836_v9 = vadd.f32 %v4671_v11, %v2701_v58  ;;  %v2705_v12 = vmul.f32 %v4666_v10, %v2570_v63  ;;  %v2573_v13 = vld [vmem:[#allocation2 + $0x1b0] sm:$0xff]  ;;  %v2837_v15 = vadd.f32 %v4671_v11, %v2702_v62 }
 0x244   : > { %v3831_v32 = vpop.eup %3830  ;;  %3067 = vst [vmem:[%s4457_s7 + $0xb0] sm:$0xff] %v3829_v28  ;;  %3850 = vtanh.f32 %v2822_v17  ;;  %v2706_v16 = vmul.f32 %v4666_v10, %v2571_v3  ;;  %v2574_v17 = vld [vmem:[#allocation2 + $0x1b8] sm:$0xff]  ;;  %v2838_v19 = vadd.f32 %v4671_v11, %v2703_v2  ;;  %v2707_v20 = vmul.f32 %v4666_v10, %v2572_v7 }
 0x245   : > { %v3833_v36 = vpop.eup %3832  ;;  %3068 = vst [vmem:[%s4457_s7 + $0xb8] sm:$0xff] %v3831_v32  ;;  %3852 = vtanh.f32 %v2823_v21  ;;  %v2575_v21 = vld [vmem:[#allocation2 + $0x1c0] sm:$0xff]  ;;  %v2839_v23 = vadd.f32 %v4671_v11, %v2704_v6  ;;  %v2708_v24 = vmul.f32 %v4666_v10, %v2573_v13  ;;  %v2840_v27 = vadd.f32 %v4671_v11, %v2705_v12 }
 0x246   : > { %v3835_v40 = vpop.eup %3834  ;;  %3069 = vst [vmem:[%s4457_s7 + $0xc0] sm:$0xff] %v3833_v36  ;;  %3854 = vtanh.f32 %v2824_v25  ;;  %v2576_v25 = vld [vmem:[#allocation2 + $0x1c8] sm:$0xff]  ;;  %v2709_v28 = vmul.f32 %v4666_v10, %v2574_v17  ;;  %v2841_v31 = vadd.f32 %v4671_v11, %v2706_v16  ;;  %v2710_v32 = vmul.f32 %v4666_v10, %v2575_v21 }
 0x247   : > { %v3837_v44 = vpop.eup %3836  ;;  %3070 = vst [vmem:[%s4457_s7 + $0xc8] sm:$0xff] %v3835_v40  ;;  %3856 = vtanh.f32 %v2825_v29  ;;  %v2577_v29 = vld [vmem:[#allocation2 + $0x1d0] sm:$0xff]  ;;  %v2842_v35 = vadd.f32 %v4671_v11, %v2707_v20  ;;  %v2711_v36 = vmul.f32 %v4666_v10, %v2576_v25  ;;  %v2843_v39 = vadd.f32 %v4671_v11, %v2708_v24 }
 0x248   : > { %v3839_v48 = vpop.eup %3838  ;;  %3071 = vst [vmem:[%s4457_s7 + $0xd0] sm:$0xff] %v3837_v44  ;;  %3858 = vtanh.f32 %v2826_v33  ;;  %v2578_v33 = vld [vmem:[#allocation2 + $0x1d8] sm:$0xff]  ;;  %v2712_v40 = vmul.f32 %v4666_v10, %v2577_v29  ;;  %v2844_v43 = vadd.f32 %v4671_v11, %v2709_v28  ;;  %v2845_v47 = vadd.f32 %v4671_v11, %v2710_v32 }
 0x249   : > { %v3841_v52 = vpop.eup %3840  ;;  %3072 = vst [vmem:[%s4457_s7 + $0xd8] sm:$0xff] %v3839_v48  ;;  %3860 = vtanh.f32 %v2827_v37  ;;  %v2579_v37 = vld [vmem:[#allocation2 + $0x1e0] sm:$0xff]  ;;  %v2713_v44 = vmul.f32 %v4666_v10, %v2578_v33  ;;  %v2846_v51 = vadd.f32 %v4671_v11, %v2711_v36 }
 0x24a   : > { %v3843_v56 = vpop.eup %3842  ;;  %3073 = vst [vmem:[%s4457_s7 + $0xe0] sm:$0xff] %v3841_v52  ;;  %3862 = vtanh.f32 %v2828_v41  ;;  %v2580_v41 = vld [vmem:[#allocation2 + $0x1e8] sm:$0xff]  ;;  %v2714_v48 = vmul.f32 %v4666_v10, %v2579_v37  ;;  %v2847_v55 = vadd.f32 %v4671_v11, %v2712_v40 }
 0x24b   : > { %v3845_v60 = vpop.eup %3844  ;;  %3074 = vst [vmem:[%s4457_s7 + $0xe8] sm:$0xff] %v3843_v56  ;;  %3864 = vtanh.f32 %v2829_v45  ;;  %v2581_v45 = vld [vmem:[#allocation2 + $0x1f0] sm:$0xff]  ;;  %v2715_v52 = vmul.f32 %v4666_v10, %v2580_v41  ;;  %v2848_v59 = vadd.f32 %v4671_v11, %v2713_v44 }
 0x24c   : > { %v3847_v0 = vpop.eup %3846  ;;  %3075 = vst [vmem:[%s4457_s7 + $0xf0] sm:$0xff] %v3845_v60  ;;  %3866 = vtanh.f32 %v2830_v49  ;;  %v2582_v49 = vld [vmem:[#allocation2 + $0x1f8] sm:$0xff]  ;;  %v2716_v56 = vmul.f32 %v4666_v10, %v2581_v45  ;;  %v2849_v63 = vadd.f32 %v4671_v11, %v2714_v48 }
 0x24d   : > { %v3849_v4 = vpop.eup %3848  ;;  %3076 = vst [vmem:[%s4457_s7 + $0xf8] sm:$0xff] %v3847_v0  ;;  %3868 = vtanh.f32 %v2831_v53  ;;  %v2583_v53 = vld [vmem:[#allocation2 + $0x200] sm:$0xff]  ;;  %v2717_v60 = vmul.f32 %v4666_v10, %v2582_v49  ;;  %v2850_v3 = vadd.f32 %v4671_v11, %v2715_v52 }
 0x24e   : > { %v3851_v8 = vpop.eup %3850  ;;  %3077 = vst [vmem:[%s4457_s7 + $0x100] sm:$0xff] %v3849_v4  ;;  %3870 = vtanh.f32 %v2832_v57  ;;  %v2584_v57 = vld [vmem:[#allocation2 + $0x208] sm:$0xff]  ;;  %v2718_v0 = vmul.f32 %v4666_v10, %v2583_v53  ;;  %v2851_v7 = vadd.f32 %v4671_v11, %v2716_v56 }
 0x24f   : > { %v3853_v14 = vpop.eup %3852  ;;  %3078 = vst [vmem:[%s4457_s7 + $0x108] sm:$0xff] %v3851_v8  ;;  %3872 = vtanh.f32 %v2833_v61  ;;  %v2585_v61 = vld [vmem:[#allocation2 + $0x210] sm:$0xff]  ;;  %v2719_v4 = vmul.f32 %v4666_v10, %v2584_v57  ;;  %v2852_v13 = vadd.f32 %v4671_v11, %v2717_v60 }
 0x250   : > { %v3855_v18 = vpop.eup %3854  ;;  %3079 = vst [vmem:[%s4457_s7 + $0x110] sm:$0xff] %v3853_v14  ;;  %3874 = vtanh.f32 %v2834_v1  ;;  %v2586_v1 = vld [vmem:[#allocation2 + $0x218] sm:$0xff]  ;;  %v2720_v8 = vmul.f32 %v4666_v10, %v2585_v61  ;;  %v2853_v17 = vadd.f32 %v4671_v11, %v2718_v0 }
 0x251   : > { %v3857_v22 = vpop.eup %3856  ;;  %3080 = vst [vmem:[%s4457_s7 + $0x118] sm:$0xff] %v3855_v18  ;;  %3876 = vtanh.f32 %v2835_v5  ;;  %v2587_v5 = vld [vmem:[#allocation2 + $0x220] sm:$0xff]  ;;  %v2721_v14 = vmul.f32 %v4666_v10, %v2586_v1  ;;  %v2854_v21 = vadd.f32 %v4671_v11, %v2719_v4 }
 0x252   : > { %v3859_v26 = vpop.eup %3858  ;;  %3081 = vst [vmem:[%s4457_s7 + $0x120] sm:$0xff] %v3857_v22  ;;  %3878 = vtanh.f32 %v2836_v9  ;;  %v2588_v9 = vld [vmem:[#allocation2 + $0x228] sm:$0xff]  ;;  %v2722_v18 = vmul.f32 %v4666_v10, %v2587_v5  ;;  %v2855_v25 = vadd.f32 %v4671_v11, %v2720_v8 }
 0x253   : > { %v3861_v30 = vpop.eup %3860  ;;  %3082 = vst [vmem:[%s4457_s7 + $0x128] sm:$0xff] %v3859_v26  ;;  %3880 = vtanh.f32 %v2837_v15  ;;  %v2589_v15 = vld [vmem:[#allocation2 + $0x230] sm:$0xff]  ;;  %v2723_v22 = vmul.f32 %v4666_v10, %v2588_v9  ;;  %v2856_v29 = vadd.f32 %v4671_v11, %v2721_v14 }
 0x254   : > { %v3863_v34 = vpop.eup %3862  ;;  %3083 = vst [vmem:[%s4457_s7 + $0x130] sm:$0xff] %v3861_v30  ;;  %3882 = vtanh.f32 %v2838_v19  ;;  %v2590_v19 = vld [vmem:[#allocation2 + $0x238] sm:$0xff]  ;;  %v2724_v26 = vmul.f32 %v4666_v10, %v2589_v15  ;;  %v2857_v33 = vadd.f32 %v4671_v11, %v2722_v18 }
 0x255   : > { %v3865_v38 = vpop.eup %3864  ;;  %3084 = vst [vmem:[%s4457_s7 + $0x138] sm:$0xff] %v3863_v34  ;;  %3884 = vtanh.f32 %v2839_v23  ;;  %v2591_v23 = vld [vmem:[#allocation2 + $0x240] sm:$0xff]  ;;  %v2725_v30 = vmul.f32 %v4666_v10, %v2590_v19  ;;  %v2858_v37 = vadd.f32 %v4671_v11, %v2723_v22 }
 0x256   : > { %v3867_v42 = vpop.eup %3866  ;;  %3085 = vst [vmem:[%s4457_s7 + $0x140] sm:$0xff] %v3865_v38  ;;  %3886 = vtanh.f32 %v2840_v27  ;;  %v2592_v27 = vld [vmem:[#allocation2 + $0x248] sm:$0xff]  ;;  %v2726_v34 = vmul.f32 %v4666_v10, %v2591_v23  ;;  %v2859_v41 = vadd.f32 %v4671_v11, %v2724_v26 }
 0x257   : > { %v3869_v46 = vpop.eup %3868  ;;  %3086 = vst [vmem:[%s4457_s7 + $0x148] sm:$0xff] %v3867_v42  ;;  %3888 = vtanh.f32 %v2841_v31  ;;  %v2593_v31 = vld [vmem:[#allocation2 + $0x250] sm:$0xff]  ;;  %v2727_v38 = vmul.f32 %v4666_v10, %v2592_v27  ;;  %v2860_v45 = vadd.f32 %v4671_v11, %v2725_v30 }
 0x258   : > { %v3871_v50 = vpop.eup %3870  ;;  %3087 = vst [vmem:[%s4457_s7 + $0x150] sm:$0xff] %v3869_v46  ;;  %3890 = vtanh.f32 %v2842_v35  ;;  %v2594_v35 = vld [vmem:[#allocation2 + $0x258] sm:$0xff]  ;;  %v2728_v42 = vmul.f32 %v4666_v10, %v2593_v31  ;;  %v2861_v49 = vadd.f32 %v4671_v11, %v2726_v34 }
 0x259   : > { %v3873_v54 = vpop.eup %3872  ;;  %3088 = vst [vmem:[%s4457_s7 + $0x158] sm:$0xff] %v3871_v50  ;;  %3892 = vtanh.f32 %v2843_v39  ;;  %v2595_v39 = vld [vmem:[#allocation2 + $0x260] sm:$0xff]  ;;  %v2729_v46 = vmul.f32 %v4666_v10, %v2594_v35  ;;  %v2862_v53 = vadd.f32 %v4671_v11, %v2727_v38 }
 0x25a   : > { %v3875_v58 = vpop.eup %3874  ;;  %3089 = vst [vmem:[%s4457_s7 + $0x160] sm:$0xff] %v3873_v54  ;;  %3894 = vtanh.f32 %v2844_v43  ;;  %v2596_v43 = vld [vmem:[#allocation2 + $0x268] sm:$0xff]  ;;  %v2730_v50 = vmul.f32 %v4666_v10, %v2595_v39  ;;  %v2863_v57 = vadd.f32 %v4671_v11, %v2728_v42 }
 0x25b   : > { %v3877_v62 = vpop.eup %3876  ;;  %3090 = vst [vmem:[%s4457_s7 + $0x168] sm:$0xff] %v3875_v58  ;;  %3896 = vtanh.f32 %v2845_v47  ;;  %v2597_v47 = vld [vmem:[#allocation2 + $0x270] sm:$0xff]  ;;  %v2731_v54 = vmul.f32 %v4666_v10, %v2596_v43  ;;  %v2864_v61 = vadd.f32 %v4671_v11, %v2729_v46 }
 0x25c   : > { %v3879_v2 = vpop.eup %3878  ;;  %3091 = vst [vmem:[%s4457_s7 + $0x170] sm:$0xff] %v3877_v62  ;;  %3898 = vtanh.f32 %v2846_v51  ;;  %v2598_v51 = vld [vmem:[#allocation2 + $0x278] sm:$0xff]  ;;  %v2732_v58 = vmul.f32 %v4666_v10, %v2597_v47  ;;  %v2865_v1 = vadd.f32 %v4671_v11, %v2730_v50 }
 0x25d   : > { %v3881_v6 = vpop.eup %3880  ;;  %3092 = vst [vmem:[%s4457_s7 + $0x178] sm:$0xff] %v3879_v2  ;;  %3900 = vtanh.f32 %v2847_v55  ;;  %v2599_v55 = vld [vmem:[#allocation2 + $0x280] sm:$0xff]  ;;  %v2733_v62 = vmul.f32 %v4666_v10, %v2598_v51  ;;  %v2866_v5 = vadd.f32 %v4671_v11, %v2731_v54 }
 0x25e   : > { %v3883_v12 = vpop.eup %3882  ;;  %3093 = vst [vmem:[%s4457_s7 + $0x180] sm:$0xff] %v3881_v6  ;;  %3902 = vtanh.f32 %v2848_v59  ;;  %v2600_v59 = vld [vmem:[#allocation2 + $0x288] sm:$0xff]  ;;  %v2734_v2 = vmul.f32 %v4666_v10, %v2599_v55  ;;  %v2867_v9 = vadd.f32 %v4671_v11, %v2732_v58  ;;  %v4933_v55 = vld [vmem:[%s5091_s3] ss:$0 sm:$0xff] }
 0x25f   : > { %v3885_v16 = vpop.eup %3884  ;;  %3094 = vst [vmem:[%s4457_s7 + $0x188] sm:$0xff] %v3883_v12  ;;  %3904 = vtanh.f32 %v2849_v63  ;;  %v2601_v63 = vld [vmem:[#allocation2 + $0x290] sm:$0xff]  ;;  %v2735_v6 = vmul.f32 %v4666_v10, %v2600_v59  ;;  %v2868_v15 = vadd.f32 %v4671_v11, %v2733_v62 }
 0x260   : > { %v3887_v20 = vpop.eup %3886  ;;  %3095 = vst [vmem:[%s4457_s7 + $0x190] sm:$0xff] %v3885_v16  ;;  %3906 = vtanh.f32 %v2850_v3  ;;  %v2602_v3 = vld [vmem:[#allocation2 + $0x298] sm:$0xff]  ;;  %v2736_v12 = vmul.f32 %v4666_v10, %v2601_v63  ;;  %v2869_v19 = vadd.f32 %v4671_v11, %v2734_v2 }
 0x261   : > { %v3889_v24 = vpop.eup %3888  ;;  %3096 = vst [vmem:[%s4457_s7 + $0x198] sm:$0xff] %v3887_v20  ;;  %3908 = vtanh.f32 %v2851_v7  ;;  %v2603_v7 = vld [vmem:[#allocation2 + $0x2a0] sm:$0xff]  ;;  %v2737_v16 = vmul.f32 %v4666_v10, %v2602_v3  ;;  %v2870_v23 = vadd.f32 %v4671_v11, %v2735_v6 }
 0x262   : > { %v3891_v28 = vpop.eup %3890  ;;  %3097 = vst [vmem:[%s4457_s7 + $0x1a0] sm:$0xff] %v3889_v24  ;;  %3910 = vtanh.f32 %v2852_v13  ;;  %v2604_v13 = vld [vmem:[#allocation2 + $0x2a8] sm:$0xff]  ;;  %v2738_v20 = vmul.f32 %v4666_v10, %v2603_v7  ;;  %v2871_v27 = vadd.f32 %v4671_v11, %v2736_v12 }
 0x263   : > { %v3893_v32 = vpop.eup %3892  ;;  %3098 = vst [vmem:[%s4457_s7 + $0x1a8] sm:$0xff] %v3891_v28  ;;  %3912 = vtanh.f32 %v2853_v17  ;;  %v2605_v17 = vld [vmem:[#allocation2 + $0x2b0] sm:$0xff]  ;;  %v2739_v24 = vmul.f32 %v4666_v10, %v2604_v13  ;;  %v2872_v31 = vadd.f32 %v4671_v11, %v2737_v16 }
 0x264   : > { %v3895_v36 = vpop.eup %3894  ;;  %3099 = vst [vmem:[%s4457_s7 + $0x1b0] sm:$0xff] %v3893_v32  ;;  %3914 = vtanh.f32 %v2854_v21  ;;  %v2606_v21 = vld [vmem:[#allocation2 + $0x2b8] sm:$0xff]  ;;  %v2740_v28 = vmul.f32 %v4666_v10, %v2605_v17  ;;  %v2873_v35 = vadd.f32 %v4671_v11, %v2738_v20 }
 0x265   : > { %v3897_v40 = vpop.eup %3896  ;;  %3100 = vst [vmem:[%s4457_s7 + $0x1b8] sm:$0xff] %v3895_v36  ;;  %3916 = vtanh.f32 %v2855_v25  ;;  %v2607_v25 = vld [vmem:[#allocation2 + $0x2c0] sm:$0xff]  ;;  %v2741_v32 = vmul.f32 %v4666_v10, %v2606_v21  ;;  %v2874_v39 = vadd.f32 %v4671_v11, %v2739_v24 }
 0x266   : > { %v3899_v44 = vpop.eup %3898  ;;  %3101 = vst [vmem:[%s4457_s7 + $0x1c0] sm:$0xff] %v3897_v40  ;;  %3918 = vtanh.f32 %v2856_v29  ;;  %v2608_v29 = vld [vmem:[#allocation2 + $0x2c8] sm:$0xff]  ;;  %v2742_v36 = vmul.f32 %v4666_v10, %v2607_v25  ;;  %v2875_v43 = vadd.f32 %v4671_v11, %v2740_v28 }
 0x267   : > { %v3901_v48 = vpop.eup %3900  ;;  %3102 = vst [vmem:[%s4457_s7 + $0x1c8] sm:$0xff] %v3899_v44  ;;  %3920 = vtanh.f32 %v2857_v33  ;;  %v2609_v33 = vld [vmem:[#allocation2 + $0x2d0] sm:$0xff]  ;;  %v2743_v40 = vmul.f32 %v4666_v10, %v2608_v29  ;;  %v2876_v47 = vadd.f32 %v4671_v11, %v2741_v32 }
 0x268   : > { %v3903_v52 = vpop.eup %3902  ;;  %3103 = vst [vmem:[%s4457_s7 + $0x1d0] sm:$0xff] %v3901_v48  ;;  %3922 = vtanh.f32 %v2858_v37  ;;  %v2610_v37 = vld [vmem:[#allocation2 + $0x2d8] sm:$0xff]  ;;  %v2744_v44 = vmul.f32 %v4666_v10, %v2609_v33  ;;  %v2877_v51 = vadd.f32 %v4671_v11, %v2742_v36  ;;  %v2615_v11 = vld [vmem:[#allocation2 + $0x300] sm:$0xff] }
 0x269   : > { %v3905_v56 = vpop.eup %3904  ;;  %3104 = vst [vmem:[%s4457_s7 + $0x1d8] sm:$0xff] %v3903_v52  ;;  %3924 = vtanh.f32 %v2859_v41  ;;  %v2611_v41 = vld [vmem:[#allocation2 + $0x2e0] sm:$0xff]  ;;  %v2745_v48 = vmul.f32 %v4666_v10, %v2610_v37 }
 0x26a   : > { %v3907_v60 = vpop.eup %3906  ;;  %3105 = vst [vmem:[%s4457_s7 + $0x1e0] sm:$0xff] %v3905_v56  ;;  %3926 = vtanh.f32 %v2860_v45  ;;  %v2612_v45 = vld [vmem:[#allocation2 + $0x2e8] sm:$0xff]  ;;  %v2746_v52 = vmul.f32 %v4666_v10, %v2611_v41  ;;  %v2878_v56 = vadd.f32 %v4933_v55, %v2743_v40  ;;  %v2879_v59 = vadd.f32 %v4933_v55, %v2744_v44 }
 0x26b   : > { %v3909_v0 = vpop.eup %3908  ;;  %3106 = vst [vmem:[%s4457_s7 + $0x1e8] sm:$0xff] %v3907_v60  ;;  %3928 = vtanh.f32 %v2861_v49  ;;  %v2613_v49 = vld [vmem:[#allocation2 + $0x2f0] sm:$0xff]  ;;  %v2880_v63 = vadd.f32 %v4933_v55, %v2745_v48 }
 0x26c   : > { %v3911_v4 = vpop.eup %3910  ;;  %3107 = vst [vmem:[%s4457_s7 + $0x1f0] sm:$0xff] %v3909_v0  ;;  %3930 = vtanh.f32 %v2862_v53  ;;  %v2614_v53 = vld [vmem:[#allocation2 + $0x2f8] sm:$0xff]  ;;  %v2881_v3 = vadd.f32 %v4933_v55, %v2746_v52 }
 0x26d   : > { %v3913_v8 = vpop.eup %3912  ;;  %3108 = vst [vmem:[%s4457_s7 + $0x1f8] sm:$0xff] %v3911_v4  ;;  %3932 = vtanh.f32 %v2863_v57  ;;  %v4939_v57 = vld [vmem:[%s5090_s2] ss:$0 sm:$0xff] }
 0x26e   : > { %v3915_v14 = vpop.eup %3914  ;;  %3109 = vst [vmem:[%s4457_s7 + $0x200] sm:$0xff] %v3913_v8  ;;  %3934 = vtanh.f32 %v2864_v61  ;;  %v2747_v10 = vmul.f32 %v4939_v57, %v2612_v45  ;;  %v2748_v60 = vmul.f32 %v4939_v57, %v2613_v49  ;;  %v2616_v61 = vld [vmem:[#allocation2 + $0x308] sm:$0xff]  ;;  %v2749_v0 = vmul.f32 %v4939_v57, %v2614_v53 }
 0x26f   : > { %v3917_v18 = vpop.eup %3916  ;;  %3110 = vst [vmem:[%s4457_s7 + $0x208] sm:$0xff] %v3915_v14  ;;  %3936 = vtanh.f32 %v2865_v1  ;;  %v2617_v1 = vld [vmem:[#allocation2 + $0x310] sm:$0xff]  ;;  %v2750_v4 = vmul.f32 %v4939_v57, %v2615_v11  ;;  %v2751_v8 = vmul.f32 %v4939_v57, %v2616_v61 }
 0x270   : > { %v3919_v22 = vpop.eup %3918  ;;  %3111 = vst [vmem:[%s4457_s7 + $0x210] sm:$0xff] %v3917_v18  ;;  %3938 = vtanh.f32 %v2866_v5  ;;  %v2618_v5 = vld [vmem:[#allocation2 + $0x318] sm:$0xff]  ;;  %v2882_v7 = vadd.f32 %v4933_v55, %v2747_v10  ;;  %v2883_v13 = vadd.f32 %v4933_v55, %v2748_v60  ;;  %v2752_v14 = vmul.f32 %v4939_v57, %v2617_v1 }
 0x271   : > { %v3921_v26 = vpop.eup %3920  ;;  %3112 = vst [vmem:[%s4457_s7 + $0x218] sm:$0xff] %v3919_v22  ;;  %3940 = vtanh.f32 %v2867_v9  ;;  %v2619_v9 = vld [vmem:[#allocation2 + $0x320] sm:$0xff]  ;;  %v2884_v17 = vadd.f32 %v4933_v55, %v2749_v0  ;;  %v2753_v18 = vmul.f32 %v4939_v57, %v2618_v5  ;;  %v2885_v21 = vadd.f32 %v4933_v55, %v2750_v4 }
 0x272   : > { %v3923_v30 = vpop.eup %3922  ;;  %3113 = vst [vmem:[%s4457_s7 + $0x220] sm:$0xff] %v3921_v26  ;;  %3942 = vtanh.f32 %v2868_v15  ;;  %v2620_v15 = vld [vmem:[#allocation2 + $0x328] sm:$0xff]  ;;  %v2754_v22 = vmul.f32 %v4939_v57, %v2619_v9  ;;  %v2886_v25 = vadd.f32 %v4933_v55, %v2751_v8  ;;  %v2887_v29 = vadd.f32 %v4933_v55, %v2752_v14 }
 0x273   : > { %v3925_v34 = vpop.eup %3924  ;;  %3114 = vst [vmem:[%s4457_s7 + $0x228] sm:$0xff] %v3923_v30  ;;  %3944 = vtanh.f32 %v2869_v19  ;;  %v2621_v19 = vld [vmem:[#allocation2 + $0x330] sm:$0xff]  ;;  %v2755_v26 = vmul.f32 %v4939_v57, %v2620_v15  ;;  %v2888_v33 = vadd.f32 %v4933_v55, %v2753_v18 }
 0x274   : > { %v3927_v38 = vpop.eup %3926  ;;  %3115 = vst [vmem:[%s4457_s7 + $0x230] sm:$0xff] %v3925_v34  ;;  %3946 = vtanh.f32 %v2870_v23  ;;  %v2622_v23 = vld [vmem:[#allocation2 + $0x338] sm:$0xff]  ;;  %v2756_v30 = vmul.f32 %v4939_v57, %v2621_v19  ;;  %v2889_v37 = vadd.f32 %v4933_v55, %v2754_v22 }
 0x275   : > { %v3929_v42 = vpop.eup %3928  ;;  %3116 = vst [vmem:[%s4457_s7 + $0x238] sm:$0xff] %v3927_v38  ;;  %3948 = vtanh.f32 %v2871_v27  ;;  %v2623_v27 = vld [vmem:[#allocation2 + $0x340] sm:$0xff]  ;;  %v2757_v34 = vmul.f32 %v4939_v57, %v2622_v23  ;;  %v2890_v41 = vadd.f32 %v4933_v55, %v2755_v26 }
 0x276   : > { %v3931_v46 = vpop.eup %3930  ;;  %3117 = vst [vmem:[%s4457_s7 + $0x240] sm:$0xff] %v3929_v42  ;;  %3950 = vtanh.f32 %v2872_v31  ;;  %v2624_v31 = vld [vmem:[#allocation2 + $0x348] sm:$0xff]  ;;  %v2758_v38 = vmul.f32 %v4939_v57, %v2623_v27  ;;  %v2891_v45 = vadd.f32 %v4933_v55, %v2756_v30 }
 0x277   : > { %v3933_v50 = vpop.eup %3932  ;;  %3118 = vst [vmem:[%s4457_s7 + $0x248] sm:$0xff] %v3931_v46  ;;  %3952 = vtanh.f32 %v2873_v35  ;;  %v2625_v35 = vld [vmem:[#allocation2 + $0x350] sm:$0xff]  ;;  %v2759_v42 = vmul.f32 %v4939_v57, %v2624_v31  ;;  %v2892_v49 = vadd.f32 %v4933_v55, %v2757_v34 }
 0x278   : > { %v3935_v54 = vpop.eup %3934  ;;  %3119 = vst [vmem:[%s4457_s7 + $0x250] sm:$0xff] %v3933_v50  ;;  %3954 = vtanh.f32 %v2874_v39  ;;  %v2626_v39 = vld [vmem:[#allocation2 + $0x358] sm:$0xff]  ;;  %v2760_v46 = vmul.f32 %v4939_v57, %v2625_v35  ;;  %v2893_v53 = vadd.f32 %v4933_v55, %v2758_v38 }
 0x279   : > { %v3937_v58 = vpop.eup %3936  ;;  %3120 = vst [vmem:[%s4457_s7 + $0x258] sm:$0xff] %v3935_v54  ;;  %3956 = vtanh.f32 %v2875_v43  ;;  %v2627_v43 = vld [vmem:[#allocation2 + $0x360] sm:$0xff]  ;;  %v2761_v50 = vmul.f32 %v4939_v57, %v2626_v39  ;;  %v2894_v11 = vadd.f32 %v4933_v55, %v2759_v42 }
 0x27a   : > { %v3939_v62 = vpop.eup %3938  ;;  %3121 = vst [vmem:[%s4457_s7 + $0x260] sm:$0xff] %v3937_v58  ;;  %3958 = vtanh.f32 %v2876_v47  ;;  %v2628_v47 = vld [vmem:[#allocation2 + $0x368] sm:$0xff]  ;;  %v2762_v54 = vmul.f32 %v4939_v57, %v2627_v43  ;;  %v2895_v61 = vadd.f32 %v4933_v55, %v2760_v46 }
 0x27b   : > { %v3941_v2 = vpop.eup %3940  ;;  %3122 = vst [vmem:[%s4457_s7 + $0x268] sm:$0xff] %v3939_v62  ;;  %3960 = vtanh.f32 %v2877_v51  ;;  %v2629_v51 = vld [vmem:[#allocation2 + $0x370] sm:$0xff]  ;;  %v2763_v58 = vmul.f32 %v4939_v57, %v2628_v47  ;;  %v2896_v1 = vadd.f32 %v4933_v55, %v2761_v50 }
 0x27c   : > { %v3943_v6 = vpop.eup %3942  ;;  %3123 = vst [vmem:[%s4457_s7 + $0x270] sm:$0xff] %v3941_v2  ;;  %3962 = vtanh.f32 %v2878_v56  ;;  %v2630_v56 = vld [vmem:[#allocation2 + $0x378] sm:$0xff]  ;;  %v2764_v62 = vmul.f32 %v4939_v57, %v2629_v51  ;;  %v2897_v5 = vadd.f32 %v4933_v55, %v2762_v54 }
 0x27d   : > { %v3945_v12 = vpop.eup %3944  ;;  %3124 = vst [vmem:[%s4457_s7 + $0x278] sm:$0xff] %v3943_v6  ;;  %3964 = vtanh.f32 %v2879_v59  ;;  %v2631_v59 = vld [vmem:[#allocation2 + $0x380] sm:$0xff]  ;;  %v2765_v2 = vmul.f32 %v4939_v57, %v2630_v56  ;;  %v2898_v9 = vadd.f32 %v4933_v55, %v2763_v58 }
 0x27e   : > { %v3947_v16 = vpop.eup %3946  ;;  %3125 = vst [vmem:[%s4457_s7 + $0x280] sm:$0xff] %v3945_v12  ;;  %3966 = vtanh.f32 %v2880_v63  ;;  %v2632_v63 = vld [vmem:[#allocation2 + $0x388] sm:$0xff]  ;;  %v2766_v6 = vmul.f32 %v4939_v57, %v2631_v59  ;;  %v2899_v15 = vadd.f32 %v4933_v55, %v2764_v62 }
 0x27f   : > { %v3949_v20 = vpop.eup %3948  ;;  %3126 = vst [vmem:[%s4457_s7 + $0x288] sm:$0xff] %v3947_v16  ;;  %3968 = vtanh.f32 %v2881_v3  ;;  %v2633_v3 = vld [vmem:[#allocation2 + $0x390] sm:$0xff]  ;;  %v2767_v12 = vmul.f32 %v4939_v57, %v2632_v63  ;;  %v2900_v19 = vadd.f32 %v4933_v55, %v2765_v2 }
 0x280   : > { %v3951_v24 = vpop.eup %3950  ;;  %3127 = vst [vmem:[%s4457_s7 + $0x290] sm:$0xff] %v3949_v20  ;;  %3970 = vtanh.f32 %v2882_v7  ;;  %v2634_v7 = vld [vmem:[#allocation2 + $0x398] sm:$0xff]  ;;  %v2768_v16 = vmul.f32 %v4939_v57, %v2633_v3  ;;  %v2901_v23 = vadd.f32 %v4933_v55, %v2766_v6 }
 0x281   : > { %v3953_v28 = vpop.eup %3952  ;;  %3128 = vst [vmem:[%s4457_s7 + $0x298] sm:$0xff] %v3951_v24  ;;  %3972 = vtanh.f32 %v2883_v13  ;;  %v2635_v13 = vld [vmem:[#allocation2 + $0x3a0] sm:$0xff]  ;;  %v2769_v20 = vmul.f32 %v4939_v57, %v2634_v7  ;;  %v2902_v27 = vadd.f32 %v4933_v55, %v2767_v12 }
 0x282   : > { %v3955_v32 = vpop.eup %3954  ;;  %3129 = vst [vmem:[%s4457_s7 + $0x2a0] sm:$0xff] %v3953_v28  ;;  %3974 = vtanh.f32 %v2884_v17  ;;  %v2636_v17 = vld [vmem:[#allocation2 + $0x3a8] sm:$0xff]  ;;  %v2770_v24 = vmul.f32 %v4939_v57, %v2635_v13  ;;  %v2903_v31 = vadd.f32 %v4933_v55, %v2768_v16 }
 0x283   : > { %v3957_v36 = vpop.eup %3956  ;;  %3130 = vst [vmem:[%s4457_s7 + $0x2a8] sm:$0xff] %v3955_v32  ;;  %3976 = vtanh.f32 %v2885_v21  ;;  %v2637_v21 = vld [vmem:[#allocation2 + $0x3b0] sm:$0xff]  ;;  %v2771_v28 = vmul.f32 %v4939_v57, %v2636_v17  ;;  %v2904_v35 = vadd.f32 %v4933_v55, %v2769_v20 }
 0x284   : > { %v3959_v40 = vpop.eup %3958  ;;  %3131 = vst [vmem:[%s4457_s7 + $0x2b0] sm:$0xff] %v3957_v36  ;;  %3978 = vtanh.f32 %v2886_v25  ;;  %v2638_v25 = vld [vmem:[#allocation2 + $0x3b8] sm:$0xff]  ;;  %v2772_v32 = vmul.f32 %v4939_v57, %v2637_v21  ;;  %v2905_v39 = vadd.f32 %v4933_v55, %v2770_v24 }
 0x285   : > { %v3961_v44 = vpop.eup %3960  ;;  %3132 = vst [vmem:[%s4457_s7 + $0x2b8] sm:$0xff] %v3959_v40  ;;  %3980 = vtanh.f32 %v2887_v29  ;;  %v2639_v29 = vld [vmem:[#allocation2 + $0x3c0] sm:$0xff]  ;;  %v2773_v36 = vmul.f32 %v4939_v57, %v2638_v25  ;;  %v2906_v43 = vadd.f32 %v4933_v55, %v2771_v28 }
 0x286   : > { %v3963_v48 = vpop.eup %3962  ;;  %3133 = vst [vmem:[%s4457_s7 + $0x2c0] sm:$0xff] %v3961_v44  ;;  %3982 = vtanh.f32 %v2888_v33  ;;  %v2640_v33 = vld [vmem:[#allocation2 + $0x3c8] sm:$0xff]  ;;  %v2774_v40 = vmul.f32 %v4939_v57, %v2639_v29  ;;  %v2907_v47 = vadd.f32 %v4933_v55, %v2772_v32 }
 0x287   : > { %v3965_v52 = vpop.eup %3964  ;;  %3134 = vst [vmem:[%s4457_s7 + $0x2c8] sm:$0xff] %v3963_v48  ;;  %3984 = vtanh.f32 %v2889_v37  ;;  %v2641_v37 = vld [vmem:[#allocation2 + $0x3d0] sm:$0xff]  ;;  %v2775_v44 = vmul.f32 %v4939_v57, %v2640_v33  ;;  %v2908_v51 = vadd.f32 %v4933_v55, %v2773_v36 }
 0x288   : > { %v3967_v10 = vpop.eup %3966  ;;  %3135 = vst [vmem:[%s4457_s7 + $0x2d0] sm:$0xff] %v3965_v52  ;;  %3986 = vtanh.f32 %v2890_v41  ;;  %v2642_v41 = vld [vmem:[#allocation2 + $0x3d8] sm:$0xff]  ;;  %v2776_v48 = vmul.f32 %v4939_v57, %v2641_v37  ;;  %v2909_v56 = vadd.f32 %v4933_v55, %v2774_v40 }
 0x289   : > { %v3969_v60 = vpop.eup %3968  ;;  %3136 = vst [vmem:[%s4457_s7 + $0x2d8] sm:$0xff] %v3967_v10  ;;  %3988 = vtanh.f32 %v2891_v45  ;;  %v2643_v45 = vld [vmem:[#allocation2 + $0x3e0] sm:$0xff]  ;;  %v2777_v52 = vmul.f32 %v4939_v57, %v2642_v41  ;;  %v2910_v59 = vadd.f32 %v4933_v55, %v2775_v44 }
 0x28a   : > { %v3971_v0 = vpop.eup %3970  ;;  %3137 = vst [vmem:[%s4457_s7 + $0x2e0] sm:$0xff] %v3969_v60  ;;  %3990 = vtanh.f32 %v2892_v49  ;;  %v2644_v49 = vld [vmem:[#allocation2 + $0x3e8] sm:$0xff]  ;;  %v2778_v10 = vmul.f32 %v4939_v57, %v2643_v45  ;;  %v2911_v62 = vadd.f32 %v4933_v55, %v2776_v48 }
 0x28b   : > { %v3973_v4 = vpop.eup %3972  ;;  %3138 = vst [vmem:[%s4457_s7 + $0x2e8] sm:$0xff] %v3971_v0  ;;  %3992 = vtanh.f32 %v2893_v53  ;;  %v2645_v53 = vld [vmem:[#allocation2 + $0x3f0] sm:$0xff]  ;;  %v2779_v60 = vmul.f32 %v4939_v57, %v2644_v49 }
 0x28c   : > { %v3975_v8 = vpop.eup %3974  ;;  %3139 = vst [vmem:[%s4457_s7 + $0x2f0] sm:$0xff] %v3973_v4  ;;  %3994 = vtanh.f32 %v2894_v11  ;;  %v2646_v11 = vld [vmem:[#allocation2 + $0x3f8] sm:$0xff]  ;;  %v2780_v63 = vmul.f32 %v4939_v57, %v2645_v53  ;;  %v2913_v4 = vadd.f32 %v4933_v55, %v2778_v10 }
 0x28d   : > { %v3977_v14 = vpop.eup %3976  ;;  %3140 = vst [vmem:[%s4457_s7 + $0x2f8] sm:$0xff] %v3975_v8  ;;  %3996 = vtanh.f32 %v2895_v61  ;;  %v2781_v2 = vmul.f32 %v4939_v57, %v2646_v11  ;;  %v2914_v6 = vadd.f32 %v4933_v55, %v2779_v60 }
 0x28e   : > { %v3979_v18 = vpop.eup %3978  ;;  %3141 = vst [vmem:[%s4457_s7 + $0x300] sm:$0xff] %v3977_v14  ;;  %3998 = vtanh.f32 %v2896_v1  ;;  %v2912_v1 = vadd.f32 %v4933_v55, %v2777_v52  ;;  %v2915_v8 = vadd.f32 %v4933_v55, %v2780_v63 }
 0x28f   : > { %v3981_v22 = vpop.eup %3980  ;;  %3142 = vst [vmem:[%s4457_s7 + $0x308] sm:$0xff] %v3979_v18  ;;  %4000 = vtanh.f32 %v2897_v5 }
 0x290   : > { %v3983_v26 = vpop.eup %3982  ;;  %3143 = vst [vmem:[%s4457_s7 + $0x310] sm:$0xff] %v3981_v22  ;;  %4002 = vtanh.f32 %v2898_v9  ;;  %v2916_v9 = vadd.f32 %v4933_v55, %v2781_v2 }
 0x291   : > { %v3985_v30 = vpop.eup %3984  ;;  %3144 = vst [vmem:[%s4457_s7 + $0x318] sm:$0xff] %v3983_v26  ;;  %4004 = vtanh.f32 %v2899_v15 }
 0x292   : > { %v3987_v34 = vpop.eup %3986  ;;  %3145 = vst [vmem:[%s4457_s7 + $0x320] sm:$0xff] %v3985_v30  ;;  %4006 = vtanh.f32 %v2900_v19 }
 0x293   : > { %v3989_v38 = vpop.eup %3988  ;;  %3146 = vst [vmem:[%s4457_s7 + $0x328] sm:$0xff] %v3987_v34  ;;  %4008 = vtanh.f32 %v2901_v23 }
 0x294   : > { %v3991_v42 = vpop.eup %3990  ;;  %3147 = vst [vmem:[%s4457_s7 + $0x330] sm:$0xff] %v3989_v38  ;;  %4010 = vtanh.f32 %v2902_v27 }
 0x295   : > { %v3993_v46 = vpop.eup %3992  ;;  %3148 = vst [vmem:[%s4457_s7 + $0x338] sm:$0xff] %v3991_v42  ;;  %4012 = vtanh.f32 %v2903_v31 }
 0x296   : > { %v3995_v50 = vpop.eup %3994  ;;  %3149 = vst [vmem:[%s4457_s7 + $0x340] sm:$0xff] %v3993_v46  ;;  %4014 = vtanh.f32 %v2904_v35 }
 0x297   : > { %v3997_v54 = vpop.eup %3996  ;;  %3150 = vst [vmem:[%s4457_s7 + $0x348] sm:$0xff] %v3995_v50  ;;  %4016 = vtanh.f32 %v2905_v39 }
 0x298   : > { %v3999_v58 = vpop.eup %3998  ;;  %3151 = vst [vmem:[%s4457_s7 + $0x350] sm:$0xff] %v3997_v54  ;;  %4018 = vtanh.f32 %v2906_v43 }
 0x299   : > { %v4001_v61 = vpop.eup %4000  ;;  %3152 = vst [vmem:[%s4457_s7 + $0x358] sm:$0xff] %v3999_v58  ;;  %4020 = vtanh.f32 %v2907_v47 }
 0x29a   : > { %v4003_v0 = vpop.eup %4002  ;;  %3153 = vst [vmem:[%s4457_s7 + $0x360] sm:$0xff] %v4001_v61  ;;  %4022 = vtanh.f32 %v2908_v51 }
 0x29b   : > { %v4005_v3 = vpop.eup %4004  ;;  %3154 = vst [vmem:[%s4457_s7 + $0x368] sm:$0xff] %v4003_v0  ;;  %4024 = vtanh.f32 %v2909_v56 }
 0x29c   : > { %v4007_v5 = vpop.eup %4006  ;;  %3155 = vst [vmem:[%s4457_s7 + $0x370] sm:$0xff] %v4005_v3  ;;  %4026 = vtanh.f32 %v2910_v59 }
 0x29d   : > { %v4009_v7 = vpop.eup %4008  ;;  %3156 = vst [vmem:[%s4457_s7 + $0x378] sm:$0xff] %v4007_v5  ;;  %4028 = vtanh.f32 %v2911_v62 }
 0x29e   : > { %v4011_v57 = vpop.eup %4010  ;;  %3157 = vst [vmem:[%s4457_s7 + $0x380] sm:$0xff] %v4009_v7  ;;  %4030 = vtanh.f32 %v2912_v1 }
 0x29f   : > { %v4013_v12 = vpop.eup %4012  ;;  %3158 = vst [vmem:[%s4457_s7 + $0x388] sm:$0xff] %v4011_v57  ;;  %4032 = vtanh.f32 %v2913_v4 }
 0x2a0   : > { %v4015_v13 = vpop.eup %4014  ;;  %3159 = vst [vmem:[%s4457_s7 + $0x390] sm:$0xff] %v4013_v12  ;;  %4034 = vtanh.f32 %v2914_v6 }
 0x2a1   : > { %v4017_v14 = vpop.eup %4016  ;;  %3160 = vst [vmem:[%s4457_s7 + $0x398] sm:$0xff] %v4015_v13  ;;  %4036 = vtanh.f32 %v2915_v8 }
 0x2a2   : > { %v4019_v15 = vpop.eup %4018  ;;  %3161 = vst [vmem:[%s4457_s7 + $0x3a0] sm:$0xff] %v4017_v14  ;;  %4038 = vtanh.f32 %v2916_v9 }
 0x2a3   : > { %v4021_v55 = vpop.eup %4020  ;;  %3162 = vst [vmem:[%s4457_s7 + $0x3a8] sm:$0xff] %v4019_v15 }
 0x2a4   : > { %v4023_v16 = vpop.eup %4022  ;;  %3163 = vst [vmem:[%s4457_s7 + $0x3b0] sm:$0xff] %v4021_v55 }
 0x2a5   : > { %v4025_v17 = vpop.eup %4024  ;;  %3164 = vst [vmem:[%s4457_s7 + $0x3b8] sm:$0xff] %v4023_v16 }
 0x2a6   : > { %v4027_v18 = vpop.eup %4026  ;;  %3165 = vst [vmem:[%s4457_s7 + $0x3c0] sm:$0xff] %v4025_v17 }
 0x2a7   : > { %v4029_v19 = vpop.eup %4028  ;;  %3166 = vst [vmem:[%s4457_s7 + $0x3c8] sm:$0xff] %v4027_v18 }
 0x2a8   : > { %v4031_v20 = vpop.eup %4030  ;;  %3167 = vst [vmem:[%s4457_s7 + $0x3d0] sm:$0xff] %v4029_v19 }
 0x2a9   : > { %v4033_v21 = vpop.eup %4032  ;;  %3168 = vst [vmem:[%s4457_s7 + $0x3d8] sm:$0xff] %v4031_v20 }
 0x2aa   : > { %v4035_v22 = vpop.eup %4034  ;;  %3169 = vst [vmem:[%s4457_s7 + $0x3e0] sm:$0xff] %v4033_v21 }
 0x2ab   : > { %v4037_v23 = vpop.eup %4036  ;;  %3170 = vst [vmem:[%s4457_s7 + $0x3e8] sm:$0xff] %v4035_v22 }
 0x2ac   : > { %v4039_v24 = vpop.eup %4038  ;;  %3171 = vst [vmem:[%s4457_s7 + $0x3f0] sm:$0xff] %v4037_v23 }
 0x2ad   : > { %3172 = vst [vmem:[%s4457_s7 + $0x3f8] sm:$0xff] %v4039_v24 }
 0x2ae PF: > { %s14_s21 = sadd.s32 1, %s4096_s21   ;;  %s5093_s15 = smov %s4076_s16 }
 0x2af   : > { %p11_p0 = scmp.ge.s32.totalorder %s14_s21, 20   ;;  %s5094_s16 = smov %s4175_s28 }
 0x2b0   : > { %s5095_s17 = smov %s4088_s19  ;;  %s5096_s18 = smov %s4092_s20 }
 0x2b1   : > { %s5097_s19 = smov %s5100_s22  ;;  %s5098_s20 = smov %s5104_s23 }
 0x2b2   :  { %13 = sbr.rel (!%p11_p0) target bundleno = 4 (0x4), region = 129 }

</bundles_post_ra>
